<compile_context>
chip_gen: v7x
topology: tpu7x:2x2x1
jax: 0.10.0
libtpu: 0.0.40
codegen_flags: <defaults>
</compile_context>

<pallas_src>
import functools
import math

import jax
import jax.numpy as jnp
from jax.experimental import pallas as pl
from jax.experimental.pallas import tpu as pltpu

# Module constants (from the PyTorch source)
BLOCK_SIZE = 256
N_EMBD = 64
N_HEADS = 8
D_K = N_EMBD // N_HEADS

VMEM_LIMIT_BYTES = 32 * 1024 * 1024   # explicit scoped-VMEM limit (all gens)
VMEM_TILE_BUDGET = 24 * 1024 * 1024   # headroom under the scoped limit


def _mha_kernel(x_ref, wqkv_ref, bqkv_ref, wo_ref, bo_ref, o_ref, *,
                bb, seq, n_heads):
    """One grid step processes `bb` batch elements of length `seq`.

    x_ref    : (bb*seq, C)
    wqkv_ref : (C, 3C)   columns permuted to [Q_all | K_all | V_all]
    bqkv_ref : (1, 3C)   same permutation
    wo_ref   : (C, C)    bo_ref : (1, C)
    o_ref    : (bb*seq, C)
    """
    C = x_ref.shape[-1]
    d_k = C // n_heads
    scale = 1.0 / math.sqrt(d_k)

    # ---- fused QKV projection: one MXU matmul (M=bb*seq, K=C, N=3C) ----
    x = x_ref[...]                                                     # (bb*seq, C)
    qkv = jnp.dot(x, wqkv_ref[...],
                  preferred_element_type=jnp.float32) + bqkv_ref[...]  # (bb*seq, 3C)

    # 64-lane-aligned slices (columns were pre-permuted in the wrapper), then
    # fold heads into the batch dim so each attention stage is ONE batched
    # dot_general instead of an unrolled per-head loop.
    def heads_of(col0):
        t = qkv[:, col0:col0 + C]                                      # (bb*seq, C)
        t = t.reshape(bb, seq, n_heads, d_k)
        return jnp.swapaxes(t, 1, 2).reshape(bb * n_heads, seq, d_k)

    q = heads_of(0)            # (bb*H, seq, d_k)
    k = heads_of(C)
    v = heads_of(2 * C)

    # ---- scores for all heads in one batched matmul ----
    s = jnp.einsum('ztd,zsd->zts', q, k,
                   preferred_element_type=jnp.float32) * scale         # (bb*H, seq, seq)

    # causal mask as an additive bias, built once per block, shared by all heads
    row = jax.lax.broadcasted_iota(jnp.int32, (seq, seq), 0)
    col = jax.lax.broadcasted_iota(jnp.int32, (seq, seq), 1)
    bias = jnp.where(col <= row, 0.0, -1e30).astype(jnp.float32)       # (seq, seq)
    s = s + bias[None, :, :]

    # ---- softmax, with normalization applied AFTER the PV matmul ----
    m = jnp.max(s, axis=-1, keepdims=True)
    p = jnp.exp(s - m)                                                 # unnormalized
    denom = jnp.sum(p, axis=-1, keepdims=True)
    r = pl.reciprocal(denom, approx=True)                              # EUP
    r = r * (2.0 - denom * r)                                          # 1 Newton step -> ~f32

    oh = jnp.einsum('zts,zsd->ztd', p, v,
                    preferred_element_type=jnp.float32) * r            # (bb*H, seq, d_k)

    # ---- heads -> (bb*seq, C); ONE fused output projection; single store ----
    att = jnp.swapaxes(oh.reshape(bb, n_heads, seq, d_k), 1, 2).reshape(bb * seq, C)
    o_ref[...] = (jnp.dot(att, wo_ref[...],
                          preferred_element_type=jnp.float32) + bo_ref[...])


def _qkv_column_permutation(C, n_heads):
    """Columns of the fused QKV weight: per-head-interleaved [q_h|k_h|v_h]
    (the PyTorch module's chunking) -> [Q_all | K_all | V_all], head-major."""
    d_k = C // n_heads
    h = jnp.arange(n_heads)[:, None] * (3 * d_k)
    d = jnp.arange(d_k)[None, :]
    return jnp.concatenate([(h + kind * d_k + d).reshape(-1) for kind in range(3)])


def _estimate_vmem_bytes(bb, T, C, n_heads):
    """Rough f32 transient footprint of one grid step (lane padding included)."""
    H, f32 = n_heads, 4
    qkv = bb * T * 3 * C * f32
    heads = 3 * bb * H * T * 128 * f32          # q/k/v: d_k=8 lane-padded to 128
    scores = 2 * bb * H * T * T * f32           # s and p
    io = 2 * 2 * bb * T * C * f32               # double-buffered x / out blocks
    weights = (3 * C * C + C * C + 4 * C) * f32
    return qkv + heads + scores + io + weights


def _pick_block_batch(B, T, C, n_heads, budget_bytes):
    """Largest batch tile that fits the VMEM budget while keeping grid >= 2
    (so the 'parallel' batch axis feeds both TensorCores on v7x)."""
    best = 1
    for bb in range(1, B + 1):
        if B % bb:
            continue
        if B >= 2 and B // bb < 2:
            break
        if _estimate_vmem_bytes(bb, T, C, n_heads) <= budget_bytes:
            best = bb
    return best


def multi_head_attention(x, w_qkv, b_qkv, w_out, b_out,
                         n_heads=N_HEADS, block_batch=None):
    """x: (B, T, C) f32.  w_qkv: (C, 3C), b_qkv: (3C,), w_out: (C, C), b_out: (C,).

    Weights are stored transposed w.r.t. PyTorch (`linear.weight.T`), with the
    fused-QKV columns in the module's per-head-interleaved order (reshape to
    heads, then chunk into q/k/v) — exactly matching the reference forward.
    """
    B, T, C = x.shape
    bb = block_batch or _pick_block_batch(B, T, C, n_heads, VMEM_TILE_BUDGET)
    assert B % bb == 0

    # Free trace-time relayout so the kernel sees [Q|K|V] (head-major chunks).
    perm = _qkv_column_permutation(C, n_heads)
    w_qkv_p = w_qkv[:, perm]
    b_qkv_p = b_qkv[perm].reshape(1, 3 * C)
    b_out2 = b_out.reshape(1, C)

    x2d = x.reshape(B * T, C)

    kernel = functools.partial(_mha_kernel, bb=bb, seq=T, n_heads=n_heads)

    out2d = pl.pallas_call(
        kernel,
        out_shape=jax.ShapeDtypeStruct((B * T, C), jnp.float32),
        grid_spec=pltpu.PrefetchScalarGridSpec(
            num_scalar_prefetch=0,
            grid=(B // bb,),
            in_specs=[
                pl.BlockSpec((bb * T, C), lambda i: (i, 0)),    # x (batch tile)
                pl.BlockSpec((C, 3 * C), lambda i: (0, 0)),     # w_qkv (resident)
                pl.BlockSpec((1, 3 * C), lambda i: (0, 0)),     # b_qkv (resident)
                pl.BlockSpec((C, C), lambda i: (0, 0)),         # w_out (resident)
                pl.BlockSpec((1, C), lambda i: (0, 0)),         # b_out (resident)
            ],
            out_specs=pl.BlockSpec((bb * T, C), lambda i: (i, 0)),
        ),
        compiler_params=pltpu.CompilerParams(
            dimension_semantics=("parallel",),
            vmem_limit_bytes=VMEM_LIMIT_BYTES,
        ),
    )(x2d, w_qkv_p, b_qkv_p, w_out, b_out2)

    return out2d.reshape(B, T, C)


def reference_mha(x, w_qkv, b_qkv, w_out, b_out, n_heads=N_HEADS):
    """Pure-JAX replica of the PyTorch forward for verification."""
    B, T, C = x.shape
    d_k = C // n_heads
    qkv = x @ w_qkv + b_qkv                                 # (B, T, 3C)
    qkv = qkv.reshape(B, T, n_heads, 3 * d_k).transpose(0, 2, 1, 3)
    q, k, v = jnp.split(qkv, 3, axis=-1)
    s = (q @ jnp.swapaxes(k, -2, -1)) / math.sqrt(d_k)
    tril = jnp.tril(jnp.ones((T, T), jnp.float32))
    s = jnp.where(tril == 0, -jnp.inf, s)
    a = jax.nn.softmax(s, axis=-1)
    out = (a @ v).transpose(0, 2, 1, 3).reshape(B, T, C)
    return out @ w_out + b_out


if __name__ == "__main__":
    key = jax.random.PRNGKey(0)
    k_x, k_wqkv, k_bqkv, k_wo, k_bo = jax.random.split(key, 5)

    B, T, C = 4, 32, N_EMBD
    x = jax.random.normal(k_x, (B, T, C), dtype=jnp.float32)

    # Deterministic synthetic parameters (stored transposed vs PyTorch: (in, out)).
    w_qkv = jax.random.normal(k_wqkv, (C, 3 * C), dtype=jnp.float32) * 0.05
    b_qkv = jax.random.normal(k_bqkv, (3 * C,), dtype=jnp.float32) * 0.05
    w_out = jax.random.normal(k_wo, (C, C), dtype=jnp.float32) * 0.05
    b_out = jax.random.normal(k_bo, (C,), dtype=jnp.float32) * 0.05

    out = jax.block_until_ready(multi_head_attention(x, w_qkv, b_qkv, w_out, b_out))
    ref = jax.block_until_ready(reference_mha(x, w_qkv, b_qkv, w_out, b_out))

    assert out.shape == (B, T, C)
    assert jnp.allclose(out, ref, atol=2e-4, rtol=2e-4), "mismatch vs JAX reference"

    print("KERNEL_OK")
</pallas_src>

<mosaic_0001>
module attributes {stable_mosaic.version = 11 : i64} {
  func.func @_mha_kernel(%arg0: i32, %arg1: memref<64x64xf32, #tpu.memory_space<vmem>>, %arg2: memref<64x192xf32, #tpu.memory_space<vmem>>, %arg3: memref<1x192xf32, #tpu.memory_space<vmem>>, %arg4: memref<64x64xf32, #tpu.memory_space<vmem>>, %arg5: memref<1x64xf32, #tpu.memory_space<vmem>>, %arg6: memref<64x64xf32, #tpu.memory_space<vmem>>) attributes {dimension_semantics = [#tpu.dimension_semantics<parallel>], iteration_bounds = array<i64: 2>, scalar_prefetch = 0 : i64, scratch_operands = 0 : i64, tpu.core_type = #tpu.core_type<tc>, window_params = [{transform_indices = @transform_0, window_bounds = array<i64: 64, 64>}, {pipeline_mode = #tpu.pipeline_mode<synchronous>, transform_indices = @transform_1, window_bounds = array<i64: 64, 192>}, {pipeline_mode = #tpu.pipeline_mode<synchronous>, transform_indices = @transform_2, window_bounds = array<i64: 1, 192>}, {pipeline_mode = #tpu.pipeline_mode<synchronous>, transform_indices = @transform_3, window_bounds = array<i64: 64, 64>}, {pipeline_mode = #tpu.pipeline_mode<synchronous>, transform_indices = @transform_4, window_bounds = array<i64: 1, 64>}, {transform_indices = @transform_5, window_bounds = array<i64: 64, 64>}]} {
    %c0 = arith.constant 0 : index
    %c0_0 = arith.constant 0 : index
    %0 = vector.load %arg1[%c0, %c0_0] : memref<64x64xf32, #tpu.memory_space<vmem>>, vector<64x64xf32>
    %c0_1 = arith.constant 0 : index
    %c0_2 = arith.constant 0 : index
    %1 = vector.load %arg2[%c0_1, %c0_2] : memref<64x192xf32, #tpu.memory_space<vmem>>, vector<64x192xf32>
    %cst = arith.constant dense<0.000000e+00> : vector<64x192xf32>
    %2 = tpu.matmul %0, %1, %cst {dimension_numbers = #tpu.dot_dimension_numbers<[1], [0], [0], [1], [0, 0, 1, 1], [], []>} : vector<64x64xf32>, vector<64x192xf32>, vector<64x192xf32> -> vector<64x192xf32>
    %c0_3 = arith.constant 0 : index
    %c0_4 = arith.constant 0 : index
    %3 = vector.load %arg3[%c0_3, %c0_4] : memref<1x192xf32, #tpu.memory_space<vmem>>, vector<1x192xf32>
    %4 = vector.broadcast %3 : vector<1x192xf32> to vector<64x192xf32>
    %5 = arith.addf %2, %4 : vector<64x192xf32>
    %6 = vector.extract_strided_slice %5 {offsets = [0, 0], sizes = [64, 64], strides = [1, 1]} : vector<64x192xf32> to vector<64x64xf32>
    %7 = vector.shape_cast %6 : vector<64x64xf32> to vector<2x32x8x8xf32>
    %8 = tpu.transpose %7, [0, 2, 1, 3] : vector<2x32x8x8xf32> -> vector<2x8x32x8xf32>
    %9 = vector.shape_cast %8 : vector<2x8x32x8xf32> to vector<16x32x8xf32>
    %10 = vector.extract_strided_slice %5 {offsets = [0, 64], sizes = [64, 64], strides = [1, 1]} : vector<64x192xf32> to vector<64x64xf32>
    %11 = vector.shape_cast %10 : vector<64x64xf32> to vector<2x32x8x8xf32>
    %12 = tpu.transpose %11, [0, 2, 1, 3] : vector<2x32x8x8xf32> -> vector<2x8x32x8xf32>
    %13 = vector.shape_cast %12 : vector<2x8x32x8xf32> to vector<16x32x8xf32>
    %14 = vector.extract_strided_slice %5 {offsets = [0, 128], sizes = [64, 64], strides = [1, 1]} : vector<64x192xf32> to vector<64x64xf32>
    %15 = vector.shape_cast %14 : vector<64x64xf32> to vector<2x32x8x8xf32>
    %16 = tpu.transpose %15, [0, 2, 1, 3] : vector<2x32x8x8xf32> -> vector<2x8x32x8xf32>
    %17 = vector.shape_cast %16 : vector<2x8x32x8xf32> to vector<16x32x8xf32>
    "tpu.trace_start"() <{level = 10 : i32, message = "ztd,zsd->zts"}> : () -> ()
    %cst_5 = arith.constant dense<0.000000e+00> : vector<16x32x32xf32>
    %18 = tpu.matmul %9, %13, %cst_5 {dimension_numbers = #tpu.dot_dimension_numbers<[2], [2], [1], [1], [0, 0, 0, 1, 1, 1], [0], [0]>} : vector<16x32x8xf32>, vector<16x32x8xf32>, vector<16x32x32xf32> -> vector<16x32x32xf32>
    "tpu.trace_stop"() : () -> ()
    %cst_6 = arith.constant 0.353553385 : f32
    %19 = vector.broadcast %cst_6 : f32 to vector<16x32x32xf32>
    %20 = arith.mulf %18, %19 : vector<16x32x32xf32>
    %21 = tpu.iota {dimensions = array<i32: 0>} : vector<32x32xi32>
    %22 = tpu.iota {dimensions = array<i32: 1>} : vector<32x32xi32>
    %23 = arith.cmpi sle, %22, %21 : vector<32x32xi32>
    %cst_7 = arith.constant 0.000000e+00 : f32
    %cst_8 = arith.constant -1.000000e+30 : f32
    %24 = vector.broadcast %cst_7 : f32 to vector<32x32xf32>
    %25 = vector.broadcast %cst_8 : f32 to vector<32x32xf32>
    %26 = arith.select %23, %24, %25 : vector<32x32xi1>, vector<32x32xf32>
    %27 = vector.shape_cast %26 : vector<32x32xf32> to vector<1x32x32xf32>
    %28 = vector.broadcast %27 : vector<1x32x32xf32> to vector<16x32x32xf32>
    %29 = arith.addf %20, %28 : vector<16x32x32xf32>
    %cst_9 = arith.constant dense<0xFF800000> : vector<16x32xf32>
    %30 = vector.multi_reduction <maximumf>, %29, %cst_9 [2] : vector<16x32x32xf32> to vector<16x32xf32>
    %31 = vector.shape_cast %30 : vector<16x32xf32> to vector<16x32x1xf32>
    %32 = vector.broadcast %31 : vector<16x32x1xf32> to vector<16x32x32xf32>
    %33 = arith.subf %29, %32 : vector<16x32x32xf32>
    %34 = math.exp %33 : vector<16x32x32xf32>
    %cst_10 = arith.constant dense<0.000000e+00> : vector<16x32xf32>
    %35 = vector.multi_reduction <add>, %34, %cst_10 [2] : vector<16x32x32xf32> to vector<16x32xf32>
    %36 = vector.shape_cast %35 : vector<16x32xf32> to vector<16x32x1xf32>
    %37 = tpu.reciprocal %36 {approx = true} : vector<16x32x1xf32> -> vector<16x32x1xf32>
    %38 = arith.mulf %36, %37 : vector<16x32x1xf32>
    %cst_11 = arith.constant 2.000000e+00 : f32
    %39 = vector.broadcast %cst_11 : f32 to vector<16x32x1xf32>
    %40 = arith.subf %39, %38 : vector<16x32x1xf32>
    %41 = arith.mulf %37, %40 : vector<16x32x1xf32>
    "tpu.trace_start"() <{level = 10 : i32, message = "zts,zsd->ztd"}> : () -> ()
    %cst_12 = arith.constant dense<0.000000e+00> : vector<16x32x8xf32>
    %42 = tpu.matmul %34, %17, %cst_12 {dimension_numbers = #tpu.dot_dimension_numbers<[2], [1], [1], [2], [0, 0, 0, 1, 1, 2], [0], [0]>} : vector<16x32x32xf32>, vector<16x32x8xf32>, vector<16x32x8xf32> -> vector<16x32x8xf32>
    "tpu.trace_stop"() : () -> ()
    %43 = vector.broadcast %41 : vector<16x32x1xf32> to vector<16x32x8xf32>
    %44 = arith.mulf %42, %43 : vector<16x32x8xf32>
    %45 = vector.shape_cast %44 : vector<16x32x8xf32> to vector<2x8x32x8xf32>
    %46 = tpu.transpose %45, [0, 2, 1, 3] : vector<2x8x32x8xf32> -> vector<2x32x8x8xf32>
    %47 = vector.shape_cast %46 : vector<2x32x8x8xf32> to vector<64x64xf32>
    %c0_13 = arith.constant 0 : index
    %c0_14 = arith.constant 0 : index
    %48 = vector.load %arg4[%c0_13, %c0_14] : memref<64x64xf32, #tpu.memory_space<vmem>>, vector<64x64xf32>
    %cst_15 = arith.constant dense<0.000000e+00> : vector<64x64xf32>
    %49 = tpu.matmul %47, %48, %cst_15 {dimension_numbers = #tpu.dot_dimension_numbers<[1], [0], [0], [1], [0, 0, 1, 1], [], []>} : vector<64x64xf32>, vector<64x64xf32>, vector<64x64xf32> -> vector<64x64xf32>
    %c0_16 = arith.constant 0 : index
    %c0_17 = arith.constant 0 : index
    %50 = vector.load %arg5[%c0_16, %c0_17] : memref<1x64xf32, #tpu.memory_space<vmem>>, vector<1x64xf32>
    %51 = vector.broadcast %50 : vector<1x64xf32> to vector<64x64xf32>
    %52 = arith.addf %49, %51 : vector<64x64xf32>
    %c0_18 = arith.constant 0 : index
    %c0_19 = arith.constant 0 : index
    %53 = vector.load %arg6[%c0_18, %c0_19] : memref<64x64xf32, #tpu.memory_space<vmem>>, vector<64x64xf32>
    tpu.vector_store %arg6[%c0_18, %c0_19], %52 {strides = array<i32>} : memref<64x64xf32, #tpu.memory_space<vmem>>, vector<64x64xf32>,
    return
  }
  func.func @transform_0(%arg0: i32) -> (i32, i32) {
    %c0_i32 = arith.constant 0 : i32
    %c0_i32_0 = arith.constant 0 : i32
    return %arg0, %c0_i32 : i32, i32
  }
  func.func @transform_1(%arg0: i32) -> (i32, i32) {
    %c0_i32 = arith.constant 0 : i32
    %c0_i32_0 = arith.constant 0 : i32
    %c0_i32_1 = arith.constant 0 : i32
    return %c0_i32, %c0_i32_0 : i32, i32
  }
  func.func @transform_2(%arg0: i32) -> (i32, i32) {
    %c0_i32 = arith.constant 0 : i32
    %c0_i32_0 = arith.constant 0 : i32
    %c0_i32_1 = arith.constant 0 : i32
    return %c0_i32, %c0_i32_0 : i32, i32
  }
  func.func @transform_3(%arg0: i32) -> (i32, i32) {
    %c0_i32 = arith.constant 0 : i32
    %c0_i32_0 = arith.constant 0 : i32
    %c0_i32_1 = arith.constant 0 : i32
    return %c0_i32, %c0_i32_0 : i32, i32
  }
  func.func @transform_4(%arg0: i32) -> (i32, i32) {
    %c0_i32 = arith.constant 0 : i32
    %c0_i32_0 = arith.constant 0 : i32
    %c0_i32_1 = arith.constant 0 : i32
    return %c0_i32, %c0_i32_0 : i32, i32
  }
  func.func @transform_5(%arg0: i32) -> (i32, i32) {
    %c0_i32 = arith.constant 0 : i32
    %c0_i32_0 = arith.constant 0 : i32
    return %arg0, %c0_i32 : i32, i32
  }
}

</mosaic_0001>

<bundles_post_ra>
// kernel: tpu_custom_call.1
= control target key start
LH: loop header
LB: loop body
LE: loop exit
PB: predicated region body
PF: predicated region fallthrough
CT: control target
= control target key end

     0   :  { %s16404_s18 = smov 0   ;;  %s22809_s0 = inlined_call_operand.vmem [shape: f32[128,64], index: 0, kind: input, shape index: {}]   ;;  %s22810_s1 = inlined_call_operand.vmem [shape: f32[64,192], index: 1, kind: input, shape index: {}]   ;;  %s22811_s2 = inlined_call_operand.vmem [shape: f32[1,192], index: 2, kind: input, shape index: {}]   ;;  %s22812_s3 = inlined_call_operand.vmem [shape: f32[64,64], index: 3, kind: input, shape index: {}]   ;;  %s22813_s4 = inlined_call_operand.vmem [shape: f32[1,64], index: 4, kind: input, shape index: {}]   ;;  %s22814_s5 = inlined_call_operand.vmem [shape: f32[128,64], index: 5, kind: output, shape index: {}]  }
   0x1 LB: > { %s14480_s19 = sadd.s32 4294967295, %s16353_s18   ;;  %p14484_p0 = scmp.ge.s32.totalorder %s16353_s18, 1  ;;  %s16353_s18 = sphi %s16404_s18, %s15_s18  }
   0x2   : > { %p188_p1 = scmp.lt.s32.totalorder %s16353_s18, 3 }
   0x4   : > { %p189_p2 = pnand %p14484_p0, %p188_p1 }
   0x6   : > { %192 = sbr.rel (%p189_p2) target bundleno = 1798 (0x706), region = 40 }
   0xd   : > { %v237_v0 = vld [vmem:[%s22810_s1 + $0x8] sm:$0xff]  ;;  %v239_v1 = vld [vmem:[%s22810_s1 + $0x18] sm:$0xff]  ;;  %v236_v2 = vld [vmem:[%s22810_s1] sm:$0xff]  ;;  %s14485_s26 = sshll.u32 %s14480_s19, 3  ;;  %v16355_v7 = vmov 0.0   ;;  %vm264_vm0 = vcmask 523264   ;;  %v22815_v33 = vlaneseq }
   0xe   : > { %v15704_v3 = vpack.c.bf16 %v239_v1, %v237_v0  ;;  %v238_v4 = vld [vmem:[%s22810_s1 + $0x10] sm:$0xff]  ;;  %v241_v5 = vld [vmem:[%s22810_s1 + $0x28] sm:$0xff]  ;;  %v243_v6 = vld [vmem:[%s22810_s1 + $0x38] sm:$0xff]  ;;  %353 = vmatprep.mubr.f32.mxu0 %v16355_v7  ;;  %377 = vmatprep.mubr.f32.mxu1 %v16355_v7  ;;  %p217_p3 = scmp.lt.s32.totalorder %s14485_s26, 15  ;;  %s16356_s11 = smov 112   ;;  %vm7474_vm1 = vcmask 64512  }
   0xf   : > { %v15706_v8 = vpack.c.bf16 %v238_v4, %v236_v2  ;;  %v15708_v9 = vpack.c.bf16 %v243_v6, %v241_v5  ;;  %v240_v10 = vld [vmem:[%s22810_s1 + $0x20] sm:$0xff]  ;;  %v242_v11 = vld [vmem:[%s22810_s1 + $0x30] sm:$0xff]  ;;  %v245_v12 = vld [vmem:[%s22810_s1 + $0x48] sm:$0xff]  ;;  %v16478_v34 = vshrl.u32 %v22815_v33, 7  ;;  %s16357_s12 = smov 120   ;;  %s16358_s13 = smov 104  }
  0x10   : > { %15705 = vmatprep.subr.bf16.mxu0 %v15704_v3  ;;  %v247_v13 = vld [vmem:[%s22810_s1 + $0x58] sm:$0xff]  ;;  %16056 = vmatprep.subr.bf16.mxu1 %v15704_v3  ;;  %v15710_v14 = vpack.c.bf16 %v242_v11, %v240_v10  ;;  %v244_v16 = vld [vmem:[%s22810_s1 + $0x40] sm:$0xff]  ;;  %v246_v17 = vld [vmem:[%s22810_s1 + $0x50] sm:$0xff]  ;;  %s23622_s26 = smov (!%p217_p3, %s14485_s26), 15  ;;  %s16359_s14 = smov 96   ;;  %vm9362_vm5 = vcmask 261120  }
  0x11   : > { %15707 = vmatpush1.bf16.msra.mxu0 %v15706_v8  ;;  %16060 = vmatpush1.bf16.msra.mxu1 %v15706_v8  ;;  %v15712_v15 = vpack.c.bf16 %v247_v13, %v245_v12  ;;  %v249_v18 = vld [vmem:[%s22810_s1 + $0x68] sm:$0xff]  ;;  %v251_v19 = vld [vmem:[%s22810_s1 + $0x78] sm:$0xff]  ;;  %v15714_v20 = vpack.c.bf16 %v246_v17, %v244_v16  ;;  %v248_v22 = vld [vmem:[%s22810_s1 + $0x60] sm:$0xff]  ;;  %s14486_s30 = sshll.u32 %s23622_s26, 3  ;;  %23063 = vst [vmem:[#allocation2_spill] sm:$0xff] %v16478_v34  ;;  %v256_v35 = vsub.s32 0, %v16478_v34 }
  0x12   : > { %15709 = vmatprep.subr.bf16.mxu0 %v15708_v9  ;;  %16057 = vmatprep.subr.bf16.mxu1 %v15708_v9  ;;  %v15716_v21 = vpack.c.bf16 %v251_v19, %v249_v18  ;;  %v250_v23 = vld [vmem:[%s22810_s1 + $0x70] sm:$0xff]  ;;  %s220_s8 = scalar_lea.vmem %s22809_s0, %s14486_s30  ;;  %v16484_v36 = vld [vmem:[%s22811_s2] sm:$0x3]  ;;  %s16360_s15 = smov 88   ;;  %v16364_v62 = vmov 1983009808   ;;  %vm17639_vm2 = vmpackc.low %vm7474_vm1, %vm7474_vm1 }
  0x13   : > { %v15718_v24 = vpack.c.bf16 %v250_v23, %v248_v22  ;;  %v228_v25 = vld [vmem:[%s220_s8] sm:$0xff]  ;;  %v229_v27 = vld [vmem:[%s220_s8 + $0x8] sm:$0xff]  ;;  %v230_v29 = vld [vmem:[%s220_s8 + $0x10] sm:$0xff]  ;;  %v257_v37 = vrot.slane %v16484_v36, %v256_v35  ;;  %s16361_s16 = smov 80   ;;  %s16362_s17 = smov 72   ;;  %v581_v63 = vunpack.c.l.s4 %v16364_v62  ;;  %vm14219_vm8 = vcmask 130048  }
  0x14   : > { %v232_v26 = vld [vmem:[%s220_s8 + $0x20] sm:$0xff]  ;;  %v233_v28 = vld [vmem:[%s220_s8 + $0x28] sm:$0xff]  ;;  %v234_v30 = vld [vmem:[%s220_s8 + $0x30] sm:$0xff]  ;;  %s16363_s19 = smov 64   ;;  %v16365_v0 = vmov 1934713408  }
  0x15   : > { %15711 = vmatpush1.bf16.msra.mxu0 %v15710_v14  ;;  %16061 = vmatpush1.bf16.msra.mxu1 %v15710_v14  ;;  %v231_v31 = vld [vmem:[%s220_s8 + $0x18] sm:$0xff]  ;;  %v645_v1 = vunpack.c.l.s4 %v16365_v0  ;;  %v582_v2 = vunpack.c.0.s8 %v581_v63  ;;  %s16367_s20 = smov 16   ;;  %s16368_s21 = smov 8   ;;  %vm14228_vm9 = vcmask 195584   ;;  %vm14245_vm10 = vcmask 326656  }
  0x16   : > { %15713 = vmatprep.subr.bf16.mxu0 %v15712_v15  ;;  %16058 = vmatprep.subr.bf16.mxu1 %v15712_v15  ;;  %v235_v32 = vld [vmem:[%s220_s8 + $0x38] sm:$0xff]  ;;  %s16369_s22 = smov 24   ;;  %s16370_s23 = smov 32   ;;  %vm14254_vm11 = vcmask 392192   ;;  %vm14263_vm12 = vcmask 457728  }
  0x17   : > { %v646_v5 = vunpack.c.0.s8 %v645_v1  ;;  %v16609_v6 = vsub.s32 %v582_v2, %v16478_v34  ;;  %s16371_s24 = smov 40   ;;  %s16372_s25 = smov 48  }
  0x18   : > { %s16373_s27 = smov 56  }
  0x19   : > { %15715 = vmatpush1.bf16.msra.mxu0 %v15714_v20  ;;  %16062 = vmatpush1.bf16.msra.mxu1 %v15714_v20  ;;  %23064 = vst [vmem:[#allocation3_spill] sm:$0xff] %v16609_v6  ;;  %v16617_v13 = vsub.s32 %v646_v5, %v16478_v34 }
  0x1a   : > { %15717 = vmatprep.subr.bf16.mxu0 %v15716_v21  ;;  %16059 = vmatprep.subr.bf16.mxu1 %v15716_v21 }
  0x1d   : > { %15719 = vmatpush1.bf16.msra.mxu0 %v15718_v24  ;;  %16063 = vmatpush1.bf16.msra.mxu1 %v15718_v24 }
  0x20   : > { %14489 = vmatmul.mubr.msk.f32.vlgmr.msra.gmra.mrb[0].mxu0 %vm264_vm0, %v228_v25  ;;  %14493 = vmatmul.mubr.msk.f32.vlgmr.msra.gmra.mrb[0].mxu1 %vm264_vm0, %v232_v26 }
  0x21   : > { %359 = vmatprep.mubr.f32.mxu0 %v16355_v7  ;;  %383 = vmatprep.mubr.f32.mxu1 %v16355_v7 }
  0x24   : > { %14490 = vmatmul.mubr.msk.f32.gmra.mrb[2].mxu0 %vm264_vm0, %v229_v27  ;;  %14494 = vmatmul.mubr.msk.f32.gmra.mrb[2].mxu1 %vm264_vm0, %v233_v28 }
  0x25   : > { %365 = vmatprep.mubr.f32.mxu0 %v16355_v7  ;;  %389 = vmatprep.mubr.f32.mxu1 %v16355_v7 }
  0x28   : > { %14491 = vmatmul.mubr.msk.f32.gmra.mrb[4].mxu0 %vm264_vm0, %v230_v29  ;;  %14495 = vmatmul.mubr.msk.f32.gmra.mrb[4].mxu1 %vm264_vm0, %v234_v30 }
  0x29   : > { %371 = vmatprep.mubr.f32.mxu0 %v16355_v7  ;;  %395 = vmatprep.mubr.f32.mxu1 %v16355_v7 }
  0x2c   : > { %14492 = vmatmul.mubr.msk.f32.gmra.mrb[6].mxu0 %vm264_vm0, %v231_v31  ;;  %14496 = vmatmul.mubr.msk.f32.gmra.mrb[6].mxu1 %vm264_vm0, %v235_v32 }
  0xf3   : > { %v355_v38 = vpop.f32.mrb[0].mxu0  ;;  %v379_v39 = vpop.f32.mrb[0].mxu1 }
  0xf4   : > { %v16487_v40 = vadd.f32 %v355_v38, %v257_v37  ;;  %v16489_v41 = vpop.f32.mrb[1].mxu0  ;;  %v16491_v42 = vpop.f32.mrb[1].mxu1  ;;  %v16535_v58 = vadd.f32 %v379_v39, %v257_v37 }
  0xf6   : > { %434 = vrot.lane.b32.xlu1 %v16487_v40, %s16356_s11  ;;  %410 = vrot.lane.b32.xlu0 %v16487_v40, %s16357_s12 }
  0xf7   : > { %v361_v43 = vpop.f32.mrb[2].mxu0  ;;  %v385_v44 = vpop.f32.mrb[2].mxu1 }
  0xf8   : > { %v16497_v45 = vadd.f32 %v361_v43, %v257_v37  ;;  %v16499_v46 = vpop.f32.mrb[3].mxu0  ;;  %v16501_v47 = vpop.f32.mrb[3].mxu1  ;;  %v16545_v59 = vadd.f32 %v385_v44, %v257_v37 }
  0xfa   : > { %436 = vrot.lane.b32.xlu1 %v16497_v45, %s16356_s11  ;;  %458 = vrot.lane.b32.xlu0 %v16487_v40, %s16358_s13 }
  0xfb   : > { %v367_v48 = vpop.f32.mrb[4].mxu0  ;;  %v391_v49 = vpop.f32.mrb[4].mxu1 }
  0xfc   : > { %v16507_v50 = vpop.f32.mrb[5].mxu0  ;;  %v16509_v51 = vadd.f32 %v391_v49, %v257_v37  ;;  %v16511_v52 = vpop.f32.mrb[5].mxu1  ;;  %v16555_v60 = vadd.f32 %v367_v48, %v257_v37 }
  0xfe   : > { %460 = vrot.lane.b32.xlu1 %v16497_v45, %s16358_s13  ;;  %482 = vrot.lane.b32.xlu0 %v16487_v40, %s16359_s14 }
  0xff   : > { %v373_v53 = vpop.f32.mrb[6].mxu0  ;;  %v397_v54 = vpop.f32.mrb[6].mxu1 }
 0x100   : > { %v16517_v55 = vpop.f32.mrb[7].mxu0  ;;  %v16519_v56 = vadd.f32 %v397_v54, %v257_v37  ;;  %v16525_v57 = vpop.f32.mrb[7].mxu1  ;;  %v16561_v61 = vadd.f32 %v373_v53, %v257_v37 }
 0x102   : > { %484 = vrot.lane.b32.xlu1 %v16497_v45, %s16359_s14  ;;  %506 = vrot.lane.b32.xlu0 %v16487_v40, %s16360_s15 }
 0x106   : > { %508 = vrot.lane.b32.xlu1 %v16497_v45, %s16360_s15  ;;  %530 = vrot.lane.b32.xlu0 %v16487_v40, %s16361_s16 }
 0x10a   : > { %532 = vrot.lane.b32.xlu1 %v16497_v45, %s16361_s16  ;;  %554 = vrot.lane.b32.xlu0 %v16487_v40, %s16362_s17 }
 0x10e   : > { %556 = vrot.lane.b32.xlu1 %v16497_v45, %s16362_s17  ;;  %2754 = vrot.lane.b32.xlu0 %v16487_v40, %s16363_s19 }
 0x112   : > { %2756 = vrot.lane.b32.xlu1 %v16497_v45, %s16363_s19  ;;  %418 = vrot.lane.b32.xlu0 %v16535_v58, %s16357_s12 }
 0x116   : > { %420 = vrot.lane.b32.xlu1 %v16545_v59, %s16357_s12  ;;  %442 = vrot.lane.b32.xlu0 %v16535_v58, %s16356_s11 }
 0x11a   : > { %444 = vrot.lane.b32.xlu1 %v16545_v59, %s16356_s11  ;;  %466 = vrot.lane.b32.xlu0 %v16535_v58, %s16358_s13 }
 0x11e   : > { %468 = vrot.lane.b32.xlu1 %v16545_v59, %s16358_s13  ;;  %412 = vrot.lane.b32.xlu0 %v16497_v45, %s16357_s12 }
 0x122   : > { %416 = vrot.lane.b32.xlu1 %v16561_v61, %s16357_s12  ;;  %414 = vrot.lane.b32.xlu0 %v16555_v60, %s16357_s12 }
 0x126   : > { %440 = vrot.lane.b32.xlu1 %v16561_v61, %s16356_s11  ;;  %438 = vrot.lane.b32.xlu0 %v16555_v60, %s16356_s11 }
 0x12a   : > { %464 = vrot.lane.b32.xlu1 %v16561_v61, %s16358_s13  ;;  %462 = vrot.lane.b32.xlu0 %v16555_v60, %s16358_s13 }
 0x12e   : > { %488 = vrot.lane.b32.xlu1 %v16561_v61, %s16359_s14  ;;  %486 = vrot.lane.b32.xlu0 %v16555_v60, %s16359_s14 }
 0x132   : > { %512 = vrot.lane.b32.xlu1 %v16561_v61, %s16360_s15  ;;  %510 = vrot.lane.b32.xlu0 %v16555_v60, %s16360_s15 }
 0x136   : > { %536 = vrot.lane.b32.xlu1 %v16561_v61, %s16361_s16  ;;  %534 = vrot.lane.b32.xlu0 %v16555_v60, %s16361_s16 }
 0x13a   : > { %560 = vrot.lane.b32.xlu1 %v16561_v61, %s16362_s17  ;;  %558 = vrot.lane.b32.xlu0 %v16555_v60, %s16362_s17 }
 0x13e   : > { %2760 = vrot.lane.b32.xlu1 %v16561_v61, %s16363_s19  ;;  %2758 = vrot.lane.b32.xlu0 %v16555_v60, %s16363_s19 }
 0x142   : > { %424 = vrot.lane.b32.xlu1 %v16519_v56, %s16357_s12  ;;  %422 = vrot.lane.b32.xlu0 %v16509_v51, %s16357_s12 }
 0x146   : > { %448 = vrot.lane.b32.xlu1 %v16519_v56, %s16356_s11  ;;  %446 = vrot.lane.b32.xlu0 %v16509_v51, %s16356_s11 }
 0x14a   : > { %472 = vrot.lane.b32.xlu1 %v16519_v56, %s16358_s13  ;;  %470 = vrot.lane.b32.xlu0 %v16509_v51, %s16358_s13 }
 0x168   : > { %v435_v3 = vpop.permute.xlu1 %434  ;;  %v411_v4 = vpop.permute.xlu0 %410 }
 0x169   : > { %2770 = vrot.lane.b32.xlu0 %v411_v4, %s16363_s19  ;;  %v578_v7 = vcombine.low %v16487_v40, %v435_v3  ;;  %v579_v8 = vcombine.high %v16487_v40, %v435_v3 }
 0x16b   : > { %v586_v14 = vrot.slane %v578_v7, %v16609_v6  ;;  %v593_v15 = vrot.slane %v579_v8, %v16609_v6 }
 0x16c   : > { %v16613_v9 = vpop.permute.xlu1 %436  ;;  %v459_v10 = vpop.permute.xlu0 %458 }
 0x16d   : > { %v594_v11 = vcombine.low %v411_v4, %v459_v10  ;;  %v595_v12 = vcombine.high %v411_v4, %v459_v10  ;;  %2786 = vrot.lane.b32.xlu0 %v435_v3, %s16363_s19 }
 0x16f   : > { %v602_v16 = vrot.slane %v594_v11, %v16609_v6  ;;  %v609_v17 = vrot.slane %v595_v12, %v16609_v6 }
 0x170   : > { %v16623_v18 = vpop.permute.xlu1 %460  ;;  %v16625_v19 = vpop.permute.xlu0 %482 }
 0x171   : > { %v642_v20 = vcombine.low %v586_v14, %v602_v16  ;;  %v643_v21 = vcombine.high %v586_v14, %v602_v16  ;;  %v658_v22 = vcombine.low %v593_v15, %v609_v17  ;;  %v659_v23 = vcombine.high %v593_v15, %v609_v17  ;;  %2802 = vrot.lane.b32.xlu0 %v459_v10, %s16363_s19 }
 0x173   : > { %v650_v24 = vrot.slane %v642_v20, %v16617_v13  ;;  %v657_v25 = vrot.slane %v643_v21, %v16617_v13  ;;  %v666_v26 = vrot.slane %v658_v22, %v16617_v13  ;;  %v673_v27 = vrot.slane %v659_v23, %v16617_v13 }
 0x174   : > { %v16632_v28 = vpop.permute.xlu1 %484  ;;  %v507_v29 = vpop.permute.xlu0 %506 }
 0x175   : > { %v14497_v30 = vcombine.low %v650_v24, %v657_v25  ;;  %v14499_v31 = vcombine.high %v650_v24, %v657_v25  ;;  %v14501_v32 = vcombine.low %v666_v26, %v673_v27  ;;  %v14503_v35 = vcombine.high %v666_v26, %v673_v27  ;;  %2818 = vrot.lane.b32.xlu0 %v16625_v19, %s16363_s19 }
 0x177   : > { %v1674_v37 = vrot.slane %v14497_v30, %v16609_v6  ;;  %v1690_v38 = vrot.slane %v14499_v31, %v16609_v6  ;;  %v1706_v39 = vrot.slane %v14501_v32, %v16609_v6  ;;  %v1722_v40 = vrot.slane %v14503_v35, %v16609_v6 }
 0x178   : > { %v16640_v43 = vpop.permute.xlu1 %508  ;;  %v531_v44 = vpop.permute.xlu0 %530 }
 0x179   : > { %2834 = vrot.lane.b32.xlu0 %v507_v29, %s16363_s19  ;;  %v1730_v48 = vcombine.low %v1674_v37, %v1690_v38  ;;  %v1762_v49 = vcombine.low %v1706_v39, %v1722_v40  ;;  %v1731_v53 = vcombine.high %v1674_v37, %v1690_v38  ;;  %v1763_v54 = vcombine.high %v1706_v39, %v1722_v40 }
 0x17a   : > { %v610_v27 = vcombine.low %v16625_v19, %v531_v44  ;;  %v611_v30 = vcombine.high %v16625_v19, %v531_v44  ;;  %v260_v19 = vsub.s32 1, %v16478_v34 }
 0x17b   : > { %v16644_v62 = vrot.slane %v1730_v48, %v16617_v13  ;;  %v16647_v63 = vrot.slane %v1762_v49, %v16617_v13  ;;  %v16652_v2 = vrot.slane %v1731_v53, %v16617_v13  ;;  %v16655_v3 = vrot.slane %v1763_v54, %v16617_v13 }
 0x17c   : > { %v16649_v0 = vpop.permute.xlu1 %532  ;;  %v555_v1 = vpop.permute.xlu0 %554  ;;  %v625_v38 = vrot.slane %v611_v30, %v16609_v6 }
 0x17d   : > { %23065 = vst [vmem:[#allocation4_spill] sm:$0xff] %v16644_v62  ;;  %23066 = vst [vmem:[#allocation5_spill] sm:$0xff] %v16647_v63  ;;  %2850 = vrot.lane.b32.xlu0 %v531_v44, %s16363_s19  ;;  %v1794_v4 = vcombine.low %v16644_v62, %v16647_v63  ;;  %v1796_v5 = vcombine.low %v16652_v2, %v16655_v3  ;;  %v626_v25 = vcombine.low %v507_v29, %v555_v1 }
 0x17e   : > { %23067 = vst [vmem:[#allocation6_spill] sm:$0xff] %v16652_v2  ;;  %23068 = vst [vmem:[#allocation7_spill] sm:$0xff] %v16655_v3  ;;  %v627_v26 = vcombine.high %v507_v29, %v555_v1  ;;  %v618_v29 = vrot.slane %v610_v27, %v16609_v6  ;;  %v746_v39 = vcombine.low %v16632_v28, %v16649_v0 }
 0x17f   : > { %15236 = vmatprep.mubr.msk.f32.mxu1 %vm7474_vm1, %v1794_v4  ;;  %15264 = vmatprep.mubr.msk.f32.mxu0 %vm7474_vm1, %v1796_v5  ;;  %v634_v32 = vrot.slane %v626_v25, %v16609_v6  ;;  %v747_v54 = vcombine.high %v16632_v28, %v16649_v0  ;;  %v261_v5 = vrot.slane %v16484_v36, %v260_v19 }
 0x180   : > { %v557_v10 = vpop.permute.xlu1 %556  ;;  %v16668_v11 = vpop.permute.xlu0 %2754  ;;  %v641_v35 = vrot.slane %v627_v26, %v16609_v6  ;;  %v754_v25 = vrot.slane %v746_v39, %v16609_v6 }
 0x181   : > { %2866 = vrot.lane.b32.xlu0 %v555_v1, %s16363_s19  ;;  %v762_v40 = vcombine.low %v16640_v43, %v557_v10  ;;  %v674_v44 = vcombine.low %v618_v29, %v634_v32  ;;  %v675_v48 = vcombine.high %v618_v29, %v634_v32  ;;  %v763_v1 = vcombine.high %v16640_v43, %v557_v10 }
 0x182   : > { %v690_v49 = vcombine.low %v625_v38, %v641_v35  ;;  %v691_v53 = vcombine.high %v625_v38, %v641_v35  ;;  %v761_v36 = vrot.slane %v747_v54, %v16609_v6  ;;  %v16742_v35 = vadd.f32 %v16489_v41, %v261_v5 }
 0x183   : > { %v770_v26 = vrot.slane %v762_v40, %v16609_v6  ;;  %v682_v27 = vrot.slane %v674_v44, %v16617_v13  ;;  %v689_v30 = vrot.slane %v675_v48, %v16617_v13  ;;  %v16756_v41 = vadd.f32 %v16501_v47, %v261_v5 }
 0x184   : > { %v16671_v12 = vpop.permute.xlu0 %418  ;;  %v16673_v14 = vpop.permute.xlu1 %2756  ;;  %v698_v32 = vrot.slane %v690_v49, %v16617_v13  ;;  %23070 = vst [vmem:[#allocation9_spill] sm:$0xff] %v16742_v35  ;;  %v16753_v49 = vadd.f32 %v16499_v46, %v261_v5  ;;  %v715_v46 = vcombine.high %v16497_v45, %v16613_v9 }
 0x185   : > { %23069 = vst [vmem:[#allocation8_spill] sm:$0xff] %v16673_v14  ;;  %v810_v29 = vcombine.low %v754_v25, %v770_v26  ;;  %v811_v38 = vcombine.high %v754_v25, %v770_v26  ;;  %v14498_v19 = vcombine.low %v682_v27, %v689_v30  ;;  %v14500_v39 = vcombine.high %v682_v27, %v689_v30 }
 0x186   : > { %23072 = vst [vmem:[#allocation11_spill] sm:$0xff] %v16753_v49  ;;  %23073 = vst [vmem:[#allocation12_spill] sm:$0xff] %v16756_v41  ;;  %v714_v25 = vcombine.low %v16497_v45, %v16613_v9  ;;  %v16771_v26 = vadd.f32 %v16517_v55, %v261_v5  ;;  %v16776_v30 = vadd.f32 %v16525_v57, %v261_v5 }
 0x187   : > { %v818_v47 = vrot.slane %v810_v29, %v16617_v13  ;;  %v825_v27 = vrot.slane %v811_v38, %v16617_v13  ;;  %v16786_v45 = vrot.slane %v14500_v39, %v16609_v6 }
 0x188   : > { %v16675_v15 = vpop.permute.xlu0 %442  ;;  %v16677_v16 = vpop.permute.xlu1 %420  ;;  %23076 = vst [vmem:[#allocation15_spill] sm:$0xff] %v16771_v26  ;;  %23077 = vst [vmem:[#allocation16_spill] sm:$0xff] %v16776_v30 }
 0x189   : > { %v14508_v39 = vcombine.high %v818_v47, %v825_v27 }
 0x18c   : > { %v16679_v17 = vpop.permute.xlu0 %466  ;;  %v16685_v21 = vpop.permute.xlu1 %444 }
 0x18d   : > { %v1259_v7 = vcombine.high %v16545_v59, %v16685_v21  ;;  %v1139_v34 = vcombine.high %v16671_v12, %v16679_v17 }
 0x18f   : > { %v1273_v41 = vrot.slane %v1259_v7, %v16609_v6  ;;  %v1153_v3 = vrot.slane %v1139_v34, %v16609_v6 }
 0x190   : > { %v16681_v20 = vpop.permute.xlu0 %412  ;;  %v16693_v23 = vpop.permute.xlu1 %468 }
 0x191   : > { %2772 = vrot.lane.b32.xlu1 %v16681_v20, %s16363_s19  ;;  %v730_v29 = vcombine.low %v16681_v20, %v16623_v18 }
 0x194   : > { %v16687_v22 = vpop.permute.xlu0 %414  ;;  %v16709_v37 = vpop.permute.xlu1 %416 }
 0x195   : > { %2788 = vrot.lane.b32.xlu1 %v16613_v9, %s16363_s19  ;;  %2774 = vrot.lane.b32.xlu0 %v16687_v22, %s16363_s19 }
 0x198   : > { %v16695_v24 = vpop.permute.xlu0 %438  ;;  %v16726_v4 = vpop.permute.xlu1 %440 }
 0x199   : > { %2804 = vrot.lane.b32.xlu1 %v16623_v18, %s16363_s19  ;;  %2790 = vrot.lane.b32.xlu0 %v16695_v24, %s16363_s19  ;;  %v851_v62 = vcombine.high %v16555_v60, %v16695_v24 }
 0x19c   : > { %v16703_v31 = vpop.permute.xlu0 %462  ;;  %v16748_v48 = vpop.permute.xlu1 %464 }
 0x19d   : > { %2820 = vrot.lane.b32.xlu1 %v16632_v28, %s16363_s19  ;;  %2806 = vrot.lane.b32.xlu0 %v16703_v31, %s16363_s19  ;;  %v705_v28 = vrot.slane %v691_v53, %v16617_v13 }
 0x19f   : > { %v14502_v40 = vcombine.low %v698_v32, %v705_v28  ;;  %v14504_v44 = vcombine.high %v698_v32, %v705_v28  ;;  %v1274_v32 = vcombine.low %v16677_v16, %v16693_v23  ;;  %v722_v28 = vrot.slane %v714_v25, %v16609_v6 }
 0x1a0   : > { %v16758_v54 = vpop.permute.xlu0 %486  ;;  %v16808_v38 = vpop.permute.xlu1 %488  ;;  %v1275_v25 = vcombine.high %v16677_v16, %v16693_v23 }
 0x1a1   : > { %2836 = vrot.lane.b32.xlu1 %v16640_v43, %s16363_s19  ;;  %490 = vrot.lane.b32.xlu0 %v16535_v58, %s16359_s14  ;;  %v777_v43 = vrot.slane %v763_v1, %v16609_v6  ;;  %v16764_v1 = vadd.f32 %v16511_v52, %v261_v5  ;;  %v16789_v52 = vrot.slane %v14502_v40, %v16609_v6 }
 0x1a2   : > { %v16792_v55 = vrot.slane %v14504_v44, %v16609_v6  ;;  %v1258_v40 = vcombine.low %v16545_v59, %v16685_v21  ;;  %v731_v44 = vcombine.high %v16681_v20, %v16623_v18  ;;  %v1282_v33 = vrot.slane %v1274_v32, %v16609_v6 }
 0x1a3   : > { %v827_v53 = vcombine.high %v761_v36, %v777_v43  ;;  %23075 = vst [vmem:[#allocation14_spill] sm:$0xff] %v16764_v1  ;;  %v738_v1 = vrot.slane %v730_v29, %v16609_v6  ;;  %v1289_v32 = vrot.slane %v1275_v25, %v16609_v6 }
 0x1a4   : > { %v1778_v18 = vcombine.low %v16789_v52, %v16792_v55 }
 0x1a5   : > { %2852 = vrot.lane.b32.xlu1 %v16649_v0, %s16363_s19  ;;  %514 = vrot.lane.b32.xlu0 %v16535_v58, %s16360_s15  ;;  %v16745_v0 = vadd.f32 %v16491_v42, %v261_v5  ;;  %v826_v42 = vcombine.low %v761_v36, %v777_v43  ;;  %v841_v9 = vrot.slane %v827_v53, %v16617_v13 }
 0x1a6   : > { %v16802_v36 = vrot.slane %v715_v46, %v16609_v6  ;;  %v1123_v43 = vcombine.high %v16535_v58, %v16675_v15  ;;  %v1138_v53 = vcombine.low %v16671_v12, %v16679_v17  ;;  %v778_v2 = vcombine.low %v722_v28, %v738_v1 }
 0x1a7   : > { %23071 = vst [vmem:[#allocation10_spill] sm:$0xff] %v16745_v0  ;;  %v834_v57 = vrot.slane %v826_v42, %v16617_v13  ;;  %v16814_v42 = vpop.permute.xlu0 %510  ;;  %v16840_v0 = vrot.slane %v14508_v39, %v16609_v6  ;;  %v1338_v7 = vcombine.low %v1273_v41, %v1289_v32  ;;  %v1339_v26 = vcombine.high %v1273_v41, %v1289_v32 }
 0x1a8   : > { %v1137_v8 = vrot.slane %v1123_v43, %v16609_v6  ;;  %v16848_v43 = vpop.permute.xlu1 %512  ;;  %v786_v35 = vrot.slane %v778_v2, %v16617_v13 }
 0x1a9   : > { %2868 = vrot.lane.b32.xlu1 %v557_v10, %s16363_s19  ;;  %538 = vrot.lane.b32.xlu0 %v16535_v58, %s16361_s16  ;;  %v16761_v10 = vadd.f32 %v16507_v50, %v261_v5  ;;  %v16783_v50 = vrot.slane %v14498_v19, %v16609_v6  ;;  %v1122_v5 = vcombine.low %v16535_v58, %v16675_v15 }
 0x1aa   : > { %v14506_v19 = vcombine.low %v818_v47, %v825_v27  ;;  %v14510_v20 = vcombine.low %v834_v57, %v841_v9  ;;  %v14512_v47 = vcombine.high %v834_v57, %v841_v9  ;;  %v1266_v57 = vrot.slane %v1258_v40, %v16609_v6 }
 0x1ab   : > { %23074 = vst [vmem:[#allocation13_spill] sm:$0xff] %v16761_v10  ;;  %v1746_v46 = vcombine.low %v16783_v50, %v16786_v45  ;;  %v1130_v27 = vrot.slane %v1122_v5, %v16609_v6  ;;  %v745_v9 = vrot.slane %v731_v44, %v16609_v6  ;;  %v1146_v5 = vrot.slane %v1138_v53, %v16609_v6  ;;  %v16864_v25 = vpop.permute.xlu0 %534 }
 0x1ac   : > { %v16837_v30 = vrot.slane %v14506_v19, %v16609_v6  ;;  %v16856_v19 = vrot.slane %v1778_v18, %v16617_v13  ;;  %v16859_v39 = vrot.slane %v14510_v20, %v16609_v6  ;;  %v16862_v40 = vrot.slane %v14512_v47, %v16609_v6  ;;  %v16886_v41 = vpop.permute.xlu1 %536 }
 0x1ad   : > { %2776 = vrot.lane.b32.xlu1 %v16709_v37, %s16363_s19  ;;  %562 = vrot.lane.b32.xlu0 %v16535_v58, %s16362_s17  ;;  %v16853_v29 = vrot.slane %v1746_v46, %v16617_v13  ;;  %v1322_v44 = vcombine.low %v1266_v57, %v1282_v33  ;;  %v1323_v53 = vcombine.high %v1266_v57, %v1282_v33 }
 0x1ae   : > { %23079 = vst [vmem:[#allocation18_spill] sm:$0xff] %v16856_v19  ;;  %v779_v46 = vcombine.high %v722_v28, %v738_v1  ;;  %v1882_v18 = vcombine.low %v16837_v30, %v16840_v0  ;;  %v794_v10 = vcombine.low %v16802_v36, %v745_v9  ;;  %v795_v47 = vcombine.high %v16802_v36, %v745_v9 }
 0x1af   : > { %23078 = vst [vmem:[#allocation17_spill] sm:$0xff] %v16853_v29  ;;  %v1186_v33 = vcombine.low %v1130_v27, %v1146_v5  ;;  %v1187_v57 = vcombine.high %v1130_v27, %v1146_v5  ;;  %v1914_v34 = vcombine.low %v16859_v39, %v16862_v40  ;;  %v1330_v28 = vrot.slane %v1322_v44, %v16617_v13  ;;  %v16890_v63 = vpop.permute.xlu0 %558 }
 0x1b0   : > { %v1337_v36 = vrot.slane %v1323_v53, %v16617_v13  ;;  %v1202_v9 = vcombine.low %v1137_v8, %v1153_v3  ;;  %v1203_v20 = vcombine.high %v1137_v8, %v1153_v3  ;;  %v793_v27 = vrot.slane %v779_v46, %v16617_v13 }
 0x1b1   : > { %2792 = vrot.lane.b32.xlu1 %v16726_v4, %s16363_s19  ;;  %2822 = vrot.lane.b32.xlu0 %v16758_v54, %s16363_s19  ;;  %v802_v5 = vrot.slane %v794_v10, %v16617_v13  ;;  %v809_v32 = vrot.slane %v795_v47, %v16617_v13  ;;  %v16899_v2 = vrot.slane %v1186_v33, %v16617_v13 }
 0x1b2   : > { %v16902_v8 = vrot.slane %v1187_v57, %v16617_v13  ;;  %v1346_v10 = vrot.slane %v1338_v7, %v16617_v13  ;;  %v1353_v53 = vrot.slane %v1339_v26, %v16617_v13  ;;  %v14537_v46 = vcombine.low %v1330_v28, %v1337_v36 }
 0x1b3   : > { %v14539_v47 = vcombine.high %v1330_v28, %v1337_v36  ;;  %v866_v44 = vcombine.low %v16687_v22, %v16703_v31  ;;  %v16911_v3 = vrot.slane %v1882_v18, %v16617_v13  ;;  %v16914_v33 = vrot.slane %v1202_v9, %v16617_v13 }
 0x1b4   : > { %v16917_v57 = vrot.slane %v1203_v20, %v16617_v13  ;;  %v14505_v7 = vcombine.low %v786_v35, %v793_v27  ;;  %v14507_v1 = vcombine.high %v786_v35, %v793_v27  ;;  %v14509_v26 = vcombine.low %v802_v5, %v809_v32  ;;  %v16930_v35 = vpop.permute.xlu1 %560 }
 0x1b5   : > { %2808 = vrot.lane.b32.xlu1 %v16748_v48, %s16363_s19  ;;  %2838 = vrot.lane.b32.xlu0 %v16814_v42, %s16363_s19  ;;  %23080 = vst [vmem:[#allocation19_spill] sm:$0xff] %v16911_v3  ;;  %23081 = vst [vmem:[#allocation20_spill] sm:$0xff] %v16914_v33  ;;  %v14511_v19 = vcombine.high %v802_v5, %v809_v32  ;;  %v850_v29 = vcombine.low %v16555_v60, %v16695_v24 }
 0x1b6   : > { %23082 = vst [vmem:[#allocation21_spill] sm:$0xff] %v16917_v57  ;;  %v16924_v28 = vrot.slane %v1914_v34, %v16617_v13  ;;  %v14541_v36 = vcombine.low %v1346_v10, %v1353_v53  ;;  %v14543_v9 = vcombine.high %v1346_v10, %v1353_v53  ;;  %v16935_v27 = vrot.slane %v14537_v46, %v16609_v6 }
 0x1b7   : > { %v16938_v5 = vrot.slane %v14539_v47, %v16609_v6  ;;  %v867_v34 = vcombine.high %v16687_v22, %v16703_v31  ;;  %v874_v32 = vrot.slane %v866_v44, %v16609_v6  ;;  %v1810_v10 = vrot.slane %v14505_v7, %v16609_v6 }
 0x1b8   : > { %23083 = vst [vmem:[#allocation22_spill] sm:$0xff] %v16924_v28  ;;  %23084 = vst [vmem:[#allocation23_spill] sm:$0xff] %v16935_v27  ;;  %v1826_v53 = vrot.slane %v14507_v1, %v16609_v6  ;;  %v1002_v18 = vcombine.low %v16709_v37, %v16748_v48  ;;  %v1842_v46 = vrot.slane %v14509_v26, %v16609_v6  ;;  %v16976_v20 = vpop.permute.xlu1 %2760 }
 0x1b9   : > { %492 = vrot.lane.b32.xlu1 %v16545_v59, %s16359_s14  ;;  %2854 = vrot.lane.b32.xlu0 %v16864_v25, %s16363_s19  ;;  %23085 = vst [vmem:[#allocation24_spill] sm:$0xff] %v16938_v5  ;;  %v1858_v47 = vrot.slane %v14511_v19, %v16609_v6  ;;  %v858_v22 = vrot.slane %v850_v29, %v16609_v6  ;;  %23088 = vst [vmem:[#allocation27_spill] sm:$0xff] %v16976_v20 }
 0x1ba   : > { %v16959_v1 = vrot.slane %v14541_v36, %v16609_v6  ;;  %v16962_v44 = vrot.slane %v14543_v9, %v16609_v6  ;;  %v986_v19 = vcombine.low %v16561_v61, %v16726_v4  ;;  %v881_v24 = vrot.slane %v867_v34, %v16609_v6 }
 0x1bb   : > { %v914_v29 = vcombine.low %v858_v22, %v874_v32  ;;  %v915_v7 = vcombine.high %v858_v22, %v874_v32  ;;  %v1866_v26 = vcombine.low %v1810_v10, %v1826_v53  ;;  %v987_v36 = vcombine.high %v16561_v61, %v16726_v4 }
 0x1bc   : > { %23086 = vst [vmem:[#allocation25_spill] sm:$0xff] %v16959_v1  ;;  %23087 = vst [vmem:[#allocation26_spill] sm:$0xff] %v16962_v44  ;;  %v1003_v9 = vcombine.high %v16709_v37, %v16748_v48  ;;  %v1010_v31 = vrot.slane %v1002_v18, %v16609_v6  ;;  %v1867_v49 = vcombine.high %v1810_v10, %v1826_v53  ;;  %v16988_v48 = vpop.permute.xlu0 %2758 }
 0x1bd   : > { %516 = vrot.lane.b32.xlu1 %v16545_v59, %s16360_s15  ;;  %2870 = vrot.lane.b32.xlu0 %v16890_v63, %s16363_s19  ;;  %v1898_v14 = vcombine.low %v1842_v46, %v1858_v47  ;;  %v1899_v57 = vcombine.high %v1842_v46, %v1858_v47  ;;  %v865_v60 = vrot.slane %v851_v62, %v16609_v6 }
 0x1be   : > { %v994_v4 = vrot.slane %v986_v19, %v16609_v6  ;;  %23089 = vst [vmem:[#allocation28_spill] sm:$0xff] %v16988_v48  ;;  %v922_v62 = vrot.slane %v914_v29, %v16617_v13  ;;  %v929_v18 = vrot.slane %v915_v7, %v16617_v13  ;;  %v1001_v53 = vrot.slane %v987_v36, %v16609_v6 }
 0x1bf   : > { %v930_v32 = vcombine.low %v865_v60, %v881_v24  ;;  %v931_v10 = vcombine.high %v865_v60, %v881_v24  ;;  %v1017_v46 = vrot.slane %v1003_v9, %v16609_v6  ;;  %v16999_v19 = vrot.slane %v1866_v26, %v16617_v13 }
 0x1c0   : > { %v1050_v47 = vcombine.low %v994_v4, %v1010_v31  ;;  %v1051_v22 = vcombine.high %v994_v4, %v1010_v31  ;;  %v17002_v37 = vrot.slane %v1898_v14, %v16617_v13  ;;  %v17005_v29 = vrot.slane %v1867_v49, %v16617_v13  ;;  %v17018_v14 = vpop.permute.xlu1 %424  ;;  %v17026_v48 = vpop.permute.xlu0 %422 }
 0x1c1   : > { %540 = vrot.lane.b32.xlu1 %v16545_v59, %s16361_s16  ;;  %494 = vrot.lane.b32.xlu0 %v16509_v51, %s16359_s14  ;;  %v17008_v60 = vrot.slane %v1899_v57, %v16617_v13  ;;  %v1018_v24 = vcombine.low %v16808_v38, %v16886_v41  ;;  %v1019_v31 = vcombine.high %v16808_v38, %v16886_v41 }
 0x1c2   : > { %v1034_v7 = vcombine.low %v16848_v43, %v16930_v35  ;;  %v1035_v26 = vcombine.high %v16848_v43, %v16930_v35  ;;  %23090 = vst [vmem:[#allocation29_spill] sm:$0xff] %v17018_v14  ;;  %v938_v49 = vrot.slane %v930_v32, %v16617_v13  ;;  %v945_v57 = vrot.slane %v931_v10, %v16617_v13 }
 0x1c3   : > { %v14513_v36 = vcombine.low %v922_v62, %v929_v18  ;;  %v14515_v9 = vcombine.high %v922_v62, %v929_v18  ;;  %v1058_v4 = vrot.slane %v1050_v47, %v16617_v13  ;;  %v1065_v34 = vrot.slane %v1051_v22, %v16617_v13 }
 0x1c4   : > { %v1066_v61 = vcombine.low %v1001_v53, %v1017_v46  ;;  %v1067_v20 = vcombine.high %v1001_v53, %v1017_v46  ;;  %v882_v44 = vcombine.low %v16758_v54, %v16864_v25  ;;  %v883_v1 = vcombine.high %v16758_v54, %v16864_v25 }
 0x1c5   : > { %564 = vrot.lane.b32.xlu1 %v16545_v59, %s16362_s17  ;;  %518 = vrot.lane.b32.xlu0 %v16509_v51, %s16360_s15  ;;  %v898_v32 = vcombine.low %v16814_v42, %v16890_v63  ;;  %v899_v62 = vcombine.high %v16814_v42, %v16890_v63  ;;  %v1026_v18 = vrot.slane %v1018_v24, %v16609_v6 }
 0x1c6   : > { %v1033_v10 = vrot.slane %v1019_v31, %v16609_v6  ;;  %v1042_v53 = vrot.slane %v1034_v7, %v16609_v6  ;;  %v1049_v46 = vrot.slane %v1035_v26, %v16609_v6  ;;  %v14517_v54 = vcombine.low %v938_v49, %v945_v57  ;;  %v17048_v31 = vpop.permute.xlu1 %448 }
 0x1c7   : > { %v14519_v25 = vcombine.high %v938_v49, %v945_v57  ;;  %v1946_v47 = vrot.slane %v14513_v36, %v16609_v6  ;;  %v1962_v63 = vrot.slane %v14515_v9, %v16609_v6  ;;  %v1074_v42 = vrot.slane %v1066_v61, %v16617_v13  ;;  %23091 = vst [vmem:[#allocation30_spill] sm:$0xff] %v17048_v31 }
 0x1c8   : > { %v1081_v22 = vrot.slane %v1067_v20, %v16617_v13  ;;  %v14521_v24 = vcombine.low %v1058_v4, %v1065_v34  ;;  %v14523_v5 = vcombine.high %v1058_v4, %v1065_v34  ;;  %v890_v7 = vrot.slane %v882_v44, %v16609_v6  ;;  %v17056_v20 = vpop.permute.xlu0 %446 }
 0x1c9   : > { %496 = vrot.lane.b32.xlu1 %v16519_v56, %s16359_s14  ;;  %542 = vrot.lane.b32.xlu0 %v16509_v51, %s16361_s16  ;;  %v897_v26 = vrot.slane %v883_v1, %v16609_v6  ;;  %v913_v49 = vrot.slane %v899_v62, %v16609_v6  ;;  %v1082_v57 = vcombine.low %v1026_v18, %v1042_v53 }
 0x1ca   : > { %v1083_v36 = vcombine.high %v1026_v18, %v1042_v53  ;;  %v1098_v61 = vcombine.low %v1033_v10, %v1049_v46  ;;  %v1099_v9 = vcombine.high %v1033_v10, %v1049_v46  ;;  %v1978_v44 = vrot.slane %v14517_v54, %v16609_v6 }
 0x1cb   : > { %v1994_v1 = vrot.slane %v14519_v25, %v16609_v6  ;;  %v2002_v34 = vcombine.low %v1946_v47, %v1962_v63  ;;  %v2003_v4 = vcombine.high %v1946_v47, %v1962_v63  ;;  %v14527_v62 = vcombine.high %v1074_v42, %v1081_v22  ;;  %v17080_v63 = vpop.permute.xlu1 %472 }
 0x1cc   : > { %v962_v46 = vcombine.low %v897_v26, %v913_v49  ;;  %v963_v33 = vcombine.high %v897_v26, %v913_v49  ;;  %v17072_v54 = vrot.slane %v1083_v36, %v16617_v13  ;;  %v17075_v25 = vrot.slane %v1098_v61, %v16617_v13  ;;  %23092 = vst [vmem:[#allocation31_spill] sm:$0xff] %v17080_v63  ;;  %v17090_v26 = vpop.permute.xlu0 %470 }
 0x1cd   : > { %520 = vrot.lane.b32.xlu1 %v16519_v56, %s16360_s15  ;;  %566 = vrot.lane.b32.xlu0 %v16509_v51, %s16362_s17  ;;  %v17078_v47 = vrot.slane %v1099_v9, %v16617_v13  ;;  %v2098_v49 = vrot.slane %v14523_v5, %v16609_v6  ;;  %v2130_v36 = vrot.slane %v14527_v62, %v16609_v6 }
 0x1ce   : > { %v17103_v9 = vrot.slane %v962_v46, %v16617_v13  ;;  %v1410_v62 = vcombine.low %v17026_v48, %v17090_v26  ;;  %v1394_v27 = vcombine.low %v16509_v51, %v17056_v20 }
 0x1d1   : > { %544 = vrot.lane.b32.xlu1 %v16519_v56, %s16361_s16  ;;  %2762 = vrot.lane.b32.xlu0 %v16535_v58, %s16363_s19  ;;  %v906_v58 = vrot.slane %v898_v32, %v16609_v6  ;;  %v14525_v32 = vcombine.low %v1074_v42, %v1081_v22  ;;  %v17085_v42 = vrot.slane %v2002_v34, %v16617_v13 }
 0x1d2   : > { %v17088_v22 = vrot.slane %v2003_v4, %v16617_v13  ;;  %v977_v34 = vrot.slane %v963_v33, %v16617_v13  ;;  %v1530_v4 = vcombine.low %v16519_v56, %v17048_v31 }
 0x1d3   : > { %v946_v10 = vcombine.low %v890_v7, %v906_v58  ;;  %v947_v53 = vcombine.high %v890_v7, %v906_v58  ;;  %v2035_v7 = vcombine.high %v1978_v44, %v1994_v1  ;;  %v2082_v58 = vrot.slane %v14521_v24, %v16609_v6 }
 0x1d4   : > { %v1411_v24 = vcombine.high %v17026_v48, %v17090_v26 }
 0x1d5   : > { %568 = vrot.lane.b32.xlu1 %v16519_v56, %s16362_s17  ;;  %2778 = vrot.lane.b32.xlu0 %v16671_v12, %s16363_s19  ;;  %v17069_v12 = vrot.slane %v1082_v57, %v16617_v13  ;;  %v2114_v57 = vrot.slane %v14525_v32, %v16609_v6  ;;  %v17100_v61 = vrot.slane %v947_v53, %v16617_v13 }
 0x1d6   : > { %v1547_v32 = vcombine.high %v17018_v14, %v17080_v63  ;;  %v2138_v53 = vcombine.low %v2082_v58, %v2098_v49  ;;  %v2139_v33 = vcombine.high %v2082_v58, %v2098_v49  ;;  %v1395_v58 = vcombine.high %v16509_v51, %v17056_v20 }
 0x1d7   : > { %v2170_v46 = vcombine.low %v2114_v57, %v2130_v36  ;;  %v2171_v18 = vcombine.high %v2114_v57, %v2130_v36  ;;  %v17147_v57 = vrot.slane %v2035_v7, %v16617_v13  ;;  %v1538_v36 = vrot.slane %v1530_v4, %v16609_v6 }
 0x1d8   : > { %v1402_v7 = vrot.slane %v1394_v27, %v16609_v6 }
 0x1d9   : > { %2824 = vrot.lane.b32.xlu1 %v16808_v38, %s16363_s19  ;;  %2794 = vrot.lane.b32.xlu0 %v16675_v15, %s16363_s19  ;;  %v2034_v38 = vcombine.low %v1978_v44, %v1994_v1  ;;  %v17097_v15 = vrot.slane %v946_v10, %v16617_v13  ;;  %v1546_v44 = vcombine.low %v17018_v14, %v17080_v63 }
 0x1da   : > { %v1418_v63 = vrot.slane %v1410_v62, %v16609_v6  ;;  %v17157_v14 = vrot.slane %v2170_v46, %v16617_v13  ;;  %v14520_v46 = vcombine.high %v17103_v9, %v977_v34 }
 0x1db   : > { %v17126_v10 = vpop.permute.xlu0 %2770  ;;  %v1554_v1 = vrot.slane %v1546_v44, %v16609_v6  ;;  %v14514_v5 = vcombine.low %v17097_v15, %v17100_v61  ;;  %v17144_v49 = vrot.slane %v2034_v38, %v16617_v13  ;;  %v17163_v38 = vrot.slane %v2171_v18, %v16617_v13 }
 0x1dc   : > { %v14516_v62 = vcombine.high %v17097_v15, %v17100_v61 }
 0x1dd   : > { %2840 = vrot.lane.b32.xlu1 %v16848_v43, %s16363_s19  ;;  %2810 = vrot.lane.b32.xlu0 %v16679_v17, %s16363_s19  ;;  %v1531_v43 = vcombine.high %v16519_v56, %v17048_v31  ;;  %v14528_v17 = vcombine.high %v17075_v25, %v17078_v47  ;;  %v17154_v31 = vrot.slane %v2138_v53, %v16617_v13 }
 0x1de   : > { %23094 = vst [vmem:[#allocation33_spill] sm:$0xff] %v17163_v38  ;;  %v1594_v4 = vcombine.low %v1538_v36, %v1554_v1  ;;  %v14518_v53 = vcombine.low %v17103_v9, %v977_v34 }
 0x1df   : > { %v1545_v44 = vrot.slane %v1531_v43, %v16609_v6  ;;  %v1595_v43 = vcombine.high %v1538_v36, %v1554_v1  ;;  %v17174_v18 = vpop.permute.xlu0 %2786  ;;  %v1459_v36 = vcombine.high %v1402_v7, %v1418_v63 }
 0x1e0   : > { %v17187_v34 = vrot.slane %v1594_v4, %v16617_v13  ;;  %v2001_v4 = vrot.slane %v14520_v46, %v16609_v6 }
 0x1e1   : > { %2856 = vrot.lane.b32.xlu1 %v16886_v41, %s16363_s19  ;;  %2766 = vrot.lane.b32.xlu0 %v16509_v51, %s16363_s19  ;;  %v1561_v41 = vrot.slane %v1547_v32, %v16609_v6  ;;  %v17160_v51 = vrot.slane %v2139_v33, %v16617_v13  ;;  %v1425_v32 = vrot.slane %v1411_v24, %v16609_v6 }
 0x1e2   : > { %v1409_v33 = vrot.slane %v1395_v58, %v16609_v6  ;;  %v1458_v24 = vcombine.low %v1402_v7, %v1418_v63  ;;  %v1985_v7 = vrot.slane %v14518_v53, %v16609_v6  ;;  %v23096_v53 = vcombine.high %v17069_v12, %v17072_v54 }
 0x1e3   : > { %23093 = vst [vmem:[#allocation32_spill] sm:$0xff] %v17160_v51  ;;  %v1610_v27 = vcombine.low %v1545_v44, %v1561_v41  ;;  %v1611_v1 = vcombine.high %v1545_v44, %v1561_v41  ;;  %v1953_v44 = vrot.slane %v14514_v5, %v16609_v6  ;;  %v1969_v41 = vrot.slane %v14516_v62, %v16609_v6 }
 0x1e4   : > { %v1474_v58 = vcombine.low %v1409_v33, %v1425_v32  ;;  %v1475_v63 = vcombine.high %v1409_v33, %v1425_v32  ;;  %v17207_v32 = vrot.slane %v1458_v24, %v16617_v13  ;;  %v23095_v5 = vcombine.low %v17069_v12, %v17072_v54 }
 0x1e5   : > { %2872 = vrot.lane.b32.xlu1 %v16930_v35, %s16363_s19  ;;  %2782 = vrot.lane.b32.xlu0 %v17026_v48, %s16363_s19  ;;  %v17190_v48 = vrot.slane %v1595_v43, %v16617_v13  ;;  %v17201_v9 = vrot.slane %v1610_v27, %v16617_v13  ;;  %v17204_v43 = vrot.slane %v1611_v1, %v16617_v13 }
 0x1e6   : > { %v17218_v62 = vrot.slane %v23095_v5, %v16609_v6  ;;  %v17224_v46 = vrot.slane %v23096_v53, %v16609_v6  ;;  %v23097_v33 = vcombine.low %v17075_v25, %v17078_v47  ;;  %v17233_v1 = vrot.slane %v14528_v17, %v16609_v6 }
 0x1e7   : > { %v17236_v24 = vrot.slane %v1474_v58, %v16617_v13  ;;  %v14553_v25 = vcombine.low %v17187_v34, %v17190_v48  ;;  %v14555_v47 = vcombine.high %v17187_v34, %v17190_v48  ;;  %v2018_v17 = vcombine.low %v1953_v44, %v1969_v41 }
 0x1e8   : > { %v17230_v27 = vrot.slane %v23097_v33, %v16609_v6  ;;  %v2050_v58 = vcombine.low %v1985_v7, %v2001_v4  ;;  %v1747_v5 = vcombine.high %v16783_v50, %v16786_v45  ;;  %v1779_v53 = vcombine.high %v16789_v52, %v16792_v55 }
 0x1e9   : > { %2764 = vrot.lane.b32.xlu1 %v16545_v59, %s16363_s19  ;;  %2798 = vrot.lane.b32.xlu0 %v17056_v20, %s16363_s19  ;;  %v17210_v59 = vrot.slane %v1459_v36, %v16617_v13  ;;  %v17212_v20 = vpop.permute.xlu0 %2802  ;;  %v17239_v36 = vrot.slane %v1475_v63, %v16617_v13  ;;  %v14559_v63 = vcombine.high %v17201_v9, %v17204_v43 }
 0x1ea   : > { %v2154_v54 = vcombine.low %v17218_v62, %v17224_v46  ;;  %v2186_v12 = vcombine.low %v17230_v27, %v17233_v1  ;;  %v23098_v45 = vcombine.high %v16837_v30, %v16840_v0  ;;  %v23100_v55 = vcombine.high %v16859_v39, %v16862_v40 }
 0x1eb   : > { %v14545_v33 = vcombine.low %v17207_v32, %v17210_v59  ;;  %v14549_v15 = vcombine.low %v17236_v24, %v17239_v36  ;;  %v14551_v50 = vcombine.high %v17236_v24, %v17239_v36  ;;  %v17290_v61 = vrot.slane %v2018_v17, %v16617_v13 }
 0x1ec   : > { %v17279_v52 = vrot.slane %v23098_v45, %v16617_v13  ;;  %v17293_v24 = vrot.slane %v2050_v58, %v16617_v13  ;;  %v2051_v36 = vcombine.high %v1985_v7, %v2001_v4  ;;  %v17300_v39 = vrot.slane %v1747_v5, %v16617_v13 }
 0x1ed   : > { %2780 = vrot.lane.b32.xlu1 %v16677_v16, %s16363_s19  ;;  %2814 = vrot.lane.b32.xlu0 %v17090_v26, %s16363_s19  ;;  %v14557_v16 = vcombine.low %v17201_v9, %v17204_v43  ;;  %v14547_v26 = vcombine.high %v17207_v32, %v17210_v59  ;;  %v17285_v32 = vrot.slane %v23100_v55, %v16617_v13  ;;  %v17287_v59 = vpop.permute.xlu0 %2818 }
 0x1ee   : > { %23099 = vst [vmem:[#allocation34_spill] sm:$0xff] %v17279_v52  ;;  %23102 = vst [vmem:[#allocation36_spill] sm:$0xff] %v17290_v61  ;;  %v17303_v40 = vrot.slane %v1779_v53, %v16617_v13  ;;  %v17333_v45 = vrot.slane %v2051_v36, %v16617_v13  ;;  %v2963_v55 = vcombine.high %v17126_v10, %v17212_v20 }
 0x1ef   : > { %23101 = vst [vmem:[#allocation35_spill] sm:$0xff] %v17285_v32  ;;  %23103 = vst [vmem:[#allocation37_spill] sm:$0xff] %v17293_v24  ;;  %v2155_v4 = vcombine.high %v17218_v62, %v17224_v46  ;;  %v2947_v53 = vcombine.high %v16668_v11, %v17174_v18  ;;  %v2187_v62 = vcombine.high %v17230_v27, %v17233_v1  ;;  %v23113_v27 = vld [vmem:[#allocation21_spill] sm:$0xff] }
 0x1f0   : > { %23104 = vst [vmem:[#allocation38_spill] sm:$0xff] %v17300_v39  ;;  %23105 = vst [vmem:[#allocation39_spill] sm:$0xff] %v17303_v40  ;;  %v23110_v46 = vcombine.low %v16899_v2, %v16902_v8 }
 0x1f1   : > { %2796 = vrot.lane.b32.xlu1 %v16685_v21, %s16363_s19  ;;  %v2019_v21 = vcombine.high %v1953_v44, %v1969_v41  ;;  %v17310_v44 = vrot.slane %v2154_v54, %v16617_v13  ;;  %v17313_v41 = vrot.slane %v2186_v12, %v16617_v13  ;;  %v2962_v54 = vcombine.low %v17126_v10, %v17212_v20 }
 0x1f2   : > { %23109 = vst [vmem:[#allocation43_spill] sm:$0xff] %v17333_v45  ;;  %v2946_v12 = vcombine.low %v16668_v11, %v17174_v18  ;;  %v2218_v36 = vrot.slane %v23110_v46, %v16609_v6  ;;  %v23111_v10 = vcombine.high %v16899_v2, %v16902_v8  ;;  %v23112_v18 = vld [vmem:[#allocation20_spill] sm:$0xff]  ;;  %v2977_v46 = vrot.slane %v2963_v55, %v16609_v6  ;;  %v23117_v11 = vld [vmem:[#allocation29_spill] sm:$0xff] }
 0x1f3   : > { %23106 = vst [vmem:[#allocation40_spill] sm:$0xff] %v17310_v44  ;;  %23107 = vst [vmem:[#allocation41_spill] sm:$0xff] %v17313_v41  ;;  %v2970_v20 = vrot.slane %v2962_v54, %v16609_v6  ;;  %v23114_v1 = vcombine.low %v23112_v18, %v23113_v27  ;;  %v17378_v58 = vrot.slane %v2155_v4, %v16617_v13 }
 0x1f4   : > { %v2234_v5 = vrot.slane %v23111_v10, %v16609_v6  ;;  %v23116_v2 = vcombine.high %v23112_v18, %v23113_v27  ;;  %v17385_v54 = vrot.slane %v14545_v33, %v16609_v6  ;;  %v2954_v10 = vrot.slane %v2946_v12, %v16609_v6 }
 0x1f5   : > { %2812 = vrot.lane.b32.xlu1 %v16693_v23, %s16363_s19  ;;  %v17330_v23 = vrot.slane %v2019_v21, %v16617_v13  ;;  %v17345_v21 = vpop.permute.xlu0 %2834  ;;  %v2250_v7 = vrot.slane %v23114_v1, %v16609_v6  ;;  %23115 = vst [vmem:[#allocation20_spill] sm:$0xff] %v17378_v58  ;;  %v17392_v1 = vrot.slane %v14549_v15, %v16609_v6 }
 0x1f6   : > { %v2266_v8 = vrot.slane %v23116_v2, %v16609_v6  ;;  %v17395_v55 = vrot.slane %v14551_v50, %v16609_v6  ;;  %v2961_v4 = vrot.slane %v2947_v53, %v16609_v6  ;;  %v17401_v18 = vrot.slane %v2187_v62, %v16617_v13 }
 0x1f7   : > { %23108 = vst [vmem:[#allocation42_spill] sm:$0xff] %v17330_v23  ;;  %v17407_v33 = vrot.slane %v14553_v25, %v16609_v6  ;;  %v17413_v15 = vrot.slane %v14555_v47, %v16609_v6  ;;  %v3011_v50 = vcombine.high %v2954_v10, %v2970_v20  ;;  %v17421_v12 = vrot.slane %v14557_v16, %v16609_v6  ;;  %v23124_v16 = vld [vmem:[#allocation26_spill] sm:$0xff] }
 0x1f8   : > { %23118 = vst [vmem:[#allocation21_spill] sm:$0xff] %v17401_v18  ;;  %v17427_v25 = vrot.slane %v14559_v63, %v16609_v6  ;;  %v3026_v62 = vcombine.low %v2961_v4, %v2977_v46  ;;  %v3027_v34 = vcombine.high %v2961_v4, %v2977_v46  ;;  %v2274_v48 = vcombine.low %v2218_v36, %v2234_v5  ;;  %v23127_v63 = vld [vmem:[#allocation30_spill] sm:$0xff] }
 0x1f9   : > { %2768 = vrot.lane.b32.xlu1 %v16519_v56, %s16363_s19  ;;  %v17389_v56 = vrot.slane %v14547_v26, %v16609_v6  ;;  %v3010_v26 = vcombine.low %v2954_v10, %v2970_v20  ;;  %v17415_v53 = vpop.permute.xlu0 %2850  ;;  %v2306_v47 = vcombine.low %v2250_v7, %v2266_v8  ;;  %v23119_v20 = vld [vmem:[#allocation23_spill] sm:$0xff]  ;;  %v23123_v10 = vld [vmem:[#allocation25_spill] sm:$0xff]  ;;  %v2578_v43 = vcombine.low %v17392_v1, %v17395_v55 }
 0x1fa   : > { %v23125_v17 = vcombine.low %v23123_v10, %v23124_v16  ;;  %v2307_v0 = vcombine.high %v2250_v7, %v2266_v8  ;;  %v3025_v35 = vrot.slane %v3011_v50, %v16617_v13  ;;  %v2682_v45 = vcombine.low %v17407_v33, %v17413_v15 }
 0x1fb   : > { %v2546_v9 = vcombine.low %v17385_v54, %v17389_v56  ;;  %v2714_v23 = vcombine.low %v17421_v12, %v17427_v25  ;;  %v3041_v32 = vrot.slane %v3027_v34, %v16617_v13  ;;  %v17460_v52 = vrot.slane %v2274_v48, %v16617_v13  ;;  %v23136_v48 = vld [vmem:[#allocation31_spill] sm:$0xff] }
 0x1fc   : > { %v17439_v30 = vrot.slane %v23125_v17, %v16617_v13  ;;  %v3018_v17 = vrot.slane %v3010_v26, %v16617_v13  ;;  %v17463_v7 = vrot.slane %v2306_v47, %v16617_v13  ;;  %v17469_v8 = vrot.slane %v2578_v43, %v16617_v13 }
 0x1fd   : > { %2784 = vrot.lane.b32.xlu1 %v23117_v11, %s16363_s19  ;;  %v23120_v11 = vld [vmem:[#allocation24_spill] sm:$0xff]  ;;  %v17491_v43 = vrot.slane %v2307_v0, %v16617_v13 }
 0x1fe   : > { %v23121_v27 = vcombine.low %v23119_v20, %v23120_v11  ;;  %23126 = vst [vmem:[#allocation23_spill] sm:$0xff] %v17439_v30  ;;  %23128 = vst [vmem:[#allocation24_spill] sm:$0xff] %v17460_v52  ;;  %v23132_v26 = vcombine.high %v23119_v20, %v23120_v11  ;;  %v2547_v20 = vcombine.high %v17385_v54, %v17389_v56 }
 0x1ff   : > { %23129 = vst [vmem:[#allocation25_spill] sm:$0xff] %v17463_v7  ;;  %23131 = vst [vmem:[#allocation30_spill] sm:$0xff] %v17469_v8  ;;  %v14561_v11 = vcombine.low %v3018_v17, %v3025_v35 }
 0x200   : > { %v17433_v2 = vrot.slane %v23121_v27, %v16617_v13  ;;  %v2275_v27 = vcombine.high %v2218_v36, %v2234_v5  ;;  %v2867_v5 = vpop.permute.xlu0 %2866  ;;  %v17466_v36 = vrot.slane %v2546_v9, %v16617_v13  ;;  %v17475_v50 = vrot.slane %v23132_v26, %v16617_v13  ;;  %23138 = vst [vmem:[#allocation46_spill] sm:$0xff] %v17491_v43 }
 0x201   : > { %2800 = vrot.lane.b32.xlu1 %v23127_v63, %s16363_s19  ;;  %v3034_v63 = vrot.slane %v3026_v62, %v16617_v13  ;;  %v23134_v62 = vcombine.high %v23123_v10, %v23124_v16  ;;  %v17498_v16 = vrot.slane %v2682_v45, %v16617_v13  ;;  %v17501_v26 = vrot.slane %v2714_v23, %v16617_v13  ;;  %v23142_v10 = vld [vmem:[#allocation8_spill] sm:$0xff] }
 0x202   : > { %23122 = vst [vmem:[#allocation29_spill] sm:$0xff] %v17433_v2  ;;  %23130 = vst [vmem:[#allocation26_spill] sm:$0xff] %v17466_v36  ;;  %v17488_v9 = vrot.slane %v2275_v27, %v16617_v13  ;;  %v17525_v54 = vrot.slane %v14561_v11, %v16609_v6 }
 0x203   : > { %v2773_v46 = vpop.permute.xlu1 %2772  ;;  %23133 = vst [vmem:[#allocation44_spill] sm:$0xff] %v17475_v50  ;;  %v17481_v34 = vrot.slane %v23134_v62, %v16617_v13  ;;  %23139 = vst [vmem:[#allocation47_spill] sm:$0xff] %v17498_v16  ;;  %v14563_v62 = vcombine.high %v3018_v17, %v3025_v35  ;;  %v14567_v27 = vcombine.high %v3034_v63, %v3041_v32 }
 0x204   : > { %23137 = vst [vmem:[#allocation31_spill] sm:$0xff] %v17488_v9  ;;  %23140 = vst [vmem:[#allocation48_spill] sm:$0xff] %v17501_v26 }
 0x205   : > { %23135 = vst [vmem:[#allocation45_spill] sm:$0xff] %v17481_v34  ;;  %2816 = vrot.lane.b32.xlu1 %v23136_v48, %s16363_s19  ;;  %v14565_v48 = vcombine.low %v3034_v63, %v3041_v32  ;;  %v17522_v63 = vrot.slane %v2547_v20, %v16617_v13  ;;  %v17532_v32 = vrot.slane %v14563_v62, %v16609_v6 }
 0x206   : > { %v17538_v17 = vrot.slane %v14567_v27, %v16609_v6  ;;  %v2994_v20 = vcombine.low %v17345_v21, %v2867_v5  ;;  %v2978_v62 = vcombine.low %v17287_v59, %v17415_v53 }
 0x207   : > { %v2789_v47 = vpop.permute.xlu1 %2788  ;;  %v17505_v4 = vpop.permute.xlu0 %2774  ;;  %23141 = vst [vmem:[#allocation49_spill] sm:$0xff] %v17522_v63  ;;  %v17535_v23 = vrot.slane %v14565_v48, %v16609_v6  ;;  %v2995_v48 = vcombine.high %v17345_v21, %v2867_v5  ;;  %v4098_v5 = vcombine.low %v17525_v54, %v17532_v32 }
 0x208   : > { %v3082_v45 = vcombine.low %v23142_v10, %v2789_v47  ;;  %v3083_v56 = vcombine.high %v23142_v10, %v2789_v47  ;;  %v2579_v10 = vcombine.high %v17392_v1, %v17395_v55  ;;  %v2979_v1 = vcombine.high %v17287_v59, %v17415_v53 }
 0x209   : > { %v3002_v55 = vrot.slane %v2994_v20, %v16609_v6  ;;  %v4130_v35 = vcombine.low %v17535_v23, %v17538_v17  ;;  %v3009_v26 = vrot.slane %v2995_v48, %v16609_v6  ;;  %v4099_v59 = vcombine.high %v17525_v54, %v17532_v32 }
 0x20a   : > { %v4131_v53 = vcombine.high %v17535_v23, %v17538_v17 }
 0x20b   : > { %v2805_v11 = vpop.permute.xlu1 %2804  ;;  %v17541_v50 = vpop.permute.xlu0 %2790 }
 0x20c   : > { %v3098_v0 = vcombine.low %v2773_v46, %v2805_v11  ;;  %v3099_v34 = vcombine.high %v2773_v46, %v2805_v11  ;;  %v3090_v46 = vrot.slane %v3082_v45, %v16609_v6  ;;  %v3097_v11 = vrot.slane %v3083_v56, %v16609_v6 }
 0x20d   : > { %v17628_v7 = vrot.slane %v4131_v53, %v16617_v13 }
 0x20e   : > { %v3106_v47 = vrot.slane %v3098_v0, %v16609_v6  ;;  %v3113_v43 = vrot.slane %v3099_v34, %v16609_v6  ;;  %v2986_v34 = vrot.slane %v2978_v62, %v16609_v6 }
 0x20f   : > { %v17561_v21 = vpop.permute.xlu1 %2820  ;;  %v2807_v0 = vpop.permute.xlu0 %2806 }
 0x210   : > { %v3146_v45 = vcombine.low %v3090_v46, %v3106_v47  ;;  %v3147_v27 = vcombine.high %v3090_v46, %v3106_v47  ;;  %v3162_v56 = vcombine.low %v3097_v11, %v3113_v43  ;;  %v3163_v9 = vcombine.high %v3097_v11, %v3113_v43 }
 0x211   : > { %v2993_v43 = vrot.slane %v2979_v1, %v16609_v6  ;;  %v3042_v46 = vcombine.low %v2986_v34, %v3002_v55  ;;  %v3043_v62 = vcombine.high %v2986_v34, %v3002_v55  ;;  %v3234_v48 = vcombine.low %v17505_v4, %v2807_v0 }
 0x212   : > { %v3154_v20 = vrot.slane %v3146_v45, %v16617_v13  ;;  %v3161_v16 = vrot.slane %v3147_v27, %v16617_v13  ;;  %v3170_v8 = vrot.slane %v3162_v56, %v16617_v13  ;;  %v3177_v47 = vrot.slane %v3163_v9, %v16617_v13  ;;  %v23143_v56 = vld [vmem:[#allocation28_spill] sm:$0xff] }
 0x213   : > { %v17579_v11 = vpop.permute.xlu1 %2836  ;;  %v17581_v17 = vpop.permute.xlu0 %490  ;;  %v3058_v45 = vcombine.low %v2993_v43, %v3009_v26  ;;  %v3059_v27 = vcombine.high %v2993_v43, %v3009_v26  ;;  %v3218_v30 = vcombine.low %v23143_v56, %v17541_v50  ;;  %v3235_v9 = vcombine.high %v17505_v4, %v2807_v0 }
 0x214   : > { %v14569_v54 = vcombine.low %v3154_v20, %v3161_v16  ;;  %v14571_v32 = vcombine.high %v3154_v20, %v3161_v16  ;;  %v14573_v36 = vcombine.low %v3170_v8, %v3177_v47  ;;  %v14575_v23 = vcombine.high %v3170_v8, %v3177_v47  ;;  %2826 = vrot.lane.b32.xlu0 %v17581_v17, %s16363_s19 }
 0x215   : > { %v3050_v34 = vrot.slane %v3042_v46, %v16617_v13  ;;  %v3057_v26 = vrot.slane %v3043_v62, %v16617_v13  ;;  %v17597_v47 = vrot.slane %v4098_v5, %v16617_v13  ;;  %v17600_v4 = vrot.slane %v4130_v35, %v16617_v13 }
 0x216   : > { %v4178_v1 = vrot.slane %v14569_v54, %v16609_v6  ;;  %v4194_v55 = vrot.slane %v14571_v32, %v16609_v6  ;;  %v4210_v16 = vrot.slane %v14573_v36, %v16609_v6  ;;  %v4226_v8 = vrot.slane %v14575_v23, %v16609_v6 }
 0x217   : > { %v17594_v20 = vpop.permute.xlu1 %2852  ;;  %v3219_v0 = vcombine.high %v23143_v56, %v17541_v50  ;;  %v3242_v43 = vrot.slane %v3234_v48, %v16609_v6  ;;  %v17605_v36 = vpop.permute.xlu0 %514  ;;  %v3066_v46 = vrot.slane %v3058_v45, %v16617_v13  ;;  %v3073_v62 = vrot.slane %v3059_v27, %v16617_v13 }
 0x218   : > { %v4234_v54 = vcombine.low %v4178_v1, %v4194_v55  ;;  %v4266_v32 = vcombine.low %v4210_v16, %v4226_v8  ;;  %2842 = vrot.lane.b32.xlu0 %v17605_v36, %s16363_s19  ;;  %v17612_v5 = vrot.slane %v4099_v59, %v16617_v13  ;;  %v17615_v35 = vrot.slane %v2579_v10, %v16617_v13 }
 0x219   : > { %v3226_v50 = vrot.slane %v3218_v30, %v16609_v6  ;;  %v3249_v48 = vrot.slane %v3235_v9, %v16609_v6  ;;  %v14562_v27 = vcombine.low %v3050_v34, %v3057_v26  ;;  %v14564_v56 = vcombine.high %v3050_v34, %v3057_v26 }
 0x21a   : > { %23144 = vst [vmem:[#allocation8_spill] sm:$0xff] %v17615_v35  ;;  %v17620_v23 = vrot.slane %v4234_v54, %v16617_v13  ;;  %v17623_v45 = vrot.slane %v4266_v32, %v16617_v13  ;;  %v4162_v59 = vcombine.low %v17597_v47, %v17600_v4  ;;  %v3233_v10 = vrot.slane %v3219_v0, %v16609_v6 }
 0x21b   : > { %v2869_v2 = vpop.permute.xlu1 %2868  ;;  %v3282_v30 = vcombine.low %v3226_v50, %v3242_v43  ;;  %v17631_v52 = vpop.permute.xlu0 %538  ;;  %v4235_v54 = vcombine.high %v4178_v1, %v4194_v55  ;;  %v14566_v32 = vcombine.low %v3066_v46, %v3073_v62  ;;  %v14568_v18 = vcombine.high %v3066_v46, %v3073_v62 }
 0x21c   : > { %v4298_v9 = vcombine.low %v17620_v23, %v17623_v45  ;;  %v3283_v58 = vcombine.high %v3226_v50, %v3242_v43  ;;  %2858 = vrot.lane.b32.xlu0 %v17631_v52, %s16363_s19  ;;  %v4267_v34 = vcombine.high %v4210_v16, %v4226_v8  ;;  %v3298_v26 = vcombine.low %v3233_v10, %v3249_v48 }
 0x21d   : > { %v3299_v0 = vcombine.high %v3233_v10, %v3249_v48  ;;  %v17644_v39 = vrot.slane %v4235_v54, %v16617_v13  ;;  %v23147_v46 = vcombine.high %v17407_v33, %v17413_v15  ;;  %v23149_v16 = vcombine.high %v17421_v12, %v17427_v25 }
 0x21e   : > { %v15720_v40 = vpack.c.bf16 %v4298_v9, %v4162_v59  ;;  %v17647_v55 = vrot.slane %v4267_v34, %v16617_v13  ;;  %v17664_v50 = vrot.slane %v14562_v27, %v16609_v6  ;;  %v17667_v48 = vrot.slane %v14564_v56, %v16609_v6 }
 0x21f   : > { %v2777_v1 = vpop.permute.xlu1 %2776  ;;  %v17655_v62 = vrot.slane %v23147_v46, %v16617_v13  ;;  %v17661_v8 = vrot.slane %v23149_v16, %v16617_v13  ;;  %v3290_v59 = vrot.slane %v3282_v30, %v16617_v13  ;;  %v17670_v10 = vpop.permute.xlu0 %562  ;;  %v4164_v33 = vcombine.low %v17612_v5, %v17628_v7 }
 0x220   : > { %15722 = vmatprep.subr.msk.bf16.mxu1 %vm17639_vm2, %v15720_v40  ;;  %v3297_v15 = vrot.slane %v3283_v58, %v16617_v13  ;;  %v3130_v12 = vcombine.low %v17579_v11, %v2869_v2  ;;  %v4300_v25 = vcombine.low %v17644_v39, %v17647_v55  ;;  %2874 = vrot.lane.b32.xlu0 %v17670_v10, %s16363_s19 }
 0x221   : > { %23148 = vst [vmem:[#allocation28_spill] sm:$0xff] %v17655_v62  ;;  %23150 = vst [vmem:[#allocation50_spill] sm:$0xff] %v17661_v8  ;;  %15725 = vmatpush3.bf16.xpose.msk.msra.mxu1 %vm17639_vm2, %v15720_v40  ;;  %v17685_v27 = vrot.slane %v14566_v32, %v16609_v6  ;;  %v17688_v56 = vrot.slane %v14568_v18, %v16609_v6  ;;  %v3306_v30 = vrot.slane %v3298_v26, %v16617_v13 }
 0x222   : > { %v3313_v58 = vrot.slane %v3299_v0, %v16617_v13  ;;  %v3114_v9 = vcombine.low %v17561_v21, %v17594_v20  ;;  %v3115_v54 = vcombine.high %v17561_v21, %v17594_v20  ;;  %v3131_v34 = vcombine.high %v17579_v11, %v2869_v2  ;;  %v23151_v11 = vld [vmem:[#allocation27_spill] sm:$0xff] }
 0x223   : > { %v15744_v46 = vpack.c.bf16 %v4300_v25, %v4164_v33  ;;  %v2793_v40 = vpop.permute.xlu1 %2792  ;;  %v17697_v16 = vpop.permute.xlu0 %2822  ;;  %v14577_v43 = vcombine.low %v3290_v59, %v3297_v15  ;;  %v14579_v21 = vcombine.high %v3290_v59, %v3297_v15  ;;  %v3138_v2 = vrot.slane %v3130_v12, %v16609_v6 }
 0x224   : > { %v14581_v20 = vcombine.low %v3306_v30, %v3313_v58  ;;  %v4114_v33 = vcombine.low %v17664_v50, %v17667_v48  ;;  %v4146_v25 = vcombine.low %v17685_v27, %v17688_v56  ;;  %v4115_v59 = vcombine.high %v17664_v50, %v17667_v48 }
 0x225   : > { %15746 = vmatprep.subr.msk.bf16.mxu0 %vm17639_vm2, %v15744_v46  ;;  %v14583_v15 = vcombine.high %v3306_v30, %v3313_v58  ;;  %v3122_v12 = vrot.slane %v3114_v9, %v16609_v6  ;;  %v3129_v0 = vrot.slane %v3115_v54, %v16609_v6  ;;  %v3145_v26 = vrot.slane %v3131_v34, %v16609_v6 }
 0x226   : > { %15749 = vmatpush3.bf16.xpose.msk.msra.mxu0 %vm17639_vm2, %v15744_v46  ;;  %v3354_v18 = vcombine.low %v23151_v11, %v2793_v40  ;;  %v3355_v46 = vcombine.high %v23151_v11, %v2793_v40  ;;  %v17728_v63 = vrot.slane %v14577_v43, %v16609_v6  ;;  %v17731_v50 = vrot.slane %v14579_v21, %v16609_v6 }
 0x227   : > { %v2809_v32 = vpop.permute.xlu1 %2808  ;;  %v17725_v35 = vpop.permute.xlu0 %2838  ;;  %v3178_v48 = vcombine.low %v3122_v12, %v3138_v2  ;;  %v3179_v30 = vcombine.high %v3122_v12, %v3138_v2  ;;  %v17741_v40 = vrot.slane %v14583_v15, %v16609_v6  ;;  %v3194_v43 = vcombine.low %v3129_v0, %v3145_v26 }
 0x228   : > { %v3370_v8 = vcombine.low %v2777_v1, %v2809_v32  ;;  %v3371_v62 = vcombine.high %v2777_v1, %v2809_v32  ;;  %v3362_v58 = vrot.slane %v3354_v18, %v16609_v6  ;;  %v3369_v9 = vrot.slane %v3355_v46, %v16609_v6 }
 0x229   : > { %v17738_v1 = vrot.slane %v14581_v20, %v16609_v6  ;;  %v3195_v32 = vcombine.high %v3129_v0, %v3145_v26  ;;  %v17752_v20 = vrot.slane %v4114_v33, %v16617_v13  ;;  %v4370_v33 = vcombine.low %v17728_v63, %v17731_v50 }
 0x22a   : > { %v3378_v54 = vrot.slane %v3370_v8, %v16609_v6  ;;  %v3385_v34 = vrot.slane %v3371_v62, %v16609_v6  ;;  %v3186_v62 = vrot.slane %v3178_v48, %v16617_v13  ;;  %v3193_v8 = vrot.slane %v3179_v30, %v16617_v13 }
 0x22b   : > { %v17743_v21 = vpop.permute.xlu1 %492  ;;  %v17745_v41 = vpop.permute.xlu0 %2854  ;;  %v3209_v48 = vrot.slane %v3195_v32, %v16617_v13  ;;  %v4402_v30 = vcombine.low %v17738_v1, %v17741_v40  ;;  %v17771_v32 = vrot.slane %v4146_v25, %v16617_v13  ;;  %v1170_v25 = vcombine.low %v17605_v36, %v17670_v10 }
 0x22c   : > { %v3418_v11 = vcombine.low %v3362_v58, %v3378_v54  ;;  %v3419_v2 = vcombine.high %v3362_v58, %v3378_v54  ;;  %v3434_v12 = vcombine.low %v3369_v9, %v3385_v34  ;;  %v3435_v18 = vcombine.high %v3369_v9, %v3385_v34  ;;  %2828 = vrot.lane.b32.xlu1 %v17743_v21, %s16363_s19 }
 0x22d   : > { %v3202_v9 = vrot.slane %v3194_v43, %v16617_v13  ;;  %v14572_v43 = vcombine.high %v3186_v62, %v3193_v8  ;;  %v1155_v28 = vcombine.high %v17581_v17, %v17631_v52 }
 0x22e   : > { %v3426_v0 = vrot.slane %v3418_v11, %v16617_v13  ;;  %v3433_v15 = vrot.slane %v3419_v2, %v16617_v13  ;;  %v3442_v46 = vrot.slane %v3434_v12, %v16617_v13  ;;  %v3449_v58 = vrot.slane %v3435_v18, %v16617_v13 }
 0x22f   : > { %v17762_v54 = vpop.permute.xlu1 %516  ;;  %v2871_v44 = vpop.permute.xlu0 %2870  ;;  %v14570_v12 = vcombine.low %v3186_v62, %v3193_v8  ;;  %v17774_v18 = vrot.slane %v4115_v59, %v16617_v13  ;;  %v1154_v62 = vcombine.low %v17581_v17, %v17631_v52 }
 0x230   : > { %v14585_v34 = vcombine.low %v3426_v0, %v3433_v15  ;;  %v14587_v11 = vcombine.high %v3426_v0, %v3433_v15  ;;  %v14589_v26 = vcombine.low %v3442_v46, %v3449_v58  ;;  %v14591_v2 = vcombine.high %v3442_v46, %v3449_v58  ;;  %2844 = vrot.lane.b32.xlu1 %v17762_v54, %s16363_s19 }
 0x231   : > { %v14574_v46 = vcombine.low %v3202_v9, %v3209_v48  ;;  %v14576_v58 = vcombine.high %v3202_v9, %v3209_v48 }
 0x232   : > { %v4450_v24 = vrot.slane %v14585_v34, %v16609_v6  ;;  %v4466_v61 = vrot.slane %v14587_v11, %v16609_v6  ;;  %v17779_v0 = vrot.slane %v14589_v26, %v16609_v6  ;;  %v17782_v15 = vrot.slane %v14591_v2, %v16609_v6 }
 0x233   : > { %v17788_v59 = vpop.permute.xlu1 %540  ;;  %v17790_v8 = vpop.permute.xlu0 %494  ;;  %v17795_v26 = vrot.slane %v4370_v33, %v16617_v13  ;;  %v17798_v34 = vrot.slane %v4402_v30, %v16617_v13  ;;  %v17803_v11 = vrot.slane %v14570_v12, %v16609_v6  ;;  %v17806_v2 = vrot.slane %v14572_v43, %v16609_v6 }
 0x234   : > { %2860 = vrot.lane.b32.xlu1 %v17788_v59, %s16363_s19  ;;  %v4506_v9 = vcombine.low %v4450_v24, %v4466_v61  ;;  %v4538_v48 = vcombine.low %v17779_v0, %v17782_v15  ;;  %v1171_v33 = vcombine.high %v17605_v36, %v17670_v10  ;;  %2830 = vrot.lane.b32.xlu0 %v17790_v8, %s16363_s19 }
 0x235   : > { %v4371_v12 = vcombine.high %v17728_v63, %v17731_v50  ;;  %v4403_v43 = vcombine.high %v17738_v1, %v17741_v40  ;;  %v17825_v52 = vrot.slane %v14574_v46, %v16609_v6  ;;  %v17828_v17 = vrot.slane %v14576_v58, %v16609_v6 }
 0x236   : > { %v17815_v30 = vrot.slane %v4506_v9, %v16617_v13  ;;  %v17818_v3 = vrot.slane %v4538_v48, %v16617_v13  ;;  %v17831_v36 = vrot.slane %v1170_v25, %v16609_v6  ;;  %v4299_v9 = vcombine.high %v17620_v23, %v17623_v45 }
 0x237   : > { %23152 = vst [vmem:[#allocation27_spill] sm:$0xff] %v17825_v52  ;;  %23153 = vst [vmem:[#allocation51_spill] sm:$0xff] %v17828_v17  ;;  %v565_v10 = vpop.permute.xlu1 %564  ;;  %v3266_v48 = vcombine.low %v17725_v35, %v2871_v44  ;;  %v3267_v63 = vcombine.high %v17725_v35, %v2871_v44  ;;  %v17837_v50 = vpop.permute.xlu0 %518  ;;  %v4434_v1 = vcombine.low %v17795_v26, %v17798_v34 }
 0x238   : > { %2876 = vrot.lane.b32.xlu1 %v565_v10, %s16363_s19  ;;  %v4570_v40 = vcombine.low %v17815_v30, %v17818_v3  ;;  %v1162_v46 = vrot.slane %v1154_v62, %v16609_v6  ;;  %v3250_v58 = vcombine.low %v17697_v16, %v17745_v41  ;;  %2846 = vrot.lane.b32.xlu0 %v17837_v50, %s16363_s19 }
 0x239   : > { %v4507_v23 = vcombine.high %v4450_v24, %v4466_v61  ;;  %v4250_v44 = vcombine.low %v17803_v11, %v17806_v2  ;;  %v3251_v35 = vcombine.high %v17697_v16, %v17745_v41  ;;  %v17854_v25 = vrot.slane %v4371_v12, %v16617_v13 }
 0x23a   : > { %v15726_v45 = vpack.c.bf16 %v4570_v40, %v4434_v1  ;;  %v17857_v38 = vrot.slane %v4403_v43, %v16617_v13  ;;  %v17860_v62 = vrot.slane %v1155_v28, %v16609_v6  ;;  %v17863_v51 = vrot.slane %v1171_v33, %v16609_v6 }
 0x23b   : > { %v17865_v61 = vpop.permute.xlu1 %496  ;;  %v4282_v24 = vcombine.low %v17825_v52, %v17828_v17  ;;  %v23155_v41 = vcombine.high %v17685_v27, %v17688_v56  ;;  %v1218_v12 = vcombine.low %v1162_v46, %v17831_v36  ;;  %v3274_v43 = vrot.slane %v3266_v48, %v16609_v6  ;;  %v17878_v1 = vpop.permute.xlu0 %542 }
 0x23c   : > { %23154 = vst [vmem:[#allocation52_spill] sm:$0xff] %v17865_v61  ;;  %v3281_v28 = vrot.slane %v3267_v63, %v16609_v6  ;;  %2832 = vrot.lane.b32.xlu1 %v17865_v61, %s16363_s19  ;;  %v23156_v33 = vcombine.high %v17597_v47, %v17600_v4  ;;  %15728 = vmatprep.subr.msk.bf16.mxu1 %vm17639_vm2, %v15726_v45 }
 0x23d   : > { %v17873_v16 = vrot.slane %v23155_v41, %v16617_v13  ;;  %v17890_v27 = vrot.slane %v4507_v23, %v16617_v13  ;;  %v4539_v56 = vcombine.high %v17779_v0, %v17782_v15  ;;  %2862 = vrot.lane.b32.xlu0 %v17878_v1, %s16363_s19  ;;  %v17897_v48 = vrot.slane %v4250_v44, %v16617_v13 }
 0x23e   : > { %v17885_v40 = vpack.c.bf16 %v4299_v9, %v23156_v33  ;;  %v1219_v63 = vcombine.high %v1162_v46, %v17831_v36  ;;  %v3258_v47 = vrot.slane %v3250_v58, %v16609_v6  ;;  %v3265_v4 = vrot.slane %v3251_v35, %v16609_v6  ;;  %15731 = vmatpush3.bf16.xpose.msk.msra.mxu1 %vm17639_vm2, %v15726_v45 }
 0x23f   : > { %v4436_v9 = vcombine.low %v17854_v25, %v17857_v38  ;;  %v1306_v0 = vcombine.low %v17762_v54, %v565_v10  ;;  %v1307_v15 = vcombine.high %v17762_v54, %v565_v10  ;;  %v17909_v23 = vrot.slane %v4539_v56, %v16617_v13  ;;  %v17917_v46 = vpop.permute.xlu1 %520  ;;  %v17923_v10 = vpop.permute.xlu0 %566 }
 0x240   : > { %15734 = vmatprep.subr.msk.bf16.mxu1 %vm17639_vm2, %v17885_v40  ;;  %v17915_v36 = vrot.slane %v4282_v24, %v16617_v13  ;;  %23157 = vst [vmem:[#allocation53_spill] sm:$0xff] %v17917_v46  ;;  %v3314_v58 = vcombine.low %v3258_v47, %v3274_v43  ;;  %v3315_v44 = vcombine.high %v3258_v47, %v3274_v43 }
 0x241   : > { %v1290_v35 = vcombine.low %v17743_v21, %v17788_v59  ;;  %v1291_v54 = vcombine.high %v17743_v21, %v17788_v59  ;;  %2848 = vrot.lane.b32.xlu1 %v17917_v46, %s16363_s19  ;;  %v3330_v45 = vcombine.low %v3265_v4, %v3281_v28  ;;  %v3331_v41 = vcombine.high %v3265_v4, %v3281_v28 }
 0x242   : > { %v4572_v24 = vcombine.low %v17890_v27, %v17909_v23  ;;  %v4302_v33 = vcombine.low %v17897_v48, %v17915_v36  ;;  %2878 = vrot.lane.b32.xlu0 %v17923_v10, %s16363_s19  ;;  %v1234_v43 = vcombine.low %v17860_v62, %v17863_v51  ;;  %v1235_v21 = vcombine.high %v17860_v62, %v17863_v51 }
 0x243   : > { %v4166_v59 = vcombine.low %v17752_v20, %v17771_v32  ;;  %v17942_v56 = vrot.slane %v1218_v12, %v16617_v13  ;;  %v1314_v47 = vrot.slane %v1306_v0, %v16609_v6  ;;  %v1321_v4 = vrot.slane %v1307_v15, %v16609_v6  ;;  %v17946_v46 = vpop.permute.xlu1 %544  ;;  %v17954_v28 = vpop.permute.xlu0 %2762 }
 0x244   : > { %v15750_v61 = vpack.c.bf16 %v4572_v24, %v4436_v9  ;;  %23159 = vst [vmem:[#allocation55_spill] sm:$0xff] %v17946_v46  ;;  %v17949_v52 = vrot.slane %v1219_v63, %v16617_v13  ;;  %v3322_v51 = vrot.slane %v3314_v58, %v16617_v13  ;;  %v1298_v62 = vrot.slane %v1290_v35, %v16609_v6 }
 0x245   : > { %23158 = vst [vmem:[#allocation54_spill] sm:$0xff] %v17942_v56  ;;  %v1305_v17 = vrot.slane %v1291_v54, %v16609_v6  ;;  %2864 = vrot.lane.b32.xlu1 %v17946_v46, %s16363_s19  ;;  %v3329_v12 = vrot.slane %v3315_v44, %v16617_v13  ;;  %v3338_v9 = vrot.slane %v3330_v45, %v16617_v13 }
 0x246   : > { %23160 = vst [vmem:[#allocation56_spill] sm:$0xff] %v17949_v52  ;;  %v3345_v0 = vrot.slane %v3331_v41, %v16617_v13  ;;  %15752 = vmatprep.subr.msk.bf16.mxu0 %vm17639_vm2, %v15750_v61  ;;  %v15768_v63 = vpack.c.bf16 %v4302_v33, %v4166_v59  ;;  %v17964_v15 = vrot.slane %v1234_v43, %v16617_v13  ;;  %v23165_v43 = vld [vmem:[#allocation11_spill] sm:$0xff]  ;;  %v23181_v52 = vld [vmem:[#allocation18_spill] sm:$0xff] }
 0x247   : > { %15755 = vmatpush3.bf16.xpose.msk.msra.mxu0 %vm17639_vm2, %v15750_v61  ;;  %v23162_v58 = vcombine.low %v16999_v19, %v17002_v37  ;;  %v17977_v54 = vrot.slane %v1235_v21, %v16617_v13  ;;  %v1354_v45 = vcombine.low %v1298_v62, %v1314_v47  ;;  %v1355_v41 = vcombine.high %v1298_v62, %v1314_v47  ;;  %v17981_v61 = vpop.permute.xlu1 %568  ;;  %v2779_v62 = vpop.permute.xlu0 %2778 }
 0x248   : > { %23161 = vst [vmem:[#allocation57_spill] sm:$0xff] %v17964_v15  ;;  %v1370_v24 = vcombine.low %v1305_v17, %v1321_v4  ;;  %15770 = vmatprep.subr.msk.bf16.mxu0 %vm17639_vm2, %v15768_v63  ;;  %23164 = vst [vmem:[#allocation59_spill] sm:$0xff] %v17981_v61  ;;  %v1371_v33 = vcombine.high %v1305_v17, %v1321_v4  ;;  %5132 = vrot.lane.b32.xlu0 %v23165_v43, %s16357_s12  ;;  %v23180_v15 = vld [vmem:[#allocation17_spill] sm:$0xff] }
 0x249   : > { %15237 = vmatmul.mubr.msk.f32.vlgmr.msra.gmra.mrb[8].mxu1 %vm7474_vm1, %v23162_v58  ;;  %23163 = vst [vmem:[#allocation58_spill] sm:$0xff] %v17977_v54  ;;  %v23166_v59 = vcombine.low %v17085_v42, %v17144_v49  ;;  %v4435_v21 = vcombine.high %v17795_v26, %v17798_v34  ;;  %v4571_v47 = vcombine.high %v17815_v30, %v17818_v3  ;;  %v23178_v26 = vld [vmem:[#allocation33_spill] sm:$0xff] }
 0x24a   : > { %v14578_v35 = vcombine.low %v3322_v51, %v3329_v12  ;;  %v14580_v17 = vcombine.high %v3322_v51, %v3329_v12  ;;  %v14582_v4 = vcombine.low %v3338_v9, %v3345_v0  ;;  %15737 = vmatpush3.bf16.xpose.msk.msra.mxu1 %vm17639_vm2, %v17885_v40  ;;  %v14584_v44 = vcombine.high %v3338_v9, %v3345_v0  ;;  %v23168_v51 = vld [vmem:[#allocation4_spill] sm:$0xff]  ;;  %v23169_v12 = vld [vmem:[#allocation5_spill] sm:$0xff] }
 0x24b   : > { %15239 = vmatprep.mubr.msk.f32.mxu1 %vm7474_vm1, %v23166_v59  ;;  %v1426_v59 = vcombine.low %v17790_v8, %v17878_v1  ;;  %v15738_v46 = vpack.c.bf16 %v4571_v47, %v4435_v21  ;;  %2880 = vrot.lane.b32.xlu1 %v17981_v61, %s16363_s19  ;;  %v23167_v3 = vcombine.low %v17154_v31, %v17157_v14  ;;  %v18016_v0 = vpop.permute.xlu1 %2824 }
 0x24c   : > { %v1362_v34 = vrot.slane %v1354_v45, %v16617_v13  ;;  %v1369_v30 = vrot.slane %v1355_v41, %v16617_v13  ;;  %v1427_v40 = vcombine.high %v17790_v8, %v17878_v1  ;;  %v23170_v9 = vcombine.high %v23168_v51, %v23169_v12  ;;  %v23171_v45 = vld [vmem:[#allocation9_spill] sm:$0xff]  ;;  %v2795_v41 = vpop.permute.xlu0 %2794 }
 0x24d   : > { %15240 = vmatmul.mubr.msk.f32.gmra.mrb[10].mxu1 %vm7474_vm1, %v23167_v3  ;;  %v1378_v21 = vrot.slane %v1370_v24, %v16617_v13  ;;  %v1385_v47 = vrot.slane %v1371_v33, %v16617_v13  ;;  %15740 = vmatprep.subr.msk.bf16.mxu1 %vm17639_vm2, %v15738_v46  ;;  %v4301_v8 = vcombine.high %v17644_v39, %v17647_v55 }
 0x24e   : > { %15250 = vmatprep.mubr.msk.f32.mxu1 %vm7474_vm1, %v23170_v9  ;;  %5178 = vrot.lane.b32.xlu0 %v23171_v45, %s16358_s13  ;;  %v18031_v24 = vrot.slane %v14578_v35, %v16609_v6  ;;  %v18034_v33 = vrot.slane %v14580_v17, %v16609_v6  ;;  %v23172_v51 = vcombine.low %v17005_v29, %v17008_v60 }
 0x24f   : > { %v18041_v12 = vrot.slane %v14582_v4, %v16609_v6  ;;  %v18044_v39 = vrot.slane %v14584_v44, %v16609_v6  ;;  %v18047_v55 = vrot.slane %v1426_v59, %v16609_v6  ;;  %v23173_v35 = vcombine.low %v17088_v22, %v17147_v57  ;;  %5130 = vrot.lane.b32.xlu1 %v23171_v45, %s16357_s12  ;;  %v2841_v44 = vpop.permute.xlu1 %2840 }
 0x250   : > { %15265 = vmatmul.mubr.msk.f32.vlgmr.msra.gmra.mrb[8].mxu0 %vm7474_vm1, %v23172_v51  ;;  %v14538_v17 = vcombine.low %v1362_v34, %v1369_v30  ;;  %v14540_v9 = vcombine.high %v1362_v34, %v1369_v30  ;;  %v18056_v51 = vrot.slane %v1427_v40, %v16609_v6  ;;  %v3490_v4 = vcombine.low %v17954_v28, %v2795_v41  ;;  %v2811_v30 = vpop.permute.xlu0 %2810  ;;  %v23177_v40 = vld [vmem:[#allocation32_spill] sm:$0xff] }
 0x251   : > { %15267 = vmatprep.mubr.msk.f32.mxu0 %vm7474_vm1, %v23173_v35  ;;  %15773 = vmatpush3.bf16.xpose.msk.msra.mxu0 %vm17639_vm2, %v15768_v63  ;;  %v14542_v59 = vcombine.low %v1378_v21, %v1385_v47  ;;  %v14544_v3 = vcombine.high %v1378_v21, %v1385_v47  ;;  %v23175_v35 = vld [vmem:[#allocation15_spill] sm:$0xff]  ;;  %v23176_v63 = vcombine.high %v17612_v5, %v17628_v7 }
 0x252   : > { %23174 = vst [vmem:[#allocation11_spill] sm:$0xff] %v18056_v51  ;;  %5136 = vrot.lane.b32.xlu0 %v23175_v35, %s16357_s12  ;;  %v23179_v58 = vcombine.low %v23177_v40, %v23178_v26  ;;  %v3491_v54 = vcombine.high %v17954_v28, %v2795_v41  ;;  %15743 = vmatpush3.bf16.xpose.msk.msra.mxu1 %vm17639_vm2, %v15738_v46 }
 0x253   : > { %v15756_v34 = vpack.c.bf16 %v4301_v8, %v23176_v63  ;;  %v3506_v21 = vcombine.low %v2779_v62, %v2811_v30  ;;  %v3507_v47 = vcombine.high %v2779_v62, %v2811_v30  ;;  %v23182_v7 = vcombine.low %v23180_v15, %v23181_v52  ;;  %5154 = vrot.lane.b32.xlu1 %v23171_v45, %s16356_s11  ;;  %v2857_v41 = vpop.permute.xlu1 %2856 }
 0x254   : > { %15268 = vmatmul.mubr.msk.f32.gmra.mrb[10].mxu0 %vm7474_vm1, %v23179_v58  ;;  %v4386_v5 = vcombine.low %v18031_v24, %v18034_v33  ;;  %v4418_v28 = vcombine.low %v18041_v12, %v18044_v39  ;;  %v3498_v46 = vrot.slane %v3490_v4, %v16609_v6  ;;  %v4573_v8 = vcombine.high %v17890_v27, %v17909_v23  ;;  %v18102_v4 = vpop.permute.xlu0 %2766 }
 0x255   : > { %15292 = vmatprep.mubr.msk.f32.mxu0 %vm7474_vm1, %v23182_v7  ;;  %15758 = vmatprep.subr.msk.bf16.mxu1 %vm17639_vm2, %v15756_v34  ;;  %v3514_v62 = vrot.slane %v3506_v21, %v16609_v6  ;;  %v3521_v58 = vrot.slane %v3507_v47, %v16609_v6  ;;  %v18095_v63 = vrot.slane %v14538_v17, %v16609_v6  ;;  %v23183_v7 = vld [vmem:[#allocation13_spill] sm:$0xff] }
 0x256   : > { %v18098_v30 = vrot.slane %v14540_v9, %v16609_v6  ;;  %5182 = vrot.lane.b32.xlu0 %v23183_v7, %s16358_s13  ;;  %v4437_v21 = vcombine.high %v17854_v25, %v17857_v38  ;;  %v4303_v47 = vcombine.high %v17897_v48, %v17915_v36  ;;  %v3505_v1 = vrot.slane %v3491_v54, %v16609_v6 }
 0x257   : > { %v3554_v27 = vcombine.low %v3498_v46, %v3514_v62  ;;  %v3555_v23 = vcombine.high %v3498_v46, %v3514_v62  ;;  %v3386_v17 = vcombine.low %v18016_v0, %v2857_v41  ;;  %v18111_v9 = vrot.slane %v14542_v59, %v16609_v6  ;;  %5156 = vrot.lane.b32.xlu1 %v23165_v43, %s16356_s11  ;;  %v2873_v54 = vpop.permute.xlu1 %2872 }
 0x258   : > { %v3387_v56 = vcombine.high %v18016_v0, %v2857_v41  ;;  %v18115_v61 = vrot.slane %v4386_v5, %v16617_v13  ;;  %v18118_v51 = vrot.slane %v4418_v28, %v16617_v13  ;;  %v18121_v38 = vrot.slane %v14544_v3, %v16609_v6  ;;  %v18131_v28 = vpop.permute.xlu0 %2782 }
 0x259   : > { %v3570_v25 = vcombine.low %v3505_v1, %v3521_v58  ;;  %v3571_v48 = vcombine.high %v3505_v1, %v3521_v58  ;;  %v15762_v36 = vpack.c.bf16 %v4573_v8, %v4437_v21  ;;  %v23184_v59 = vcombine.high %v16999_v19, %v17002_v37 }
 0x25a   : > { %5204 = vrot.lane.b32.xlu0 %v23165_v43, %s16359_s14  ;;  %v3402_v0 = vcombine.low %v2841_v44, %v2873_v54  ;;  %v3403_v5 = vcombine.high %v2841_v44, %v2873_v54  ;;  %v23185_v1 = vcombine.high %v17752_v20, %v17771_v32  ;;  %v3562_v46 = vrot.slane %v3554_v27, %v16617_v13 }
 0x25b   : > { %15251 = vmatmul.mubr.msk.f32.vlgmr.msra.gmra.mrb[12].mxu1 %vm7474_vm1, %v23184_v59  ;;  %v3569_v62 = vrot.slane %v3555_v23, %v16617_v13  ;;  %v3394_v37 = vrot.slane %v3386_v17, %v16609_v6  ;;  %v23186_v19 = vcombine.high %v17085_v42, %v17144_v49  ;;  %v4251_v44 = vcombine.high %v17803_v11, %v17806_v2  ;;  %v18158_v49 = vpop.permute.xlu1 %2764  ;;  %v23187_v2 = vld [vmem:[#allocation51_spill] sm:$0xff] }
 0x25c   : > { %v18136_v3 = vpack.c.bf16 %v4303_v47, %v23185_v1  ;;  %v3401_v58 = vrot.slane %v3387_v56, %v16609_v6  ;;  %15761 = vmatpush3.bf16.xpose.msk.msra.mxu1 %vm17639_vm2, %v15756_v34  ;;  %v3410_v20 = vrot.slane %v3402_v0, %v16609_v6  ;;  %v3417_v32 = vrot.slane %v3403_v5, %v16609_v6  ;;  %v23188_v56 = vld [vmem:[#allocation27_spill] sm:$0xff]  ;;  %v2799_v17 = vpop.permute.xlu0 %2798 }
 0x25d   : > { %15253 = vmatprep.mubr.msk.f32.mxu1 %vm7474_vm1, %v23186_v19  ;;  %v4438_v41 = vcombine.low %v18115_v61, %v18118_v51  ;;  %v3578_v8 = vrot.slane %v3570_v25, %v16617_v13  ;;  %v3585_v42 = vrot.slane %v3571_v48, %v16617_v13  ;;  %15764 = vmatprep.subr.msk.bf16.mxu1 %vm17639_vm2, %v15762_v36  ;;  %v23190_v19 = vld [vmem:[#allocation6_spill] sm:$0xff] }
 0x25e   : > { %v4439_v11 = vcombine.high %v18115_v61, %v18118_v51  ;;  %v4283_v34 = vcombine.high %v23188_v56, %v23187_v2  ;;  %v3450_v21 = vcombine.low %v3394_v37, %v3410_v20  ;;  %v3451_v47 = vcombine.high %v3394_v37, %v3410_v20  ;;  %5180 = vrot.lane.b32.xlu1 %v23165_v43, %s16358_s13 }
 0x25f   : > { %v3466_v27 = vcombine.low %v3401_v58, %v3417_v32  ;;  %v3467_v23 = vcombine.high %v3401_v58, %v3417_v32  ;;  %v14593_v25 = vcombine.low %v3562_v46, %v3569_v62  ;;  %v14595_v48 = vcombine.high %v3562_v46, %v3569_v62  ;;  %5250 = vrot.lane.b32.xlu0 %v23171_v45, %s16361_s16  ;;  %v23191_v46 = vld [vmem:[#allocation7_spill] sm:$0xff]  ;;  %v2781_v58 = vpop.permute.xlu1 %2780 }
 0x260   : > { %v23189_v54 = vcombine.high %v17154_v31, %v17157_v14  ;;  %v4265_v59 = vrot.slane %v4251_v44, %v16617_v13  ;;  %v3458_v0 = vrot.slane %v3450_v21, %v16617_v13  ;;  %v3465_v5 = vrot.slane %v3451_v47, %v16617_v13  ;;  %v2815_v47 = vpop.permute.xlu0 %2814 }
 0x261   : > { %v3474_v1 = vrot.slane %v3466_v27, %v16617_v13  ;;  %v3481_v37 = vrot.slane %v3467_v23, %v16617_v13  ;;  %v23192_v62 = vcombine.high %v23190_v19, %v23191_v46  ;;  %v14597_v14 = vcombine.low %v3578_v8, %v3585_v42 }
 0x262   : > { %15254 = vmatmul.mubr.msk.f32.gmra.mrb[14].mxu1 %vm7474_vm1, %v23189_v54  ;;  %v14599_v31 = vcombine.high %v3578_v8, %v3585_v42  ;;  %v4297_v20 = vrot.slane %v4283_v34, %v16617_v13  ;;  %v4387_v44 = vcombine.high %v18031_v24, %v18034_v33  ;;  %v14586_v32 = vcombine.low %v3458_v0, %v3465_v5 }
 0x263   : > { %15278 = vmatprep.mubr.msk.f32.mxu1 %vm7474_vm1, %v23192_v62  ;;  %v14588_v2 = vcombine.high %v3458_v0, %v3465_v5  ;;  %v14590_v56 = vcombine.low %v3474_v1, %v3481_v37  ;;  %v14592_v21 = vcombine.high %v3474_v1, %v3481_v37  ;;  %5134 = vrot.lane.b32.xlu1 %v23183_v7, %s16357_s12 }
 0x264   : > { %v3762_v27 = vcombine.low %v18102_v4, %v2799_v17  ;;  %v3763_v23 = vcombine.high %v18102_v4, %v2799_v17  ;;  %5274 = vrot.lane.b32.xlu0 %v23171_v45, %s16362_s17  ;;  %v3778_v8 = vcombine.low %v18131_v28, %v2815_v47  ;;  %v3779_v42 = vcombine.high %v18131_v28, %v2815_v47  ;;  %v2797_v17 = vpop.permute.xlu1 %2796 }
 0x265   : > { %v18193_v24 = vrot.slane %v14586_v32, %v16609_v6  ;;  %v18196_v33 = vrot.slane %v14588_v2, %v16609_v6  ;;  %v18199_v34 = vrot.slane %v14590_v56, %v16609_v6  ;;  %v18202_v54 = vrot.slane %v14592_v21, %v16609_v6  ;;  %15767 = vmatpush3.bf16.xpose.msk.msra.mxu1 %vm17639_vm2, %v15762_v36 }
 0x266   : > { %v18207_v4 = vrot.slane %v14593_v25, %v16609_v6  ;;  %15782 = vmatprep.subr.msk.bf16.mxu1 %vm17639_vm2, %v18136_v3  ;;  %v3786_v28 = vrot.slane %v3778_v8, %v16609_v6  ;;  %v4304_v0 = vcombine.low %v4265_v59, %v4297_v20  ;;  %v4305_v5 = vcombine.high %v4265_v59, %v4297_v20 }
 0x267   : > { %v18214_v1 = vrot.slane %v14595_v48, %v16609_v6  ;;  %v18217_v37 = vrot.slane %v14597_v14, %v16609_v6  ;;  %5158 = vrot.lane.b32.xlu1 %v23183_v7, %s16356_s11  ;;  %v4522_v36 = vcombine.low %v18193_v24, %v18196_v33  ;;  %v4554_v25 = vcombine.low %v18199_v34, %v18202_v54 }
 0x268   : > { %v3770_v19 = vrot.slane %v3762_v27, %v16609_v6  ;;  %v3793_v46 = vrot.slane %v3779_v42, %v16609_v6  ;;  %5208 = vrot.lane.b32.xlu0 %v23175_v35, %s16359_s14  ;;  %v3626_v48 = vcombine.low %v18158_v49, %v2797_v17  ;;  %v3627_v59 = vcombine.high %v18158_v49, %v2797_v17  ;;  %v2813_v21 = vpop.permute.xlu1 %2812 }
 0x269   : > { %v18232_v62 = vrot.slane %v14599_v31, %v16609_v6  ;;  %v3777_v14 = vrot.slane %v3763_v23, %v16609_v6  ;;  %v4530_v20 = vrot.slane %v4522_v36, %v16617_v13  ;;  %v4562_v32 = vrot.slane %v4554_v25, %v16617_v13 }
 0x26a   : > { %v3826_v2 = vcombine.low %v3770_v19, %v3786_v28  ;;  %v3827_v56 = vcombine.high %v3770_v19, %v3786_v28  ;;  %v23193_v47 = vcombine.low %v17774_v18, %v17873_v16  ;;  %v23194_v49 = vcombine.high %v17774_v18, %v17873_v16 }
 0x26b   : > { %5160 = vrot.lane.b32.xlu1 %v23175_v35, %s16356_s11  ;;  %v3642_v31 = vcombine.low %v2781_v58, %v2813_v21  ;;  %v3643_v23 = vcombine.high %v2781_v58, %v2813_v21  ;;  %v4574_v42 = vcombine.low %v4530_v20, %v4562_v32  ;;  %v18250_v17 = vrot.slane %v4387_v44, %v16617_v13 }
 0x26c   : > { %v18240_v27 = vpack.c.bf16 %v4304_v0, %v23193_v47  ;;  %v18245_v8 = vpack.c.bf16 %v4305_v5, %v23194_v49  ;;  %v3842_v28 = vcombine.low %v3777_v14, %v3793_v46  ;;  %v3634_v36 = vrot.slane %v3626_v48, %v16609_v6  ;;  %5254 = vrot.lane.b32.xlu0 %v23183_v7, %s16361_s16 }
 0x26d   : > { %v3641_v0 = vrot.slane %v3627_v59, %v16609_v6  ;;  %v23195_v25 = vcombine.high %v17005_v29, %v17008_v60  ;;  %v4575_v18 = vcombine.high %v4530_v20, %v4562_v32  ;;  %v23196_v16 = vcombine.high %v17088_v22, %v17147_v57  ;;  %v18274_v22 = vpop.permute.xlu1 %2768 }
 0x26e   : > { %v3650_v58 = vrot.slane %v3642_v31, %v16609_v6  ;;  %v3657_v44 = vrot.slane %v3643_v23, %v16609_v6  ;;  %v15774_v5 = vpack.c.bf16 %v4574_v42, %v4438_v41  ;;  %v3834_v29 = vrot.slane %v3826_v2, %v16617_v13 }
 0x26f   : > { %15279 = vmatmul.mubr.msk.f32.vlgmr.msra.gmra.mrb[16].mxu1 %vm7474_vm1, %v23195_v25  ;;  %v3841_v60 = vrot.slane %v3827_v56, %v16617_v13  ;;  %v3843_v19 = vcombine.high %v3777_v14, %v3793_v46  ;;  %v4419_v57 = vcombine.high %v18041_v12, %v18044_v39  ;;  %5184 = vrot.lane.b32.xlu1 %v23175_v35, %s16358_s13 }
 0x270   : > { %15281 = vmatprep.mubr.msk.f32.mxu1 %vm7474_vm1, %v23196_v16  ;;  %15785 = vmatpush3.bf16.xpose.msk.msra.mxu1 %vm17639_vm2, %v18136_v3  ;;  %v3690_v48 = vcombine.low %v3634_v36, %v3650_v58  ;;  %v3691_v59 = vcombine.high %v3634_v36, %v3650_v58  ;;  %v3706_v20 = vcombine.low %v3641_v0, %v3657_v44 }
 0x271   : > { %v3707_v32 = vcombine.high %v3641_v0, %v3657_v44  ;;  %v18281_v41 = vrot.slane %v3842_v28, %v16617_v13  ;;  %v23197_v46 = vcombine.high %v23177_v40, %v23178_v26  ;;  %15776 = vmatprep.subr.msk.bf16.mxu0 %vm17639_vm2, %v15774_v5  ;;  %v15786_v12 = vpack.c.bf16 %v4575_v18, %v4439_v11  ;;  %v2785_v51 = vpop.permute.xlu1 %2784  ;;  %v23199_v28 = vld [vmem:[#allocation12_spill] sm:$0xff] }
 0x272   : > { %v4523_v39 = vcombine.high %v18193_v24, %v18196_v33  ;;  %v3698_v3 = vrot.slane %v3690_v48, %v16617_v13  ;;  %v3705_v14 = vrot.slane %v3691_v59, %v16617_v13  ;;  %v3714_v2 = vrot.slane %v3706_v20, %v16617_v13  ;;  %5278 = vrot.lane.b32.xlu0 %v23183_v7, %s16362_s17  ;;  %v23201_v20 = vld [vmem:[#allocation10_spill] sm:$0xff] }
 0x273   : > { %15282 = vmatmul.mubr.msk.f32.gmra.mrb[18].mxu1 %vm7474_vm1, %v23197_v46  ;;  %v3721_v26 = vrot.slane %v3707_v32, %v16617_v13  ;;  %v18301_v40 = vrot.slane %v3843_v19, %v16617_v13  ;;  %v23198_v61 = vcombine.high %v23180_v15, %v23181_v52  ;;  %15788 = vmatprep.subr.msk.bf16.mxu1 %vm17639_vm2, %v15786_v12 }
 0x274   : > { %v4537_v11 = vrot.slane %v4523_v39, %v16617_v13  ;;  %v4555_v24 = vcombine.high %v18199_v34, %v18202_v54  ;;  %v14601_v33 = vcombine.low %v3698_v3, %v3705_v14  ;;  %v14603_v56 = vcombine.high %v3698_v3, %v3705_v14  ;;  %5202 = vrot.lane.b32.xlu1 %v23171_v45, %s16359_s14 }
 0x275   : > { %15306 = vmatprep.mubr.msk.f32.mxu1 %vm7474_vm1, %v23198_v61  ;;  %v14605_v21 = vcombine.low %v3714_v2, %v3721_v26  ;;  %v14607_v47 = vcombine.high %v3714_v2, %v3721_v26  ;;  %v14609_v49 = vcombine.low %v3834_v29, %v3841_v60  ;;  %v14611_v52 = vcombine.high %v3834_v29, %v3841_v60  ;;  %v2801_v18 = vpop.permute.xlu1 %2800  ;;  %v23202_v2 = vld [vmem:[#allocation19_spill] sm:$0xff]  ;;  %v23203_v26 = vld [vmem:[#allocation22_spill] sm:$0xff] }
 0x276   : > { %15779 = vmatpush3.bf16.xpose.msk.msra.mxu0 %vm17639_vm2, %v15774_v5  ;;  %v4433_v15 = vrot.slane %v4419_v57, %v16617_v13  ;;  %v4569_v31 = vrot.slane %v4555_v24, %v16617_v13  ;;  %v18319_v23 = vrot.slane %v14601_v33, %v16609_v6  ;;  %v18322_v34 = vrot.slane %v14603_v56, %v16609_v6  ;;  %v23205_v24 = vld [vmem:[#allocation36_spill] sm:$0xff]  ;;  %v23206_v33 = vld [vmem:[#allocation37_spill] sm:$0xff] }
 0x277   : > { %v18325_v54 = vrot.slane %v14605_v21, %v16609_v6  ;;  %v18328_v42 = vrot.slane %v14607_v47, %v16609_v6  ;;  %5140 = vrot.lane.b32.xlu0 %v23199_v28, %s16357_s12  ;;  %v23200_v36 = vcombine.low %v17837_v50, %v17923_v10  ;;  %v14613_v25 = vcombine.low %v18281_v41, %v18301_v40 }
 0x278   : > { %15791 = vmatpush3.bf16.xpose.msk.msra.mxu1 %vm17639_vm2, %v15786_v12  ;;  %15794 = vmatprep.subr.msk.bf16.mxu0 %vm17639_vm2, %v18240_v27  ;;  %v4642_v16 = vcombine.low %v18207_v4, %v18214_v1  ;;  %v14615_v58 = vcombine.high %v18281_v41, %v18301_v40  ;;  %v4576_v44 = vcombine.low %v4537_v11, %v4569_v31 }
 0x279   : > { %v18336_v0 = vrot.slane %v23200_v36, %v16609_v6  ;;  %15806 = vmatprep.subr.msk.bf16.mxu1 %vm17639_vm2, %v18245_v8  ;;  %5226 = vrot.lane.b32.xlu1 %v23171_v45, %s16360_s15  ;;  %v4674_v5 = vcombine.low %v18217_v37, %v18232_v62  ;;  %v3898_v29 = vcombine.low %v18274_v22, %v2801_v18  ;;  %v2817_v12 = vpop.permute.xlu1 %2816 }
 0x27a   : > { %v4577_v60 = vcombine.high %v4537_v11, %v4569_v31  ;;  %v4778_v19 = vcombine.low %v18319_v23, %v18322_v34  ;;  %v4810_v57 = vcombine.low %v18325_v54, %v18328_v42  ;;  %v18362_v48 = vrot.slane %v14609_v49, %v16609_v6 }
 0x27b   : > { %v18365_v59 = vrot.slane %v14611_v52, %v16609_v6  ;;  %5186 = vrot.lane.b32.xlu0 %v23201_v20, %s16358_s13  ;;  %v3899_v32 = vcombine.high %v18274_v22, %v2801_v18  ;;  %v4440_v41 = vcombine.low %v18250_v17, %v4433_v15  ;;  %v4441_v46 = vcombine.high %v18250_v17, %v4433_v15  ;;  %v23209_v52 = vld [vmem:[#allocation16_spill] sm:$0xff] }
 0x27c   : > { %v4650_v39 = vrot.slane %v4642_v16, %v16617_v13  ;;  %v4786_v3 = vrot.slane %v4778_v19, %v16617_v13  ;;  %v4818_v14 = vrot.slane %v4810_v57, %v16617_v13  ;;  %v23204_v40 = vcombine.low %v23202_v2, %v23203_v26 }
 0x27d   : > { %5228 = vrot.lane.b32.xlu1 %v23165_v43, %s16360_s15  ;;  %v3914_v22 = vcombine.low %v2785_v51, %v2817_v12  ;;  %v3915_v61 = vcombine.high %v2785_v51, %v2817_v12  ;;  %v4682_v11 = vrot.slane %v4674_v5, %v16617_v13  ;;  %v3906_v17 = vrot.slane %v3898_v29, %v16609_v6  ;;  %v23211_v29 = vld [vmem:[#allocation40_spill] sm:$0xff] }
 0x27e   : > { %15293 = vmatmul.mubr.msk.f32.vlgmr.msra.gmra.mrb[12].mxu0 %vm7474_vm1, %v23204_v40  ;;  %v23207_v56 = vcombine.low %v23205_v24, %v23206_v33  ;;  %v15798_v21 = vpack.c.bf16 %v4576_v44, %v4440_v41  ;;  %v15810_v47 = vpack.c.bf16 %v4577_v60, %v4441_v46  ;;  %v3913_v49 = vrot.slane %v3899_v32, %v16609_v6  ;;  %v23212_v60 = vld [vmem:[#allocation41_spill] sm:$0xff] }
 0x27f   : > { %15797 = vmatpush3.bf16.xpose.msk.msra.mxu0 %vm17639_vm2, %v18240_v27  ;;  %v23208_v51 = vcombine.high %v23202_v2, %v23203_v26  ;;  %5144 = vrot.lane.b32.xlu0 %v23209_v52, %s16357_s12  ;;  %v3922_v15 = vrot.slane %v3914_v22, %v16609_v6  ;;  %v3929_v31 = vrot.slane %v3915_v61, %v16609_v6  ;;  %v23215_v2 = vld [vmem:[#allocation14_spill] sm:$0xff]  ;;  %v23218_v22 = vld [vmem:[#allocation39_spill] sm:$0xff] }
 0x280   : > { %15295 = vmatprep.mubr.msk.f32.mxu0 %vm7474_vm1, %v23207_v56  ;;  %v18400_v36 = vrot.slane %v14613_v25, %v16609_v6  ;;  %v18403_v27 = vrot.slane %v14615_v58, %v16609_v6  ;;  %v23210_v18 = vcombine.high %v23205_v24, %v23206_v33  ;;  %v4842_v16 = vcombine.low %v4786_v3, %v4818_v14 }
 0x281   : > { %15307 = vmatmul.mubr.msk.f32.vlgmr.msra.gmra.mrb[20].mxu1 %vm7474_vm1, %v23208_v51  ;;  %15800 = vmatprep.subr.msk.bf16.mxu0 %vm17639_vm2, %v15798_v21  ;;  %v3962_v25 = vcombine.low %v3906_v17, %v3922_v15  ;;  %v3963_v44 = vcombine.high %v3906_v17, %v3922_v15  ;;  %v3978_v58 = vcombine.low %v3913_v49, %v3929_v31 }
 0x282   : > { %15309 = vmatprep.mubr.msk.f32.mxu1 %vm7474_vm1, %v23210_v18  ;;  %15809 = vmatpush3.bf16.xpose.msk.msra.mxu1 %vm17639_vm2, %v18245_v8  ;;  %v3979_v5 = vcombine.high %v3913_v49, %v3929_v31  ;;  %v23213_v19 = vcombine.low %v23211_v29, %v23212_v60  ;;  %v4706_v8 = vcombine.low %v4650_v39, %v4682_v11 }
 0x283   : > { %15812 = vmatprep.subr.msk.bf16.mxu1 %vm17639_vm2, %v15810_v47  ;;  %5252 = vrot.lane.b32.xlu1 %v23165_v43, %s16361_s16  ;;  %v4843_v57 = vcombine.high %v4786_v3, %v4818_v14  ;;  %v3970_v32 = vrot.slane %v3962_v25, %v16617_v13  ;;  %v3977_v41 = vrot.slane %v3963_v44, %v16617_v13  ;;  %v23217_v14 = vld [vmem:[#allocation38_spill] sm:$0xff] }
 0x284   : > { %15296 = vmatmul.mubr.msk.f32.gmra.mrb[14].mxu0 %vm7474_vm1, %v23213_v19  ;;  %v3986_v46 = vrot.slane %v3978_v58, %v16617_v13  ;;  %v23214_v12 = vcombine.high %v23211_v29, %v23212_v60  ;;  %5190 = vrot.lane.b32.xlu0 %v23215_v2, %s16358_s13  ;;  %v23216_v26 = vcombine.high %v17837_v50, %v17923_v10  ;;  %v23221_v58 = vld [vmem:[#allocation11_spill] sm:$0xff]  ;;  %v23223_v60 = vld [vmem:[#allocation53_spill] sm:$0xff] }
 0x285   : > { %v3993_v3 = vrot.slane %v3979_v5, %v16617_v13  ;;  %v23219_v61 = vcombine.low %v23217_v14, %v23218_v22  ;;  %v23220_v17 = vcombine.high %v23217_v14, %v23218_v22  ;;  %v4707_v24 = vcombine.high %v4650_v39, %v4682_v11  ;;  %v23222_v29 = vld [vmem:[#allocation59_spill] sm:$0xff] }
 0x286   : > { %15310 = vmatmul.mubr.msk.f32.gmra.mrb[22].mxu1 %vm7474_vm1, %v23214_v12  ;;  %v18435_v40 = vrot.slane %v23216_v26, %v16609_v6  ;;  %v14617_v33 = vcombine.low %v3970_v32, %v3977_v41  ;;  %v14619_v56 = vcombine.high %v3970_v32, %v3977_v41  ;;  %v15816_v49 = vpack.c.bf16 %v4842_v16, %v4706_v8  ;;  %v23224_v32 = vld [vmem:[#allocation55_spill] sm:$0xff]  ;;  %v23225_v41 = vld [vmem:[#allocation52_spill] sm:$0xff] }
 0x287   : > { %15320 = vmatprep.mubr.msk.f32.mxu0 %vm7474_vm1, %v23219_v61  ;;  %15334 = vmatprep.mubr.msk.f32.mxu1 %vm7474_vm1, %v23220_v17  ;;  %v4914_v50 = vcombine.low %v18362_v48, %v18365_v59  ;;  %v14621_v10 = vcombine.low %v3986_v46, %v3993_v3  ;;  %v14623_v51 = vcombine.high %v3986_v46, %v3993_v3  ;;  %v18510_v17 = vpop.permute.xlu0 %2826 }
 0x288   : > { %5276 = vrot.lane.b32.xlu1 %v23165_v43, %s16362_s17  ;;  %15803 = vmatpush3.bf16.xpose.msk.msra.mxu0 %vm17639_vm2, %v15798_v21  ;;  %v4946_v15 = vcombine.low %v18400_v36, %v18403_v27  ;;  %v18455_v31 = vrot.slane %v14617_v33, %v16609_v6  ;;  %v18458_v39 = vrot.slane %v14619_v56, %v16609_v6 }
 0x289   : > { %5212 = vrot.lane.b32.xlu0 %v23199_v28, %s16359_s14  ;;  %15818 = vmatprep.subr.msk.bf16.mxu0 %vm17639_vm2, %v15816_v49  ;;  %v15828_v11 = vpack.c.bf16 %v4843_v57, %v4707_v24  ;;  %v2426_v18 = vcombine.low %v18095_v63, %v18098_v30  ;;  %v1490_v21 = vcombine.low %v18047_v55, %v18336_v0 }
 0x28a   : > { %v18469_v16 = vrot.slane %v14621_v10, %v16609_v6  ;;  %v18472_v25 = vrot.slane %v14623_v51, %v16609_v6  ;;  %15815 = vmatpush3.bf16.xpose.msk.msra.mxu1 %vm17639_vm2, %v15810_v47  ;;  %v1491_v44 = vcombine.high %v18047_v55, %v18336_v0  ;;  %v1506_v5 = vcombine.low %v23221_v58, %v18435_v40  ;;  %v23229_v10 = vld [vmem:[#allocation42_spill] sm:$0xff]  ;;  %v23230_v51 = vld [vmem:[#allocation43_spill] sm:$0xff] }
 0x28b   : > { %v1578_v19 = vcombine.low %v23223_v60, %v23222_v29  ;;  %15830 = vmatprep.subr.msk.bf16.mxu1 %vm17639_vm2, %v15828_v11  ;;  %v5050_v8 = vcombine.low %v18455_v31, %v18458_v39  ;;  %v1507_v57 = vcombine.high %v23221_v58, %v18435_v40  ;;  %v4922_v55 = vrot.slane %v4914_v50, %v16617_v13 }
 0x28c   : > { %5206 = vrot.lane.b32.xlu1 %v23183_v7, %s16359_s14  ;;  %v4954_v0 = vrot.slane %v4946_v15, %v16617_v13  ;;  %v5082_v47 = vcombine.low %v18469_v16, %v18472_v25  ;;  %v1562_v46 = vcombine.low %v23225_v41, %v23224_v32  ;;  %v4779_v26 = vcombine.high %v18319_v23, %v18322_v34  ;;  %v23226_v34 = vld [vmem:[#allocation34_spill] sm:$0xff] }
 0x28d   : > { %5258 = vrot.lane.b32.xlu0 %v23201_v20, %s16361_s16  ;;  %v5058_v12 = vrot.slane %v5050_v8, %v16617_v13  ;;  %v4811_v3 = vcombine.high %v18325_v54, %v18328_v42  ;;  %v18504_v14 = vrot.slane %v1490_v21, %v16617_v13  ;;  %v1563_v22 = vcombine.high %v23225_v41, %v23224_v32  ;;  %v23227_v54 = vld [vmem:[#allocation35_spill] sm:$0xff] }
 0x28e   : > { %v1579_v61 = vcombine.high %v23223_v60, %v23222_v29  ;;  %v5090_v24 = vrot.slane %v5082_v47, %v16617_v13  ;;  %v18514_v33 = vrot.slane %v1491_v44, %v16617_v13  ;;  %v1586_v23 = vrot.slane %v1578_v19, %v16609_v6  ;;  %v18547_v47 = vpop.permute.xlu0 %2842 }
 0x28f   : > { %v23228_v42 = vcombine.low %v23226_v34, %v23227_v54  ;;  %v4643_v56 = vcombine.high %v18207_v4, %v18214_v1  ;;  %v4675_v50 = vcombine.high %v18217_v37, %v18232_v62  ;;  %v23231_v15 = vcombine.low %v23229_v10, %v23230_v51 }
 0x290   : > { %5230 = vrot.lane.b32.xlu1 %v23183_v7, %s16360_s15  ;;  %v4978_v21 = vcombine.low %v4922_v55, %v4954_v0  ;;  %v5114_v44 = vcombine.low %v5058_v12, %v5090_v24  ;;  %v5115_v29 = vcombine.high %v5058_v12, %v5090_v24  ;;  %v23232_v60 = vcombine.high %v23226_v34, %v23227_v54  ;;  %v23237_v24 = vld [vmem:[#allocation24_spill] sm:$0xff]  ;;  %v23238_v34 = vld [vmem:[#allocation25_spill] sm:$0xff] }
 0x291   : > { %15321 = vmatmul.mubr.msk.f32.vlgmr.msra.gmra.mrb[16].mxu0 %vm7474_vm1, %v23228_v42  ;;  %5282 = vrot.lane.b32.xlu0 %v23201_v20, %s16362_s17  ;;  %v4979_v4 = vcombine.high %v4922_v55, %v4954_v0  ;;  %v4793_v1 = vrot.slane %v4779_v26, %v16617_v13  ;;  %v4825_v37 = vrot.slane %v4811_v3, %v16617_v13  ;;  %v23234_v55 = vld [vmem:[#allocation20_spill] sm:$0xff]  ;;  %v23235_v0 = vld [vmem:[#allocation21_spill] sm:$0xff] }
 0x292   : > { %15323 = vmatprep.mubr.msk.f32.mxu0 %vm7474_vm1, %v23231_v15  ;;  %15335 = vmatmul.mubr.msk.f32.vlgmr.msra.gmra.mrb[24].mxu1 %vm7474_vm1, %v23232_v60  ;;  %v1570_v62 = vrot.slane %v1562_v46, %v16609_v6  ;;  %v1593_v19 = vrot.slane %v1579_v61, %v16609_v6  ;;  %v23233_v8 = vcombine.high %v23229_v10, %v23230_v51  ;;  %v2859_v15 = vpop.permute.xlu0 %2858 }
 0x293   : > { %15821 = vmatpush3.bf16.xpose.msk.msra.mxu0 %vm17639_vm2, %v15816_v49  ;;  %v15822_v32 = vpack.c.bf16 %v5114_v44, %v4978_v21  ;;  %15833 = vmatpush3.bf16.xpose.msk.msra.mxu1 %vm17639_vm2, %v15828_v11  ;;  %v23236_v41 = vcombine.low %v23234_v55, %v23235_v0  ;;  %v15834_v46 = vpack.c.bf16 %v5115_v29, %v4979_v4 }
 0x294   : > { %15337 = vmatprep.mubr.msk.f32.mxu1 %vm7474_vm1, %v23233_v8  ;;  %v4657_v12 = vrot.slane %v4643_v56, %v16617_v13  ;;  %v4689_v26 = vrot.slane %v4675_v50, %v16617_v13  ;;  %v1577_v3 = vrot.slane %v1563_v22, %v16609_v6  ;;  %v1626_v61 = vcombine.low %v1570_v62, %v1586_v23  ;;  %v23242_v8 = vld [vmem:[#allocation54_spill] sm:$0xff] }
 0x295   : > { %15324 = vmatmul.mubr.msk.f32.gmra.mrb[18].mxu0 %vm7474_vm1, %v23236_v41  ;;  %v1627_v49 = vcombine.high %v1570_v62, %v1586_v23  ;;  %5232 = vrot.lane.b32.xlu1 %v23175_v35, %s16360_s15  ;;  %v23239_v11 = vcombine.low %v23237_v24, %v23238_v34  ;;  %v23240_v54 = vcombine.high %v23234_v55, %v23235_v0 }
 0x296   : > { %5216 = vrot.lane.b32.xlu0 %v23209_v52, %s16359_s14  ;;  %v4844_v42 = vcombine.low %v4793_v1, %v4825_v37  ;;  %v5051_v22 = vcombine.high %v18455_v31, %v18458_v39  ;;  %v5083_v23 = vcombine.high %v18469_v16, %v18472_v25  ;;  %v1642_v56 = vcombine.low %v1577_v3, %v1593_v19  ;;  %v2875_v4 = vpop.permute.xlu0 %2874 }
 0x297   : > { %15348 = vmatprep.mubr.msk.f32.mxu0 %vm7474_vm1, %v23239_v11  ;;  %15338 = vmatmul.mubr.msk.f32.gmra.mrb[26].mxu1 %vm7474_vm1, %v23240_v54  ;;  %v1643_v50 = vcombine.high %v1577_v3, %v1593_v19  ;;  %v23241_v10 = vcombine.high %v23237_v24, %v23238_v34  ;;  %v4845_v51 = vcombine.high %v4793_v1, %v4825_v37 }
 0x298   : > { %15824 = vmatprep.subr.msk.bf16.mxu0 %vm17639_vm2, %v15822_v32  ;;  %v2458_v21 = vcombine.low %v18111_v9, %v18121_v38  ;;  %15836 = vmatprep.subr.msk.bf16.mxu1 %vm17639_vm2, %v15834_v46  ;;  %v4708_v31 = vcombine.low %v4657_v12, %v4689_v26  ;;  %v4915_v39 = vcombine.high %v18362_v48, %v18365_v59 }
 0x299   : > { %15362 = vmatprep.mubr.msk.f32.mxu1 %vm7474_vm1, %v23241_v10  ;;  %v4947_v16 = vcombine.high %v18400_v36, %v18403_v27  ;;  %v1514_v25 = vrot.slane %v1506_v5, %v16617_v13  ;;  %v1521_v44 = vrot.slane %v1507_v57, %v16617_v13  ;;  %v14546_v29 = vcombine.low %v18504_v14, %v18514_v33 }
 0x29a   : > { %5256 = vrot.lane.b32.xlu1 %v23175_v35, %s16361_s16  ;;  %v4709_v48 = vcombine.high %v4657_v12, %v4689_v26  ;;  %v1634_v59 = vrot.slane %v1626_v61, %v16617_v13  ;;  %5262 = vrot.lane.b32.xlu0 %v23215_v2, %s16361_s16  ;;  %v15840_v36 = vpack.c.bf16 %v4844_v42, %v4708_v31 }
 0x29b   : > { %v5065_v27 = vrot.slane %v5051_v22, %v16617_v13  ;;  %v5097_v5 = vrot.slane %v5083_v23, %v16617_v13  ;;  %v1641_v40 = vrot.slane %v1627_v49, %v16617_v13  ;;  %v1650_v58 = vrot.slane %v1642_v56, %v16617_v13  ;;  %15827 = vmatpush3.bf16.xpose.msk.msra.mxu0 %vm17639_vm2, %v15822_v32  ;;  %v23246_v23 = vld [vmem:[#allocation57_spill] sm:$0xff]  ;;  %v23247_v56 = vld [vmem:[#allocation58_spill] sm:$0xff] }
 0x29c   : > { %v1657_v57 = vrot.slane %v1643_v50, %v16617_v13  ;;  %v15852_v60 = vpack.c.bf16 %v4845_v51, %v4709_v48  ;;  %v14548_v1 = vcombine.high %v18504_v14, %v18514_v33  ;;  %15839 = vmatpush3.bf16.xpose.msk.msra.mxu1 %vm17639_vm2, %v15834_v46  ;;  %15842 = vmatprep.subr.msk.bf16.mxu0 %vm17639_vm2, %v15840_v36  ;;  %v23243_v14 = vld [vmem:[#allocation56_spill] sm:$0xff] }
 0x29d   : > { %v4929_v37 = vrot.slane %v4915_v39, %v16617_v13  ;;  %v4961_v62 = vrot.slane %v4947_v16, %v16617_v13  ;;  %v14550_v19 = vcombine.low %v1514_v25, %v1521_v44  ;;  %v23244_v33 = vcombine.low %v23242_v8, %v23243_v14  ;;  %v23250_v39 = vld [vmem:[#allocation29_spill] sm:$0xff]  ;;  %v23251_v16 = vld [vmem:[#allocation23_spill] sm:$0xff] }
 0x29e   : > { %15854 = vmatprep.subr.msk.bf16.mxu1 %vm17639_vm2, %v15852_v60  ;;  %5280 = vrot.lane.b32.xlu1 %v23175_v35, %s16362_s17  ;;  %v23245_v55 = vcombine.high %v23242_v8, %v23243_v14  ;;  %v14552_v41 = vcombine.high %v1514_v25, %v1521_v44  ;;  %v3538_v46 = vcombine.low %v18547_v47, %v2875_v4 }
 0x29f   : > { %v18626_v32 = vrot.slane %v23244_v33, %v16609_v6  ;;  %5286 = vrot.lane.b32.xlu0 %v23215_v2, %s16362_s17  ;;  %v3539_v12 = vcombine.high %v18547_v47, %v2875_v4  ;;  %v5116_v26 = vcombine.low %v5065_v27, %v5097_v5  ;;  %v14554_v3 = vcombine.low %v1634_v59, %v1641_v40 }
 0x2a0   : > { %v18632_v0 = vrot.slane %v23245_v55, %v16609_v6  ;;  %v14556_v61 = vcombine.high %v1634_v59, %v1641_v40  ;;  %v14558_v49 = vcombine.low %v1650_v58, %v1657_v57  ;;  %v14560_v24 = vcombine.high %v1650_v58, %v1657_v57 }
 0x2a1   : > { %v3522_v34 = vcombine.low %v18510_v17, %v2859_v15  ;;  %v3523_v11 = vcombine.high %v18510_v17, %v2859_v15  ;;  %v4980_v54 = vcombine.low %v4929_v37, %v4961_v62  ;;  %v4981_v42 = vcombine.high %v4929_v37, %v4961_v62 }
 0x2a2   : > { %5138 = vrot.lane.b32.xlu1 %v23201_v20, %s16357_s12  ;;  %v5117_v22 = vcombine.high %v5065_v27, %v5097_v5  ;;  %v23248_v50 = vcombine.low %v23246_v23, %v23247_v56  ;;  %v23249_v10 = vcombine.high %v23246_v23, %v23247_v56  ;;  %v2290_v17 = vcombine.low %v18626_v32, %v18632_v0  ;;  %v23254_v27 = vld [vmem:[#allocation26_spill] sm:$0xff] }
 0x2a3   : > { %v3546_v15 = vrot.slane %v3538_v46, %v16609_v6  ;;  %v3553_v31 = vrot.slane %v3539_v12, %v16609_v6  ;;  %v23252_v25 = vcombine.low %v23250_v39, %v23251_v16  ;;  %v15846_v44 = vpack.c.bf16 %v5116_v26, %v4980_v54  ;;  %v23255_v5 = vld [vmem:[#allocation30_spill] sm:$0xff]  ;;  %v18706_v26 = vpop.permute.xlu1 %2828 }
 0x2a4   : > { %v18646_v47 = vrot.slane %v23248_v50, %v16609_v6  ;;  %v18652_v51 = vrot.slane %v23249_v10, %v16609_v6  ;;  %v18663_v48 = vrot.slane %v14546_v29, %v16609_v6  ;;  %v23253_v59 = vcombine.high %v23250_v39, %v23251_v16  ;;  %v23263_v23 = vld [vmem:[#allocation46_spill] sm:$0xff] }
 0x2a5   : > { %15349 = vmatmul.mubr.msk.f32.vlgmr.msra.gmra.mrb[20].mxu0 %vm7474_vm1, %v23252_v25  ;;  %v23256_v40 = vcombine.low %v23254_v27, %v23255_v5  ;;  %v18674_v58 = vrot.slane %v14548_v1, %v16609_v6  ;;  %v18677_v57 = vrot.slane %v14550_v19, %v16609_v6  ;;  %v18680_v4 = vrot.slane %v14552_v41, %v16609_v6 }
 0x2a6   : > { %15363 = vmatmul.mubr.msk.f32.vlgmr.msra.gmra.mrb[28].mxu1 %vm7474_vm1, %v23253_v59  ;;  %v3530_v29 = vrot.slane %v3522_v34, %v16609_v6  ;;  %v3537_v37 = vrot.slane %v3523_v11, %v16609_v6  ;;  %v23257_v62 = vcombine.high %v23254_v27, %v23255_v5  ;;  %v18689_v8 = vrot.slane %v14554_v3, %v16609_v6 }
 0x2a7   : > { %15351 = vmatprep.mubr.msk.f32.mxu0 %vm7474_vm1, %v23256_v40  ;;  %v18692_v1 = vrot.slane %v14556_v61, %v16609_v6  ;;  %15845 = vmatpush3.bf16.xpose.msk.msra.mxu0 %vm17639_vm2, %v15840_v36  ;;  %v15858_v19 = vpack.c.bf16 %v5117_v22, %v4981_v42  ;;  %v18699_v14 = vrot.slane %v14558_v49, %v16609_v6  ;;  %v23258_v61 = vld [vmem:[#allocation47_spill] sm:$0xff]  ;;  %v23259_v49 = vld [vmem:[#allocation48_spill] sm:$0xff] }
 0x2a8   : > { %15365 = vmatprep.mubr.msk.f32.mxu1 %vm7474_vm1, %v23257_v62  ;;  %15857 = vmatpush3.bf16.xpose.msk.msra.mxu1 %vm17639_vm2, %v15852_v60  ;;  %v18702_v33 = vrot.slane %v14560_v24, %v16609_v6  ;;  %v3586_v55 = vcombine.low %v3530_v29, %v3546_v15  ;;  %v3587_v41 = vcombine.high %v3530_v29, %v3546_v15  ;;  %v23262_v22 = vld [vmem:[#allocation31_spill] sm:$0xff] }
 0x2a9   : > { %v3602_v46 = vcombine.low %v3537_v37, %v3553_v31  ;;  %v3603_v12 = vcombine.high %v3537_v37, %v3553_v31  ;;  %15848 = vmatprep.subr.msk.bf16.mxu0 %vm17639_vm2, %v15846_v44  ;;  %15860 = vmatprep.subr.msk.bf16.mxu1 %vm17639_vm2, %v15858_v19  ;;  %v2322_v36 = vcombine.low %v18646_v47, %v18652_v51 }
 0x2aa   : > { %5162 = vrot.lane.b32.xlu1 %v23201_v20, %s16356_s11  ;;  %v18718_v60 = vrot.slane %v2426_v18, %v16617_v13  ;;  %v18724_v3 = vrot.slane %v2458_v21, %v16617_v13  ;;  %v23260_v24 = vcombine.low %v23258_v61, %v23259_v49  ;;  %v23261_v34 = vcombine.high %v23258_v61, %v23259_v49 }
 0x2ab   : > { %v2562_v18 = vcombine.low %v18663_v48, %v18674_v58  ;;  %v2594_v11 = vcombine.low %v18677_v57, %v18680_v4  ;;  %v2698_v21 = vcombine.low %v18689_v8, %v18692_v1  ;;  %v2427_v54 = vcombine.high %v18095_v63, %v18098_v30 }
 0x2ac   : > { %15352 = vmatmul.mubr.msk.f32.gmra.mrb[22].mxu0 %vm7474_vm1, %v23260_v24  ;;  %15366 = vmatmul.mubr.msk.f32.gmra.mrb[30].mxu1 %vm7474_vm1, %v23261_v34  ;;  %v2459_v42 = vcombine.high %v18111_v9, %v18121_v38  ;;  %v23264_v56 = vcombine.low %v23262_v22, %v23263_v23  ;;  %v23265_v50 = vcombine.high %v23262_v22, %v23263_v23  ;;  %v2845_v38 = vpop.permute.xlu1 %2844 }
 0x2ad   : > { %v2730_v10 = vcombine.low %v18699_v14, %v18702_v33  ;;  %v3594_v15 = vrot.slane %v3586_v55, %v16617_v13  ;;  %v3601_v63 = vrot.slane %v3587_v41, %v16617_v13  ;;  %v3610_v30 = vrot.slane %v3602_v46, %v16617_v13 }
 0x2ae   : > { %15376 = vmatprep.mubr.msk.f32.mxu0 %vm7474_vm1, %v23264_v56  ;;  %15390 = vmatprep.mubr.msk.f32.mxu1 %vm7474_vm1, %v23265_v50  ;;  %v3617_v9 = vrot.slane %v3603_v12, %v16617_v13  ;;  %v18761_v31 = vrot.slane %v2290_v17, %v16617_v13  ;;  %v18764_v39 = vrot.slane %v2322_v36, %v16617_v13 }
 0x2af   : > { %5164 = vrot.lane.b32.xlu1 %v23199_v28, %s16356_s11  ;;  %v2291_v16 = vcombine.high %v18626_v32, %v18632_v0  ;;  %v2323_v25 = vcombine.high %v18646_v47, %v18652_v51  ;;  %v2478_v59 = vcombine.low %v18718_v60, %v18724_v3  ;;  %v18773_v27 = vrot.slane %v2562_v18, %v16617_v13 }
 0x2b0   : > { %v18776_v5 = vrot.slane %v2594_v11, %v16617_v13  ;;  %v18779_v17 = vrot.slane %v2698_v21, %v16617_v13  ;;  %15851 = vmatpush3.bf16.xpose.msk.msra.mxu0 %vm17639_vm2, %v15846_v44  ;;  %15863 = vmatpush3.bf16.xpose.msk.msra.mxu1 %vm17639_vm2, %v15858_v19  ;;  %v18786_v32 = vrot.slane %v2730_v10, %v16617_v13  ;;  %v2861_v62 = vpop.permute.xlu1 %2860  ;;  %v18796_v44 = vpop.permute.xlu0 %2830 }
 0x2b1   : > { %v18789_v0 = vrot.slane %v2427_v54, %v16617_v13  ;;  %v18792_v47 = vrot.slane %v2459_v42, %v16617_v13  ;;  %v14594_v51 = vcombine.low %v3594_v15, %v3601_v63  ;;  %v14596_v40 = vcombine.high %v3594_v15, %v3601_v63  ;;  %v23266_v63 = vld [vmem:[#allocation44_spill] sm:$0xff] }
 0x2b2   : > { %v14598_v29 = vcombine.low %v3610_v30, %v3617_v9  ;;  %v14600_v37 = vcombine.high %v3610_v30, %v3617_v9  ;;  %v2342_v19 = vcombine.low %v18761_v31, %v18764_v39  ;;  %v2479_v55 = vcombine.high %v18718_v60, %v18724_v3  ;;  %v23267_v30 = vld [vmem:[#allocation45_spill] sm:$0xff] }
 0x2b3   : > { %5188 = vrot.lane.b32.xlu1 %v23199_v28, %s16358_s13  ;;  %v18803_v41 = vrot.slane %v2291_v16, %v16617_v13  ;;  %v18806_v46 = vrot.slane %v2323_v25, %v16617_v13  ;;  %v3658_v12 = vcombine.low %v18706_v26, %v2861_v62  ;;  %v2343_v36 = vcombine.high %v18761_v31, %v18764_v39  ;;  %v23270_v25 = vld [vmem:[#allocation49_spill] sm:$0xff] }
 0x2b4   : > { %v2614_v61 = vcombine.low %v18773_v27, %v18776_v5  ;;  %v3659_v24 = vcombine.high %v18706_v26, %v2861_v62  ;;  %v4593_v21 = vrot.slane %v14594_v51, %v16609_v6  ;;  %v4609_v54 = vrot.slane %v14596_v40, %v16609_v6  ;;  %v2877_v26 = vpop.permute.xlu1 %2876  ;;  %v2847_v50 = vpop.permute.xlu0 %2846  ;;  %v23271_v51 = vld [vmem:[#allocation8_spill] sm:$0xff] }
 0x2b5   : > { %v18825_v42 = vrot.slane %v14598_v29, %v16609_v6  ;;  %v18828_v22 = vrot.slane %v14600_v37, %v16609_v6  ;;  %v3674_v23 = vcombine.low %v2845_v38, %v2877_v26  ;;  %v3675_v56 = vcombine.high %v2845_v38, %v2877_v26 }
 0x2b6   : > { %v23268_v9 = vcombine.low %v23266_v63, %v23267_v30  ;;  %v23269_v31 = vcombine.high %v23266_v63, %v23267_v30  ;;  %v3666_v39 = vrot.slane %v3658_v12, %v16609_v6  ;;  %v2563_v38 = vcombine.high %v18663_v48, %v18674_v58 }
 0x2b7   : > { %5142 = vrot.lane.b32.xlu1 %v23215_v2, %s16357_s12  ;;  %v2595_v16 = vcombine.high %v18677_v57, %v18680_v4  ;;  %v23272_v40 = vcombine.low %v23270_v25, %v23271_v51  ;;  %v23273_v29 = vcombine.high %v23270_v25, %v23271_v51  ;;  %v3673_v37 = vrot.slane %v3659_v24, %v16609_v6 }
 0x2b8   : > { %15377 = vmatmul.mubr.msk.f32.vlgmr.msra.gmra.mrb[24].mxu0 %vm7474_vm1, %v23268_v9  ;;  %15391 = vmatmul.mubr.msk.f32.vlgmr.msra.gmra.mrb[32].mxu1 %vm7474_vm1, %v23269_v31  ;;  %v3682_v62 = vrot.slane %v3674_v23, %v16609_v6  ;;  %v3689_v12 = vrot.slane %v3675_v56, %v16609_v6  ;;  %v18860_v48 = vpop.permute.xlu1 %2832  ;;  %v4658_v58 = vcombine.low %v4593_v21, %v4609_v54  ;;  %v2863_v23 = vpop.permute.xlu0 %2862  ;;  %v23274_v31 = vld [vmem:[#allocation28_spill] sm:$0xff]  ;;  %v23275_v56 = vld [vmem:[#allocation50_spill] sm:$0xff] }
 0x2b9   : > { %15379 = vmatprep.mubr.msk.f32.mxu0 %vm7474_vm1, %v23272_v40  ;;  %15393 = vmatprep.mubr.msk.f32.mxu1 %vm7474_vm1, %v23273_v29  ;;  %v4690_v57 = vcombine.low %v18825_v42, %v18828_v22  ;;  %v4659_v4 = vcombine.high %v4593_v21, %v4609_v54  ;;  %v23276_v25 = vcombine.low %v23274_v31, %v23275_v56 }
 0x2ba   : > { %v3722_v63 = vcombine.low %v3666_v39, %v3682_v62  ;;  %v3723_v30 = vcombine.high %v3666_v39, %v3682_v62  ;;  %v3738_v24 = vcombine.low %v3673_v37, %v3689_v12  ;;  %v3739_v9 = vcombine.high %v3673_v37, %v3689_v12 }
 0x2bb   : > { %5166 = vrot.lane.b32.xlu1 %v23215_v2, %s16356_s11  ;;  %v23277_v51 = vcombine.high %v23274_v31, %v23275_v56  ;;  %v3794_v21 = vcombine.low %v18796_v44, %v2863_v23  ;;  %v3795_v54 = vcombine.high %v18796_v44, %v2863_v23  ;;  %v18879_v40 = vrot.slane %v2563_v38, %v16617_v13 }
 0x2bc   : > { %15380 = vmatmul.mubr.msk.f32.gmra.mrb[26].mxu0 %vm7474_vm1, %v23276_v25  ;;  %v3730_v39 = vrot.slane %v3722_v63, %v16617_v13  ;;  %v3737_v29 = vrot.slane %v3723_v30, %v16617_v13  ;;  %v3746_v37 = vrot.slane %v3738_v24, %v16617_v13  ;;  %v3753_v62 = vrot.slane %v3739_v9, %v16617_v13  ;;  %v2849_v12 = vpop.permute.xlu1 %2848  ;;  %v2879_v63 = vpop.permute.xlu0 %2878 }
 0x2bd   : > { %15394 = vmatmul.mubr.msk.f32.gmra.mrb[34].mxu1 %vm7474_vm1, %v23277_v51  ;;  %15404 = vmatprep.mubr.msk.f32.mxu0 %vm7474_vm1, %v2342_v19  ;;  %v18888_v31 = vrot.slane %v4658_v58, %v16617_v13  ;;  %v4691_v44 = vcombine.high %v18825_v42, %v18828_v22  ;;  %v18893_v38 = vrot.slane %v2595_v16, %v16617_v13 }
 0x2be   : > { %15418 = vmatprep.mubr.msk.f32.mxu1 %vm7474_vm1, %v2343_v36  ;;  %v14602_v19 = vcombine.low %v3730_v39, %v3737_v29  ;;  %v14604_v36 = vcombine.high %v3730_v39, %v3737_v29  ;;  %v4698_v30 = vrot.slane %v4690_v57, %v16617_v13  ;;  %v18899_v24 = vrot.slane %v4659_v4, %v16617_v13 }
 0x2bf   : > { %5168 = vrot.lane.b32.xlu1 %v23209_v52, %s16356_s11  ;;  %v14606_v9 = vcombine.low %v3746_v37, %v3753_v62  ;;  %v14608_v58 = vcombine.high %v3746_v37, %v3753_v62  ;;  %v3810_v23 = vcombine.low %v2847_v50, %v2879_v63  ;;  %v3811_v56 = vcombine.high %v2847_v50, %v2879_v63 }
 0x2c0   : > { %v18902_v42 = vrot.slane %v14602_v19, %v16609_v6  ;;  %v18905_v22 = vrot.slane %v14604_v36, %v16609_v6  ;;  %v3802_v16 = vrot.slane %v3794_v21, %v16609_v6  ;;  %v3809_v25 = vrot.slane %v3795_v54, %v16609_v6  ;;  %v2865_v39 = vpop.permute.xlu1 %2864 }
 0x2c1   : > { %v18910_v51 = vrot.slane %v14606_v9, %v16609_v6  ;;  %v18913_v57 = vrot.slane %v14608_v58, %v16609_v6  ;;  %v3818_v4 = vrot.slane %v3810_v23, %v16609_v6  ;;  %v3825_v50 = vrot.slane %v3811_v56, %v16609_v6 }
 0x2c2   : > { %v3930_v29 = vcombine.low %v18860_v48, %v2865_v39  ;;  %v3931_v21 = vcombine.high %v18860_v48, %v2865_v39  ;;  %v4794_v54 = vcombine.low %v18902_v42, %v18905_v22  ;;  %v18924_v37 = vrot.slane %v4691_v44, %v16617_v13 }
 0x2c3   : > { %5192 = vrot.lane.b32.xlu1 %v23209_v52, %s16358_s13  ;;  %v3858_v62 = vcombine.low %v3802_v16, %v3818_v4  ;;  %v3859_v19 = vcombine.high %v3802_v16, %v3818_v4  ;;  %v3874_v36 = vcombine.low %v3809_v25, %v3825_v50  ;;  %v3875_v63 = vcombine.high %v3809_v25, %v3825_v50  ;;  %v18939_v4 = vpop.permute.xlu0 %5132 }
 0x2c4   : > { %v4710_v9 = vcombine.low %v18888_v31, %v4698_v30  ;;  %v4802_v58 = vrot.slane %v4794_v54, %v16617_v13  ;;  %v4826_v23 = vcombine.low %v18910_v51, %v18913_v57  ;;  %v4711_v56 = vcombine.high %v18888_v31, %v4698_v30 }
 0x2c5   : > { %v3866_v48 = vrot.slane %v3858_v62, %v16617_v13  ;;  %v3873_v39 = vrot.slane %v3859_v19, %v16617_v13  ;;  %v3882_v44 = vrot.slane %v3874_v36, %v16617_v13  ;;  %v3889_v11 = vrot.slane %v3875_v63, %v16617_v13  ;;  %v2881_v36 = vpop.permute.xlu1 %2880 }
 0x2c6   : > { %v3938_v16 = vrot.slane %v3930_v29, %v16609_v6  ;;  %v3945_v25 = vrot.slane %v3931_v21, %v16609_v6  ;;  %v4834_v50 = vrot.slane %v4826_v23, %v16617_v13  ;;  %v4795_v31 = vcombine.high %v18902_v42, %v18905_v22 }
 0x2c7   : > { %5210 = vrot.lane.b32.xlu1 %v23201_v20, %s16359_s14  ;;  %v14610_v30 = vcombine.low %v3866_v48, %v3873_v39  ;;  %v14612_v54 = vcombine.high %v3866_v48, %v3873_v39  ;;  %v14614_v62 = vcombine.low %v3882_v44, %v3889_v11  ;;  %v14616_v19 = vcombine.high %v3882_v44, %v3889_v11 }
 0x2c8   : > { %v3946_v63 = vcombine.low %v2849_v12, %v2881_v36  ;;  %v3947_v26 = vcombine.high %v2849_v12, %v2881_v36  ;;  %v4846_v15 = vcombine.low %v4802_v58, %v4834_v50  ;;  %v4847_v10 = vcombine.high %v4802_v58, %v4834_v50  ;;  %v5179_v36 = vpop.permute.xlu0 %5178 }
 0x2c9   : > { %v18945_v29 = vrot.slane %v14610_v30, %v16609_v6  ;;  %v18948_v21 = vrot.slane %v14612_v54, %v16609_v6  ;;  %v18951_v23 = vrot.slane %v14614_v62, %v16609_v6  ;;  %v18954_v42 = vrot.slane %v14616_v19, %v16609_v6 }
 0x2ca   : > { %v3954_v11 = vrot.slane %v3946_v63, %v16609_v6  ;;  %v3961_v12 = vrot.slane %v3947_v26, %v16609_v6  ;;  %v15864_v22 = vpack.c.bf16 %v4846_v15, %v4710_v9  ;;  %v15876_v58 = vpack.c.bf16 %v4847_v10, %v4711_v56  ;;  %v5131_v26 = vpop.permute.xlu1 %5130 }
 0x2cb   : > { %5234 = vrot.lane.b32.xlu1 %v23201_v20, %s16360_s15  ;;  %v4930_v48 = vcombine.low %v18945_v29, %v18948_v21  ;;  %v4962_v39 = vcombine.low %v18951_v23, %v18954_v42  ;;  %v4712_v44 = vcombine.low %v18899_v24, %v18924_v37  ;;  %v4827_v50 = vcombine.high %v18910_v51, %v18913_v57 }
 0x2cc   : > { %v3994_v30 = vcombine.low %v3938_v16, %v3954_v11  ;;  %v3995_v54 = vcombine.high %v3938_v16, %v3954_v11  ;;  %v4010_v62 = vcombine.low %v3945_v25, %v3961_v12  ;;  %v4011_v19 = vcombine.high %v3945_v25, %v3961_v12  ;;  %15866 = vmatprep.subr.msk.bf16.mxu0 %vm17639_vm2, %v15864_v22 }
 0x2cd   : > { %v5314_v10 = vcombine.low %v5131_v26, %v5179_v36  ;;  %15878 = vmatprep.subr.msk.bf16.mxu1 %vm17639_vm2, %v15876_v58  ;;  %15869 = vmatpush3.bf16.xpose.msk.msra.mxu0 %vm17639_vm2, %v15864_v22  ;;  %v18975_v15 = vrot.slane %v4795_v31, %v16617_v13  ;;  %v4713_v51 = vcombine.high %v18899_v24, %v18924_v37 }
 0x2ce   : > { %v4002_v57 = vrot.slane %v3994_v30, %v16617_v13  ;;  %v4009_v9 = vrot.slane %v3995_v54, %v16617_v13  ;;  %v4018_v56 = vrot.slane %v4010_v62, %v16617_v13  ;;  %v4025_v16 = vrot.slane %v4011_v19, %v16617_v13  ;;  %15881 = vmatpush3.bf16.xpose.msk.msra.mxu1 %vm17639_vm2, %v15876_v58  ;;  %v5155_v62 = vpop.permute.xlu1 %5154 }
 0x2cf   : > { %5236 = vrot.lane.b32.xlu1 %v23199_v28, %s16360_s15  ;;  %v5315_v25 = vcombine.high %v5131_v26, %v5179_v36  ;;  %v4938_v31 = vrot.slane %v4930_v48, %v16617_v13  ;;  %v4970_v63 = vrot.slane %v4962_v39, %v16617_v13  ;;  %v18990_v11 = vrot.slane %v4827_v50, %v16617_v13 }
 0x2d0   : > { %v14618_v12 = vcombine.low %v4002_v57, %v4009_v9  ;;  %v14620_v22 = vcombine.high %v4002_v57, %v4009_v9  ;;  %v14622_v30 = vcombine.low %v4018_v56, %v4025_v16  ;;  %v14624_v54 = vcombine.high %v4018_v56, %v4025_v16 }
 0x2d1   : > { %v5322_v19 = vrot.slane %v5314_v10, %v16609_v6  ;;  %v5298_v18 = vcombine.low %v23171_v45, %v5155_v62  ;;  %v5299_v36 = vcombine.high %v23171_v45, %v5155_v62  ;;  %v4931_v58 = vcombine.high %v18945_v29, %v18948_v21 }
 0x2d2   : > { %v5001_v48 = vrot.slane %v14618_v12, %v16609_v6  ;;  %v5017_v39 = vrot.slane %v14620_v22, %v16609_v6  ;;  %v5033_v50 = vrot.slane %v14622_v30, %v16609_v6  ;;  %v5049_v26 = vrot.slane %v14624_v54, %v16609_v6  ;;  %v5157_v21 = vpop.permute.xlu1 %5156 }
 0x2d3   : > { %5260 = vrot.lane.b32.xlu1 %v23199_v28, %s16361_s16  ;;  %v5329_v10 = vrot.slane %v5315_v25, %v16609_v6  ;;  %v5306_v57 = vrot.slane %v5298_v18, %v16609_v6  ;;  %v5313_v45 = vrot.slane %v5299_v36, %v16609_v6  ;;  %v4848_v29 = vcombine.low %v18975_v15, %v18990_v11 }
 0x2d4   : > { %v4982_v9 = vcombine.low %v4938_v31, %v4970_v63  ;;  %v5066_v56 = vcombine.low %v5001_v48, %v5017_v39  ;;  %v5098_v16 = vcombine.low %v5033_v50, %v5049_v26  ;;  %v4983_v12 = vcombine.high %v4938_v31, %v4970_v63 }
 0x2d5   : > { %v5362_v22 = vcombine.low %v5306_v57, %v5322_v19  ;;  %v5363_v30 = vcombine.high %v5306_v57, %v5322_v19  ;;  %v5378_v54 = vcombine.low %v5313_v45, %v5329_v10  ;;  %v5379_v62 = vcombine.high %v5313_v45, %v5329_v10  ;;  %v19024_v10 = vpop.permute.xlu0 %5136 }
 0x2d6   : > { %v5434_v25 = vcombine.low %v23165_v43, %v5157_v21  ;;  %v5435_v18 = vcombine.high %v23165_v43, %v5157_v21  ;;  %v5074_v36 = vrot.slane %v5066_v56, %v16617_v13  ;;  %v5106_v34 = vrot.slane %v5098_v16, %v16617_v13 }
 0x2d7   : > { %5284 = vrot.lane.b32.xlu1 %v23199_v28, %s16362_s17  ;;  %v19015_v49 = vrot.slane %v5362_v22, %v16617_v13  ;;  %v19018_v31 = vrot.slane %v5363_v30, %v16617_v13  ;;  %v19020_v63 = vpack.c.bf16 %v4848_v29, %v4712_v44  ;;  %v4849_v19 = vcombine.high %v18975_v15, %v18990_v11  ;;  %v5181_v11 = vpop.permute.xlu1 %5180 }
 0x2d8   : > { %v5118_v57 = vcombine.low %v5074_v36, %v5106_v34  ;;  %v5119_v45 = vcombine.high %v5074_v36, %v5106_v34  ;;  %v19027_v43 = vrot.slane %v4931_v58, %v16617_v13  ;;  %v4963_v21 = vcombine.high %v18951_v23, %v18954_v42 }
 0x2d9   : > { %v19032_v56 = vrot.slane %v5378_v54, %v16617_v13  ;;  %v19035_v16 = vrot.slane %v5379_v62, %v16617_v13  ;;  %v5442_v44 = vrot.slane %v5434_v25, %v16609_v6  ;;  %v5449_v15 = vrot.slane %v5435_v18, %v16609_v6 }
 0x2da   : > { %v5450_v34 = vcombine.low %v18939_v4, %v5181_v11  ;;  %v5451_v58 = vcombine.high %v18939_v4, %v5181_v11  ;;  %v15870_v29 = vpack.c.bf16 %v5118_v57, %v4982_v9  ;;  %v15882_v23 = vpack.c.bf16 %v5119_v45, %v4983_v12 }
 0x2db   : > { %5214 = vrot.lane.b32.xlu1 %v23215_v2, %s16359_s14  ;;  %v14625_v42 = vcombine.low %v19015_v49, %v19018_v31  ;;  %v14627_v22 = vcombine.high %v19015_v49, %v19018_v31  ;;  %v5067_v30 = vcombine.high %v5001_v48, %v5017_v39  ;;  %v5099_v54 = vcombine.high %v5033_v50, %v5049_v26  ;;  %v5135_v9 = vpop.permute.xlu1 %5134  ;;  %v5183_v50 = vpop.permute.xlu0 %5182 }
 0x2dc   : > { %v5458_v62 = vrot.slane %v5450_v34, %v16609_v6  ;;  %v5465_v25 = vrot.slane %v5451_v58, %v16609_v6  ;;  %15872 = vmatprep.subr.msk.bf16.mxu0 %vm17639_vm2, %v15870_v29  ;;  %15884 = vmatprep.subr.msk.bf16.mxu1 %vm17639_vm2, %v15882_v23  ;;  %v4977_v4 = vrot.slane %v4963_v21, %v16617_v13 }
 0x2dd   : > { %15875 = vmatpush3.bf16.xpose.msk.msra.mxu0 %vm17639_vm2, %v15870_v29  ;;  %15887 = vmatpush3.bf16.xpose.msk.msra.mxu1 %vm17639_vm2, %v15882_v23  ;;  %v15900_v49 = vpack.c.bf16 %v4849_v19, %v4713_v51  ;;  %v5081_v48 = vrot.slane %v5067_v30, %v16617_v13  ;;  %v5113_v39 = vrot.slane %v5099_v54, %v16617_v13 }
 0x2de   : > { %v5498_v26 = vcombine.low %v5442_v44, %v5458_v62  ;;  %v5499_v12 = vcombine.high %v5442_v44, %v5458_v62  ;;  %v5514_v18 = vcombine.low %v5449_v15, %v5465_v25  ;;  %v5515_v36 = vcombine.high %v5449_v15, %v5465_v25  ;;  %15890 = vmatprep.subr.msk.bf16.mxu0 %vm17639_vm2, %v19020_v63 }
 0x2df   : > { %5238 = vrot.lane.b32.xlu1 %v23215_v2, %s16360_s15  ;;  %v5586_v31 = vcombine.low %v5135_v9, %v5183_v50  ;;  %v5587_v57 = vcombine.high %v5135_v9, %v5183_v50  ;;  %15902 = vmatprep.subr.msk.bf16.mxu1 %vm17639_vm2, %v15900_v49  ;;  %v5120_v24 = vcombine.low %v5081_v48, %v5113_v39  ;;  %v5159_v15 = vpop.permute.xlu1 %5158 }
 0x2e0   : > { %v14629_v37 = vcombine.low %v19032_v56, %v19035_v16  ;;  %v19073_v51 = vrot.slane %v5498_v26, %v16617_v13  ;;  %v5513_v19 = vrot.slane %v5499_v12, %v16617_v13  ;;  %v4984_v45 = vcombine.low %v19027_v43, %v4977_v4 }
 0x2e1   : > { %v14631_v21 = vcombine.high %v19032_v56, %v19035_v16  ;;  %v19080_v44 = vrot.slane %v5514_v18, %v16617_v13  ;;  %v19083_v11 = vrot.slane %v14625_v42, %v16609_v6  ;;  %v2731_v34 = vcombine.high %v18699_v14, %v18702_v33 }
 0x2e2   : > { %v5529_v58 = vrot.slane %v5515_v36, %v16617_v13  ;;  %v5594_v29 = vrot.slane %v5586_v31, %v16609_v6  ;;  %v5601_v23 = vrot.slane %v5587_v57, %v16609_v6  ;;  %v15894_v56 = vpack.c.bf16 %v5120_v24, %v4984_v45 }
 0x2e3   : > { %5240 = vrot.lane.b32.xlu1 %v23209_v52, %s16360_s15  ;;  %v5570_v16 = vcombine.low %v23183_v7, %v5159_v15  ;;  %v5571_v30 = vcombine.high %v23183_v7, %v5159_v15  ;;  %v4985_v42 = vcombine.high %v19027_v43, %v4977_v4  ;;  %v5121_v54 = vcombine.high %v5081_v48, %v5113_v39  ;;  %v5161_v9 = vpop.permute.xlu1 %5160 }
 0x2e4   : > { %v14633_v62 = vcombine.low %v19073_v51, %v5513_v19  ;;  %15405 = vmatmul.mubr.msk.f32.vlgmr.msra.gmra.mrb[28].mxu0 %vm7474_vm1, %v2478_v59  ;;  %15419 = vmatmul.mubr.msk.f32.vlgmr.msra.gmra.mrb[36].mxu1 %vm7474_vm1, %v2479_v55  ;;  %v19105_v25 = vrot.slane %v14627_v22, %v16609_v6  ;;  %v19108_v7 = vrot.slane %v14629_v37, %v16609_v6 }
 0x2e5   : > { %v5578_v43 = vrot.slane %v5570_v16, %v16609_v6  ;;  %v5585_v4 = vrot.slane %v5571_v30, %v16609_v6  ;;  %15407 = vmatprep.mubr.msk.f32.mxu0 %vm7474_vm1, %v2614_v61  ;;  %v23278_v60 = vcombine.high %v18773_v27, %v18776_v5  ;;  %v19121_v3 = vrot.slane %v14631_v21, %v16609_v6 }
 0x2e6   : > { %v5706_v59 = vcombine.low %v23175_v35, %v5161_v9  ;;  %v5707_v55 = vcombine.high %v23175_v35, %v5161_v9  ;;  %15893 = vmatpush3.bf16.xpose.msk.msra.mxu0 %vm17639_vm2, %v19020_v63  ;;  %v15906_v61 = vpack.c.bf16 %v5121_v54, %v4985_v42  ;;  %15905 = vmatpush3.bf16.xpose.msk.msra.mxu1 %vm17639_vm2, %v15900_v49 }
 0x2e7   : > { %15421 = vmatprep.mubr.msk.f32.mxu1 %vm7474_vm1, %v23278_v60  ;;  %5264 = vrot.lane.b32.xlu1 %v23209_v52, %s16361_s16  ;;  %v5634_v22 = vcombine.low %v5578_v43, %v5594_v29  ;;  %v5635_v48 = vcombine.high %v5578_v43, %v5594_v29  ;;  %v5650_v27 = vcombine.low %v5585_v4, %v5601_v23  ;;  %v5185_v49 = vpop.permute.xlu1 %5184 }
 0x2e8   : > { %v5651_v5 = vcombine.high %v5585_v4, %v5601_v23  ;;  %v14635_v39 = vcombine.high %v19073_v51, %v5513_v19  ;;  %v14637_v50 = vcombine.low %v19080_v44, %v5529_v58  ;;  %15896 = vmatprep.subr.msk.bf16.mxu0 %vm17639_vm2, %v15894_v56  ;;  %15908 = vmatprep.subr.msk.bf16.mxu1 %vm17639_vm2, %v15906_v61 }
 0x2e9   : > { %v6450_v35 = vcombine.low %v19083_v11, %v19105_v25  ;;  %v14639_v63 = vcombine.high %v19080_v44, %v5529_v58  ;;  %v5642_v26 = vrot.slane %v5634_v22, %v16617_v13  ;;  %v5649_v12 = vrot.slane %v5635_v48, %v16617_v13 }
 0x2ea   : > { %v23279_v18 = vcombine.low %v18779_v17, %v18786_v32  ;;  %v19148_v36 = vrot.slane %v14633_v62, %v16609_v6  ;;  %v5714_v31 = vrot.slane %v5706_v59, %v16609_v6  ;;  %v5722_v57 = vcombine.low %v19024_v10, %v5185_v49 }
 0x2eb   : > { %v5723_v24 = vcombine.high %v19024_v10, %v5185_v49  ;;  %v23280_v37 = vcombine.high %v18779_v17, %v18786_v32  ;;  %v23281_v51 = vcombine.low %v18803_v41, %v18806_v46  ;;  %v5658_v19 = vrot.slane %v5650_v27, %v16617_v13  ;;  %v19176_v16 = vpop.permute.xlu1 %5202 }
 0x2ec   : > { %15408 = vmatmul.mubr.msk.f32.gmra.mrb[30].mxu0 %vm7474_vm1, %v23279_v18  ;;  %v5665_v45 = vrot.slane %v5651_v5, %v16617_v13  ;;  %v5721_v21 = vrot.slane %v5707_v55, %v16609_v6  ;;  %v23282_v44 = vcombine.high %v18803_v41, %v18806_v46  ;;  %v6482_v17 = vcombine.low %v19108_v7, %v19121_v3 }
 0x2ed   : > { %15422 = vmatmul.mubr.msk.f32.gmra.mrb[38].mxu1 %vm7474_vm1, %v23280_v37  ;;  %15432 = vmatprep.mubr.msk.f32.mxu0 %vm7474_vm1, %v23281_v51  ;;  %v5730_v32 = vrot.slane %v5722_v57, %v16609_v6  ;;  %v5737_v10 = vrot.slane %v5723_v24, %v16609_v6  ;;  %v6458_v15 = vrot.slane %v6450_v35, %v16617_v13 }
 0x2ee   : > { %15446 = vmatprep.mubr.msk.f32.mxu1 %vm7474_vm1, %v23282_v44  ;;  %v19174_v58 = vrot.slane %v14635_v39, %v16609_v6  ;;  %v14641_v29 = vcombine.low %v5642_v26, %v5649_v12  ;;  %v14643_v23 = vcombine.high %v5642_v26, %v5649_v12  ;;  %v19179_v41 = vrot.slane %v14637_v50, %v16609_v6 }
 0x2ef   : > { %v19182_v46 = vrot.slane %v14639_v63, %v16609_v6  ;;  %v5770_v30 = vcombine.low %v5714_v31, %v5730_v32  ;;  %v5771_v42 = vcombine.high %v5714_v31, %v5730_v32  ;;  %v5786_v54 = vcombine.low %v5721_v21, %v5737_v10  ;;  %15899 = vmatpush3.bf16.xpose.msk.msra.mxu0 %vm17639_vm2, %v15894_v56  ;;  %v19198_v53 = vpop.permute.xlu1 %5226 }
 0x2f0   : > { %v5787_v62 = vcombine.high %v5721_v21, %v5737_v10  ;;  %v14645_v43 = vcombine.low %v5658_v19, %v5665_v45  ;;  %v14647_v4 = vcombine.high %v5658_v19, %v5665_v45  ;;  %15911 = vmatpush3.bf16.xpose.msk.msra.mxu1 %vm17639_vm2, %v15906_v61  ;;  %v6490_v9 = vrot.slane %v6482_v17, %v16617_v13 }
 0x2f1   : > { %v6586_v60 = vcombine.low %v19148_v36, %v19174_v58  ;;  %v5778_v59 = vrot.slane %v5770_v30, %v16617_v13  ;;  %v5785_v55 = vrot.slane %v5771_v42, %v16617_v13  ;;  %v5794_v22 = vrot.slane %v5786_v54, %v16617_v13 }
 0x2f2   : > { %v5801_v48 = vrot.slane %v5787_v62, %v16617_v13  ;;  %v6618_v27 = vcombine.low %v19179_v41, %v19182_v46  ;;  %v2481_v61 = vcombine.high %v18789_v0, %v18792_v47  ;;  %v23283_v5 = vcombine.high %v18689_v8, %v18692_v1 }
 0x2f3   : > { %v6594_v56 = vrot.slane %v6586_v60, %v16617_v13  ;;  %v2616_v50 = vcombine.low %v18879_v40, %v18893_v38  ;;  %v2617_v35 = vcombine.high %v18879_v40, %v18893_v38  ;;  %v2745_v63 = vrot.slane %v2731_v34, %v16617_v13  ;;  %v19227_v24 = vpop.permute.xlu1 %5228 }
 0x2f4   : > { %v2713_v39 = vrot.slane %v23283_v5, %v16617_v13  ;;  %v19215_v26 = vrot.slane %v14641_v29, %v16609_v6  ;;  %v14649_v12 = vcombine.low %v5778_v59, %v5785_v55  ;;  %v6514_v49 = vcombine.low %v6458_v15, %v6490_v9 }
 0x2f5   : > { %v6626_v18 = vrot.slane %v6618_v27, %v16617_v13  ;;  %v19219_v8 = vrot.slane %v14643_v23, %v16609_v6  ;;  %v14651_v1 = vcombine.high %v5778_v59, %v5785_v55  ;;  %v14653_v31 = vcombine.low %v5794_v22, %v5801_v48 }
 0x2f6   : > { %v19222_v57 = vrot.slane %v14645_v43, %v16609_v6  ;;  %v19225_v40 = vrot.slane %v14647_v4, %v16609_v6  ;;  %v14655_v14 = vcombine.high %v5794_v22, %v5801_v48  ;;  %v6515_v38 = vcombine.high %v6458_v15, %v6490_v9 }
 0x2f7   : > { %v6650_v33 = vcombine.low %v6594_v56, %v6626_v18  ;;  %v6651_v34 = vcombine.high %v6594_v56, %v6626_v18  ;;  %v23284_v37 = vcombine.low %v18789_v0, %v18792_v47  ;;  %15447 = vmatmul.mubr.msk.f32.vlgmr.msra.gmra.mrb[40].mxu1 %vm7474_vm1, %v2481_v61  ;;  %v6722_v45 = vcombine.low %v19215_v26, %v19219_v8  ;;  %v19244_v10 = vpop.permute.xlu1 %5252 }
 0x2f8   : > { %15449 = vmatprep.mubr.msk.f32.mxu1 %vm7474_vm1, %v2617_v35  ;;  %v6754_v21 = vcombine.low %v19222_v57, %v19225_v40  ;;  %v6802_v44 = vrot.slane %v14649_v12, %v16609_v6  ;;  %v6818_v0 = vrot.slane %v14651_v1, %v16609_v6  ;;  %v6834_v47 = vrot.slane %v14653_v31, %v16609_v6 }
 0x2f9   : > { %15433 = vmatmul.mubr.msk.f32.vlgmr.msra.gmra.mrb[32].mxu0 %vm7474_vm1, %v23284_v37  ;;  %v15912_v51 = vpack.c.bf16 %v6650_v33, %v6514_v49  ;;  %v15920_v19 = vpack.c.bf16 %v6651_v34, %v6515_v38  ;;  %v2752_v17 = vcombine.low %v2713_v39, %v2745_v63  ;;  %v6850_v32 = vrot.slane %v14655_v14, %v16609_v6 }
 0x2fa   : > { %15435 = vmatprep.mubr.msk.f32.mxu0 %vm7474_vm1, %v2616_v50  ;;  %v2753_v15 = vcombine.high %v2713_v39, %v2745_v63  ;;  %v6730_v29 = vrot.slane %v6722_v45, %v16617_v13  ;;  %v6762_v23 = vrot.slane %v6754_v21, %v16617_v13  ;;  %v6858_v30 = vcombine.low %v6802_v44, %v6818_v0 }
 0x2fb   : > { %15913 = vmatprep.subr.bf16.mxu0 %v15912_v51  ;;  %15921 = vmatprep.subr.bf16.mxu1 %v15920_v19  ;;  %v6890_v42 = vcombine.low %v6834_v47, %v6850_v32  ;;  %v6451_v54 = vcombine.high %v19083_v11, %v19105_v25  ;;  %v19252_v62 = vpop.permute.xlu1 %5276  ;;  %v6483_v9 = vcombine.high %v19108_v7, %v19121_v3 }
 0x2fc   : > { %15915 = vmatpush3.bf16.msra.mxu0 %v15912_v51  ;;  %15923 = vmatpush3.bf16.msra.mxu1 %v15920_v19  ;;  %v6866_v43 = vrot.slane %v6858_v30, %v16617_v13  ;;  %v6587_v60 = vcombine.high %v19148_v36, %v19174_v58  ;;  %v6786_v59 = vcombine.low %v6730_v29, %v6762_v23  ;;  %v19292_v19 = vpop.permute.xlu0 %5204 }
 0x2fd   : > { %15436 = vmatmul.mubr.msk.f32.gmra.mrb[34].mxu0 %vm7474_vm1, %v2752_v17  ;;  %15450 = vmatmul.mubr.msk.f32.gmra.mrb[42].mxu1 %vm7474_vm1, %v2753_v15  ;;  %v6898_v4 = vrot.slane %v6890_v42, %v16617_v13  ;;  %v6787_v55 = vcombine.high %v6730_v29, %v6762_v23  ;;  %v6465_v22 = vrot.slane %v6451_v54, %v16617_v13 }
 0x2fe   : > { %v6619_v48 = vcombine.high %v19179_v41, %v19182_v46  ;;  %v6497_v56 = vrot.slane %v6483_v9, %v16617_v13  ;;  %v6601_v27 = vrot.slane %v6587_v60, %v16617_v13  ;;  %v6723_v7 = vcombine.high %v19215_v26, %v19219_v8 }
 0x2ff   : > { %v6922_v11 = vcombine.low %v6866_v43, %v6898_v4  ;;  %v6923_v25 = vcombine.high %v6866_v43, %v6898_v4  ;;  %v19268_v58 = vpop.permute.xlu1 %5206  ;;  %v6755_v12 = vcombine.high %v19222_v57, %v19225_v40  ;;  %v6859_v49 = vcombine.high %v6802_v44, %v6818_v0 }
 0x300   : > { %v6633_v61 = vrot.slane %v6619_v48, %v16617_v13  ;;  %v6516_v5 = vcombine.low %v6465_v22, %v6497_v56  ;;  %v6517_v41 = vcombine.high %v6465_v22, %v6497_v56  ;;  %v6737_v26 = vrot.slane %v6723_v7, %v16617_v13  ;;  %v19296_v40 = vpop.permute.xlu0 %5250 }
 0x301   : > { %v15916_v3 = vpack.c.bf16 %v6922_v11, %v6786_v59  ;;  %v15924_v36 = vpack.c.bf16 %v6923_v25, %v6787_v55  ;;  %v6891_v18 = vcombine.high %v6834_v47, %v6850_v32  ;;  %v6769_v8 = vrot.slane %v6755_v12, %v16617_v13  ;;  %v23289_v47 = vld [vmem:[#allocation2_spill] sm:$0xff] }
 0x302   : > { %v6652_v39 = vcombine.low %v6601_v27, %v6633_v61  ;;  %v6653_v46 = vcombine.high %v6601_v27, %v6633_v61  ;;  %v6873_v1 = vrot.slane %v6859_v49, %v16617_v13  ;;  %v23288_v44 = vlaneseq }
 0x303   : > { %15917 = vmatprep.subr.bf16.mxu0 %v15916_v3  ;;  %15925 = vmatprep.subr.bf16.mxu1 %v15924_v36  ;;  %v19274_v63 = vpop.permute.xlu1 %5230  ;;  %v6905_v31 = vrot.slane %v6891_v18, %v16617_v13  ;;  %v6788_v33 = vcombine.low %v6737_v26, %v6769_v8  ;;  %v6789_v45 = vcombine.high %v6737_v26, %v6769_v8  ;;  %v9285_v17 = vadd.s32 8, %v23289_v47 }
 0x304   : > { %15919 = vmatpush3.bf16.msra.mxu0 %v15916_v3  ;;  %15927 = vmatpush3.bf16.msra.mxu1 %v15924_v36  ;;  %v19270_v50 = vpack.c.bf16 %v6652_v39, %v6516_v5  ;;  %v19272_v35 = vpack.c.bf16 %v6653_v46, %v6517_v41  ;;  %v9289_v0 = vand.u32 127, %v23288_v44  ;;  %v19302_v29 = vpop.permute.xlu0 %5274  ;;  %v9287_v43 = vadd.s32 24, %v23289_v47 }
 0x305   : > { %v6924_v38 = vcombine.low %v6873_v1, %v6905_v31  ;;  %v6925_v21 = vcombine.high %v6873_v1, %v6905_v31  ;;  %v16366_v4 = vmov -1e+30   ;;  %v9286_v55 = vadd.s32 16, %v23289_v47 }
 0x306   : > { %23285 = vst [vmem:[#allocation4_spill] sm:$0xff] %v19270_v50  ;;  %23286 = vst [vmem:[#allocation5_spill] sm:$0xff] %v19272_v35  ;;  %15929 = vmatprep.subr.bf16.mxu0 %v19270_v50  ;;  %15937 = vmatprep.subr.bf16.mxu1 %v19272_v35  ;;  %vm9291_vm3 = vcmp.le.s32.totalorder %v9289_v0, %v9285_v17  ;;  %vm9293_vm4 = vcmp.le.s32.totalorder %v9289_v0, %v9287_v43 }
 0x307   : > { %v19284_v14 = vpop.permute.xlu1 %5232  ;;  %v19286_v34 = vpack.c.bf16 %v6924_v38, %v6788_v33  ;;  %v19304_v30 = vpack.c.bf16 %v6925_v21, %v6789_v45  ;;  %v19307_v9 = vsel %vm9291_vm3, 0.0, %v16366_v4  ;;  %vm9292_vm6 = vcmp.le.s32.totalorder %v9289_v0, %v9286_v55 }
 0x308   : > { %v19312_v22 = vpop.permute.xlu0 %5208  ;;  %v19317_v27 = vsel %vm9293_vm4, 0.0, %v16366_v4  ;;  %vm9290_vm7 = vcmp.le.s32.totalorder %v9289_v0, %v23289_v47  ;;  %v19326_v41 = vsel %vm9292_vm6, 0.0, %v16366_v4 }
 0x309   : > { %23287 = vst [vmem:[#allocation9_spill] sm:$0xff] %v19286_v34  ;;  %23290 = vst [vmem:[#allocation15_spill] sm:$0xff] %v19304_v30  ;;  %v19334_v18 = vsel %vm9290_vm7, 0.0, %v16366_v4 }
 0x30c   : > { %v19288_v37 = vpop.permute.xlu1 %5256  ;;  %v19324_v39 = vpop.permute.xlu0 %5254 }
 0x310   : > { %v19290_v51 = vpop.permute.xlu1 %5280  ;;  %v19348_v44 = vpop.permute.xlu0 %5278 }
 0x314   : > { %v19294_v57 = vpop.permute.xlu1 %5138  ;;  %v19359_v55 = vpop.permute.xlu0 %5140 }
 0x315   : > { %23298 = vst [vmem:[#allocation6_spill] sm:$0xff] %v19359_v55 }
 0x31c   : > { %v19300_v32 = vpop.permute.xlu1 %5162  ;;  %v15238_v15 = vpop.f32.mrb[8].mxu1 }
 0x31d   : > { %v7565_v23 = vpop.f32.mrb[9].mxu1  ;;  %v9220_v42 = vmul.f32 0.35355338, %v15238_v15 }
 0x31e   : > { %v9219_v26 = vmul.f32 0.35355338, %v7565_v23 }
 0x31f   : > { %v19315_v11 = vadd.f32 %v19307_v9, %v9220_v42 }
 0x320   : > { %v15241_v54 = vpop.f32.mrb[10].mxu1  ;;  %v19344_v33 = vadd.f32 %v19334_v18, %v9219_v26 }
 0x321   : > { %v7575_v60 = vpop.f32.mrb[11].mxu1  ;;  %v19309_v59 = vpop.permute.xlu1 %5164  ;;  %v9366_v5 = vsel %vm9362_vm5, %v19315_v11, -inf  ;;  %v9222_v15 = vmul.f32 0.35355338, %v15241_v54 }
 0x322   : > { %9367 = vmax.xlane.f32.xlu0 %v9366_v5  ;;  %v9363_v23 = vsel %vm9362_vm5, %v19344_v33, -inf  ;;  %v19373_v5 = vpop.permute.xlu0 %5186 }
 0x323   : > { %v15266_v48 = vpop.f32.mrb[8].mxu0 }
 0x324   : > { %v7783_v25 = vpop.f32.mrb[9].mxu0  ;;  %v9228_v56 = vmul.f32 0.35355338, %v15266_v48  ;;  %v19362_v48 = vadd.f32 %v19317_v27, %v9222_v15 }
 0x325   : > { %v19319_v7 = vpop.permute.xlu1 %5188  ;;  %v9227_v38 = vmul.f32 0.35355338, %v7783_v25  ;;  %v9221_v25 = vmul.f32 0.35355338, %v7575_v60 }
 0x326   : > { %23291 = vst [vmem:[#allocation32_spill] sm:$0xff] %v19319_v7  ;;  %v19329_v46 = vadd.f32 %v19307_v9, %v9228_v56 }
 0x327   : > { %v15269_v61 = vpop.f32.mrb[10].mxu0  ;;  %v19353_v17 = vadd.f32 %v19334_v18, %v9227_v38  ;;  %v19367_v54 = vadd.f32 %v19326_v41, %v9221_v25 }
 0x328   : > { %v9230_v3 = vmul.f32 0.35355338, %v15269_v61  ;;  %v7793_v36 = vpop.f32.mrb[11].mxu0  ;;  %23292 = vst [vmem:[#allocation33_spill] sm:$0xff] %v19329_v46  ;;  %v9390_v45 = vsel %vm9362_vm5, %v19329_v46, -inf }
 0x329   : > { %v9229_v49 = vmul.f32 0.35355338, %v7793_v36  ;;  %v19341_v31 = vpop.permute.xlu1 %5142  ;;  %9391 = vmax.xlane.f32.xlu0 %v9390_v45  ;;  %23296 = vst [vmem:[#allocation51_spill] sm:$0xff] %v19353_v17  ;;  %v9387_v56 = vsel %vm9362_vm5, %v19353_v17, -inf  ;;  %23299 = vst [vmem:[#allocation7_spill] sm:$0xff] %v19367_v54  ;;  %v9372_v36 = vsel %vm9362_vm5, %v19362_v48, -inf }
 0x32a   : > { %v19332_v12 = vadd.f32 %v19317_v27, %v9230_v3  ;;  %23295 = vst [vmem:[#allocation13_spill] sm:$0xff] %v19341_v31 }
 0x32b   : > { %v19337_v8 = vadd.f32 %v19326_v41, %v9229_v49  ;;  %v9369_v49 = vsel %vm9362_vm5, %v19367_v54, -inf }
 0x32c   : > { %23293 = vst [vmem:[#allocation17_spill] sm:$0xff] %v19332_v12  ;;  %v9396_v1 = vsel %vm9362_vm5, %v19332_v12, -inf }
 0x32d   : > { %23294 = vst [vmem:[#allocation18_spill] sm:$0xff] %v19337_v8  ;;  %9397 = vmax.xlane.f32.xlu1 %v9396_v1  ;;  %v9393_v47 = vsel %vm9362_vm5, %v19337_v8, -inf  ;;  %9364 = vmax.xlane.f32.xlu0 %v9363_v23  ;;  %v19357_v43 = vpop.permute.xlu1 %5166 }
 0x32e   : > { %v15252_v21 = vpop.f32.mrb[12].mxu1  ;;  %23297 = vst [vmem:[#allocation27_spill] sm:$0xff] %v19357_v43 }
 0x32f   : > { %v7674_v0 = vpop.f32.mrb[13].mxu1  ;;  %v9224_v3 = vmul.f32 0.35355338, %v15252_v21 }
 0x331   : > { %9394 = vmax.xlane.f32.xlu1 %v9393_v47  ;;  %9388 = vmax.xlane.f32.xlu0 %v9387_v56  ;;  %v19369_v61 = vpop.permute.xlu1 %5168  ;;  %v19376_v26 = vadd.f32 %v19307_v9, %v9224_v3  ;;  %v19382_v47 = vpop.permute.xlu0 %5144 }
 0x332   : > { %23300 = vst [vmem:[#allocation12_spill] sm:$0xff] %v19369_v61  ;;  %23303 = vst [vmem:[#allocation22_spill] sm:$0xff] %v19382_v47 }
 0x333   : > { %23301 = vst [vmem:[#allocation10_spill] sm:$0xff] %v19376_v26  ;;  %v9378_v15 = vsel %vm9362_vm5, %v19376_v26, -inf }
 0x335   : > { %v15255_v42 = vpop.f32.mrb[14].mxu1  ;;  %9373 = vmax.xlane.f32.xlu0 %v9372_v36  ;;  %v19380_v38 = vpop.permute.xlu1 %5192 }
 0x336   : > { %v7684_v4 = vpop.f32.mrb[15].mxu1  ;;  %v9226_v60 = vmul.f32 0.35355338, %v15255_v42  ;;  %23302 = vst [vmem:[#allocation19_spill] sm:$0xff] %v19380_v38  ;;  %v19397_v3 = vpop.permute.xlu0 %5190 }
 0x337   : > { %23305 = vst [vmem:[#allocation37_spill] sm:$0xff] %v19397_v3 }
 0x338   : > { %v19385_v21 = vadd.f32 %v19317_v27, %v9226_v60 }
 0x339   : > { %9370 = vmax.xlane.f32.xlu0 %v9369_v49  ;;  %v19393_v25 = vpop.permute.xlu1 %5210 }
 0x33a   : > { %23304 = vst [vmem:[#allocation36_spill] sm:$0xff] %v19385_v21  ;;  %v9384_v56 = vsel %vm9362_vm5, %v19385_v21, -inf  ;;  %v19399_v49 = vpop.permute.xlu0 %5212 }
 0x33d   : > { %9379 = vmax.xlane.f32.xlu0 %v9378_v15  ;;  %v5235_v36 = vpop.permute.xlu1 %5234  ;;  %v9223_v15 = vmul.f32 0.35355338, %v7674_v0 }
 0x33e   : > { %v5259_v21 = vpop.permute.xlu0 %5258 }
 0x33f   : > { %v19413_v12 = vadd.f32 %v19334_v18, %v9223_v15 }
 0x341   : > { %9385 = vmax.xlane.f32.xlu0 %v9384_v56  ;;  %v19408_v38 = vpop.permute.xlu1 %5236  ;;  %23307 = vst [vmem:[#allocation41_spill] sm:$0xff] %v19413_v12 }
 0x342   : > { %v15280_v1 = vpop.f32.mrb[16].mxu1 }
 0x343   : > { %v7892_v45 = vpop.f32.mrb[17].mxu1 }
 0x345   : > { %v19422_v8 = vpop.permute.xlu1 %5260 }
 0x346   : > { %v19389_v23 = vpop.f32.mrb[18].mxu1 }
 0x347   : > { %v19391_v42 = vpop.f32.mrb[19].mxu1 }
 0x349   : > { %v5285_v46 = vpop.permute.xlu1 %5284 }
 0x351   : > { %v15294_v60 = vpop.f32.mrb[12].mxu0 }
 0x352   : > { %v9236_v30 = vmul.f32 0.35355338, %v15294_v60  ;;  %v8001_v35 = vpop.f32.mrb[13].mxu0 }
 0x353   : > { %v9235_v60 = vmul.f32 0.35355338, %v8001_v35  ;;  %v5283_v35 = vpop.permute.xlu0 %5282 }
 0x354   : > { %v19401_v26 = vpop.f32.mrb[20].mxu1  ;;  %v19404_v61 = vadd.f32 %v19307_v9, %v9236_v30 }
 0x355   : > { %v19406_v47 = vpop.f32.mrb[21].mxu1  ;;  %v19430_v43 = vadd.f32 %v19334_v18, %v9235_v60 }
 0x356   : > { %23306 = vst [vmem:[#allocation40_spill] sm:$0xff] %v19404_v61  ;;  %v9414_v30 = vsel %vm9362_vm5, %v19404_v61, -inf  ;;  %v9375_v61 = vsel %vm9362_vm5, %v19413_v12, -inf  ;;  %v5891_v12 = vcombine.high %v5235_v36, %v5283_v35 }
 0x357   : > { %v15297_v52 = vpop.f32.mrb[14].mxu0  ;;  %9415 = vmax.xlane.f32.xlu1 %v9414_v30  ;;  %23310 = vst [vmem:[#allocation11_spill] sm:$0xff] %v19430_v43  ;;  %v5874_v30 = vcombine.low %v19393_v25, %v5259_v21  ;;  %v9411_v60 = vsel %vm9362_vm5, %v19430_v43, -inf }
 0x358   : > { %v9238_v34 = vmul.f32 0.35355338, %v15297_v52  ;;  %v8011_v50 = vpop.f32.mrb[15].mxu0  ;;  %v9232_v52 = vmul.f32 0.35355338, %v15280_v1 }
 0x359   : > { %v19410_v56 = vpop.f32.mrb[22].mxu1  ;;  %v9237_v31 = vmul.f32 0.35355338, %v8011_v50  ;;  %v9225_v50 = vmul.f32 0.35355338, %v7684_v4 }
 0x35a   : > { %v19415_v3 = vpop.f32.mrb[23].mxu1  ;;  %v19420_v0 = vadd.f32 %v19317_v27, %v9238_v34  ;;  %v5890_v34 = vcombine.low %v5235_v36, %v5283_v35  ;;  %v19436_v1 = vadd.f32 %v19307_v9, %v9232_v52  ;;  %v9231_v4 = vmul.f32 0.35355338, %v7892_v45 }
 0x35b   : > { %v19425_v2 = vadd.f32 %v19326_v41, %v9237_v31  ;;  %9376 = vmax.xlane.f32.xlu1 %v9375_v61 }
 0x35c   : > { %23308 = vst [vmem:[#allocation38_spill] sm:$0xff] %v19420_v0  ;;  %v9420_v15 = vsel %vm9362_vm5, %v19420_v0, -inf  ;;  %23311 = vst [vmem:[#allocation59_spill] sm:$0xff] %v19436_v1  ;;  %v19441_v0 = vadd.f32 %v19326_v41, %v9225_v50  ;;  %v5898_v61 = vrot.slane %v5890_v34, %v16609_v6  ;;  %v9402_v45 = vsel %vm9362_vm5, %v19436_v1, -inf }
 0x35d   : > { %23309 = vst [vmem:[#allocation39_spill] sm:$0xff] %v19425_v2  ;;  %9421 = vmax.xlane.f32.xlu0 %v9420_v15  ;;  %v9417_v31 = vsel %vm9362_vm5, %v19425_v2, -inf  ;;  %v5875_v15 = vcombine.high %v19393_v25, %v5259_v21  ;;  %v5882_v2 = vrot.slane %v5874_v30, %v16609_v6  ;;  %v19454_v21 = vadd.f32 %v19334_v18, %v9231_v4 }
 0x35e   : > { %23312 = vst [vmem:[#allocation53_spill] sm:$0xff] %v19441_v0  ;;  %v9381_v35 = vsel %vm9362_vm5, %v19441_v0, -inf  ;;  %v6010_v4 = vcombine.low %v19399_v49, %v19422_v8 }
 0x35f   : > { %9412 = vmax.xlane.f32.xlu1 %v9411_v60  ;;  %23313 = vst [vmem:[#allocation55_spill] sm:$0xff] %v19454_v21  ;;  %v5889_v34 = vrot.slane %v5875_v15, %v16609_v6  ;;  %v5938_v30 = vcombine.low %v5882_v2, %v5898_v61  ;;  %v5939_v17 = vcombine.high %v5882_v2, %v5898_v61  ;;  %v9234_v15 = vmul.f32 0.35355338, %v19389_v23 }
 0x360   : > { %v9399_v2 = vsel %vm9362_vm5, %v19454_v21, -inf  ;;  %v6018_v61 = vrot.slane %v6010_v4, %v16609_v6  ;;  %v23381_v21 = vld [vmem:[#allocation18_spill] sm:$0xff] }
 0x361   : > { %9418 = vmax.xlane.f32.xlu0 %v9417_v31  ;;  %v6026_v31 = vcombine.low %v19408_v38, %v5285_v46  ;;  %v5946_v23 = vrot.slane %v5938_v30, %v16617_v13 }
 0x363   : > { %9382 = vmax.xlane.f32.xlu1 %v9381_v35  ;;  %v6034_v0 = vrot.slane %v6026_v31, %v16609_v6 }
 0x364   : > { %v15322_v52 = vpop.f32.mrb[16].mxu0 }
 0x365   : > { %v9244_v54 = vmul.f32 0.35355338, %v15322_v52  ;;  %v8219_v55 = vpop.f32.mrb[17].mxu0  ;;  %v19448_v7 = vpop.f32.mrb[24].mxu1  ;;  %9403 = vmax.xlane.f32.xlu0 %v9402_v45  ;;  %v6027_v52 = vcombine.high %v19408_v38, %v5285_v46  ;;  %v6011_v45 = vcombine.high %v19399_v49, %v19422_v8  ;;  %v6075_v30 = vcombine.high %v6018_v61, %v6034_v0 }
 0x366   : > { %v9243_v50 = vmul.f32 0.35355338, %v8219_v55  ;;  %v19459_v36 = vpop.f32.mrb[25].mxu1  ;;  %v5905_v55 = vrot.slane %v5891_v12, %v16609_v6 }
 0x367   : > { %v19457_v25 = vadd.f32 %v19307_v9, %v9244_v54  ;;  %9400 = vmax.xlane.f32.xlu1 %v9399_v2 }
 0x368   : > { %v15325_v60 = vpop.f32.mrb[18].mxu0  ;;  %v19474_v12 = vadd.f32 %v19334_v18, %v9243_v50  ;;  %v5954_v8 = vcombine.low %v5889_v34, %v5905_v55  ;;  %v5955_v49 = vcombine.high %v5889_v34, %v5905_v55  ;;  %v6041_v50 = vrot.slane %v6027_v52, %v16609_v6 }
 0x369   : > { %23314 = vst [vmem:[#allocation52_spill] sm:$0xff] %v19457_v25  ;;  %v9246_v54 = vmul.f32 0.35355338, %v15325_v60  ;;  %v8229_v1 = vpop.f32.mrb[19].mxu0  ;;  %v9438_v43 = vsel %vm9362_vm5, %v19457_v25, -inf  ;;  %v6025_v34 = vrot.slane %v6011_v45, %v16609_v6  ;;  %v6074_v55 = vcombine.low %v6018_v61, %v6034_v0 }
 0x36a   : > { %23315 = vst [vmem:[#allocation34_spill] sm:$0xff] %v19474_v12  ;;  %v19476_v35 = vpop.f32.mrb[26].mxu1  ;;  %v9245_v38 = vmul.f32 0.35355338, %v8229_v1  ;;  %9439 = vmax.xlane.f32.xlu0 %v9438_v43  ;;  %v5953_v1 = vrot.slane %v5939_v17, %v16617_v13  ;;  %v9233_v25 = vmul.f32 0.35355338, %v19391_v42  ;;  %v5962_v52 = vrot.slane %v5954_v8, %v16617_v13 }
 0x36b   : > { %v19480_v46 = vadd.f32 %v19317_v27, %v9246_v54  ;;  %v19482_v60 = vpop.f32.mrb[27].mxu1  ;;  %v19493_v54 = vadd.f32 %v19317_v27, %v9234_v15  ;;  %v9435_v43 = vsel %vm9362_vm5, %v19474_v12, -inf  ;;  %v5969_v17 = vrot.slane %v5955_v49, %v16617_v13  ;;  %v23380_v12 = vld [vmem:[#allocation14_spill] sm:$0xff] }
 0x36c   : > { %v19500_v4 = vadd.f32 %v19326_v41, %v9245_v38  ;;  %v6090_v15 = vcombine.low %v6025_v34, %v6041_v50  ;;  %v6091_v2 = vcombine.high %v6025_v34, %v6041_v50  ;;  %v19505_v42 = vadd.f32 %v19326_v41, %v9233_v25 }
 0x36d   : > { %23316 = vst [vmem:[#allocation35_spill] sm:$0xff] %v19480_v46  ;;  %v9444_v31 = vsel %vm9362_vm5, %v19480_v46, -inf  ;;  %23317 = vst [vmem:[#allocation42_spill] sm:$0xff] %v19493_v54  ;;  %v9240_v46 = vmul.f32 0.35355338, %v19401_v26  ;;  %v9408_v45 = vsel %vm9362_vm5, %v19493_v54, -inf  ;;  %v14658_v0 = vcombine.low %v5946_v23, %v5953_v1 }
 0x36e   : > { %23318 = vst [vmem:[#allocation43_spill] sm:$0xff] %v19500_v4  ;;  %9436 = vmax.xlane.f32.xlu0 %v9435_v43  ;;  %9445 = vmax.xlane.f32.xlu1 %v9444_v31  ;;  %23319 = vst [vmem:[#allocation20_spill] sm:$0xff] %v19505_v42  ;;  %v6082_v38 = vrot.slane %v6074_v55, %v16617_v13  ;;  %v6089_v61 = vrot.slane %v6075_v30, %v16617_v13  ;;  %v9441_v8 = vsel %vm9362_vm5, %v19500_v4, -inf }
 0x36f   : > { %v14660_v49 = vcombine.high %v5946_v23, %v5953_v1  ;;  %v14662_v31 = vcombine.low %v5962_v52, %v5969_v17  ;;  %v14664_v50 = vcombine.high %v5962_v52, %v5969_v17  ;;  %v6098_v25 = vrot.slane %v6090_v15, %v16617_v13 }
 0x370   : > { %v6105_v26 = vrot.slane %v6091_v2, %v16617_v13  ;;  %v19517_v43 = vadd.f32 %v19307_v9, %v9240_v46  ;;  %v9239_v34 = vmul.f32 0.35355338, %v19406_v47  ;;  %v9405_v30 = vsel %vm9362_vm5, %v19505_v42, -inf }
 0x371   : > { %v14666_v54 = vcombine.low %v6082_v38, %v6089_v61  ;;  %v14668_v4 = vcombine.high %v6082_v38, %v6089_v61  ;;  %v19525_v52 = vrot.slane %v14658_v0, %v16609_v6  ;;  %v19530_v46 = vrot.slane %v14660_v49, %v16609_v6 }
 0x372   : > { %9409 = vmax.xlane.f32.xlu0 %v9408_v45  ;;  %9442 = vmax.xlane.f32.xlu1 %v9441_v8  ;;  %23320 = vst [vmem:[#allocation21_spill] sm:$0xff] %v19517_v43  ;;  %v19533_v47 = vrot.slane %v14662_v31, %v16609_v6  ;;  %v19536_v2 = vrot.slane %v14664_v50, %v16609_v6  ;;  %v9242_v8 = vmul.f32 0.35355338, %v19410_v56  ;;  %v9426_v49 = vsel %vm9362_vm5, %v19517_v43, -inf  ;;  %v23375_v43 = vld [vmem:[#allocation6_spill] sm:$0xff] }
 0x373   : > { %23321 = vst [vmem:[#allocation24_spill] sm:$0xff] %v19525_v52  ;;  %23322 = vst [vmem:[#allocation25_spill] sm:$0xff] %v19530_v46  ;;  %v14670_v38 = vcombine.low %v6098_v25, %v6105_v26  ;;  %v14672_v61 = vcombine.high %v6098_v25, %v6105_v26  ;;  %v19543_v0 = vadd.f32 %v19334_v18, %v9239_v34 }
 0x374   : > { %23323 = vst [vmem:[#allocation54_spill] sm:$0xff] %v19533_v47  ;;  %23324 = vst [vmem:[#allocation56_spill] sm:$0xff] %v19536_v2  ;;  %v19556_v26 = vrot.slane %v14666_v54, %v16609_v6  ;;  %v19559_v34 = vrot.slane %v14668_v4, %v16609_v6 }
 0x375   : > { %23326 = vst [vmem:[#allocation58_spill] sm:$0xff] %v19543_v0  ;;  %v19574_v54 = vrot.slane %v14672_v61, %v16609_v6 }
 0x376   : > { %9406 = vmax.xlane.f32.xlu0 %v9405_v30  ;;  %v9241_v30 = vmul.f32 0.35355338, %v19415_v3  ;;  %23328 = vst [vmem:[#allocation23_spill] sm:$0xff] %v19556_v26  ;;  %23329 = vst [vmem:[#allocation26_spill] sm:$0xff] %v19559_v34  ;;  %v7011_v3 = vcombine.high %v19525_v52, %v19530_v46  ;;  %v7147_v61 = vcombine.high %v19556_v26, %v19559_v34 }
 0x377   : > { %23332 = vst [vmem:[#allocation48_spill] sm:$0xff] %v19574_v54 }
 0x378   : > { %v15350_v55 = vpop.f32.mrb[20].mxu0  ;;  %v7025_v52 = vrot.slane %v7011_v3, %v16617_v13  ;;  %v7161_v46 = vrot.slane %v7147_v61, %v16617_v13 }
 0x379   : > { %v9252_v45 = vmul.f32 0.35355338, %v15350_v55  ;;  %v19522_v23 = vpop.f32.mrb[28].mxu1  ;;  %v8437_v1 = vpop.f32.mrb[21].mxu0 }
 0x37a   : > { %v9251_v17 = vmul.f32 0.35355338, %v8437_v1  ;;  %v19527_v15 = vpop.f32.mrb[29].mxu1  ;;  %9427 = vmax.xlane.f32.xlu0 %v9426_v49  ;;  %v19566_v1 = vadd.f32 %v19317_v27, %v9242_v8  ;;  %v9247_v8 = vmul.f32 0.35355338, %v19459_v36 }
 0x37b   : > { %v19540_v55 = vadd.f32 %v19307_v9, %v9252_v45  ;;  %v7043_v45 = vcombine.high %v19533_v47, %v19536_v2  ;;  %v19580_v47 = vadd.f32 %v19326_v41, %v9241_v30 }
 0x37c   : > { %v19549_v31 = vadd.f32 %v19334_v18, %v9251_v17  ;;  %23330 = vst [vmem:[#allocation30_spill] sm:$0xff] %v19566_v1 }
 0x37d   : > { %23325 = vst [vmem:[#allocation57_spill] sm:$0xff] %v19540_v55  ;;  %v9462_v50 = vsel %vm9362_vm5, %v19540_v55, -inf  ;;  %v9423_v55 = vsel %vm9362_vm5, %v19543_v0, -inf  ;;  %23333 = vst [vmem:[#allocation31_spill] sm:$0xff] %v19580_v47 }
 0x37e   : > { %23327 = vst [vmem:[#allocation29_spill] sm:$0xff] %v19549_v31  ;;  %9463 = vmax.xlane.f32.xlu1 %v9462_v50  ;;  %v19571_v50 = vrot.slane %v14670_v38, %v16609_v6  ;;  %9424 = vmax.xlane.f32.xlu0 %v9423_v55  ;;  %v9459_v2 = vsel %vm9362_vm5, %v19549_v31, -inf  ;;  %v7057_v38 = vrot.slane %v7043_v45, %v16617_v13  ;;  %v9429_v45 = vsel %vm9362_vm5, %v19580_v47, -inf }
 0x37f   : > { %v15353_v25 = vpop.f32.mrb[22].mxu0  ;;  %v19553_v56 = vpop.f32.mrb[30].mxu1 }
 0x380   : > { %v8447_v17 = vpop.f32.mrb[23].mxu0  ;;  %v19568_v49 = vpop.f32.mrb[31].mxu1  ;;  %23331 = vst [vmem:[#allocation47_spill] sm:$0xff] %v19571_v50  ;;  %v9254_v4 = vmul.f32 0.35355338, %v15353_v25  ;;  %v9432_v25 = vsel %vm9362_vm5, %v19566_v1, -inf  ;;  %v7179_v3 = vcombine.high %v19571_v50, %v19574_v54  ;;  %v7064_v55 = vcombine.low %v7025_v52, %v7057_v38 }
 0x381   : > { %v9253_v36 = vmul.f32 0.35355338, %v8447_v17  ;;  %v7065_v34 = vcombine.high %v7025_v52, %v7057_v38 }
 0x382   : > { %9460 = vmax.xlane.f32.xlu1 %v9459_v2  ;;  %v19593_v30 = vadd.f32 %v19317_v27, %v9254_v4  ;;  %v19597_v2 = vadd.f32 %v19334_v18, %v9247_v8  ;;  %9433 = vmax.xlane.f32.xlu0 %v9432_v25  ;;  %v7193_v26 = vrot.slane %v7179_v3, %v16617_v13  ;;  %v9248_v4 = vmul.f32 0.35355338, %v19448_v7 }
 0x383   : > { %v19604_v17 = vadd.f32 %v19326_v41, %v9253_v36 }
 0x384   : > { %23334 = vst [vmem:[#allocation46_spill] sm:$0xff] %v19593_v30  ;;  %23335 = vst [vmem:[#allocation44_spill] sm:$0xff] %v19597_v2  ;;  %v7200_v1 = vcombine.low %v7161_v46, %v7193_v26  ;;  %v7201_v50 = vcombine.high %v7161_v46, %v7193_v26  ;;  %v9468_v61 = vsel %vm9362_vm5, %v19593_v30, -inf  ;;  %v9447_v8 = vsel %vm9362_vm5, %v19597_v2, -inf }
 0x385   : > { %23336 = vst [vmem:[#allocation45_spill] sm:$0xff] %v19604_v17  ;;  %v19619_v26 = vadd.f32 %v19307_v9, %v9248_v4  ;;  %v9465_v36 = vsel %vm9362_vm5, %v19604_v17, -inf }
 0x386   : > { %9430 = vmax.xlane.f32.xlu1 %v9429_v45  ;;  %9469 = vmax.xlane.f32.xlu0 %v9468_v61  ;;  %v19610_v25 = vpack.c.bf16 %v7200_v1, %v7064_v55  ;;  %v19612_v54 = vpack.c.bf16 %v7201_v50, %v7065_v34 }
 0x387   : > { %23339 = vst [vmem:[#allocation28_spill] sm:$0xff] %v19619_v26  ;;  %v9450_v4 = vsel %vm9362_vm5, %v19619_v26, -inf }
 0x388   : > { %23337 = vst [vmem:[#allocation49_spill] sm:$0xff] %v19610_v25  ;;  %23338 = vst [vmem:[#allocation8_spill] sm:$0xff] %v19612_v54  ;;  %v9250_v25 = vmul.f32 0.35355338, %v19476_v35 }
 0x38a   : > { %9448 = vmax.xlane.f32.xlu1 %v9447_v8  ;;  %9466 = vmax.xlane.f32.xlu0 %v9465_v36 }
 0x38b   : > { %v15378_v52 = vpop.f32.mrb[24].mxu0  ;;  %v19614_v38 = vpop.f32.mrb[32].mxu1 }
 0x38c   : > { %v8655_v46 = vpop.f32.mrb[25].mxu0  ;;  %v19616_v7 = vpop.f32.mrb[33].mxu1  ;;  %v9260_v3 = vmul.f32 0.35355338, %v15378_v52 }
 0x38d   : > { %v9259_v8 = vmul.f32 0.35355338, %v8655_v46 }
 0x38e   : > { %v19628_v61 = vadd.f32 %v19307_v9, %v9260_v3  ;;  %9451 = vmax.xlane.f32.xlu0 %v9450_v4  ;;  %v5330_v4 = vcombine.low %v19176_v16, %v19296_v40 }
 0x38f   : > { %v15381_v45 = vpop.f32.mrb[26].mxu0  ;;  %v19642_v3 = vadd.f32 %v19334_v18, %v9259_v8  ;;  %v5346_v8 = vcombine.low %v19198_v53, %v19302_v29 }
 0x390   : > { %v19623_v1 = vpop.f32.mrb[34].mxu1  ;;  %v9262_v34 = vmul.f32 0.35355338, %v15381_v45  ;;  %v8665_v50 = vpop.f32.mrb[27].mxu0  ;;  %23340 = vst [vmem:[#allocation50_spill] sm:$0xff] %v19628_v61  ;;  %v9486_v46 = vsel %vm9362_vm5, %v19628_v61, -inf }
 0x391   : > { %v19625_v55 = vpop.f32.mrb[35].mxu1  ;;  %v9261_v54 = vmul.f32 0.35355338, %v8665_v50  ;;  %23343 = vst [vmem:[#allocation61_spill] sm:$0xff] %v19642_v3  ;;  %v19649_v50 = vadd.f32 %v19317_v27, %v9250_v25  ;;  %v9483_v35 = vsel %vm9362_vm5, %v19642_v3, -inf }
 0x392   : > { %v19633_v52 = vadd.f32 %v19317_v27, %v9262_v34  ;;  %9487 = vmax.xlane.f32.xlu0 %v9486_v46  ;;  %v9256_v46 = vmul.f32 0.35355338, %v19522_v23 }
 0x393   : > { %v19636_v36 = vadd.f32 %v19326_v41, %v9261_v54  ;;  %23344 = vst [vmem:[#allocation62_spill] sm:$0xff] %v19649_v50  ;;  %v9249_v54 = vmul.f32 0.35355338, %v19482_v60  ;;  %v9456_v25 = vsel %vm9362_vm5, %v19649_v50, -inf  ;;  %v5347_v60 = vcombine.high %v19198_v53, %v19302_v29 }
 0x394   : > { %23341 = vst [vmem:[#allocation2_spill] sm:$0xff] %v19633_v52  ;;  %v9492_v45 = vsel %vm9362_vm5, %v19633_v52, -inf  ;;  %v5338_v52 = vrot.slane %v5330_v4, %v16609_v6  ;;  %v19671_v3 = vadd.f32 %v19307_v9, %v9256_v46 }
 0x395   : > { %23342 = vst [vmem:[#allocation60_spill] sm:$0xff] %v19636_v36  ;;  %9493 = vmax.xlane.f32.xlu1 %v9492_v45  ;;  %v9489_v34 = vsel %vm9362_vm5, %v19636_v36, -inf  ;;  %v19659_v45 = vadd.f32 %v19326_v41, %v9249_v54  ;;  %v9255_v54 = vmul.f32 0.35355338, %v19527_v15  ;;  %v5361_v50 = vrot.slane %v5347_v60, %v16609_v6 }
 0x396   : > { %9484 = vmax.xlane.f32.xlu0 %v9483_v35  ;;  %v5331_v35 = vcombine.high %v19176_v16, %v19296_v40  ;;  %23346 = vst [vmem:[#allocation64_spill] sm:$0xff] %v19671_v3  ;;  %v5482_v16 = vcombine.low %v19227_v24, %v19252_v62  ;;  %v5483_v40 = vcombine.high %v19227_v24, %v19252_v62  ;;  %v9258_v15 = vmul.f32 0.35355338, %v19553_v56 }
 0x397   : > { %23345 = vst [vmem:[#allocation63_spill] sm:$0xff] %v19659_v45  ;;  %v9453_v23 = vsel %vm9362_vm5, %v19659_v45, -inf  ;;  %v19683_v4 = vadd.f32 %v19334_v18, %v9255_v54  ;;  %v9474_v46 = vsel %vm9362_vm5, %v19671_v3, -inf  ;;  %v5467_v24 = vcombine.high %v19292_v19, %v19244_v10 }
 0x398   : > { %v5618_v62 = vcombine.low %v19274_v63, %v19348_v44  ;;  %v5490_v56 = vrot.slane %v5482_v16, %v16609_v6  ;;  %v5497_v54 = vrot.slane %v5483_v40, %v16609_v6 }
 0x399   : > { %9490 = vmax.xlane.f32.xlu1 %v9489_v34  ;;  %v5354_v34 = vrot.slane %v5346_v8, %v16609_v6  ;;  %v5345_v8 = vrot.slane %v5331_v35, %v16609_v6  ;;  %23347 = vst [vmem:[#allocation65_spill] sm:$0xff] %v19683_v4  ;;  %v5481_v16 = vrot.slane %v5467_v24, %v16609_v6  ;;  %v19718_v24 = vpop.permute.xlu0 %5216 }
 0x39a   : > { %9457 = vmax.xlane.f32.xlu0 %v9456_v25  ;;  %v5626_v40 = vrot.slane %v5618_v62, %v16609_v6  ;;  %23349 = vst [vmem:[#allocation67_spill] sm:$0xff] %v19718_v24 }
 0x39b   : > { %v5394_v53 = vcombine.low %v5338_v52, %v5354_v34  ;;  %v5395_v29 = vcombine.high %v5338_v52, %v5354_v34  ;;  %v5410_v25 = vcombine.low %v5345_v8, %v5361_v50  ;;  %v5466_v52 = vcombine.low %v19292_v19, %v19244_v10 }
 0x39c   : > { %v5411_v35 = vcombine.high %v5345_v8, %v5361_v50  ;;  %v5619_v19 = vcombine.high %v19274_v63, %v19348_v44  ;;  %v5547_v36 = vcombine.high %v5481_v16, %v5497_v54 }
 0x39d   : > { %v5402_v60 = vrot.slane %v5394_v53, %v16617_v13  ;;  %v5409_v34 = vrot.slane %v5395_v29, %v16617_v13  ;;  %v9471_v53 = vsel %vm9362_vm5, %v19683_v4, -inf  ;;  %v5418_v29 = vrot.slane %v5410_v25, %v16617_v13 }
 0x39e   : > { %9454 = vmax.xlane.f32.xlu0 %v9453_v23  ;;  %v5602_v23 = vcombine.low %v19268_v58, %v19324_v39  ;;  %v5474_v10 = vrot.slane %v5466_v52, %v16609_v6  ;;  %v5603_v4 = vcombine.high %v19268_v58, %v19324_v39  ;;  %v5546_v25 = vcombine.low %v5481_v16, %v5497_v54 }
 0x39f   : > { %v14626_v50 = vcombine.low %v5402_v60, %v5409_v34  ;;  %v14628_v8 = vcombine.high %v5402_v60, %v5409_v34  ;;  %v5633_v44 = vrot.slane %v5619_v19, %v16609_v6 }
 0x3a0   : > { %v5530_v3 = vcombine.low %v5474_v10, %v5490_v56  ;;  %v5531_v45 = vcombine.high %v5474_v10, %v5490_v56  ;;  %v5610_v52 = vrot.slane %v5602_v23, %v16609_v6  ;;  %v5617_v56 = vrot.slane %v5603_v4, %v16609_v6 }
 0x3a1   : > { %v19721_v62 = vrot.slane %v14626_v50, %v16609_v6  ;;  %v5561_v10 = vrot.slane %v5547_v36, %v16617_v13  ;;  %v5754_v50 = vcombine.low %v19284_v14, %v19290_v51  ;;  %v5755_v4 = vcombine.high %v19284_v14, %v19290_v51 }
 0x3a2   : > { %9475 = vmax.xlane.f32.xlu0 %v9474_v46  ;;  %v19701_v46 = vadd.f32 %v19317_v27, %v9258_v15  ;;  %v5425_v15 = vrot.slane %v5411_v35, %v16617_v13  ;;  %v5666_v60 = vcombine.low %v5610_v52, %v5626_v40  ;;  %v5667_v34 = vcombine.high %v5610_v52, %v5626_v40 }
 0x3a3   : > { %v19724_v35 = vrot.slane %v14628_v8, %v16609_v6  ;;  %v5538_v54 = vrot.slane %v5530_v3, %v16617_v13  ;;  %v5545_v23 = vrot.slane %v5531_v45, %v16617_v13  ;;  %v5682_v19 = vcombine.low %v5617_v56, %v5633_v44 }
 0x3a4   : > { %23348 = vst [vmem:[#allocation66_spill] sm:$0xff] %v19701_v46  ;;  %v9480_v63 = vsel %vm9362_vm5, %v19701_v46, -inf  ;;  %v14630_v58 = vcombine.low %v5418_v29, %v5425_v15  ;;  %v14632_v39 = vcombine.high %v5418_v29, %v5425_v15  ;;  %v5683_v16 = vcombine.high %v5617_v56, %v5633_v44  ;;  %v19749_v44 = vpop.permute.xlu0 %5262 }
 0x3a5   : > { %v5674_v8 = vrot.slane %v5666_v60, %v16617_v13  ;;  %v5681_v40 = vrot.slane %v5667_v34, %v16617_v13  ;;  %v6466_v3 = vcombine.low %v19721_v62, %v19724_v35  ;;  %v5738_v45 = vcombine.low %v19312_v22, %v19288_v37  ;;  %23350 = vst [vmem:[#allocation68_spill] sm:$0xff] %v19749_v44 }
 0x3a6   : > { %9472 = vmax.xlane.f32.xlu0 %v9471_v53  ;;  %v5554_v53 = vrot.slane %v5546_v25, %v16617_v13  ;;  %v5739_v36 = vcombine.high %v19312_v22, %v19288_v37  ;;  %v19744_v29 = vrot.slane %v14630_v58, %v16609_v6  ;;  %v19747_v15 = vrot.slane %v14632_v39, %v16609_v6  ;;  %v19755_v22 = vpop.permute.xlu1 %5214 }
 0x3a7   : > { %v14634_v25 = vcombine.low %v5538_v54, %v5545_v23  ;;  %v14636_v52 = vcombine.high %v5538_v54, %v5545_v23  ;;  %v5690_v51 = vrot.slane %v5682_v19, %v16617_v13  ;;  %v5762_v60 = vrot.slane %v5754_v50, %v16609_v6  ;;  %23351 = vst [vmem:[#allocation69_spill] sm:$0xff] %v19755_v22 }
 0x3a8   : > { %v14640_v14 = vcombine.high %v5554_v53, %v5561_v10  ;;  %v5697_v34 = vrot.slane %v5683_v16, %v16617_v13  ;;  %v14642_v56 = vcombine.low %v5674_v8, %v5681_v40  ;;  %v5769_v37 = vrot.slane %v5755_v4, %v16609_v6  ;;  %v19780_v61 = vpop.permute.xlu0 %5286 }
 0x3a9   : > { %v19758_v58 = vrot.slane %v6466_v3, %v16617_v13  ;;  %v14644_v39 = vcombine.high %v5674_v8, %v5681_v40  ;;  %v5746_v54 = vrot.slane %v5738_v45, %v16609_v6  ;;  %v5753_v23 = vrot.slane %v5739_v36, %v16609_v6  ;;  %23352 = vst [vmem:[#allocation70_spill] sm:$0xff] %v19780_v61 }
 0x3aa   : > { %9481 = vmax.xlane.f32.xlu0 %v9480_v63  ;;  %v14638_v63 = vcombine.low %v5554_v53, %v5561_v10  ;;  %v6498_v19 = vcombine.low %v19744_v29, %v19747_v15  ;;  %v19769_v4 = vrot.slane %v14634_v25, %v16609_v6  ;;  %v19772_v3 = vrot.slane %v14636_v52, %v16609_v6 }
 0x3ab   : > { %v5802_v40 = vcombine.low %v5746_v54, %v5762_v60  ;;  %v5803_v45 = vcombine.high %v5746_v54, %v5762_v60  ;;  %v19778_v22 = vrot.slane %v14640_v14, %v16609_v6  ;;  %v14646_v44 = vcombine.low %v5690_v51, %v5697_v34  ;;  %v19794_v14 = vpop.permute.xlu1 %5238 }
 0x3ac   : > { %v19775_v8 = vrot.slane %v14638_v63, %v16609_v6  ;;  %v5819_v46 = vcombine.high %v5753_v23, %v5769_v37  ;;  %v14648_v26 = vcombine.high %v5690_v51, %v5697_v34  ;;  %v19786_v52 = vrot.slane %v6498_v19, %v16617_v13  ;;  %23354 = vst [vmem:[#allocation72_spill] sm:$0xff] %v19794_v14 }
 0x3ad   : > { %v19789_v63 = vrot.slane %v14642_v56, %v16609_v6  ;;  %v19792_v60 = vrot.slane %v14644_v39, %v16609_v6  ;;  %v9257_v54 = vmul.f32 0.35355338, %v19568_v49  ;;  %v6602_v34 = vcombine.low %v19769_v4, %v19772_v3 }
 0x3ae   : > { %v5810_v56 = vrot.slane %v5802_v40, %v16617_v13  ;;  %v5817_v19 = vrot.slane %v5803_v45, %v16617_v13  ;;  %v6634_v49 = vcombine.low %v19775_v8, %v19778_v22  ;;  %v5833_v14 = vrot.slane %v5819_v46, %v16617_v13 }
 0x3af   : > { %v19815_v40 = vrot.slane %v14646_v44, %v16609_v6  ;;  %v19828_v46 = vadd.f32 %v19326_v41, %v9257_v54 }
 0x3b0   : > { %v14650_v30 = vcombine.low %v5810_v56, %v5817_v19  ;;  %v14652_v54 = vcombine.high %v5810_v56, %v5817_v19  ;;  %v5859_v56 = vcombine.high %v19294_v57, %v19373_v5 }
 0x3b1   : > { %23357 = vst [vmem:[#allocation75_spill] sm:$0xff] %v19828_v46 }
 0x3b7   : > { %v15406_v53 = vpop.f32.mrb[28].mxu0  ;;  %v19762_v10 = vpop.f32.mrb[36].mxu1 }
 0x3b8   : > { %v9268_v16 = vmul.f32 0.35355338, %v15406_v53  ;;  %v8873_v50 = vpop.f32.mrb[29].mxu0  ;;  %v19766_v24 = vpop.f32.mrb[37].mxu1  ;;  %v5818_v53 = vcombine.low %v5753_v23, %v5769_v37  ;;  %v9272_v0 = vmul.f32 0.35355338, %v19762_v10 }
 0x3b9   : > { %v9267_v36 = vmul.f32 0.35355338, %v8873_v50 }
 0x3ba   : > { %v19783_v25 = vadd.f32 %v19307_v9, %v9268_v16 }
 0x3bb   : > { %v19798_v37 = vadd.f32 %v19334_v18, %v9267_v36  ;;  %v5826_v36 = vrot.slane %v5818_v53, %v16617_v13  ;;  %v6738_v53 = vcombine.low %v19789_v63, %v19792_v60 }
 0x3bc   : > { %23353 = vst [vmem:[#allocation71_spill] sm:$0xff] %v19783_v25  ;;  %v9510_v51 = vsel %vm9362_vm5, %v19783_v25, -inf  ;;  %v9368_v25 = vpop.xlane.xlu0 %9367 }
 0x3bd   : > { %23355 = vst [vmem:[#allocation73_spill] sm:$0xff] %v19798_v37  ;;  %9511 = vmax.xlane.f32.xlu1 %v9510_v51  ;;  %v19823_v51 = vrot.slane %v14648_v26, %v16609_v6  ;;  %v9507_v44 = vsel %vm9362_vm5, %v19798_v37, -inf  ;;  %v14654_v47 = vcombine.low %v5826_v36, %v5833_v14  ;;  %v14656_v31 = vcombine.high %v5826_v36, %v5833_v14  ;;  %v19857_v14 = vpop.permute.xlu1 %5240 }
 0x3be   : > { %23359 = vst [vmem:[#allocation77_spill] sm:$0xff] %v19857_v14  ;;  %v9477_v36 = vsel %vm9362_vm5, %v19828_v46, -inf }
 0x3bf   : > { %v15409_v23 = vpop.f32.mrb[30].mxu0 }
 0x3c0   : > { %v9270_v39 = vmul.f32 0.35355338, %v15409_v23  ;;  %v19806_v16 = vpop.f32.mrb[38].mxu1  ;;  %v8883_v50 = vpop.f32.mrb[31].mxu0  ;;  %v9264_v23 = vmul.f32 0.35355338, %v19614_v38  ;;  %v5842_v38 = vcombine.low %v23201_v20, %v19300_v32 }
 0x3c1   : > { %v9269_v61 = vmul.f32 0.35355338, %v8883_v50  ;;  %v19812_v17 = vpop.f32.mrb[39].mxu1  ;;  %v9263_v50 = vmul.f32 0.35355338, %v19616_v7  ;;  %9508 = vmax.xlane.f32.xlu1 %v9507_v44  ;;  %v19843_v7 = vrot.slane %v6634_v49, %v16617_v13  ;;  %v6467_v44 = vcombine.high %v19721_v62, %v19724_v35  ;;  %v19862_v49 = vpop.xlane.xlu0 %9391 }
 0x3c2   : > { %v19818_v45 = vadd.f32 %v19317_v27, %v9270_v39  ;;  %v19834_v39 = vrot.slane %v6602_v34, %v16617_v13  ;;  %v5858_v34 = vcombine.low %v19294_v57, %v19373_v5  ;;  %v9266_v62 = vmul.f32 0.35355338, %v19623_v1  ;;  %v19911_v14 = vpop.permute.xlu1 %5264 }
 0x3c3   : > { %v19838_v26 = vadd.f32 %v19326_v41, %v9269_v61  ;;  %v6770_v61 = vcombine.low %v19815_v40, %v19823_v51  ;;  %v19860_v19 = vadd.f32 %v19334_v18, %v9263_v50  ;;  %v19877_v5 = vrot.slane %v14652_v54, %v16609_v6  ;;  %23364 = vst [vmem:[#allocation82_spill] sm:$0xff] %v19911_v14 }
 0x3c4   : > { %23356 = vst [vmem:[#allocation74_spill] sm:$0xff] %v19818_v45  ;;  %v9516_v2 = vsel %vm9362_vm5, %v19818_v45, -inf  ;;  %v19867_v45 = vadd.f32 %v19307_v9, %v9264_v23  ;;  %v19880_v35 = vrot.slane %v14654_v47, %v16609_v6  ;;  %v19883_v23 = vrot.slane %v14656_v31, %v16609_v6 }
 0x3c5   : > { %23358 = vst [vmem:[#allocation76_spill] sm:$0xff] %v19838_v26  ;;  %9517 = vmax.xlane.f32.xlu0 %v9516_v2  ;;  %v5843_v2 = vcombine.high %v23201_v20, %v19300_v32  ;;  %23360 = vst [vmem:[#allocation78_spill] sm:$0xff] %v19860_v19  ;;  %9478 = vmax.xlane.f32.xlu1 %v9477_v36  ;;  %v9513_v57 = vsel %vm9362_vm5, %v19838_v26, -inf  ;;  %v19873_v20 = vrot.slane %v14650_v30, %v16609_v6  ;;  %v9365_v54 = vpop.xlane.xlu0 %9364 }
 0x3c6   : > { %23361 = vst [vmem:[#allocation79_spill] sm:$0xff] %v19867_v45  ;;  %v9556_v32 = vsub.f32 %v19315_v11, %v9368_v25  ;;  %v5866_v1 = vrot.slane %v5858_v34, %v16609_v6  ;;  %v5850_v50 = vrot.slane %v5842_v38, %v16609_v6  ;;  %v6654_v30 = vcombine.low %v19834_v39, %v19843_v7 }
 0x3c7   : > { %v19890_v36 = vrot.slane %v6738_v53, %v16617_v13  ;;  %v5873_v11 = vrot.slane %v5859_v56, %v16609_v6  ;;  %v5857_v25 = vrot.slane %v5843_v2, %v16609_v6  ;;  %v9495_v31 = vsel %vm9362_vm5, %v19860_v19, -inf }
 0x3c8   : > { %v6499_v34 = vcombine.high %v19744_v29, %v19747_v15  ;;  %v19901_v38 = vadd.f32 %v19317_v27, %v9266_v62  ;;  %v9555_v53 = vsub.f32 %v19344_v33, %v9365_v54  ;;  %v9498_v2 = vsel %vm9362_vm5, %v19867_v45, -inf }
 0x3c9   : > { %9514 = vmax.xlane.f32.xlu0 %v9513_v57  ;;  %23362 = vst [vmem:[#allocation80_spill] sm:$0xff] %v19890_v36  ;;  %v9265_v57 = vmul.f32 0.35355338, %v19625_v55  ;;  %9496 = vmax.xlane.f32.xlu1 %v9495_v31  ;;  %v9621_v19 = vmul.f32 1.442695, %v9556_v32  ;;  %v19916_v29 = vrot.slane %v6770_v61, %v16617_v13  ;;  %v6874_v33 = vcombine.low %v19873_v20, %v19877_v5  ;;  %v9389_v45 = vpop.xlane.xlu0 %9388 }
 0x3ca   : > { %23363 = vst [vmem:[#allocation81_spill] sm:$0xff] %v19901_v38  ;;  %v19905_v26 = vpop.f32.mrb[40].mxu1  ;;  %v6906_v55 = vcombine.low %v19880_v35, %v19883_v23  ;;  %v5906_v15 = vcombine.low %v5850_v50, %v5866_v1  ;;  %v5907_v62 = vcombine.high %v5850_v50, %v5866_v1  ;;  %v9619_v54 = vmul.f32 1.442695, %v9555_v53  ;;  %v19938_v50 = vpop.xlane.xlu1 %9397 }
 0x3cb   : > { %v19913_v46 = vpop.f32.mrb[41].mxu1  ;;  %23365 = vst [vmem:[#allocation83_spill] sm:$0xff] %v19916_v29  ;;  %v19923_v31 = vrot.slane %v6467_v44, %v16617_v13  ;;  %v5922_v14 = vcombine.low %v5857_v25, %v5873_v11  ;;  %v5923_v32 = vcombine.high %v5857_v25, %v5873_v11  ;;  %v6603_v61 = vcombine.high %v19769_v4, %v19772_v3 }
 0x3cc   : > { %v19894_v47 = vpop.f32.mrb[32].mxu0  ;;  %v19931_v37 = vadd.f32 %v19326_v41, %v9265_v57  ;;  %16091 = vpow2.f32 %v9619_v54  ;;  %v9504_v1 = vsel %vm9362_vm5, %v19901_v38, -inf  ;;  %v5978_v44 = vcombine.low %v23199_v28, %v19309_v59 }
 0x3cd   : > { %v19907_v56 = vpop.f32.mrb[33].mxu0  ;;  %9499 = vmax.xlane.f32.xlu0 %v9498_v2  ;;  %v19926_v2 = vrot.slane %v6499_v34, %v16617_v13  ;;  %16093 = vpow2.f32 %v9621_v19  ;;  %v19943_v4 = vrot.slane %v6874_v33, %v16617_v13  ;;  %v19946_v3 = vrot.slane %v6906_v55, %v16617_v13 }
 0x3ce   : > { %23366 = vst [vmem:[#allocation84_spill] sm:$0xff] %v19931_v37  ;;  %v19949_v10 = vrot.slane %v5906_v15, %v16617_v13  ;;  %v19952_v25 = vrot.slane %v5907_v62, %v16617_v13  ;;  %v5979_v19 = vcombine.high %v23199_v28, %v19309_v59  ;;  %v6635_v53 = vcombine.high %v19775_v8, %v19778_v22  ;;  %v9374_v15 = vpop.xlane.xlu0 %9373  ;;  %v9395_v42 = vpop.xlane.xlu1 %9394 }
 0x3cf   : > { %23368 = vst [vmem:[#allocation86_spill] sm:$0xff] %v19943_v4  ;;  %23369 = vst [vmem:[#allocation87_spill] sm:$0xff] %v19946_v3  ;;  %v19963_v33 = vrot.slane %v5922_v14, %v16617_v13  ;;  %v19966_v55 = vrot.slane %v5923_v32, %v16617_v13  ;;  %v23371_v62 = vcombine.low %v19758_v58, %v19786_v52  ;;  %v9271_v22 = vmul.f32 0.35355338, %v19766_v24 }
 0x3d0   : > { %v19940_v11 = vpop.f32.mrb[34].mxu0  ;;  %v19956_v34 = vpop.f32.mrb[42].mxu1  ;;  %v6790_v59 = vcombine.low %v19890_v36, %v19916_v29  ;;  %v9501_v8 = vsel %vm9362_vm5, %v19931_v37, -inf  ;;  %v19984_v14 = vrot.slane %v6603_v61, %v16617_v13  ;;  %v19987_v32 = vrot.slane %v5978_v44, %v16609_v6  ;;  %v23373_v61 = vld [vmem:[#allocation51_spill] sm:$0xff] }
 0x3d1   : > { %23367 = vst [vmem:[#allocation85_spill] sm:$0xff] %v19940_v11  ;;  %9505 = vmax.xlane.f32.xlu0 %v9504_v1  ;;  %v19958_v57 = vpop.f32.mrb[35].mxu0  ;;  %v19968_v54 = vpop.f32.mrb[43].mxu1  ;;  %v19973_v28 = vpack.c.bf16 %v6654_v30, %v23371_v62  ;;  %v19978_v1 = vadd.f32 %v19307_v9, %v9272_v0  ;;  %v9558_v30 = vsub.f32 %v19362_v48, %v9374_v15 }
 0x3d2   : > { %23370 = vst [vmem:[#allocation88_spill] sm:$0xff] %v19958_v57  ;;  %v6926_v62 = vcombine.low %v19943_v4, %v19946_v3  ;;  %v19997_v37 = vrot.slane %v5979_v19, %v16609_v6  ;;  %v9563_v38 = vsub.f32 %v23373_v61, %v9389_v45  ;;  %v20001_v44 = vrot.slane %v6635_v53, %v16617_v13  ;;  %v9371_v19 = vpop.xlane.xlu0 %9370  ;;  %v23377_v53 = vld [vmem:[#allocation7_spill] sm:$0xff]  ;;  %v23378_v4 = vld [vmem:[#allocation33_spill] sm:$0xff] }
 0x3d3   : > { %23372 = vst [vmem:[#allocation89_spill] sm:$0xff] %v19978_v1  ;;  %v20012_v11 = vadd.f32 %v19334_v18, %v9271_v22  ;;  %v9274_v45 = vmul.f32 0.35355338, %v19806_v16  ;;  %v9557_v61 = vsub.f32 %v23377_v53, %v9371_v19  ;;  %v9522_v48 = vsel %vm9362_vm5, %v19978_v1, -inf  ;;  %v23379_v22 = vld [vmem:[#allocation27_spill] sm:$0xff] }
 0x3d4   : > { %v9564_v3 = vsub.f32 %v23378_v4, %v19862_v49  ;;  %v9625_v57 = vmul.f32 1.442695, %v9558_v30  ;;  %v6114_v16 = vcombine.low %v23380_v12, %v23379_v22  ;;  %v9565_v19 = vsub.f32 %v23381_v21, %v9395_v42  ;;  %v23382_v49 = vld [vmem:[#allocation37_spill] sm:$0xff] }
 0x3d5   : > { %9502 = vmax.xlane.f32.xlu0 %v9501_v8  ;;  %v23374_v8 = vld [vmem:[#allocation32_spill] sm:$0xff]  ;;  %23376 = vst [vmem:[#allocation51_spill] sm:$0xff] %v20012_v11  ;;  %v9635_v53 = vmul.f32 1.442695, %v9563_v38  ;;  %v9623_v36 = vmul.f32 1.442695, %v9557_v61 }
 0x3d6   : > { %v5994_v0 = vcombine.low %v23375_v43, %v23374_v8  ;;  %v5995_v24 = vcombine.high %v23375_v43, %v23374_v8  ;;  %v20022_v43 = vpack.c.bf16 %v6926_v62, %v6790_v59  ;;  %v20024_v8 = vpop.eup %16091  ;;  %v23383_v4 = vld [vmem:[#allocation13_spill] sm:$0xff]  ;;  %v6115_v59 = vcombine.high %v23380_v12, %v23379_v22  ;;  %v23388_v61 = vld [vmem:[#allocation16_spill] sm:$0xff] }
 0x3d7   : > { %v20029_v1 = vpop.eup %16093  ;;  %v6130_v30 = vcombine.low %v23383_v4, %v23382_v49  ;;  %15460 = vmatprep.mubr.msk.f32.mxu0 %vm9362_vm5, %v20024_v8  ;;  %v20040_v62 = vadd.f32 %v19317_v27, %v9274_v45  ;;  %v9275_v21 = vmul.f32 0.35355338, %v19907_v56  ;;  %16095 = vpow2.f32 %v9623_v36  ;;  %v23385_v12 = vld [vmem:[#allocation17_spill] sm:$0xff] }
 0x3d8   : > { %v6002_v15 = vrot.slane %v5994_v0, %v16609_v6  ;;  %v6009_v29 = vrot.slane %v5995_v24, %v16609_v6  ;;  %15461 = vmatmul.mubr.msk.f32.vlgmr.msra.gmra.mrb[36].mxu0 %vm9362_vm5, %v20029_v1  ;;  %v9519_v42 = vsel %vm9362_vm5, %v20012_v11, -inf  ;;  %v6131_v38 = vcombine.high %v23383_v4, %v23382_v49  ;;  %v23387_v45 = vld [vmem:[#allocation9_spill] sm:$0xff] }
 0x3d9   : > { %9523 = vmax.xlane.f32.xlu0 %v9522_v48  ;;  %23384 = vst [vmem:[#allocation32_spill] sm:$0xff] %v20040_v62  ;;  %v9566_v0 = vsub.f32 %v23385_v12, %v19938_v50  ;;  %v9637_v24 = vmul.f32 1.442695, %v9564_v3  ;;  %16097 = vpow2.f32 %v9625_v57  ;;  %v23386_v48 = vld [vmem:[#allocation4_spill] sm:$0xff]  ;;  %v6122_v56 = vrot.slane %v6114_v16, %v16609_v6 }
 0x3da   : > { %15931 = vmatpush3.bf16.msra.mxu0 %v23386_v48  ;;  %v9639_v36 = vmul.f32 1.442695, %v9565_v19  ;;  %16099 = vpow2.f32 %v9635_v53  ;;  %5288 = vrot.lane.b32.xlu1 %v23388_v61, %s16362_s17  ;;  %v6656_v22 = vcombine.low %v19984_v14, %v20001_v44  ;;  %v6042_v49 = vcombine.low %v19987_v32, %v6002_v15  ;;  %v23391_v48 = vld [vmem:[#allocation22_spill] sm:$0xff] }
 0x3db   : > { %15933 = vmatprep.subr.bf16.mxu0 %v23387_v45  ;;  %v6043_v50 = vcombine.high %v19987_v32, %v6002_v15  ;;  %v6129_v3 = vrot.slane %v6115_v59, %v16609_v6  ;;  %v6138_v16 = vrot.slane %v6130_v30, %v16609_v6  ;;  %v9276_v19 = vmul.f32 0.35355338, %v19894_v47  ;;  %v9380_v15 = vpop.xlane.xlu0 %9379  ;;  %v23390_v47 = vld [vmem:[#allocation19_spill] sm:$0xff] }
 0x3dc   : > { %v20066_v53 = vadd.f32 %v19334_v18, %v9275_v21  ;;  %v9528_v4 = vsel %vm9362_vm5, %v20040_v62, -inf  ;;  %v6145_v12 = vrot.slane %v6131_v38, %v16609_v6  ;;  %v9641_v32 = vmul.f32 1.442695, %v9566_v0  ;;  %v23392_v0 = vld [vmem:[#allocation12_spill] sm:$0xff] }
 0x3dd   : > { %9520 = vmax.xlane.f32.xlu0 %v9519_v42  ;;  %v6058_v42 = vcombine.low %v19997_v37, %v6009_v29  ;;  %16101 = vpow2.f32 %v9637_v24  ;;  %v6059_v30 = vcombine.high %v19997_v37, %v6009_v29  ;;  %v6178_v59 = vcombine.low %v6122_v56, %v6138_v16  ;;  %v23394_v37 = vld [vmem:[#allocation10_spill] sm:$0xff] }
 0x3de   : > { %23389 = vst [vmem:[#allocation6_spill] sm:$0xff] %v20066_v53  ;;  %15935 = vmatpush3.bf16.msra.mxu0 %v23387_v45  ;;  %v6266_v21 = vcombine.low %v23391_v48, %v23390_v47  ;;  %16103 = vpow2.f32 %v9639_v36  ;;  %v6179_v57 = vcombine.high %v6122_v56, %v6138_v16  ;;  %v6194_v62 = vcombine.low %v6129_v3, %v6145_v12 }
 0x3df   : > { %15945 = vmatprep.subr.bf16.mxu0 %v19973_v28  ;;  %v6195_v11 = vcombine.high %v6129_v3, %v6145_v12  ;;  %v6267_v38 = vcombine.high %v23391_v48, %v23390_v47  ;;  %v6250_v24 = vcombine.low %v23388_v61, %v23392_v0  ;;  %v20082_v45 = vadd.f32 %v19307_v9, %v9276_v19 }
 0x3e0   : > { %v9560_v29 = vsub.f32 %v23394_v37, %v9380_v15  ;;  %v20088_v36 = vrot.slane %v6042_v49, %v16617_v13  ;;  %v6251_v56 = vcombine.high %v23388_v61, %v23392_v0  ;;  %16105 = vpow2.f32 %v9641_v32 }
 0x3e1   : > { %9529 = vmax.xlane.f32.xlu0 %v9528_v4  ;;  %23393 = vst [vmem:[#allocation7_spill] sm:$0xff] %v20082_v45  ;;  %v9531_v4 = vsel %vm9362_vm5, %v20066_v53, -inf  ;;  %v9280_v3 = vmul.f32 0.35355338, %v19905_v26  ;;  %v20093_v16 = vpop.eup %16095  ;;  %v20096_v19 = vrot.slane %v6043_v50, %v16617_v13  ;;  %v20099_v12 = vrot.slane %v6058_v42, %v16617_v13 }
 0x3e2   : > { %v20102_v15 = vrot.slane %v6059_v30, %v16617_v13  ;;  %v6274_v49 = vrot.slane %v6266_v21, %v16609_v6  ;;  %v20108_v61 = vrot.slane %v6178_v59, %v16617_v13  ;;  %v20111_v26 = vrot.slane %v6179_v57, %v16617_v13  ;;  %15463 = vmatprep.mubr.msk.f32.mxu0 %vm9362_vm5, %v20093_v16 }
 0x3e3   : > { %v20105_v47 = vpop.eup %16097  ;;  %v20114_v32 = vrot.slane %v6194_v62, %v16617_v13  ;;  %v6281_v50 = vrot.slane %v6267_v38, %v16609_v6  ;;  %v20122_v30 = vrot.slane %v6195_v11, %v16617_v13  ;;  %v6258_v48 = vrot.slane %v6250_v24, %v16609_v6 }
 0x3e4   : > { %23395 = vst [vmem:[#allocation33_spill] sm:$0xff] %v20105_v47  ;;  %v20119_v42 = vpop.eup %16099  ;;  %v9629_v59 = vmul.f32 1.442695, %v9560_v29  ;;  %15464 = vmatmul.mubr.msk.f32.gmra.mrb[38].mxu0 %vm9362_vm5, %v20105_v47  ;;  %v9534_v62 = vsel %vm9362_vm5, %v20082_v45, -inf  ;;  %v6265_v57 = vrot.slane %v6251_v56, %v16609_v6  ;;  %v20131_v21 = vadd.f32 %v19307_v9, %v9280_v3 }
 0x3e5   : > { %9532 = vmax.xlane.f32.xlu0 %v9531_v4  ;;  %v9281_v38 = vmul.f32 0.35355338, %v19968_v54  ;;  %15488 = vmatprep.mubr.msk.f32.mxu0 %vm9362_vm5, %v20119_v42  ;;  %v23397_v11 = vcombine.low %v19923_v31, %v19926_v2  ;;  %v6314_v29 = vcombine.low %v6258_v48, %v6274_v49  ;;  %v9282_v56 = vmul.f32 0.35355338, %v19956_v34 }
 0x3e6   : > { %23396 = vst [vmem:[#allocation27_spill] sm:$0xff] %v20131_v21  ;;  %v6330_v3 = vcombine.low %v6265_v57, %v6281_v50  ;;  %16107 = vpow2.f32 %v9629_v59  ;;  %v6331_v4 = vcombine.high %v6265_v57, %v6281_v50  ;;  %v9546_v37 = vsel %vm9362_vm5, %v20131_v21, -inf  ;;  %v9416_v50 = vpop.xlane.xlu1 %9415 }
 0x3e7   : > { %v20139_v0 = vpack.c.bf16 %v6656_v22, %v23397_v11  ;;  %v20147_v54 = vpop.eup %16101  ;;  %v6315_v22 = vcombine.high %v6258_v48, %v6274_v49  ;;  %v20165_v49 = vadd.f32 %v19326_v41, %v9281_v38  ;;  %v9386_v48 = vpop.xlane.xlu0 %9385  ;;  %v20173_v59 = vrot.slane %v6314_v29, %v16617_v13 }
 0x3e8   : > { %15489 = vmatmul.mubr.msk.f32.vlgmr.msra.gmra.mrb[40].mxu0 %vm9362_vm5, %v20147_v54  ;;  %v6739_v34 = vcombine.high %v19789_v63, %v19792_v60  ;;  %v6771_v57 = vcombine.high %v19815_v40, %v19823_v51  ;;  %v20186_v9 = vrot.slane %v6330_v3, %v16617_v13  ;;  %v6875_v29 = vcombine.high %v19873_v20, %v19877_v5 }
 0x3e9   : > { %9535 = vmax.xlane.f32.xlu0 %v9534_v62  ;;  %v20153_v62 = vpop.eup %16103  ;;  %23399 = vst [vmem:[#allocation18_spill] sm:$0xff] %v20165_v49  ;;  %15947 = vmatpush3.bf16.msra.mxu0 %v19973_v28  ;;  %v20183_v38 = vrot.slane %v6315_v22, %v16617_v13  ;;  %v23401_v63 = vcombine.low %v19949_v10, %v19952_v25 }
 0x3ea   : > { %23398 = vst [vmem:[#allocation14_spill] sm:$0xff] %v20153_v62  ;;  %15491 = vmatprep.mubr.msk.f32.mxu0 %vm9362_vm5, %v20153_v62  ;;  %15949 = vmatprep.subr.bf16.mxu0 %v20022_v43  ;;  %v20180_v28 = vpop.eup %16105  ;;  %v23402_v40 = vcombine.high %v19949_v10, %v19952_v25  ;;  %v23403_v20 = vcombine.low %v19963_v33, %v19966_v55  ;;  %v23406_v10 = vld [vmem:[#allocation36_spill] sm:$0xff]  ;;  %v23439_v62 = vld [vmem:[#allocation43_spill] sm:$0xff] }
 0x3eb   : > { %23400 = vst [vmem:[#allocation37_spill] sm:$0xff] %v20180_v28  ;;  %v20198_v60 = vrot.slane %v23401_v63, %v16609_v6  ;;  %v20219_v22 = vrot.slane %v6331_v4, %v16617_v13  ;;  %v20222_v3 = vadd.f32 %v19317_v27, %v9282_v56  ;;  %v9562_v25 = vsub.f32 %v23406_v10, %v9386_v48  ;;  %v9422_v63 = vpop.xlane.xlu0 %9421  ;;  %v23407_v48 = vld [vmem:[#allocation41_spill] sm:$0xff] }
 0x3ec   : > { %15492 = vmatmul.mubr.msk.f32.gmra.mrb[42].mxu0 %vm9362_vm5, %v20180_v28  ;;  %v20204_v51 = vrot.slane %v23402_v40, %v16609_v6  ;;  %v20210_v5 = vrot.slane %v23403_v20, %v16609_v6  ;;  %v9549_v40 = vsel %vm9362_vm5, %v20165_v49, -inf  ;;  %v9377_v20 = vpop.xlane.xlu1 %9376  ;;  %v20235_v4 = vrot.slane %v6771_v57, %v16617_v13  ;;  %v23416_v28 = vld [vmem:[#allocation59_spill] sm:$0xff] }
 0x3ed   : > { %9547 = vmax.xlane.f32.xlu0 %v9546_v37  ;;  %v6907_v37 = vcombine.high %v19880_v35, %v19883_v23  ;;  %v23404_v35 = vcombine.high %v19963_v33, %v19966_v55  ;;  %23405 = vst [vmem:[#allocation13_spill] sm:$0xff] %v20222_v3  ;;  %15951 = vmatpush3.bf16.msra.mxu0 %v20022_v43 }
 0x3ee   : > { %15961 = vmatprep.subr.bf16.mxu0 %v20139_v0  ;;  %v6655_v33 = vcombine.high %v19834_v39, %v19843_v7  ;;  %v20232_v55 = vrot.slane %v6739_v34, %v16617_v13  ;;  %v14681_v43 = vcombine.low %v20173_v59, %v20183_v38  ;;  %v14683_v56 = vcombine.high %v20173_v59, %v20183_v38 }
 0x3ef   : > { %v20216_v23 = vrot.slane %v23404_v35, %v16609_v6  ;;  %v9559_v35 = vsub.f32 %v23407_v48, %v9377_v20  ;;  %v20243_v10 = vrot.slane %v6875_v29, %v16617_v13  ;;  %v20247_v39 = vrot.slane %v6907_v37, %v16617_v13  ;;  %v9419_v20 = vpop.xlane.xlu0 %9418  ;;  %v23409_v37 = vld [vmem:[#allocation39_spill] sm:$0xff] }
 0x3f0   : > { %v6994_v7 = vcombine.low %v20198_v60, %v20204_v51  ;;  %v14685_v57 = vcombine.low %v20186_v9, %v20219_v22  ;;  %v9633_v59 = vmul.f32 1.442695, %v9562_v25  ;;  %v9552_v29 = vsel %vm9362_vm5, %v20222_v3, -inf  ;;  %v20257_v48 = vpop.eup %16107  ;;  %v23412_v3 = vld [vmem:[#allocation11_spill] sm:$0xff] }
 0x3f1   : > { %9550 = vmax.xlane.f32.xlu0 %v9549_v40  ;;  %v23408_v40 = vld [vmem:[#allocation40_spill] sm:$0xff]  ;;  %v7026_v34 = vcombine.low %v20210_v5, %v20216_v23  ;;  %v9627_v38 = vmul.f32 1.442695, %v9559_v35  ;;  %v6792_v24 = vcombine.low %v20232_v55, %v20235_v4  ;;  %v23410_v49 = vcombine.low %v20088_v36, %v20096_v19 }
 0x3f2   : > { %v9572_v11 = vsub.f32 %v23408_v40, %v9416_v50  ;;  %v9413_v50 = vpop.xlane.xlu1 %9412  ;;  %v9573_v40 = vsub.f32 %v23409_v37, %v9419_v20  ;;  %v23411_v25 = vcombine.high %v20088_v36, %v20096_v19  ;;  %v23413_v20 = vcombine.low %v20099_v12, %v20102_v15 }
 0x3f3   : > { %v20266_v21 = vrot.slane %v23410_v49, %v16609_v6  ;;  %16109 = vpow2.f32 %v9627_v38  ;;  %v9571_v45 = vsub.f32 %v23412_v3, %v9413_v50  ;;  %v23414_v49 = vcombine.high %v20099_v12, %v20102_v15  ;;  %v23415_v15 = vld [vmem:[#allocation38_spill] sm:$0xff] }
 0x3f4   : > { %v20272_v35 = vrot.slane %v23411_v25, %v16609_v6  ;;  %v9653_v53 = vmul.f32 1.442695, %v9572_v11  ;;  %v6928_v36 = vcombine.low %v20243_v10, %v20247_v39  ;;  %v20290_v19 = vrot.slane %v6994_v7, %v16617_v13  ;;  %v9404_v25 = vpop.xlane.xlu0 %9403 }
 0x3f5   : > { %9553 = vmax.xlane.f32.xlu0 %v9552_v29  ;;  %v20279_v29 = vrot.slane %v23413_v20, %v16609_v6  ;;  %v20285_v37 = vrot.slane %v23414_v49, %v16609_v6  ;;  %v20293_v3 = vrot.slane %v7026_v34, %v16617_v13  ;;  %v9273_v38 = vmul.f32 0.35355338, %v19812_v17  ;;  %v23417_v17 = vld [vmem:[#allocation53_spill] sm:$0xff] }
 0x3f6   : > { %16111 = vpow2.f32 %v9633_v59  ;;  %v9651_v50 = vmul.f32 1.442695, %v9571_v45  ;;  %v9762_v12 = vsel %vm9362_vm5, %v20257_v48, 0.0  ;;  %v9574_v20 = vsub.f32 %v23415_v15, %v9422_v63  ;;  %v9383_v49 = vpop.xlane.xlu1 %9382 }
 0x3f7   : > { %v9655_v11 = vmul.f32 1.442695, %v9573_v40  ;;  %v9568_v47 = vsub.f32 %v23416_v28, %v9404_v25  ;;  %v7130_v7 = vcombine.low %v20266_v21, %v20272_v35  ;;  %v14687_v34 = vcombine.high %v20186_v9, %v20219_v22 }
 0x3f8   : > { %16113 = vpow2.f32 %v9651_v50  ;;  %v9561_v45 = vsub.f32 %v23417_v17, %v9383_v49  ;;  %v7162_v59 = vcombine.low %v20279_v29, %v20285_v37  ;;  %v23418_v63 = vcombine.high %v19758_v58, %v19786_v52  ;;  %v9440_v15 = vpop.xlane.xlu0 %9439  ;;  %v23420_v52 = vld [vmem:[#allocation83_spill] sm:$0xff] }
 0x3f9   : > { %9763 = vadd.xlane.f32.xlu0 %v9762_v12  ;;  %16115 = vpow2.f32 %v9653_v53  ;;  %v20312_v28 = vpack.c.bf16 %v6928_v36, %v6792_v24  ;;  %v20317_v12 = vadd.f32 %v19326_v41, %v9273_v38  ;;  %v9279_v9 = vmul.f32 0.35355338, %v19913_v46  ;;  %v23421_v24 = vld [vmem:[#allocation80_spill] sm:$0xff]  ;;  %v23422_v36 = vld [vmem:[#allocation55_spill] sm:$0xff] }
 0x3fa   : > { %v20310_v40 = vpack.c.bf16 %v6655_v33, %v23418_v63  ;;  %v9631_v22 = vmul.f32 1.442695, %v9561_v45  ;;  %v9645_v50 = vmul.f32 1.442695, %v9568_v47  ;;  %v9657_v49 = vmul.f32 1.442695, %v9574_v20  ;;  %v9401_v53 = vpop.xlane.xlu1 %9400 }
 0x3fb   : > { %23419 = vst [vmem:[#allocation17_spill] sm:$0xff] %v20317_v12  ;;  %16117 = vpow2.f32 %v9655_v11  ;;  %v20321_v58 = vrot.slane %v7130_v7, %v16617_v13  ;;  %v9567_v17 = vsub.f32 %v23422_v36, %v9401_v53  ;;  %v23423_v63 = vld [vmem:[#allocation52_spill] sm:$0xff]  ;;  %v20328_v25 = vrot.slane %v7162_v59, %v16617_v13 }
 0x3fc   : > { %16119 = vpow2.f32 %v9631_v22  ;;  %v9580_v38 = vsub.f32 %v23423_v63, %v9440_v15  ;;  %v23424_v46 = vcombine.low %v20108_v61, %v20111_v26  ;;  %v20337_v20 = vrot.slane %v14681_v43, %v16609_v6  ;;  %v9437_v15 = vpop.xlane.xlu0 %9436  ;;  %v23426_v43 = vld [vmem:[#allocation34_spill] sm:$0xff] }
 0x3fd   : > { %v20340_v11 = vrot.slane %v14683_v56, %v16609_v6  ;;  %v20343_v7 = vrot.slane %v14685_v57, %v16609_v6  ;;  %v16110_v45 = vpop.eup %16109  ;;  %v20346_v22 = vadd.f32 %v19334_v18, %v9279_v9  ;;  %16121 = vpow2.f32 %v9645_v50  ;;  %v23427_v9 = vld [vmem:[#allocation88_spill] sm:$0xff] }
 0x3fe   : > { %v20334_v47 = vrot.slane %v23424_v46, %v16609_v6  ;;  %v9643_v59 = vmul.f32 1.442695, %v9567_v17  ;;  %v9525_v53 = vsel %vm9362_vm5, %v20317_v12, -inf  ;;  %16123 = vpow2.f32 %v9657_v49  ;;  %v9446_v36 = vpop.xlane.xlu1 %9445  ;;  %15474 = vmatprep.mubr.msk.f32.mxu1 %vm9362_vm5, %v16110_v45  ;;  %v23438_v12 = vld [vmem:[#allocation85_spill] sm:$0xff] }
 0x3ff   : > { %23425 = vst [vmem:[#allocation4_spill] sm:$0xff] %v20346_v22  ;;  %v9579_v56 = vsub.f32 %v23426_v43, %v9437_v15  ;;  %v9759_v63 = vsel %vm9362_vm5, %v16110_v45, 0.0  ;;  %9526 = vmax.xlane.f32.xlu1 %v9525_v53  ;;  %v20354_v57 = vrot.slane %v14687_v34, %v16609_v6  ;;  %v9277_v50 = vmul.f32 0.35355338, %v23427_v9  ;;  %15475 = vmatmul.mubr.msk.f32.vlgmr.msra.gmra.mrb[44].mxu1 %vm9362_vm5, %v20257_v48  ;;  %v23429_v45 = vld [vmem:[#allocation35_spill] sm:$0xff]  ;;  %v23430_v34 = vld [vmem:[#allocation5_spill] sm:$0xff] }
 0x400   : > { %v16112_v18 = vpop.eup %16111  ;;  %16125 = vpow2.f32 %v9643_v59  ;;  %v9669_v17 = vmul.f32 1.442695, %v9580_v38  ;;  %9760 = vadd.xlane.f32.xlu0 %v9759_v63  ;;  %v23428_v49 = vcombine.high %v20108_v61, %v20111_v26  ;;  %v9582_v15 = vsub.f32 %v23429_v45, %v9446_v36  ;;  %15939 = vmatpush3.bf16.msra.mxu1 %v23430_v34  ;;  %v23434_v26 = vld [vmem:[#allocation15_spill] sm:$0xff]  ;;  %v9410_v36 = vpop.xlane.xlu0 %9409 }
 0x401   : > { %v9667_v53 = vmul.f32 1.442695, %v9579_v56  ;;  %v23431_v59 = vcombine.low %v20114_v32, %v20122_v30  ;;  %v23432_v48 = vcombine.high %v20114_v32, %v20122_v30  ;;  %15941 = vmatprep.subr.bf16.mxu1 %v23434_v26  ;;  %v9543_v56 = vsel %vm9362_vm5, %v20346_v22, -inf  ;;  %v23435_v9 = vld [vmem:[#allocation87_spill] sm:$0xff] }
 0x402   : > { %v20363_v46 = vrot.slane %v23428_v49, %v16609_v6  ;;  %v20379_v61 = vpop.eup %16113  ;;  %v7194_v63 = vcombine.low %v20321_v58, %v20328_v25  ;;  %v23436_v49 = vld [vmem:[#allocation86_spill] sm:$0xff]  ;;  %v7402_v34 = vcombine.low %v20337_v20, %v20340_v11  ;;  %v9443_v30 = vpop.xlane.xlu1 %9442  ;;  %v9768_v33 = vsel %vm9362_vm5, %v16112_v18, 0.0 }
 0x403   : > { %v20371_v38 = vrot.slane %v23431_v59, %v16609_v6  ;;  %v20377_v43 = vrot.slane %v23432_v48, %v16609_v6  ;;  %23433 = vst [vmem:[#allocation9_spill] sm:$0xff] %v20379_v61  ;;  %v20390_v32 = vpop.eup %16115  ;;  %16127 = vpow2.f32 %v9667_v53  ;;  %15516 = vmatprep.mubr.msk.f32.mxu0 %vm9362_vm5, %v20379_v61  ;;  %v23437_v59 = vld [vmem:[#allocation42_spill] sm:$0xff]  ;;  %9544 = vmax.xlane.f32.xlu1 %v9543_v56  ;;  %v9278_v45 = vmul.f32 0.35355338, %v23438_v12  ;;  %v23442_v56 = vld [vmem:[#allocation20_spill] sm:$0xff] }
 0x404   : > { %v9570_v48 = vsub.f32 %v23437_v59, %v9410_v36  ;;  %v7434_v22 = vcombine.low %v20343_v7, %v20354_v57  ;;  %v20400_v6 = vadd.f32 %v19326_v41, %v9277_v50  ;;  %16129 = vpow2.f32 %v9669_v17  ;;  %15517 = vmatmul.mubr.msk.f32.vlgmr.msra.gmra.mrb[44].mxu0 %vm9362_vm5, %v20390_v32  ;;  %9769 = vadd.xlane.f32.xlu0 %v9768_v33  ;;  %v9407_v33 = vpop.xlane.xlu0 %9406 }
 0x405   : > { %v9581_v53 = vsub.f32 %v23439_v62, %v9443_v30  ;;  %v20405_v61 = vpop.eup %16117  ;;  %v9673_v36 = vmul.f32 1.442695, %v9582_v15  ;;  %15943 = vmatpush3.bf16.msra.mxu1 %v23434_v26  ;;  %15963 = vmatpush3.bf16.msra.mxu0 %v20139_v0  ;;  %v7266_v12 = vcombine.low %v20334_v47, %v20363_v46  ;;  %v7298_v41 = vcombine.low %v20371_v38, %v20377_v43 }
 0x406   : > { %23440 = vst [vmem:[#allocation16_spill] sm:$0xff] %v20405_v61  ;;  %v9649_v59 = vmul.f32 1.442695, %v9570_v48  ;;  %v16120_v50 = vpop.eup %16119  ;;  %15519 = vmatprep.mubr.msk.f32.mxu0 %vm9362_vm5, %v20405_v61  ;;  %15953 = vmatprep.subr.bf16.mxu1 %v20310_v40  ;;  %v23441_v17 = vcombine.low %v20290_v19, %v20293_v3  ;;  %v20420_v0 = vrot.slane %v7402_v34, %v16617_v13 }
 0x407   : > { %v9671_v62 = vmul.f32 1.442695, %v9581_v53  ;;  %v7131_v26 = vcombine.high %v20266_v21, %v20272_v35  ;;  %15965 = vmatprep.subr.bf16.mxu0 %v20312_v28  ;;  %15477 = vmatprep.mubr.msk.f32.mxu1 %vm9362_vm5, %v16120_v50  ;;  %v9569_v30 = vsub.f32 %v23442_v56, %v9407_v33  ;;  %v9765_v48 = vsel %vm9362_vm5, %v16120_v50, 0.0  ;;  %v16122_v61 = vpop.eup %16121 }
 0x408   : > { %v15976_v15 = vpack.c.bf16 %v7194_v63, %v23441_v17  ;;  %16131 = vpow2.f32 %v9649_v59  ;;  %v20429_v53 = vrot.slane %v7434_v22, %v16617_v13  ;;  %v20432_v63 = vadd.f32 %v19317_v27, %v9278_v45  ;;  %15478 = vmatmul.mubr.msk.f32.gmra.mrb[46].mxu1 %vm9362_vm5, %v16112_v18  ;;  %9766 = vadd.xlane.f32.xlu0 %v9765_v48  ;;  %v20439_v34 = vpop.eup %16123  ;;  %v9428_v45 = vpop.xlane.xlu0 %9427  ;;  %v23447_v48 = vld [vmem:[#allocation58_spill] sm:$0xff] }
 0x409   : > { %16133 = vpow2.f32 %v9671_v62  ;;  %v9537_v21 = vsel %vm9362_vm5, %v20400_v6, -inf  ;;  %v7163_v35 = vcombine.high %v20279_v29, %v20285_v37  ;;  %v9647_v59 = vmul.f32 1.442695, %v9569_v30  ;;  %15967 = vmatpush3.bf16.msra.mxu0 %v20312_v28 }
 0x40a   : > { %16135 = vpow2.f32 %v9673_v36  ;;  %9538 = vmax.xlane.f32.xlu1 %v9537_v21  ;;  %v20443_v27 = vrot.slane %v7266_v12, %v16617_v13  ;;  %v20446_v22 = vrot.slane %v7298_v41, %v16617_v13  ;;  %v16126_v18 = vpop.eup %16125  ;;  %15520 = vmatmul.mubr.msk.f32.gmra.mrb[46].mxu0 %vm9362_vm5, %v20439_v34  ;;  %v6657_v29 = vcombine.high %v19984_v14, %v20001_v44  ;;  %v23443_v12 = vld [vmem:[#allocation21_spill] sm:$0xff] }
 0x40b   : > { %15977 = vmatprep.subr.bf16.mxu0 %v15976_v15  ;;  %v6995_v37 = vcombine.high %v20198_v60, %v20204_v51  ;;  %v7027_v28 = vcombine.high %v20210_v5, %v20216_v23  ;;  %16137 = vpow2.f32 %v9647_v59  ;;  %v9464_v36 = vpop.xlane.xlu1 %9463  ;;  %15502 = vmatprep.mubr.msk.f32.mxu1 %vm9362_vm5, %v16126_v18  ;;  %v9576_v41 = vsub.f32 %v23443_v12, %v9428_v45  ;;  %v23448_v45 = vld [vmem:[#allocation29_spill] sm:$0xff] }
 0x40c   : > { %v9786_v50 = vsel %vm9362_vm5, %v16122_v61, 0.0  ;;  %v7466_v62 = vcombine.low %v20420_v0, %v20429_v53  ;;  %15503 = vmatmul.mubr.msk.f32.vlgmr.msra.gmra.mrb[48].mxu1 %vm9362_vm5, %v16122_v61  ;;  %v23444_v14 = vcombine.high %v23421_v24, %v23420_v52  ;;  %v23445_v44 = vcombine.high %v23436_v49, %v23435_v9  ;;  %v23446_v61 = vld [vmem:[#allocation57_spill] sm:$0xff]  ;;  %v9425_v9 = vpop.xlane.xlu0 %9424 }
 0x40d   : > { %9787 = vadd.xlane.f32.xlu0 %v9786_v50  ;;  %v9540_v51 = vsel %vm9362_vm5, %v20432_v63, -inf  ;;  %v20471_v5 = vrot.slane %v7131_v26, %v16617_v13  ;;  %v20474_v23 = vrot.slane %v7163_v35, %v16617_v13  ;;  %v20476_v33 = vpop.eup %16127  ;;  %v9588_v17 = vsub.f32 %v23446_v61, %v9464_v36  ;;  %15955 = vmatpush3.bf16.msra.mxu1 %v20310_v40  ;;  %v23450_v61 = vld [vmem:[#allocation31_spill] sm:$0xff] }
 0x40e   : > { %v15956_v60 = vpack.c.bf16 %v23445_v44, %v23444_v14  ;;  %v9661_v56 = vmul.f32 1.442695, %v9576_v41  ;;  %9541 = vmax.xlane.f32.xlu1 %v9540_v51  ;;  %v7330_v52 = vcombine.low %v20443_v27, %v20446_v22  ;;  %v20482_v24 = vpop.eup %16129  ;;  %15544 = vmatprep.mubr.msk.f32.mxu0 %vm9362_vm5, %v20476_v33  ;;  %v6521_v49 = vcombine.high %v19923_v31, %v19926_v2 }
 0x40f   : > { %v20489_v26 = vrot.slane %v6995_v37, %v16617_v13  ;;  %v20492_v30 = vrot.slane %v7027_v28, %v16617_v13  ;;  %v9461_v40 = vpop.xlane.xlu1 %9460  ;;  %v9575_v21 = vsub.f32 %v23447_v48, %v9425_v9  ;;  %v9783_v35 = vsel %vm9362_vm5, %v16126_v18, 0.0  ;;  %15545 = vmatmul.mubr.msk.f32.vlgmr.msra.gmra.mrb[48].mxu0 %vm9362_vm5, %v20482_v24 }
 0x410   : > { %15957 = vmatprep.subr.bf16.mxu1 %v15956_v60  ;;  %16139 = vpow2.f32 %v9661_v56  ;;  %v15980_v59 = vpack.c.bf16 %v7466_v62, %v7330_v52  ;;  %v9587_v36 = vsub.f32 %v23448_v45, %v9461_v40  ;;  %15979 = vmatpush3.bf16.msra.mxu0 %v15976_v15  ;;  %v20499_v31 = vpack.c.bf16 %v6657_v29, %v6521_v49  ;;  %v9434_v15 = vpop.xlane.xlu0 %9433  ;;  %v23452_v45 = vld [vmem:[#allocation46_spill] sm:$0xff] }
 0x411   : > { %9784 = vadd.xlane.f32.xlu0 %v9783_v35  ;;  %v7196_v2 = vcombine.low %v20471_v5, %v20474_v23  ;;  %v9685_v28 = vmul.f32 1.442695, %v9588_v17  ;;  %v9659_v12 = vmul.f32 1.442695, %v9575_v21  ;;  %15959 = vmatpush3.bf16.msra.mxu1 %v15956_v60  ;;  %v9750_v18 = vsel %vm9362_vm5, %v20029_v1, 0.0  ;;  %v23449_v1 = vld [vmem:[#allocation30_spill] sm:$0xff] }
 0x412   : > { %v16132_v37 = vpop.eup %16131  ;;  %15981 = vmatprep.subr.bf16.mxu0 %v15980_v59  ;;  %v9683_v50 = vmul.f32 1.442695, %v9587_v36  ;;  %15969 = vmatprep.subr.bf16.mxu1 %v20499_v31  ;;  %v7060_v62 = vcombine.low %v20489_v26, %v20492_v30  ;;  %v9578_v60 = vsub.f32 %v23449_v1, %v9434_v15  ;;  %v7403_v51 = vcombine.high %v20337_v20, %v20340_v11  ;;  %v23457_v1 = vld [vmem:[#allocation45_spill] sm:$0xff] }
 0x413   : > { %v20505_v41 = vpop.eup %16133  ;;  %9751 = vadd.xlane.f32.xlu1 %v9750_v18  ;;  %v9792_v29 = vsel %vm9362_vm5, %v16132_v37, 0.0  ;;  %16141 = vpow2.f32 %v9659_v12  ;;  %v9431_v44 = vpop.xlane.xlu1 %9430  ;;  %v7435_v52 = vcombine.high %v20343_v7, %v20354_v57  ;;  %v9747_v40 = vsel %vm9362_vm5, %v20024_v8, 0.0  ;;  %v23451_v8 = vld [vmem:[#allocation44_spill] sm:$0xff]  ;;  %v23456_v18 = vld [vmem:[#allocation47_spill] sm:$0xff] }
 0x414   : > { %v20511_v14 = vpop.eup %16135  ;;  %15547 = vmatprep.mubr.msk.f32.mxu0 %vm9362_vm5, %v20505_v41  ;;  %16143 = vpow2.f32 %v9683_v50  ;;  %v9577_v17 = vsub.f32 %v23450_v61, %v9431_v44  ;;  %v20521_v56 = vpack.c.bf16 %v7196_v2, %v7060_v62  ;;  %v9665_v49 = vmul.f32 1.442695, %v9578_v60  ;;  %15983 = vmatpush3.bf16.msra.mxu0 %v15980_v59  ;;  %v9470_v11 = vpop.xlane.xlu0 %9469  ;;  %v23454_v2 = vld [vmem:[#allocation23_spill] sm:$0xff]  ;;  %v23455_v12 = vld [vmem:[#allocation48_spill] sm:$0xff] }
 0x415   : > { %15548 = vmatmul.mubr.msk.f32.gmra.mrb[50].mxu0 %vm9362_vm5, %v20511_v14  ;;  %9793 = vadd.xlane.f32.xlu0 %v9792_v29  ;;  %v16138_v9 = vpop.eup %16137  ;;  %16145 = vpow2.f32 %v9685_v28  ;;  %v7267_v21 = vcombine.high %v20334_v47, %v20363_v46  ;;  %v7299_v7 = vcombine.high %v20371_v38, %v20377_v43  ;;  %v20535_v35 = vrot.slane %v7403_v51, %v16617_v13  ;;  %v23453_v43 = vld [vmem:[#allocation26_spill] sm:$0xff]  ;;  %v23459_v51 = vld [vmem:[#allocation24_spill] sm:$0xff] }
 0x416   : > { %v9663_v20 = vmul.f32 1.442695, %v9577_v17  ;;  %15993 = vmatprep.subr.bf16.mxu0 %v20521_v56  ;;  %v9789_v48 = vsel %vm9362_vm5, %v16138_v9, 0.0  ;;  %16147 = vpow2.f32 %v9665_v49  ;;  %15505 = vmatprep.mubr.msk.f32.mxu1 %vm9362_vm5, %v16138_v9  ;;  %v9590_v36 = vsub.f32 %v23452_v45, %v9470_v11  ;;  %v23460_v17 = vld [vmem:[#allocation56_spill] sm:$0xff] }
 0x417   : > { %9748 = vadd.xlane.f32.xlu1 %v9747_v40  ;;  %v9449_v57 = vpop.xlane.xlu1 %9448  ;;  %15506 = vmatmul.mubr.msk.f32.gmra.mrb[50].mxu1 %vm9362_vm5, %v16132_v37  ;;  %v20541_v47 = vrot.slane %v7435_v52, %v16617_v13  ;;  %v9771_v38 = vsel %vm9362_vm5, %v20119_v42, 0.0  ;;  %v7146_v28 = vcombine.low %v23454_v2, %v23453_v43  ;;  %v7178_v50 = vcombine.low %v23456_v18, %v23455_v12  ;;  %v23458_v42 = vld [vmem:[#allocation25_spill] sm:$0xff]  ;;  %v23461_v52 = vld [vmem:[#allocation54_spill] sm:$0xff] }
 0x418   : > { %16149 = vpow2.f32 %v9663_v20  ;;  %v9583_v59 = vsub.f32 %v23451_v8, %v9449_v57  ;;  %v9467_v29 = vpop.xlane.xlu0 %9466  ;;  %v20551_v37 = vrot.slane %v7267_v21, %v16617_v13  ;;  %v20554_v44 = vrot.slane %v7299_v7, %v16617_v13 }
 0x419   : > { %9790 = vadd.xlane.f32.xlu0 %v9789_v48  ;;  %v9589_v60 = vsub.f32 %v23457_v1, %v9467_v29  ;;  %v7010_v61 = vcombine.low %v23459_v51, %v23458_v42  ;;  %v7042_v9 = vcombine.low %v23461_v52, %v23460_v17  ;;  %v9689_v49 = vmul.f32 1.442695, %v9590_v36  ;;  %v23462_v36 = vld [vmem:[#allocation28_spill] sm:$0xff] }
 0x41a   : > { %v16140_v46 = vpop.eup %16139  ;;  %v9675_v15 = vmul.f32 1.442695, %v9583_v59  ;;  %v6929_v40 = vcombine.high %v20243_v10, %v20247_v39  ;;  %v7468_v20 = vcombine.low %v20535_v35, %v20541_v47  ;;  %v9774_v21 = vsel %vm9362_vm5, %v20147_v54, 0.0 }
 0x41b   : > { %9772 = vadd.xlane.f32.xlu1 %v9771_v38  ;;  %v9810_v62 = vsel %vm9362_vm5, %v16140_v46, 0.0  ;;  %v9687_v48 = vmul.f32 1.442695, %v9589_v60  ;;  %v20568_v7 = vrot.slane %v7146_v28, %v16617_v13  ;;  %v20571_v57 = vrot.slane %v7178_v50, %v16617_v13 }
 0x41c   : > { %16151 = vpow2.f32 %v9675_v15  ;;  %v9452_v10 = vpop.xlane.xlu0 %9451  ;;  %v6793_v59 = vcombine.high %v20232_v55, %v20235_v4  ;;  %v7332_v54 = vcombine.low %v20551_v37, %v20554_v44  ;;  %v20588_v43 = vrot.slane %v7010_v61, %v16617_v13  ;;  %v23465_v61 = vld [vmem:[#allocation14_spill] sm:$0xff] }
 0x41d   : > { %9811 = vadd.xlane.f32.xlu0 %v9810_v62  ;;  %v16142_v11 = vpop.eup %16141  ;;  %16153 = vpow2.f32 %v9687_v48  ;;  %v9584_v38 = vsub.f32 %v23462_v36, %v9452_v10  ;;  %v20591_v2 = vrot.slane %v7042_v9, %v16617_v13  ;;  %v7195_v28 = vcombine.high %v20321_v58, %v20328_v25  ;;  %v23466_v9 = vld [vmem:[#allocation61_spill] sm:$0xff] }
 0x41e   : > { %v20573_v8 = vpop.eup %16143  ;;  %15530 = vmatprep.mubr.msk.f32.mxu1 %vm9362_vm5, %v16142_v11  ;;  %v9807_v39 = vsel %vm9362_vm5, %v16142_v11, 0.0  ;;  %16155 = vpow2.f32 %v9689_v49  ;;  %v15972_v55 = vpack.c.bf16 %v6929_v40, %v6793_v59  ;;  %v15996_v4 = vpack.c.bf16 %v7468_v20, %v7332_v54  ;;  %v23467_v40 = vld [vmem:[#allocation2_spill] sm:$0xff]  ;;  %v23468_v54 = vld [vmem:[#allocation9_spill] sm:$0xff] }
 0x41f   : > { %9775 = vadd.xlane.f32.xlu1 %v9774_v21  ;;  %v20581_v45 = vpop.eup %16145  ;;  %15572 = vmatprep.mubr.msk.f32.mxu0 %vm9362_vm5, %v20573_v8  ;;  %v7198_v50 = vcombine.low %v20568_v7, %v20571_v57  ;;  %v7059_v62 = vcombine.high %v20290_v19, %v20293_v3  ;;  %v7062_v58 = vcombine.low %v20588_v43, %v20591_v2  ;;  %v23464_v3 = vld [vmem:[#allocation60_spill] sm:$0xff]  ;;  %v9777_v17 = vsel %vm9362_vm5, %v23465_v61, 0.0 }
 0x420   : > { %15531 = vmatmul.mubr.msk.f32.vlgmr.msra.gmra.mrb[52].mxu1 %vm9362_vm5, %v16140_v46  ;;  %15573 = vmatmul.mubr.msk.f32.vlgmr.msra.gmra.mrb[52].mxu0 %vm9362_vm5, %v20581_v45  ;;  %v16148_v12 = vpop.eup %16147  ;;  %v9677_v46 = vmul.f32 1.442695, %v9584_v38  ;;  %v9488_v29 = vpop.xlane.xlu0 %9487  ;;  %v9795_v36 = vsel %vm9362_vm5, %v23468_v54, 0.0 }
 0x421   : > { %15971 = vmatpush3.bf16.msra.mxu1 %v20499_v31  ;;  %15995 = vmatpush3.bf16.msra.mxu0 %v20521_v56  ;;  %v9753_v31 = vsel %vm9362_vm5, %v20093_v16, 0.0  ;;  %v9816_v25 = vsel %vm9362_vm5, %v16148_v12, 0.0  ;;  %v23463_v56 = vld [vmem:[#allocation50_spill] sm:$0xff]  ;;  %v15984_v60 = vpack.c.bf16 %v7195_v28, %v7059_v62  ;;  %v20611_v16 = vpack.c.bf16 %v7198_v50, %v7062_v58  ;;  %v23470_v62 = vld [vmem:[#allocation63_spill] sm:$0xff] }
 0x422   : > { %v9494_v18 = vpop.xlane.xlu1 %9493  ;;  %9808 = vadd.xlane.f32.xlu0 %v9807_v39  ;;  %v16150_v15 = vpop.eup %16149  ;;  %15973 = vmatprep.subr.bf16.mxu1 %v15972_v55  ;;  %16157 = vpow2.f32 %v9677_v46  ;;  %v9596_v1 = vsub.f32 %v23463_v56, %v9488_v29  ;;  %v7197_v29 = vcombine.high %v20471_v5, %v20474_v23  ;;  %v23472_v5 = vld [vmem:[#allocation64_spill] sm:$0xff] }
 0x423   : > { %15997 = vmatprep.subr.bf16.mxu0 %v15996_v4  ;;  %9754 = vadd.xlane.f32.xlu1 %v9753_v31  ;;  %v9598_v20 = vsub.f32 %v23467_v40, %v9494_v18  ;;  %v9813_v39 = vsel %vm9362_vm5, %v16150_v15, 0.0  ;;  %v7331_v18 = vcombine.high %v20443_v27, %v20446_v22 }
 0x424   : > { %15533 = vmatprep.mubr.msk.f32.mxu1 %vm9362_vm5, %v16150_v15  ;;  %v9485_v52 = vpop.xlane.xlu0 %9484  ;;  %v9701_v11 = vmul.f32 1.442695, %v9596_v1  ;;  %v9798_v15 = vsel %vm9362_vm5, %v20390_v32, 0.0  ;;  %v7061_v32 = vcombine.high %v20489_v26, %v20492_v30 }
 0x425   : > { %15534 = vmatmul.mubr.msk.f32.gmra.mrb[54].mxu1 %vm9362_vm5, %v16148_v12  ;;  %15999 = vmatpush3.bf16.msra.mxu0 %v15996_v4  ;;  %v9595_v49 = vsub.f32 %v23466_v9, %v9485_v52  ;;  %v23469_v4 = vld [vmem:[#allocation62_spill] sm:$0xff]  ;;  %v9705_v12 = vmul.f32 1.442695, %v9598_v20 }
 0x426   : > { %v9491_v42 = vpop.xlane.xlu1 %9490  ;;  %15975 = vmatpush3.bf16.msra.mxu1 %v15972_v55  ;;  %v16152_v19 = vpop.eup %16151  ;;  %9817 = vadd.xlane.f32.xlu0 %v9816_v25  ;;  %v7467_v55 = vcombine.high %v20420_v0, %v20429_v53  ;;  %v23471_v25 = vld [vmem:[#allocation33_spill] sm:$0xff]  ;;  %v20647_v1 = vpack.c.bf16 %v7197_v29, %v7061_v32 }
 0x427   : > { %v9597_v51 = vsub.f32 %v23464_v3, %v9491_v42  ;;  %15985 = vmatprep.subr.bf16.mxu1 %v15984_v60  ;;  %16009 = vmatprep.subr.bf16.mxu0 %v20611_v16  ;;  %v20620_v48 = vpop.eup %16153  ;;  %v9699_v10 = vmul.f32 1.442695, %v9595_v49  ;;  %v9756_v58 = vsel %vm9362_vm5, %v23471_v25, 0.0  ;;  %v9822_v3 = vsel %vm9362_vm5, %v20482_v24, 0.0 }
 0x428   : > { %9778 = vadd.xlane.f32.xlu1 %v9777_v17  ;;  %15558 = vmatprep.mubr.msk.f32.mxu1 %vm9362_vm5, %v16152_v19  ;;  %v20623_v59 = vpop.eup %16155  ;;  %v9458_v38 = vpop.xlane.xlu0 %9457  ;;  %v15988_v53 = vpack.c.bf16 %v7467_v55, %v7331_v18  ;;  %v9819_v49 = vsel %vm9362_vm5, %v20476_v33, 0.0  ;;  %v23477_v55 = vld [vmem:[#allocation72_spill] sm:$0xff]  ;;  %v7199_v25 = vcombine.high %v20568_v7, %v20571_v57  ;;  %v9804_v7 = vsel %vm9362_vm5, %v20439_v34, 0.0 }
 0x429   : > { %v9703_v21 = vmul.f32 1.442695, %v9597_v51  ;;  %15575 = vmatprep.mubr.msk.f32.mxu0 %vm9362_vm5, %v20620_v48  ;;  %16159 = vpow2.f32 %v9699_v10  ;;  %v9586_v28 = vsub.f32 %v23469_v4, %v9458_v38  ;;  %v23476_v38 = vld [vmem:[#allocation70_spill] sm:$0xff]  ;;  %v9828_v34 = vsel %vm9362_vm5, %v20511_v14, 0.0  ;;  %v23483_v14 = vld [vmem:[#allocation75_spill] sm:$0xff] }
 0x42a   : > { %9814 = vadd.xlane.f32.xlu0 %v9813_v39  ;;  %15576 = vmatmul.mubr.msk.f32.gmra.mrb[54].mxu0 %vm9362_vm5, %v20623_v59  ;;  %16161 = vpow2.f32 %v9701_v11  ;;  %v23474_v11 = vld [vmem:[#allocation66_spill] sm:$0xff]  ;;  %v23475_v39 = vld [vmem:[#allocation37_spill] sm:$0xff]  ;;  %v6162_v4 = vcombine.low %v23477_v55, %v23476_v38 }
 0x42b   : > { %16163 = vpow2.f32 %v9703_v21  ;;  %v9681_v50 = vmul.f32 1.442695, %v9586_v28  ;;  %v9780_v54 = vsel %vm9362_vm5, %v23475_v39, 0.0  ;;  %v23478_v28 = vld [vmem:[#allocation16_spill] sm:$0xff] }
 0x42c   : > { %9796 = vadd.xlane.f32.xlu1 %v9795_v36  ;;  %v16158_v46 = vpop.eup %16157  ;;  %v9455_v0 = vpop.xlane.xlu0 %9454 }
 0x42d   : > { %15559 = vmatmul.mubr.msk.f32.vlgmr.msra.gmra.mrb[56].mxu1 %vm9362_vm5, %v16158_v46  ;;  %v9834_v31 = vsel %vm9362_vm5, %v16158_v46, 0.0  ;;  %16165 = vpow2.f32 %v9681_v50  ;;  %v9585_v27 = vsub.f32 %v23470_v62, %v9455_v0  ;;  %v7469_v46 = vcombine.high %v20535_v35, %v20541_v47  ;;  %v23479_v50 = vld [vmem:[#allocation68_spill] sm:$0xff] }
 0x42e   : > { %15987 = vmatpush3.bf16.msra.mxu1 %v15984_v60  ;;  %16167 = vpow2.f32 %v9705_v12  ;;  %9835 = vadd.xlane.f32.xlu0 %v9834_v31  ;;  %v9831_v60 = vsel %vm9362_vm5, %v16152_v19, 0.0  ;;  %v23473_v19 = vld [vmem:[#allocation65_spill] sm:$0xff]  ;;  %v9801_v12 = vsel %vm9362_vm5, %v23478_v28, 0.0  ;;  %v7333_v62 = vcombine.high %v20551_v37, %v20554_v44 }
 0x42f   : > { %15989 = vmatprep.subr.bf16.mxu1 %v15988_v53  ;;  %v9679_v22 = vmul.f32 1.442695, %v9585_v27  ;;  %v23481_v27 = vld [vmem:[#allocation3_spill] sm:$0xff] }
 0x430   : > { %9799 = vadd.xlane.f32.xlu1 %v9798_v15  ;;  %v9476_v56 = vpop.xlane.xlu0 %9475  ;;  %v23480_v15 = vld [vmem:[#allocation69_spill] sm:$0xff]  ;;  %v6170_v32 = vrot.slane %v6162_v4, %v23481_v27  ;;  %v16004_v47 = vpack.c.bf16 %v7469_v46, %v7333_v62  ;;  %v23485_v46 = vld [vmem:[#allocation71_spill] sm:$0xff] }
 0x431   : > { %16169 = vpow2.f32 %v9679_v22  ;;  %v9592_v23 = vsub.f32 %v23472_v5, %v9476_v56  ;;  %v6146_v0 = vcombine.low %v23480_v15, %v23479_v50  ;;  %v6147_v29 = vcombine.high %v23480_v15, %v23479_v50  ;;  %v23486_v15 = vld [vmem:[#allocation79_spill] sm:$0xff] }
 0x432   : > { %15991 = vmatpush3.bf16.msra.mxu1 %v15988_v53  ;;  %9832 = vadd.xlane.f32.xlu0 %v9831_v60  ;;  %v6163_v53 = vcombine.high %v23477_v55, %v23476_v38  ;;  %v9825_v22 = vsel %vm9362_vm5, %v20505_v41, 0.0  ;;  %v7063_v56 = vcombine.high %v20588_v43, %v20591_v2  ;;  %v9846_v38 = vsel %vm9362_vm5, %v20581_v45, 0.0 }
 0x433   : > { %16001 = vmatprep.subr.bf16.mxu1 %v20647_v1  ;;  %v20652_v42 = vpop.eup %16159  ;;  %v9693_v26 = vmul.f32 1.442695, %v9592_v23  ;;  %v6161_v41 = vrot.slane %v6147_v29, %v23481_v27  ;;  %v23488_v29 = vld [vmem:[#allocation67_spill] sm:$0xff] }
 0x434   : > { %9757 = vadd.xlane.f32.xlu1 %v9756_v58  ;;  %v20654_v30 = vpop.eup %16161  ;;  %15600 = vmatprep.mubr.msk.f32.mxu0 %vm9362_vm5, %v20652_v42  ;;  %v9473_v51 = vpop.xlane.xlu0 %9472  ;;  %v6154_v58 = vrot.slane %v6146_v0, %v23481_v27  ;;  %v6177_v37 = vrot.slane %v6163_v53, %v23481_v27 }
 0x435   : > { %v20660_v61 = vpop.eup %16163  ;;  %16171 = vpow2.f32 %v9693_v26  ;;  %v9591_v17 = vsub.f32 %v23473_v19, %v9473_v51  ;;  %15601 = vmatmul.mubr.msk.f32.vlgmr.msra.gmra.mrb[56].mxu0 %vm9362_vm5, %v20654_v30  ;;  %v23482_v19 = vld [vmem:[#allocation73_spill] sm:$0xff] }
 0x436   : > { %16011 = vmatpush3.bf16.msra.mxu0 %v20611_v16  ;;  %15603 = vmatprep.mubr.msk.f32.mxu0 %vm9362_vm5, %v20660_v61  ;;  %v6210_v5 = vcombine.low %v6154_v58, %v6170_v32  ;;  %v6211_v23 = vcombine.high %v6154_v58, %v6170_v32  ;;  %v6226_v26 = vcombine.low %v6161_v41, %v6177_v37 }
 0x437   : > { %v16166_v52 = vpop.eup %16165  ;;  %v9691_v24 = vmul.f32 1.442695, %v9591_v17 }
 0x438   : > { %9823 = vadd.xlane.f32.xlu1 %v9822_v3  ;;  %v20668_v9 = vpop.eup %16167  ;;  %v9482_v40 = vpop.xlane.xlu0 %9481  ;;  %v9840_v20 = vsel %vm9362_vm5, %v16166_v52, 0.0  ;;  %v6227_v3 = vcombine.high %v6161_v41, %v6177_v37  ;;  %v6218_v43 = vrot.slane %v6210_v5, %v16617_v13  ;;  %v6225_v2 = vrot.slane %v6211_v23, %v16617_v13  ;;  %v23489_v37 = vld [vmem:[#allocation77_spill] sm:$0xff] }
 0x439   : > { %16173 = vpow2.f32 %v9691_v24  ;;  %v9594_v21 = vsub.f32 %v23474_v11, %v9482_v40  ;;  %15604 = vmatmul.mubr.msk.f32.gmra.mrb[58].mxu0 %vm9362_vm5, %v20668_v9  ;;  %9841 = vadd.xlane.f32.xlu0 %v9840_v20  ;;  %v6234_v24 = vrot.slane %v6226_v26, %v16617_v13 }
 0x43a   : > { %v14674_v20 = vcombine.low %v6218_v43, %v6225_v2  ;;  %v14676_v11 = vcombine.high %v6218_v43, %v6225_v2 }
 0x43b   : > { %v16170_v16 = vpop.eup %16169  ;;  %v9697_v10 = vmul.f32 1.442695, %v9594_v21  ;;  %v9843_v21 = vsel %vm9362_vm5, %v20573_v8, 0.0  ;;  %v23484_v8 = vld [vmem:[#allocation78_spill] sm:$0xff] }
 0x43c   : > { %9820 = vadd.xlane.f32.xlu1 %v9819_v49  ;;  %15561 = vmatprep.mubr.msk.f32.mxu1 %vm9362_vm5, %v16170_v16  ;;  %v9837_v33 = vsel %vm9362_vm5, %v16170_v16, 0.0  ;;  %v6241_v49 = vrot.slane %v6227_v3, %v16617_v13  ;;  %v20736_v4 = vrot.slane %v14674_v20, %v23481_v27  ;;  %v20739_v28 = vrot.slane %v14676_v11, %v23481_v27 }
 0x43d   : > { %16175 = vpow2.f32 %v9697_v10  ;;  %15562 = vmatmul.mubr.msk.f32.gmra.mrb[58].mxu1 %vm9362_vm5, %v16166_v52  ;;  %9838 = vadd.xlane.f32.xlu0 %v9837_v33  ;;  %v9849_v11 = vsel %vm9362_vm5, %v20620_v48, 0.0 }
 0x43e   : > { %v14680_v33 = vcombine.high %v6234_v24, %v6241_v49  ;;  %v7282_v58 = vcombine.low %v20736_v4, %v20739_v28 }
 0x43f   : > { %v16172_v36 = vpop.eup %16171 }
 0x440   : > { %9781 = vadd.xlane.f32.xlu1 %v9780_v54  ;;  %v9858_v18 = vsel %vm9362_vm5, %v16172_v36, 0.0  ;;  %v14678_v54 = vcombine.low %v6234_v24, %v6241_v49  ;;  %v20748_v45 = vrot.slane %v14680_v33, %v23481_v27 }
 0x441   : > { %9859 = vadd.xlane.f32.xlu0 %v9858_v18 }
 0x442   : > { %v20745_v53 = vrot.slane %v14678_v54, %v23481_v27 }
 0x443   : > { %v16174_v31 = vpop.eup %16173 }
 0x444   : > { %9802 = vadd.xlane.f32.xlu1 %v9801_v12  ;;  %15586 = vmatprep.mubr.msk.f32.mxu1 %vm9362_vm5, %v16174_v31  ;;  %v9855_v35 = vsel %vm9362_vm5, %v16174_v31, 0.0  ;;  %v23487_v31 = vld [vmem:[#allocation82_spill] sm:$0xff] }
 0x445   : > { %15587 = vmatmul.mubr.msk.f32.vlgmr.msra.gmra.mrb[60].mxu1 %vm9362_vm5, %v16172_v36  ;;  %9856 = vadd.xlane.f32.xlu0 %v9855_v35  ;;  %v6282_v62 = vcombine.low %v23488_v29, %v23487_v31  ;;  %v6283_v32 = vcombine.high %v23488_v29, %v23487_v31  ;;  %v9867_v35 = vsel %vm9362_vm5, %v20652_v42, 0.0 }
 0x446   : > { %16003 = vmatpush3.bf16.msra.mxu1 %v20647_v1  ;;  %v20716_v1 = vpack.c.bf16 %v7199_v25, %v7063_v56 }
 0x447   : > { %v20707_v44 = vpop.eup %16175  ;;  %16005 = vmatprep.subr.bf16.mxu1 %v16004_v47  ;;  %v6290_v26 = vrot.slane %v6282_v62, %v23481_v27  ;;  %v6297_v3 = vrot.slane %v6283_v32, %v23481_v27 }
 0x448   : > { %9826 = vadd.xlane.f32.xlu1 %v9825_v22  ;;  %v9864_v57 = vsel %vm9362_vm5, %v20707_v44, 0.0 }
 0x449   : > { %9865 = vadd.xlane.f32.xlu0 %v9864_v57 }
 0x44a   : > { %v9512_v60 = vpop.xlane.xlu1 %9511  ;;  %16007 = vmatpush3.bf16.msra.mxu1 %v16004_v47 }
 0x44b   : > { %16017 = vmatprep.subr.bf16.mxu1 %v20716_v1  ;;  %v9604_v50 = vsub.f32 %v23485_v46, %v9512_v60  ;;  %v7314_v60 = vcombine.low %v20745_v53, %v20748_v45 }
 0x44c   : > { %9805 = vadd.xlane.f32.xlu1 %v9804_v7  ;;  %v23490_v7 = vld [vmem:[#allocation81_spill] sm:$0xff] }
 0x44d   : > { %v9717_v23 = vmul.f32 1.442695, %v9604_v50 }
 0x44e   : > { %v9509_v51 = vpop.xlane.xlu1 %9508 }
 0x44f   : > { %v9603_v17 = vsub.f32 %v23482_v19, %v9509_v51  ;;  %v20774_v19 = vrot.slane %v7282_v58, %v16617_v13 }
 0x450   : > { %9829 = vadd.xlane.f32.xlu1 %v9828_v34  ;;  %v9870_v34 = vsel %vm9362_vm5, %v20654_v30, 0.0  ;;  %v20780_v30 = vrot.slane %v7314_v60, %v16617_v13  ;;  %v23495_v60 = vld [vmem:[#allocation51_spill] sm:$0xff] }
 0x451   : > { %v9715_v40 = vmul.f32 1.442695, %v9603_v17 }
 0x452   : > { %v20724_v52 = vpop.xlane.xlu0 %9517  ;;  %v9479_v16 = vpop.xlane.xlu1 %9478 }
 0x453   : > { %16177 = vpow2.f32 %v9715_v40  ;;  %v9593_v10 = vsub.f32 %v23483_v14, %v9479_v16 }
 0x454   : > { %9844 = vadd.xlane.f32.xlu1 %v9843_v21  ;;  %v23491_v21 = vld [vmem:[#allocation84_spill] sm:$0xff] }
 0x455   : > { %v9695_v36 = vmul.f32 1.442695, %v9593_v10 }
 0x456   : > { %v20731_v39 = vpop.xlane.xlu0 %9514  ;;  %v9497_v55 = vpop.xlane.xlu1 %9496 }
 0x457   : > { %16179 = vpow2.f32 %v9695_v36  ;;  %v9599_v12 = vsub.f32 %v23484_v8, %v9497_v55 }
 0x458   : > { %9847 = vadd.xlane.f32.xlu1 %v9846_v38  ;;  %v23492_v38 = vld [vmem:[#allocation76_spill] sm:$0xff] }
 0x459   : > { %v9707_v22 = vmul.f32 1.442695, %v9599_v12  ;;  %v9605_v55 = vsub.f32 %v23492_v38, %v20731_v39  ;;  %v7334_v39 = vcombine.low %v20774_v19, %v20780_v30 }
 0x45a   : > { %v9500_v18 = vpop.xlane.xlu0 %9499  ;;  %v5289_v25 = vpop.permute.xlu1 %5288 }
 0x45b   : > { %v9600_v0 = vsub.f32 %v23486_v15, %v9500_v18  ;;  %16181 = vpow2.f32 %v9707_v22  ;;  %v6298_v41 = vcombine.low %v23489_v37, %v5289_v25  ;;  %v6299_v56 = vcombine.high %v23489_v37, %v5289_v25  ;;  %v23494_v25 = vld [vmem:[#allocation74_spill] sm:$0xff] }
 0x45c   : > { %9868 = vadd.xlane.f32.xlu1 %v9867_v35  ;;  %v9606_v58 = vsub.f32 %v23494_v25, %v20724_v52  ;;  %v9719_v37 = vmul.f32 1.442695, %v9605_v55  ;;  %v7315_v52 = vcombine.high %v20745_v53, %v20748_v45 }
 0x45d   : > { %v9709_v47 = vmul.f32 1.442695, %v9600_v0  ;;  %v20763_v42 = vpop.eup %16177  ;;  %v6306_v43 = vrot.slane %v6298_v41, %v23481_v27  ;;  %v6313_v2 = vrot.slane %v6299_v56, %v23481_v27  ;;  %v23493_v0 = vld [vmem:[#allocation89_spill] sm:$0xff]  ;;  %v7335_v41 = vcombine.high %v20774_v19, %v20780_v30 }
 0x45e   : > { %v9506_v5 = vpop.xlane.xlu0 %9505  ;;  %15628 = vmatprep.mubr.msk.f32.mxu0 %vm9362_vm5, %v20763_v42  ;;  %v9721_v19 = vmul.f32 1.442695, %v9606_v58 }
 0x45f   : > { %16183 = vpow2.f32 %v9709_v47  ;;  %v9602_v57 = vsub.f32 %v23490_v7, %v9506_v5  ;;  %v6346_v17 = vcombine.low %v6290_v26, %v6306_v43  ;;  %v6347_v24 = vcombine.high %v6290_v26, %v6306_v43 }
 0x460   : > { %v6362_v49 = vcombine.low %v6297_v3, %v6313_v2  ;;  %v6363_v40 = vcombine.high %v6297_v3, %v6313_v2  ;;  %9871 = vadd.xlane.f32.xlu1 %v9870_v34  ;;  %16185 = vpow2.f32 %v9717_v23 }
 0x461   : > { %v9713_v51 = vmul.f32 1.442695, %v9602_v57  ;;  %v16180_v14 = vpop.eup %16179  ;;  %v6354_v10 = vrot.slane %v6346_v17, %v16617_v13  ;;  %v6361_v54 = vrot.slane %v6347_v24, %v16617_v13  ;;  %v9891_v17 = vsel %vm9362_vm5, %v20763_v42, 0.0 }
 0x462   : > { %v9503_v20 = vpop.xlane.xlu0 %9502  ;;  %v6370_v33 = vrot.slane %v6362_v49, %v16617_v13  ;;  %v6377_v36 = vrot.slane %v6363_v40, %v16617_v13  ;;  %15589 = vmatprep.mubr.msk.f32.mxu1 %vm9362_vm5, %v16180_v14  ;;  %v9861_v48 = vsel %vm9362_vm5, %v16180_v14, 0.0  ;;  %v23496_v49 = vld [vmem:[#allocation32_spill] sm:$0xff] }
 0x463   : > { %v9601_v16 = vsub.f32 %v23491_v21, %v9503_v20  ;;  %16187 = vpow2.f32 %v9713_v51  ;;  %v14682_v12 = vcombine.low %v6354_v10, %v6361_v54  ;;  %v14684_v18 = vcombine.high %v6354_v10, %v6361_v54  ;;  %15590 = vmatmul.mubr.msk.f32.gmra.mrb[62].mxu1 %vm9362_vm5, %v20707_v44  ;;  %9862 = vadd.xlane.f32.xlu0 %v9861_v48 }
 0x464   : > { %v14686_v46 = vcombine.low %v6370_v33, %v6377_v36  ;;  %v14688_v50 = vcombine.high %v6370_v33, %v6377_v36  ;;  %9850 = vadd.xlane.f32.xlu1 %v9849_v11  ;;  %v9873_v44 = vsel %vm9362_vm5, %v20660_v61, 0.0  ;;  %v7283_v61 = vcombine.high %v20736_v4, %v20739_v28  ;;  %v23497_v36 = vld [vmem:[#allocation6_spill] sm:$0xff] }
 0x465   : > { %v9711_v8 = vmul.f32 1.442695, %v9601_v16  ;;  %v16182_v29 = vpop.eup %16181  ;;  %v7353_v62 = vrot.slane %v14682_v12, %v23481_v27  ;;  %v7369_v32 = vrot.slane %v14684_v18, %v23481_v27  ;;  %v7329_v33 = vrot.slane %v7315_v52, %v16617_v13  ;;  %v23498_v18 = vld [vmem:[#allocation49_spill] sm:$0xff] }
 0x466   : > { %v9524_v15 = vpop.xlane.xlu0 %9523  ;;  %v7385_v22 = vrot.slane %v14686_v46, %v23481_v27  ;;  %v7401_v35 = vrot.slane %v14688_v50, %v23481_v27  ;;  %15614 = vmatprep.mubr.msk.f32.mxu1 %vm9362_vm5, %v16182_v29  ;;  %v9879_v28 = vsel %vm9362_vm5, %v16182_v29, 0.0  ;;  %v7297_v54 = vrot.slane %v7283_v61, %v16617_v13 }
 0x467   : > { %16189 = vpow2.f32 %v9711_v8  ;;  %v9608_v31 = vsub.f32 %v23493_v0, %v9524_v15  ;;  %v7418_v7 = vcombine.low %v7353_v62, %v7369_v32  ;;  %v7419_v2 = vcombine.high %v7353_v62, %v7369_v32  ;;  %v23499_v0 = vld [vmem:[#allocation8_spill] sm:$0xff] }
 0x468   : > { %9874 = vadd.xlane.f32.xlu1 %v9873_v44  ;;  %v7450_v57 = vcombine.low %v7385_v22, %v7401_v35  ;;  %v7451_v34 = vcombine.high %v7385_v22, %v7401_v35  ;;  %16191 = vpow2.f32 %v9719_v37  ;;  %v9852_v48 = vsel %vm9362_vm5, %v20623_v59, 0.0 }
 0x469   : > { %v16184_v47 = vpop.eup %16183  ;;  %v9725_v56 = vmul.f32 1.442695, %v9608_v31  ;;  %v7426_v3 = vrot.slane %v7418_v7, %v16617_v13  ;;  %v7433_v21 = vrot.slane %v7419_v2, %v16617_v13  ;;  %v7336_v50 = vcombine.low %v7297_v54, %v7329_v33  ;;  %v23500_v31 = vld [vmem:[#allocation7_spill] sm:$0xff] }
 0x46a   : > { %v9521_v5 = vpop.xlane.xlu0 %9520  ;;  %v9882_v23 = vsel %vm9362_vm5, %v16184_v47, 0.0  ;;  %15615 = vmatmul.mubr.msk.f32.vlgmr.msra.gmra.mrb[64].mxu1 %vm9362_vm5, %v16184_v47  ;;  %v7458_v43 = vrot.slane %v7450_v57, %v16617_v13  ;;  %v16186_v51 = vpop.eup %16185  ;;  %v7465_v16 = vrot.slane %v7451_v34, %v16617_v13  ;;  %v7337_v47 = vcombine.high %v7297_v54, %v7329_v33 }
 0x46b   : > { %v9607_v26 = vsub.f32 %v23495_v60, %v9521_v5  ;;  %9883 = vadd.xlane.f32.xlu0 %v9882_v23  ;;  %16019 = vmatpush3.bf16.msra.mxu1 %v20716_v1  ;;  %16193 = vpow2.f32 %v9725_v56  ;;  %v9894_v30 = vsel %vm9362_vm5, %v16186_v51, 0.0  ;;  %v9876_v2 = vsel %vm9362_vm5, %v20668_v9, 0.0  ;;  %v23505_v9 = vld [vmem:[#allocation13_spill] sm:$0xff] }
 0x46c   : > { %9892 = vadd.xlane.f32.xlu1 %v9891_v17  ;;  %v7470_v53 = vcombine.low %v7426_v3, %v7458_v43  ;;  %v7471_v1 = vcombine.high %v7426_v3, %v7458_v43  ;;  %v7472_v8 = vcombine.low %v7433_v21, %v7465_v16  ;;  %v7473_v32 = vcombine.high %v7433_v21, %v7465_v16  ;;  %v23501_v3 = vld [vmem:[#allocation27_spill] sm:$0xff] }
 0x46d   : > { %v9723_v24 = vmul.f32 1.442695, %v9607_v26  ;;  %v16188_v45 = vpop.eup %16187 }
 0x46e   : > { %v9530_v4 = vpop.xlane.xlu0 %9529  ;;  %v16012_v20 = vpack.c.bf16 %v7470_v53, %v7334_v39  ;;  %v16020_v11 = vpack.c.bf16 %v7471_v1, %v7335_v41  ;;  %v9888_v55 = vsel %vm9362_vm5, %v16188_v45, 0.0  ;;  %v16028_v59 = vpack.c.bf16 %v7472_v8, %v7336_v50 }
 0x46f   : > { %16195 = vpow2.f32 %v9723_v24  ;;  %v9610_v40 = vsub.f32 %v23496_v49, %v9530_v4  ;;  %9880 = vadd.xlane.f32.xlu0 %v9879_v28  ;;  %v16036_v44 = vpack.c.bf16 %v7473_v32, %v7337_v47  ;;  %v23503_v4 = vld [vmem:[#allocation18_spill] sm:$0xff] }
 0x470   : > { %16197 = vpow2.f32 %v9721_v19  ;;  %9895 = vadd.xlane.f32.xlu1 %v9894_v30  ;;  %16013 = vmatprep.subr.bf16.mxu0 %v16012_v20  ;;  %v23502_v19 = vld [vmem:[#allocation17_spill] sm:$0xff] }
 0x471   : > { %v16190_v42 = vpop.eup %16189  ;;  %v9729_v14 = vmul.f32 1.442695, %v9610_v40  ;;  %16021 = vmatprep.subr.bf16.mxu1 %v16020_v11  ;;  %16015 = vmatpush3.bf16.msra.mxu0 %v16012_v20  ;;  %v23504_v40 = vld [vmem:[#allocation4_spill] sm:$0xff] }
 0x472   : > { %15617 = vmatprep.mubr.msk.f32.mxu1 %vm9362_vm5, %v16190_v42  ;;  %v9533_v10 = vpop.xlane.xlu0 %9532  ;;  %16023 = vmatpush3.bf16.msra.mxu1 %v16020_v11  ;;  %v16192_v15 = vpop.eup %16191  ;;  %v9885_v29 = vsel %vm9362_vm5, %v16190_v42, 0.0 }
 0x473   : > { %v9611_v38 = vsub.f32 %v23497_v36, %v9533_v10  ;;  %9889 = vadd.xlane.f32.xlu0 %v9888_v55  ;;  %15618 = vmatmul.mubr.msk.f32.gmra.mrb[66].mxu1 %vm9362_vm5, %v16188_v45  ;;  %16199 = vpow2.f32 %v9729_v14  ;;  %v9897_v1 = vsel %vm9362_vm5, %v16192_v15, 0.0 }
 0x474   : > { %9853 = vadd.xlane.f32.xlu1 %v9852_v48  ;;  %16025 = vmatprep.subr.bf16.mxu0 %v23498_v18 }
 0x475   : > { %v9731_v12 = vmul.f32 1.442695, %v9611_v38  ;;  %16033 = vmatprep.subr.bf16.mxu1 %v23499_v0  ;;  %v16194_v62 = vpop.eup %16193  ;;  %15629 = vmatmul.mubr.msk.f32.vlgmr.msra.gmra.mrb[60].mxu0 %vm9362_vm5, %v16186_v51 }
 0x476   : > { %v9536_v46 = vpop.xlane.xlu0 %9535  ;;  %15631 = vmatprep.mubr.msk.f32.mxu0 %vm9362_vm5, %v16192_v15  ;;  %16027 = vmatpush3.bf16.msra.mxu0 %v23498_v18  ;;  %v9906_v37 = vsel %vm9362_vm5, %v16194_v62, 0.0 }
 0x477   : > { %16201 = vpow2.f32 %v9731_v12  ;;  %v9612_v39 = vsub.f32 %v23500_v31, %v9536_v46  ;;  %9886 = vadd.xlane.f32.xlu0 %v9885_v29  ;;  %16029 = vmatprep.subr.bf16.mxu0 %v16028_v59 }
 0x479   : > { %v16196_v22 = vpop.eup %16195  ;;  %v9733_v35 = vmul.f32 1.442695, %v9612_v39 }
 0x47a   : > { %15642 = vmatprep.mubr.msk.f32.mxu1 %vm9362_vm5, %v16196_v22  ;;  %v20839_v25 = vpop.eup %16197  ;;  %v9548_v58 = vpop.xlane.xlu0 %9547  ;;  %16031 = vmatpush3.bf16.msra.mxu0 %v16028_v59  ;;  %v9903_v41 = vsel %vm9362_vm5, %v16196_v22, 0.0 }
 0x47b   : > { %16203 = vpow2.f32 %v9733_v35  ;;  %15643 = vmatmul.mubr.msk.f32.vlgmr.msra.gmra.mrb[68].mxu1 %vm9362_vm5, %v16194_v62  ;;  %15632 = vmatmul.mubr.msk.f32.gmra.mrb[62].mxu0 %vm9362_vm5, %v20839_v25  ;;  %v9616_v43 = vsub.f32 %v23501_v3, %v9548_v58  ;;  %v9900_v58 = vsel %vm9362_vm5, %v20839_v25, 0.0 }
 0x47c   : > { %9907 = vadd.xlane.f32.xlu0 %v9906_v37  ;;  %16035 = vmatpush3.bf16.msra.mxu1 %v23499_v0 }
 0x47d   : > { %16037 = vmatprep.subr.bf16.mxu1 %v16036_v44  ;;  %v16200_v56 = vpop.eup %16199  ;;  %v9741_v24 = vmul.f32 1.442695, %v9616_v43 }
 0x47e   : > { %v9551_v5 = vpop.xlane.xlu0 %9550  ;;  %v9912_v7 = vsel %vm9362_vm5, %v16200_v56, 0.0 }
 0x47f   : > { %v9617_v28 = vsub.f32 %v23503_v4, %v9551_v5 }
 0x480   : > { %9904 = vadd.xlane.f32.xlu0 %v9903_v41  ;;  %16039 = vmatpush3.bf16.msra.mxu1 %v16036_v44 }
 0x481   : > { %v16202_v23 = vpop.eup %16201  ;;  %v9743_v21 = vmul.f32 1.442695, %v9617_v28 }
 0x482   : > { %15656 = vmatprep.mubr.msk.f32.mxu0 %vm9362_vm5, %v16202_v23  ;;  %v9554_v60 = vpop.xlane.xlu0 %9553  ;;  %v9915_v61 = vsel %vm9362_vm5, %v16202_v23, 0.0 }
 0x483   : > { %v9618_v11 = vsub.f32 %v23505_v9, %v9554_v60 }
 0x484   : > { %9913 = vadd.xlane.f32.xlu0 %v9912_v7 }
 0x485   : > { %v16204_v57 = vpop.eup %16203  ;;  %v9745_v30 = vmul.f32 1.442695, %v9618_v11 }
 0x486   : > { %15657 = vmatmul.mubr.msk.f32.vlgmr.msra.gmra.mrb[64].mxu0 %vm9362_vm5, %v16204_v57  ;;  %v9918_v26 = vsel %vm9362_vm5, %v16204_v57, 0.0  ;;  %v20852_v52 = vpop.xlane.xlu0 %9763 }
 0x487   : > { %9919 = vadd.xlane.f32.xlu1 %v9918_v26 }
 0x48b   : > { %9916 = vadd.xlane.f32.xlu1 %v9915_v61 }
 0x48c   : > { %v9527_v34 = vpop.xlane.xlu1 %9526 }
 0x48d   : > { %v20857_v51 = vpop.xlane.xlu0 %9760  ;;  %v9609_v17 = vsub.f32 %v23502_v19, %v9527_v34 }
 0x48f   : > { %9877 = vadd.xlane.f32.xlu1 %v9876_v2  ;;  %v9727_v53 = vmul.f32 1.442695, %v9609_v17 }
 0x490   : > { %v9545_v45 = vpop.xlane.xlu1 %9544 }
 0x491   : > { %16205 = vpow2.f32 %v9727_v53  ;;  %v20862_v49 = vpop.xlane.xlu0 %9769  ;;  %v9615_v20 = vsub.f32 %v23504_v40, %v9545_v45 }
 0x492   : > { %16207 = vpow2.f32 %v9741_v24 }
 0x493   : > { %9898 = vadd.xlane.f32.xlu1 %v9897_v1  ;;  %v9739_v16 = vmul.f32 1.442695, %v9615_v20 }
 0x495   : > { %16209 = vpow2.f32 %v9739_v16  ;;  %v20866_v42 = vpop.xlane.xlu0 %9766 }
 0x496   : > { %16211 = vpow2.f32 %v9743_v21 }
 0x497   : > { %v9539_v14 = vpop.xlane.xlu1 %9538  ;;  %16213 = vpow2.f32 %v9745_v30 }
 0x498   : > { %v9613_v10 = vsub.f32 %v20400_v6, %v9539_v14 }
 0x49a   : > { %v9735_v54 = vmul.f32 1.442695, %v9613_v10  ;;  %v20869_v33 = vpop.xlane.xlu0 %9787 }
 0x49b   : > { %v9542_v36 = vpop.xlane.xlu1 %9541  ;;  %v16206_v38 = vpop.eup %16205 }
 0x49c   : > { %16215 = vpow2.f32 %v9735_v54  ;;  %v9614_v55 = vsub.f32 %v20432_v63, %v9542_v36  ;;  %15645 = vmatprep.mubr.msk.f32.mxu1 %vm9362_vm5, %v16206_v38  ;;  %v9909_v8 = vsel %vm9362_vm5, %v16206_v38, 0.0  ;;  %v16208_v48 = vpop.eup %16207 }
 0x49d   : > { %15646 = vmatmul.mubr.msk.f32.gmra.mrb[70].mxu1 %vm9362_vm5, %v16200_v56  ;;  %9910 = vadd.xlane.f32.xlu0 %v9909_v8  ;;  %v9930_v50 = vsel %vm9362_vm5, %v16208_v48, 0.0 }
 0x49e   : > { %v9737_v12 = vmul.f32 1.442695, %v9614_v55  ;;  %v20874_v18 = vpop.xlane.xlu0 %9784 }
 0x49f   : > { %v16210_v6 = vpop.eup %16209 }
 0x4a0   : > { %16217 = vpow2.f32 %v9737_v12  ;;  %v9752_v46 = vpop.xlane.xlu1 %9751  ;;  %15670 = vmatprep.mubr.msk.f32.mxu1 %vm9362_vm5, %v16210_v6  ;;  %v16212_v15 = vpop.eup %16211  ;;  %v9927_v39 = vsel %vm9362_vm5, %v16210_v6, 0.0 }
 0x4a1   : > { %15671 = vmatmul.mubr.msk.f32.vlgmr.msra.gmra.mrb[72].mxu1 %vm9362_vm5, %v16208_v48  ;;  %9931 = vadd.xlane.f32.xlu0 %v9930_v50  ;;  %v16214_v31 = vpop.eup %16213  ;;  %16219 = vrcp.f32 %v9752_v46  ;;  %v9933_v41 = vsel %vm9362_vm5, %v16212_v15, 0.0 }
 0x4a2   : > { %v20879_v63 = vpop.xlane.xlu0 %9793  ;;  %15673 = vmatprep.mubr.msk.f32.mxu1 %vm9362_vm5, %v16212_v15  ;;  %v9936_v22 = vsel %vm9362_vm5, %v16214_v31, 0.0 }
 0x4a4   : > { %v9749_v0 = vpop.xlane.xlu1 %9748 }
 0x4a5   : > { %16221 = vrcp.f32 %v9749_v0  ;;  %9928 = vadd.xlane.f32.xlu0 %v9927_v39  ;;  %15674 = vmatmul.mubr.msk.f32.gmra.mrb[74].mxu1 %vm9362_vm5, %v16214_v31 }
 0x4a6   : > { %v16216_v29 = vpop.eup %16215  ;;  %v20884_v62 = vpop.xlane.xlu0 %9790 }
 0x4a7   : > { %15659 = vmatprep.mubr.msk.f32.mxu0 %vm9362_vm5, %v16216_v29  ;;  %v9921_v59 = vsel %vm9362_vm5, %v16216_v29, 0.0 }
 0x4a8   : > { %v9773_v32 = vpop.xlane.xlu1 %9772  ;;  %9922 = vadd.xlane.f32.xlu1 %v9921_v59 }
 0x4a9   : > { %16223 = vrcp.f32 %v9773_v32  ;;  %9937 = vadd.xlane.f32.xlu0 %v9936_v22 }
 0x4aa   : > { %v16218_v35 = vpop.eup %16217  ;;  %v20890_v47 = vpop.xlane.xlu0 %9811 }
 0x4ab   : > { %15660 = vmatmul.mubr.msk.f32.gmra.mrb[66].mxu0 %vm9362_vm5, %v16218_v35  ;;  %v15462_v44 = vpop.f32.mrb[36].mxu0  ;;  %v16220_v5 = vpop.eup %16219  ;;  %v9924_v23 = vsel %vm9362_vm5, %v16218_v35, 0.0 }
 0x4ac   : > { %v9776_v37 = vpop.xlane.xlu1 %9775  ;;  %9901 = vadd.xlane.f32.xlu1 %v9900_v58  ;;  %v10273_v56 = vpop.f32.mrb[37].mxu0  ;;  %v10004_v26 = vmul.f32 %v16220_v5, %v9752_v46 }
 0x4ad   : > { %16225 = vrcp.f32 %v9776_v37  ;;  %9934 = vadd.xlane.f32.xlu0 %v9933_v41 }
 0x4ae   : > { %v10068_v2 = vsub.f32 2.0, %v10004_v26 }
 0x4af   : > { %v16222_v7 = vpop.eup %16221  ;;  %v20897_v57 = vpop.xlane.xlu0 %9808 }
 0x4b0   : > { %9925 = vadd.xlane.f32.xlu1 %v9924_v23  ;;  %v9755_v60 = vpop.xlane.xlu1 %9754  ;;  %v10003_v25 = vmul.f32 %v16222_v7, %v9749_v0  ;;  %v10132_v1 = vmul.f32 %v16220_v5, %v10068_v2 }
 0x4b1   : > { %16227 = vrcp.f32 %v9755_v60 }
 0x4b2   : > { %v10067_v17 = vsub.f32 2.0, %v10003_v25  ;;  %v20915_v54 = vmul.f32 %v15462_v44, %v10132_v1 }
 0x4b3   : > { %v16224_v61 = vpop.eup %16223  ;;  %v20899_v34 = vpop.xlane.xlu0 %9817 }
 0x4b4   : > { %v10011_v3 = vmul.f32 %v16224_v61, %v9773_v32  ;;  %v10131_v20 = vmul.f32 %v16222_v7, %v10067_v17 }
 0x4b5   : > { %v9779_v43 = vpop.xlane.xlu1 %9778 }
 0x4b6   : > { %16229 = vrcp.f32 %v9779_v43  ;;  %v10075_v24 = vsub.f32 2.0, %v10011_v3  ;;  %v20920_v55 = vmul.f32 %v10273_v56, %v10131_v20 }
 0x4b7   : > { %v16226_v19 = vpop.eup %16225  ;;  %16231 = vrcp.f32 %v20852_v52  ;;  %v20902_v28 = vpop.f32.mrb[38].mxu0 }
 0x4b8   : > { %v10012_v4 = vmul.f32 %v16226_v19, %v9776_v37  ;;  %16233 = vrcp.f32 %v20857_v51  ;;  %v10283_v40 = vpop.f32.mrb[39].mxu0  ;;  %v10139_v9 = vmul.f32 %v16224_v61, %v10075_v24  ;;  %v20909_v21 = vpop.xlane.xlu0 %9814 }
 0x4b9   : > { %v20904_v53 = vpop.xlane.xlu1 %9796  ;;  %16235 = vrcp.f32 %v20862_v49 }
 0x4ba   : > { %v10076_v45 = vsub.f32 2.0, %v10012_v4  ;;  %16237 = vrcp.f32 %v20866_v42 }
 0x4bb   : > { %v16228_v11 = vpop.eup %16227  ;;  %16239 = vrcp.f32 %v20869_v33  ;;  %v15490_v14 = vpop.f32.mrb[40].mxu0 }
 0x4bc   : > { %v10140_v16 = vmul.f32 %v16226_v19, %v10076_v45  ;;  %v10005_v30 = vmul.f32 %v16228_v11, %v9755_v60  ;;  %16241 = vrcp.f32 %v20874_v18  ;;  %v10467_v38 = vpop.f32.mrb[41].mxu0  ;;  %v20929_v50 = vpop.xlane.xlu0 %9835 }
 0x4bd   : > { %v20912_v10 = vpop.xlane.xlu1 %9799  ;;  %16243 = vrcp.f32 %v20879_v63  ;;  %v20922_v48 = vmul.f32 %v10467_v38, %v10139_v9 }
 0x4be   : > { %v20917_v36 = vmul.f32 %v15490_v14, %v10140_v16  ;;  %v10069_v8 = vsub.f32 2.0, %v10005_v30  ;;  %16245 = vrcp.f32 %v20884_v62 }
 0x4bf   : > { %16247 = vrcp.f32 %v20890_v47  ;;  %v11811_v0 = vcombine.low %v20920_v55, %v20922_v48  ;;  %v11812_v31 = vcombine.high %v20920_v55, %v20922_v48  ;;  %v20936_v39 = vpop.f32.mrb[42].mxu0 }
 0x4c0   : > { %v16230_v12 = vpop.eup %16229  ;;  %v11947_v6 = vcombine.low %v20915_v54, %v20917_v36  ;;  %v11948_v46 = vcombine.high %v20915_v54, %v20917_v36  ;;  %16249 = vrcp.f32 %v20897_v57  ;;  %v10477_v59 = vpop.f32.mrb[43].mxu0  ;;  %v10133_v35 = vmul.f32 %v16228_v11, %v10069_v8 }
 0x4c1   : > { %v10013_v15 = vmul.f32 %v16230_v12, %v9779_v43  ;;  %v20938_v29 = vpop.xlane.xlu1 %9757  ;;  %v20941_v32 = vpop.eup %16231  ;;  %16251 = vrcp.f32 %v20899_v34 }
 0x4c2   : > { %v20943_v58 = vpop.eup %16233  ;;  %16253 = vrcp.f32 %v20938_v29  ;;  %v20953_v5 = vpop.xlane.xlu0 %9832  ;;  %v20955_v7 = vmul.f32 %v10283_v40, %v10133_v35  ;;  %v10008_v4 = vmul.f32 %v20941_v32, %v20852_v52 }
 0x4c3   : > { %v10077_v22 = vsub.f32 2.0, %v10013_v15  ;;  %v20945_v37 = vpop.eup %16235  ;;  %16255 = vrcp.f32 %v20909_v21  ;;  %v10007_v1 = vmul.f32 %v20943_v58, %v20857_v51 }
 0x4c4   : > { %v20950_v56 = vpop.eup %16237  ;;  %16257 = vrcp.f32 %v20904_v53  ;;  %v10010_v45 = vmul.f32 %v20945_v37, %v20862_v49 }
 0x4c5   : > { %v10141_v44 = vmul.f32 %v16230_v12, %v10077_v22  ;;  %v20948_v41 = vpop.xlane.xlu1 %9823  ;;  %v16240_v23 = vpop.eup %16239  ;;  %16259 = vrcp.f32 %v20912_v10  ;;  %v10009_v40 = vmul.f32 %v20950_v56, %v20866_v42  ;;  %v10072_v42 = vsub.f32 2.0, %v10008_v4 }
 0x4c6   : > { %v16242_v26 = vpop.eup %16241  ;;  %16261 = vrcp.f32 %v20929_v50  ;;  %v20969_v19 = vpop.xlane.xlu0 %9841  ;;  %v10016_v20 = vmul.f32 %v16240_v23, %v20869_v33  ;;  %v10071_v38 = vsub.f32 2.0, %v10007_v1  ;;  %v10074_v33 = vsub.f32 2.0, %v10010_v45 }
 0x4c7   : > { %v20958_v60 = vmul.f32 %v10477_v59, %v10141_v44  ;;  %v16244_v61 = vpop.eup %16243  ;;  %16263 = vrcp.f32 %v20953_v5  ;;  %v10015_v9 = vmul.f32 %v16242_v26, %v20874_v18  ;;  %v10073_v12 = vsub.f32 2.0, %v10009_v40 }
 0x4c8   : > { %v16246_v2 = vpop.eup %16245  ;;  %16265 = vrcp.f32 %v20948_v41  ;;  %v10018_v52 = vmul.f32 %v16244_v61, %v20879_v63  ;;  %v10080_v15 = vsub.f32 2.0, %v10016_v20  ;;  %v21008_v40 = vmul.f32 %v20941_v32, %v10072_v42 }
 0x4c9   : > { %v12083_v25 = vcombine.low %v20955_v7, %v20958_v60  ;;  %v20966_v43 = vpop.xlane.xlu1 %9820  ;;  %v16248_v17 = vpop.eup %16247  ;;  %v10017_v16 = vmul.f32 %v16246_v2, %v20884_v62  ;;  %v10079_v63 = vsub.f32 2.0, %v10015_v9  ;;  %v21013_v9 = vmul.f32 %v20943_v58, %v10071_v38 }
 0x4ca   : > { %v16250_v24 = vpop.eup %16249  ;;  %16267 = vrcp.f32 %v20966_v43  ;;  %v10024_v49 = vmul.f32 %v16248_v17, %v20890_v47  ;;  %v20990_v8 = vpop.xlane.xlu0 %9838  ;;  %v10082_v22 = vsub.f32 2.0, %v10018_v52  ;;  %v21016_v52 = vmul.f32 %v20945_v37, %v10074_v33 }
 0x4cb   : > { %v20986_v51 = vpop.eup %16251  ;;  %v10023_v30 = vmul.f32 %v16250_v24, %v20897_v57  ;;  %v10081_v35 = vsub.f32 2.0, %v10017_v16  ;;  %v21027_v32 = vmul.f32 %v20950_v56, %v10073_v12  ;;  %v21031_v42 = vmul.f32 %v16242_v26, %v10079_v63 }
 0x4cc   : > { %v16254_v14 = vpop.eup %16253  ;;  %v10088_v57 = vsub.f32 2.0, %v10024_v49  ;;  %v10026_v4 = vmul.f32 %v20986_v51, %v20899_v34 }
 0x4cd   : > { %v9782_v11 = vpop.xlane.xlu1 %9781  ;;  %v20992_v18 = vpop.eup %16255  ;;  %v10087_v44 = vsub.f32 2.0, %v10023_v30  ;;  %v10006_v1 = vmul.f32 %v16254_v14, %v20938_v29  ;;  %v21029_v30 = vmul.f32 %v16240_v23, %v10080_v15  ;;  %v21042_v33 = vmul.f32 %v16246_v2, %v10081_v35 }
 0x4ce   : > { %16269 = vrcp.f32 %v9782_v11  ;;  %v20996_v62 = vpop.eup %16257  ;;  %v10025_v34 = vmul.f32 %v20992_v18, %v20909_v21  ;;  %v21038_v38 = vpop.xlane.xlu0 %9859  ;;  %v21040_v21 = vmul.f32 %v16244_v61, %v10082_v22  ;;  %v10090_v56 = vsub.f32 2.0, %v10026_v4 }
 0x4cf   : > { %16271 = vrcp.f32 %v20969_v19  ;;  %v20999_v47 = vpop.eup %16259  ;;  %v10019_v37 = vmul.f32 %v20996_v62, %v20904_v53  ;;  %v10070_v23 = vsub.f32 2.0, %v10006_v1  ;;  %v21046_v12 = vmul.f32 %v16248_v17, %v10088_v57 }
 0x4d0   : > { %v21004_v45 = vpop.eup %16261  ;;  %16273 = vrcp.f32 %v20990_v8  ;;  %v21048_v26 = vmul.f32 %v16250_v24, %v10087_v44  ;;  %v21054_v53 = vrot.slane %v11947_v6, %v23481_v27  ;;  %v10020_v61 = vmul.f32 %v20999_v47, %v20912_v10 }
 0x4d1   : > { %v20994_v59 = vpop.xlane.xlu1 %9802  ;;  %v21018_v16 = vpop.eup %16263  ;;  %v10032_v2 = vmul.f32 %v21004_v45, %v20929_v50  ;;  %v10089_v22 = vsub.f32 2.0, %v10025_v34  ;;  %v21071_v10 = vrot.slane %v11948_v46, %v23481_v27  ;;  %v10083_v50 = vsub.f32 2.0, %v10019_v37 }
 0x4d2   : > { %v21010_v20 = vpop.f32.mrb[44].mxu1  ;;  %v21033_v58 = vpop.eup %16265  ;;  %16275 = vrcp.f32 %v20994_v59  ;;  %v10031_v63 = vmul.f32 %v21018_v16, %v20953_v5  ;;  %v21077_v5 = vrot.slane %v11811_v0, %v23481_v27  ;;  %v10084_v44 = vsub.f32 2.0, %v10020_v61 }
 0x4d3   : > { %v21024_v49 = vpop.f32.mrb[45].mxu1  ;;  %v10028_v24 = vmul.f32 %v21033_v58, %v20948_v41  ;;  %16277 = vrcp.f32 %v21038_v38  ;;  %v21084_v41 = vrot.slane %v11812_v31, %v23481_v27  ;;  %v10096_v4 = vsub.f32 2.0, %v10032_v2  ;;  %v21091_v0 = vpop.xlane.xlu0 %9856 }
 0x4d4   : > { %v21044_v3 = vpop.eup %16267  ;;  %v10095_v1 = vsub.f32 2.0, %v10031_v63  ;;  %v21111_v61 = vrot.slane %v12083_v25, %v23481_v27 }
 0x4d5   : > { %v21022_v29 = vpop.xlane.xlu1 %9826  ;;  %v10027_v54 = vmul.f32 %v21044_v3, %v20966_v43  ;;  %v10092_v37 = vsub.f32 2.0, %v10028_v24  ;;  %v21100_v43 = vmul.f32 %v20986_v51, %v10090_v56  ;;  %v10147_v51 = vmul.f32 %v20996_v62, %v10083_v50 }
 0x4d6   : > { %v11752_v62 = vmul.f32 %v21010_v20, %v21008_v40  ;;  %v10148_v24 = vmul.f32 %v20999_v47, %v10084_v44  ;;  %v21144_v50 = vmul.f32 %v21018_v16, %v10095_v1 }
 0x4d7   : > { %v15518_v17 = vpop.f32.mrb[44].mxu0  ;;  %23506 = vst [vmem:[#allocation19_spill] sm:$0xff] %v21100_v43  ;;  %v10091_v63 = vsub.f32 2.0, %v10027_v54  ;;  %v10156_v20 = vmul.f32 %v21033_v58, %v10092_v37  ;;  %v21160_v16 = vpop.xlane.xlu0 %9865 }
 0x4d8   : > { %v16270_v15 = vpop.eup %16269  ;;  %v10661_v6 = vpop.f32.mrb[45].mxu0  ;;  %v21169_v1 = vmul.f32 %v15518_v17, %v10148_v24 }
 0x4d9   : > { %v10014_v35 = vmul.f32 %v16270_v15, %v9782_v11  ;;  %v21065_v57 = vpop.xlane.xlu1 %9805  ;;  %v10134_v11 = vmul.f32 %v16254_v14, %v10070_v23  ;;  %v21088_v46 = vpop.eup %16271  ;;  %v21103_v14 = vmul.f32 %v20992_v18, %v10089_v22  ;;  %v21172_v37 = vmul.f32 %v10661_v6, %v10147_v51 }
 0x4da   : > { %16279 = vrcp.f32 %v21065_v57  ;;  %v21105_v23 = vpop.eup %16273  ;;  %v21128_v25 = vmul.f32 %v21088_v46, %v20969_v19 }
 0x4db   : > { %v10078_v36 = vsub.f32 2.0, %v10014_v35  ;;  %16281 = vrcp.f32 %v21022_v29  ;;  %v21093_v34 = vpop.f32.mrb[46].mxu1  ;;  %23507 = vst [vmem:[#allocation22_spill] sm:$0xff] %v21103_v14  ;;  %v21124_v18 = vmul.f32 %v20902_v28, %v10134_v11  ;;  %v21141_v28 = vmul.f32 %v21004_v45, %v10096_v4 }
 0x4dc   : > { %v21097_v31 = vpop.f32.mrb[47].mxu1  ;;  %v21152_v11 = vmul.f32 %v21105_v23, %v20990_v8  ;;  %v11751_v45 = vmul.f32 %v21024_v49, %v21013_v9  ;;  %v10155_v9 = vmul.f32 %v21044_v3, %v10091_v63 }
 0x4dd   : > { %v10142_v55 = vmul.f32 %v16270_v15, %v10078_v36  ;;  %v21095_v48 = vpop.xlane.xlu1 %9829  ;;  %v23508_v15 = vcombine.high %v20955_v7, %v20958_v60  ;;  %v21120_v56 = vpop.f32.mrb[46].mxu0 }
 0x4de   : > { %16283 = vrcp.f32 %v21095_v48  ;;  %v21133_v7 = vpop.f32.mrb[47].mxu0  ;;  %v21135_v60 = vpop.eup %16275 }
 0x4df   : > { %v21117_v2 = vrot.slane %v23508_v15, %v23481_v27  ;;  %v21131_v22 = vmul.f32 %v20936_v39, %v10142_v55  ;;  %v15504_v35 = vpop.f32.mrb[48].mxu1  ;;  %16285 = vrcp.f32 %v21091_v0  ;;  %v21164_v44 = vpop.eup %16277  ;;  %v10021_v4 = vmul.f32 %v21135_v60, %v20994_v59 }
 0x4e0   : > { %v10564_v47 = vpop.f32.mrb[49].mxu1  ;;  %v11760_v54 = vmul.f32 %v15504_v35, %v21029_v30  ;;  %23509 = vst [vmem:[#allocation12_spill] sm:$0xff] %v21164_v44  ;;  %16287 = vrcp.f32 %v21160_v16  ;;  %v21184_v3 = vmul.f32 %v21164_v44, %v21038_v38 }
 0x4e1   : > { %v21154_v40 = vpop.xlane.xlu1 %9844  ;;  %v11759_v36 = vmul.f32 %v10564_v47, %v21031_v42  ;;  %v10097_v42 = vsub.f32 2.0, %v21152_v11 }
 0x4e2   : > { %v15546_v58 = vpop.f32.mrb[48].mxu0  ;;  %v11963_v55 = vcombine.low %v11752_v62, %v11760_v54  ;;  %v11964_v15 = vcombine.high %v11752_v62, %v11760_v54  ;;  %23510 = vst [vmem:[#allocation10_spill] sm:$0xff] %v21184_v3  ;;  %v10085_v62 = vsub.f32 2.0, %v10021_v4  ;;  %16289 = vrcp.f32 %v21154_v40 }
 0x4e3   : > { %v11827_v30 = vcombine.low %v11751_v45, %v11759_v36  ;;  %v10855_v35 = vpop.f32.mrb[49].mxu0  ;;  %v11828_v47 = vcombine.high %v11751_v45, %v11759_v36  ;;  %v21176_v19 = vmul.f32 %v15546_v58, %v10156_v20 }
 0x4e4   : > { %v16280_v49 = vpop.eup %16279  ;;  %v11971_v6 = vrot.slane %v11963_v55, %v23481_v27  ;;  %v11978_v51 = vrot.slane %v11964_v15, %v23481_v27  ;;  %v21237_v8 = vmul.f32 %v10855_v35, %v10155_v9  ;;  %v23513_v9 = vsub.f32 2.0, %v21128_v25 }
 0x4e5   : > { %v21178_v59 = vpop.xlane.xlu1 %9847  ;;  %v21180_v17 = vpop.eup %16281  ;;  %v11835_v63 = vrot.slane %v11827_v30, %v23481_v27  ;;  %v10022_v24 = vmul.f32 %v16280_v49, %v21065_v57  ;;  %v11842_v58 = vrot.slane %v11828_v47, %v23481_v27 }
 0x4e6   : > { %v12011_v54 = vcombine.low %v21054_v53, %v11971_v6  ;;  %v12012_v38 = vcombine.high %v21054_v53, %v11971_v6  ;;  %v12027_v36 = vcombine.low %v21071_v10, %v11978_v51  ;;  %v10029_v4 = vmul.f32 %v21180_v17, %v21022_v29 }
 0x4e7   : > { %v12028_v15 = vcombine.high %v21071_v10, %v11978_v51  ;;  %v11875_v30 = vcombine.low %v21077_v5, %v11835_v63  ;;  %v11876_v47 = vcombine.high %v21077_v5, %v11835_v63  ;;  %v10086_v39 = vsub.f32 2.0, %v10022_v24 }
 0x4e8   : > { %v16284_v45 = vpop.eup %16283  ;;  %v15549_v55 = vpop.f32.mrb[50].mxu0  ;;  %v21204_v11 = vrot.slane %v12011_v54, %v16617_v13  ;;  %v21207_v53 = vrot.slane %v12012_v38, %v16617_v13  ;;  %v21210_v6 = vrot.slane %v12027_v36, %v16617_v13  ;;  %v11891_v63 = vcombine.low %v21084_v41, %v11842_v58 }
 0x4e9   : > { %v10030_v57 = vmul.f32 %v16284_v45, %v21095_v48  ;;  %v10865_v20 = vpop.f32.mrb[51].mxu0  ;;  %v21214_v29 = vrot.slane %v12028_v15, %v16617_v13  ;;  %v21218_v10 = vrot.slane %v11875_v30, %v16617_v13  ;;  %v21220_v48 = vpop.xlane.xlu1 %9868  ;;  %v21229_v5 = vrot.slane %v11876_v47, %v16617_v13 }
 0x4ea   : > { %v21222_v51 = vpop.eup %16285  ;;  %v15507_v24 = vpop.f32.mrb[50].mxu1  ;;  %v11892_v30 = vcombine.high %v21084_v41, %v11842_v58  ;;  %v10149_v38 = vmul.f32 %v21135_v60, %v10085_v62  ;;  %v21241_v47 = vrot.slane %v11891_v63, %v16617_v13  ;;  %v10093_v36 = vsub.f32 2.0, %v10029_v4 }
 0x4eb   : > { %23511 = vst [vmem:[#allocation36_spill] sm:$0xff] %v21222_v51  ;;  %v10574_v54 = vpop.f32.mrb[51].mxu1  ;;  %v10094_v44 = vsub.f32 2.0, %v10030_v57  ;;  %v14881_v14 = vcombine.low %v21218_v10, %v21229_v5  ;;  %v21245_v43 = vpop.eup %16287  ;;  %v11754_v15 = vmul.f32 %v21093_v34, %v21016_v52  ;;  %v21255_v35 = vmul.f32 %v21088_v46, %v23513_v9 }
 0x4ec   : > { %23512 = vst [vmem:[#allocation41_spill] sm:$0xff] %v21245_v43  ;;  %v21250_v41 = vrot.slane %v11892_v30, %v16617_v13  ;;  %v10150_v60 = vmul.f32 %v16280_v49, %v10086_v39  ;;  %v11753_v62 = vmul.f32 %v21097_v31, %v21027_v32  ;;  %v14883_v58 = vcombine.high %v21218_v10, %v21229_v5  ;;  %v21308_v9 = vpop.eup %16289 }
 0x4ed   : > { %v21262_v4 = vmul.f32 %v21105_v23, %v10097_v42  ;;  %v21266_v52 = vmul.f32 %v21222_v51, %v21091_v0  ;;  %v21274_v32 = vpop.xlane.xlu1 %9871  ;;  %v21278_v23 = vmul.f32 %v21133_v7, %v10149_v38  ;;  %v10158_v39 = vmul.f32 %v16284_v45, %v10094_v44 }
 0x4ee   : > { %v21284_v49 = vmul.f32 %v21245_v43, %v21160_v16  ;;  %v10157_v42 = vmul.f32 %v21180_v17, %v10093_v36  ;;  %v23516_v57 = vcombine.low %v21124_v18, %v21131_v22  ;;  %v23517_v7 = vcombine.high %v21124_v18, %v21131_v22 }
 0x4ef   : > { %23514 = vst [vmem:[#allocation40_spill] sm:$0xff] %v21266_v52  ;;  %v21298_v44 = vmul.f32 %v21120_v56, %v10150_v60  ;;  %16291 = vrcp.f32 %v21178_v59  ;;  %v21301_v16 = vmul.f32 %v15549_v55, %v10158_v39  ;;  %v11762_v17 = vmul.f32 %v15507_v24, %v21040_v21 }
 0x4f0   : > { %23515 = vst [vmem:[#allocation39_spill] sm:$0xff] %v21284_v49  ;;  %v12227_v63 = vrot.slane %v23516_v57, %v23481_v27  ;;  %v12234_v38 = vrot.slane %v23517_v7, %v23481_v27  ;;  %16293 = vrcp.f32 %v21220_v48  ;;  %v21312_v22 = vmul.f32 %v10865_v20, %v10157_v42 }
 0x4f1   : > { %v11761_v56 = vmul.f32 %v10574_v54, %v21042_v33  ;;  %v12235_v24 = vcombine.low %v11754_v15, %v11762_v17  ;;  %v12236_v39 = vcombine.high %v11754_v15, %v11762_v17  ;;  %v21325_v18 = vpop.xlane.xlu1 %9850  ;;  %v21330_v54 = vmul.f32 %v21308_v9, %v21154_v40 }
 0x4f2   : > { %v23518_v7 = vcombine.low %v21204_v11, %v21207_v53  ;;  %16295 = vrcp.f32 %v21274_v32  ;;  %v23524_v43 = vcombine.low %v21241_v47, %v21250_v41 }
 0x4f3   : > { %v21295_v30 = vpop.f32.mrb[52].mxu1  ;;  %v21304_v45 = vpop.f32.mrb[52].mxu0  ;;  %v12099_v20 = vcombine.low %v11753_v62, %v11761_v56  ;;  %v12100_v42 = vcombine.high %v11753_v62, %v11761_v56  ;;  %v12243_v31 = vrot.slane %v12235_v24, %v23481_v27  ;;  %v12250_v15 = vrot.slane %v12236_v39, %v23481_v27 }
 0x4f4   : > { %v21306_v36 = vpop.f32.mrb[53].mxu1  ;;  %v21315_v60 = vpop.f32.mrb[53].mxu0  ;;  %v21340_v57 = vrot.slane %v23518_v7, %v23481_v27  ;;  %16297 = vrcp.f32 %v21325_v18  ;;  %v12939_v10 = vrot.slane %v23524_v43, %v23481_v27  ;;  %v23526_v43 = vcombine.low %v21172_v37, %v21237_v8 }
 0x4f5   : > { %v12107_v62 = vrot.slane %v12099_v20, %v23481_v27  ;;  %v12114_v56 = vrot.slane %v12100_v42, %v23481_v27  ;;  %v12283_v33 = vcombine.low %v12227_v63, %v12243_v31  ;;  %v12284_v24 = vcombine.high %v12227_v63, %v12243_v31 }
 0x4f6   : > { %v12299_v21 = vcombine.low %v12234_v38, %v12250_v15  ;;  %v12300_v39 = vcombine.high %v12234_v38, %v12250_v15  ;;  %v23519_v20 = vcombine.high %v21204_v11, %v21207_v53  ;;  %v23520_v63 = vcombine.low %v21210_v6, %v21214_v29  ;;  %v21369_v11 = vpop.xlane.xlu1 %9874 }
 0x4f7   : > { %v12147_v55 = vcombine.low %v21111_v61, %v12107_v62  ;;  %v12148_v0 = vcombine.high %v21111_v61, %v12107_v62  ;;  %v12163_v25 = vcombine.low %v21117_v2, %v12114_v56  ;;  %v12164_v7 = vcombine.high %v21117_v2, %v12114_v56 }
 0x4f8   : > { %v21334_v17 = vpop.f32.mrb[54].mxu1  ;;  %v13059_v46 = vrot.slane %v23519_v20, %v23481_v27  ;;  %v12291_v42 = vrot.slane %v12283_v33, %v16617_v13  ;;  %v12298_v34 = vrot.slane %v12284_v24, %v16617_v13  ;;  %v12307_v31 = vrot.slane %v12299_v21, %v16617_v13 }
 0x4f9   : > { %v21345_v40 = vpop.f32.mrb[55].mxu1  ;;  %v13075_v61 = vrot.slane %v23520_v63, %v23481_v27  ;;  %v12314_v38 = vrot.slane %v12300_v39, %v16617_v13  ;;  %v21364_v2 = vrot.slane %v12147_v55, %v16617_v13  ;;  %v21367_v15 = vrot.slane %v12148_v0, %v16617_v13  ;;  %v21371_v53 = vpop.eup %16291 }
 0x4fa   : > { %v14905_v33 = vcombine.low %v12291_v42, %v12298_v34  ;;  %v14907_v62 = vcombine.high %v12291_v42, %v12298_v34  ;;  %v21374_v21 = vrot.slane %v12163_v25, %v16617_v13  ;;  %v21377_v56 = vpop.eup %16293  ;;  %v23521_v55 = vcombine.high %v21210_v6, %v21214_v29  ;;  %v21459_v51 = vpop.xlane.xlu1 %9892 }
 0x4fb   : > { %v14909_v39 = vcombine.low %v12307_v31, %v12314_v38  ;;  %v14911_v20 = vcombine.high %v12307_v31, %v12314_v38  ;;  %v21390_v34 = vrot.slane %v14881_v14, %v23481_v27  ;;  %v23522_v25 = vcombine.low %v21169_v1, %v21176_v19  ;;  %v21403_v31 = vpop.xlane.xlu0 %9862 }
 0x4fc   : > { %v13091_v24 = vrot.slane %v23521_v55, %v23481_v27  ;;  %v21399_v6 = vrot.slane %v12164_v7, %v16617_v13  ;;  %v14897_v29 = vcombine.low %v21364_v2, %v21367_v15  ;;  %v21411_v14 = vrot.slane %v14883_v58, %v23481_v27  ;;  %v21437_v58 = vpop.eup %16295 }
 0x4fd   : > { %v21384_v63 = vpop.f32.mrb[54].mxu0  ;;  %v21396_v42 = vrot.slane %v23522_v25, %v23481_v27  ;;  %v23523_v55 = vcombine.high %v21169_v1, %v21176_v19  ;;  %v21421_v7 = vmul.f32 %v21371_v53, %v21178_v59  ;;  %v21431_v5 = vmul.f32 %v21377_v56, %v21220_v48 }
 0x4fe   : > { %v21405_v38 = vpop.f32.mrb[55].mxu0  ;;  %v21447_v48 = vrot.slane %v23526_v43, %v23481_v27  ;;  %v23527_v19 = vcombine.high %v21172_v37, %v21237_v8  ;;  %v21457_v1 = vmul.f32 %v21295_v30, %v21046_v12  ;;  %v23529_v43 = vcombine.high %v21298_v44, %v21301_v16 }
 0x4ff   : > { %v21417_v25 = vrot.slane %v23523_v55, %v23481_v27  ;;  %v23525_v55 = vcombine.high %v21241_v47, %v21250_v41  ;;  %v23528_v41 = vcombine.low %v21298_v44, %v21301_v16  ;;  %v23530_v12 = vcombine.low %v21278_v23, %v21312_v22  ;;  %v21519_v16 = vpop.xlane.xlu1 %9895 }
 0x500   : > { %v15560_v59 = vpop.f32.mrb[56].mxu1  ;;  %v21453_v49 = vrot.slane %v23527_v19, %v23481_v27  ;;  %v21471_v8 = vrot.slane %v23529_v43, %v23481_v27  ;;  %v23532_v30 = vcombine.high %v21278_v23, %v21312_v22  ;;  %v13100_v52 = vcombine.high %v21340_v57, %v13059_v46  ;;  %v21496_v23 = vpop.xlane.xlu0 %9883 }
 0x501   : > { %v12955_v0 = vrot.slane %v23525_v55, %v23481_v27  ;;  %v10952_v47 = vpop.f32.mrb[57].mxu1  ;;  %v21465_v55 = vrot.slane %v23528_v41, %v23481_v27  ;;  %v21477_v37 = vrot.slane %v23530_v12, %v23481_v27  ;;  %v13132_v3 = vcombine.high %v13075_v61, %v13091_v24 }
 0x502   : > { %v21483_v19 = vrot.slane %v23532_v30, %v23481_v27  ;;  %v13099_v44 = vcombine.low %v21340_v57, %v13059_v46  ;;  %v21490_v43 = vrot.slane %v14905_v33, %v23481_v27  ;;  %v21494_v12 = vmul.f32 %v21437_v58, %v21274_v32  ;;  %v21506_v57 = vpop.eup %16297 }
 0x503   : > { %23531 = vst [vmem:[#allocation11_spill] sm:$0xff] %v21477_v37  ;;  %v13131_v37 = vcombine.low %v13075_v61, %v13091_v24  ;;  %v21499_v22 = vrot.slane %v14907_v62, %v23481_v27  ;;  %v13114_v30 = vrot.slane %v13100_v52, %v16617_v13  ;;  %v13146_v41 = vrot.slane %v13132_v3, %v16617_v13 }
 0x504   : > { %23533 = vst [vmem:[#allocation38_spill] sm:$0xff] %v21483_v19  ;;  %v21504_v46 = vrot.slane %v13099_v44, %v16617_v13  ;;  %v21509_v33 = vrot.slane %v14909_v39, %v23481_v27  ;;  %v12964_v61 = vcombine.high %v21390_v34, %v21411_v14  ;;  %v12996_v62 = vcombine.high %v12939_v10, %v12955_v0 }
 0x505   : > { %v21512_v32 = vrot.slane %v13131_v37, %v16617_v13  ;;  %v21517_v24 = vrot.slane %v14911_v20, %v23481_v27  ;;  %v13165_v52 = vcombine.low %v13114_v30, %v13146_v41  ;;  %v13166_v3 = vcombine.high %v13114_v30, %v13146_v41 }
 0x506   : > { %23534 = vst [vmem:[#allocation59_spill] sm:$0xff] %v21504_v46  ;;  %v12963_v44 = vcombine.low %v21390_v34, %v21411_v14  ;;  %16299 = vrcp.f32 %v21369_v11  ;;  %v21527_v37 = vrot.slane %v12964_v61, %v16617_v13  ;;  %v21530_v19 = vrot.slane %v12996_v62, %v16617_v13  ;;  %v21550_v62 = vpop.xlane.xlu0 %9880 }
 0x507   : > { %23535 = vst [vmem:[#allocation53_spill] sm:$0xff] %v21512_v32  ;;  %v13164_v39 = vcombine.high %v21504_v46, %v21512_v32  ;;  %v21534_v41 = vrot.slane %v14897_v29, %v23481_v27  ;;  %v21538_v30 = vmul.f32 %v21506_v57, %v21325_v18  ;;  %14029 = vrot.lane.b32.xlu1 %v13165_v52, %s16367_s20  ;;  %16301 = vrcp.f32 %v21403_v31 }
 0x508   : > { %v12995_v34 = vcombine.low %v12939_v10, %v12955_v0  ;;  %v21541_v14 = vpop.f32.mrb[56].mxu0  ;;  %v21545_v61 = vmul.f32 %v21306_v36, %v21048_v26  ;;  %v13030_v29 = vcombine.high %v21527_v37, %v21530_v19  ;;  %v13029_v18 = vcombine.low %v21527_v37, %v21530_v19 }
 0x509   : > { %13997 = vrot.lane.b32.xlu0 %v13164_v39, %s16368_s21  ;;  %v13371_v0 = vcombine.low %v21490_v43, %v21499_v22  ;;  %v21556_v10 = vpop.f32.mrb[57].mxu0  ;;  %v21560_v26 = vrot.slane %v12963_v44, %v16617_v13  ;;  %v13403_v52 = vcombine.low %v21509_v33, %v21517_v24  ;;  %16303 = vrcp.f32 %v21459_v51 }
 0x50a   : > { %v21563_v36 = vrot.slane %v12995_v34, %v16617_v13  ;;  %v11776_v39 = vmul.f32 %v15560_v59, %v21141_v28  ;;  %v11775_v37 = vmul.f32 %v10952_v47, %v21144_v50  ;;  %v23539_v44 = vcombine.high %v21364_v2, %v21367_v15  ;;  %v21580_v34 = vpop.xlane.xlu1 %9853 }
 0x50b   : > { %23536 = vst [vmem:[#allocation83_spill] sm:$0xff] %v21560_v26  ;;  %v21569_v19 = vrot.slane %v13371_v0, %v16617_v13  ;;  %14061 = vrot.lane.b32.xlu1 %v13166_v3, %s16369_s22  ;;  %v21583_v46 = vrot.slane %v13403_v52, %v16617_v13  ;;  %v13372_v0 = vcombine.high %v21490_v43, %v21499_v22  ;;  %v10101_v2 = vsub.f32 2.0, %v21538_v30 }
 0x50c   : > { %23537 = vst [vmem:[#allocation80_spill] sm:$0xff] %v21563_v36  ;;  %v21577_v20 = vrot.slane %v23539_v44, %v23481_v27  ;;  %v13404_v28 = vcombine.high %v21509_v33, %v21517_v24  ;;  %v21589_v50 = vpop.f32.mrb[58].mxu0  ;;  %v11995_v15 = vcombine.low %v21457_v1, %v11776_v39  ;;  %v11996_v59 = vcombine.high %v21457_v1, %v11776_v39  ;;  %v21605_v24 = vpop.xlane.xlu0 %9889 }
 0x50d   : > { %23538 = vst [vmem:[#allocation55_spill] sm:$0xff] %v21569_v19  ;;  %23540 = vst [vmem:[#allocation52_spill] sm:$0xff] %v21583_v46  ;;  %14059 = vrot.lane.b32.xlu0 %v13030_v29, %s16369_s22  ;;  %v11859_v47 = vcombine.low %v21545_v61, %v11775_v37  ;;  %v21596_v3 = vpop.f32.mrb[59].mxu0  ;;  %16305 = vrcp.f32 %v21496_v23  ;;  %v13028_v43 = vcombine.high %v21560_v26, %v21563_v36  ;;  %v23542_v44 = vsub.f32 2.0, %v21421_v7 }
 0x50e   : > { %v13436_v22 = vcombine.high %v21569_v19, %v21583_v46  ;;  %v11860_v33 = vcombine.high %v21545_v61, %v11775_v37  ;;  %16307 = vrcp.f32 %v21580_v34  ;;  %v12003_v1 = vrot.slane %v11995_v15, %v23481_v27 }
 0x50f   : > { %v12010_v30 = vrot.slane %v11996_v59, %v23481_v27  ;;  %v11867_v29 = vrot.slane %v11859_v47, %v23481_v27  ;;  %v23541_v52 = vcombine.low %v21374_v21, %v21399_v6  ;;  %v10164_v61 = vmul.f32 %v21371_v53, %v23542_v44  ;;  %13995 = vrot.lane.b32.xlu1 %v13028_v43, %s16368_s21 }
 0x510   : > { %16309 = vrcp.f32 %v21519_v16  ;;  %v13235_v37 = vcombine.low %v21534_v41, %v21577_v20  ;;  %v21623_v15 = vpop.f32.mrb[58].mxu1  ;;  %v21625_v59 = vpop.eup %16299  ;;  %v23543_v47 = vcombine.high %v21374_v21, %v21399_v6  ;;  %v12043_v53 = vcombine.low %v21396_v42, %v12003_v1 }
 0x511   : > { %v21614_v39 = vrot.slane %v23541_v52, %v23481_v27  ;;  %16311 = vrcp.f32 %v21550_v62  ;;  %14001 = vrot.lane.b32.xlu0 %v13436_v22, %s16368_s21  ;;  %v12044_v7 = vcombine.high %v21396_v42, %v12003_v1  ;;  %v21637_v43 = vpop.f32.mrb[59].mxu1  ;;  %v12059_v44 = vcombine.low %v21417_v25, %v12010_v30  ;;  %v21653_v1 = vpop.eup %16301 }
 0x512   : > { %v21631_v52 = vrot.slane %v23543_v47, %v23481_v27  ;;  %16313 = vrcp.f32 %v21605_v24  ;;  %v12060_v19 = vcombine.high %v21417_v25, %v12010_v30  ;;  %v11907_v21 = vcombine.low %v21447_v48, %v11867_v29  ;;  %v21718_v30 = vpop.xlane.xlu0 %9886 }
 0x513   : > { %v23544_v6 = vsub.f32 2.0, %v21330_v54  ;;  %v10165_v22 = vmul.f32 %v21506_v57, %v10101_v2  ;;  %v21648_v46 = vrot.slane %v12043_v53, %v16617_v13  ;;  %v21651_v42 = vrot.slane %v12044_v7, %v16617_v13  ;;  %14027 = vrot.lane.b32.xlu1 %v13029_v18, %s16367_s20  ;;  %v21667_v57 = vpop.eup %16303 }
 0x514   : > { %v21657_v32 = vmul.f32 %v21625_v59, %v21369_v11  ;;  %v21661_v54 = vrot.slane %v12059_v44, %v16617_v13  ;;  %v13386_v25 = vrot.slane %v13372_v0, %v16617_v13  ;;  %23545 = vst [vmem:[#allocation34_spill] sm:$0xff] %v21667_v57  ;;  %v11874_v11 = vrot.slane %v11860_v33, %v23481_v27  ;;  %v23546_v33 = vld [vmem:[#allocation19_spill] sm:$0xff] }
 0x515   : > { %v10163_v47 = vmul.f32 %v21308_v9, %v23544_v6  ;;  %v21664_v9 = vrot.slane %v12060_v19, %v16617_v13  ;;  %v13418_v18 = vrot.slane %v13404_v28, %v16617_v13  ;;  %v21676_v53 = vmul.f32 %v21304_v45, %v10164_v61 }
 0x516   : > { %v11908_v7 = vcombine.high %v21447_v48, %v11867_v29  ;;  %v21688_v6 = vmul.f32 %v21653_v1, %v21403_v31  ;;  %v21692_v28 = vmul.f32 %v21334_v17, %v23546_v33  ;;  %v21695_v45 = vrot.slane %v11907_v21, %v16617_v13  ;;  %v23548_v48 = vld [vmem:[#allocation22_spill] sm:$0xff] }
 0x517   : > { %v21684_v44 = vmul.f32 %v21315_v60, %v10163_v47  ;;  %v21697_v61 = vpop.eup %16305  ;;  %v21701_v0 = vmul.f32 %v21667_v57, %v21459_v51  ;;  %v21705_v60 = vmul.f32 %v21345_v40, %v23548_v48  ;;  %v21708_v31 = vmul.f32 %v21405_v38, %v10165_v22 }
 0x518   : > { %v21711_v29 = vrot.slane %v11908_v7, %v16617_v13  ;;  %v21713_v17 = vpop.f32.mrb[60].mxu1  ;;  %v16308_v21 = vpop.eup %16307  ;;  %v10109_v47 = vsub.f32 2.0, %v21657_v32  ;;  %v11923_v33 = vcombine.low %v21453_v49, %v11874_v11  ;;  %v11924_v51 = vcombine.high %v21453_v49, %v11874_v11 }
 0x519   : > { %23547 = vst [vmem:[#allocation88_spill] sm:$0xff] %v21701_v0  ;;  %v13437_v19 = vcombine.low %v13386_v25, %v13418_v18  ;;  %v21720_v40 = vpop.f32.mrb[61].mxu1  ;;  %v21729_v7 = vrot.slane %v13235_v37, %v16617_v13  ;;  %v13267_v32 = vcombine.low %v21614_v39, %v21631_v52  ;;  %v13438_v38 = vcombine.high %v13386_v25, %v13418_v18 }
 0x51a   : > { %v21722_v48 = vpop.eup %16309  ;;  %v21737_v2 = vrot.slane %v11923_v33, %v16617_v13  ;;  %v21740_v26 = vrot.slane %v11924_v51, %v16617_v13  ;;  %v10038_v36 = vmul.f32 %v16308_v21, %v21580_v34  ;;  %v13236_v11 = vcombine.high %v21534_v41, %v21577_v20 }
 0x51b   : > { %23549 = vst [vmem:[#allocation35_spill] sm:$0xff] %v21722_v48  ;;  %23550 = vst [vmem:[#allocation5_spill] sm:$0xff] %v21729_v7  ;;  %v21733_v49 = vpop.eup %16311  ;;  %14033 = vrot.lane.b32.xlu0 %v13437_v19, %s16367_s20  ;;  %v21748_v57 = vrot.slane %v13267_v32, %v16617_v13  ;;  %v21754_v33 = vmul.f32 %v21697_v61, %v21496_v23  ;;  %v13268_v18 = vcombine.high %v21614_v39, %v21631_v52 }
 0x51c   : > { %v21743_v22 = vpop.eup %16313  ;;  %v14886_v19 = vcombine.low %v21737_v2, %v21740_v26  ;;  %v14888_v25 = vcombine.high %v21737_v2, %v21740_v26  ;;  %v13250_v51 = vrot.slane %v13236_v11, %v16617_v13  ;;  %v23552_v20 = vsub.f32 2.0, %v21494_v12  ;;  %v21785_v12 = vpop.xlane.xlu0 %9907 }
 0x51d   : > { %23551 = vst [vmem:[#allocation15_spill] sm:$0xff] %v21748_v57  ;;  %v13300_v34 = vcombine.high %v21729_v7, %v21748_v57  ;;  %v23553_v23 = vsub.f32 2.0, %v21431_v5  ;;  %v21773_v37 = vmul.f32 %v21722_v48, %v21519_v16  ;;  %v21777_v39 = vmul.f32 %v21733_v49, %v21550_v62 }
 0x51e   : > { %v10172_v41 = vmul.f32 %v21437_v58, %v23552_v20  ;;  %v21781_v52 = vmul.f32 %v21743_v22, %v21605_v24  ;;  %v13282_v58 = vrot.slane %v13268_v18, %v16617_v13  ;;  %v10102_v5 = vsub.f32 2.0, %v10038_v36 }
 0x51f   : > { %v10171_v32 = vmul.f32 %v21377_v56, %v23553_v23  ;;  %23554 = vst [vmem:[#allocation87_spill] sm:$0xff] %v21773_v37  ;;  %14065 = vrot.lane.b32.xlu0 %v13438_v38, %s16369_s22  ;;  %13999 = vrot.lane.b32.xlu1 %v13300_v34, %s16368_s21  ;;  %v10173_v62 = vmul.f32 %v21625_v59, %v10109_v47  ;;  %16315 = vrcp.f32 %v21718_v30 }
 0x520   : > { %v21789_v56 = vmul.f32 %v21541_v14, %v10172_v41  ;;  %v13301_v11 = vcombine.low %v13250_v51, %v13282_v58  ;;  %v13302_v24 = vcombine.high %v13250_v51, %v13282_v58  ;;  %v11778_v38 = vmul.f32 %v21623_v15, %v21255_v35  ;;  %v21817_v20 = vpop.xlane.xlu0 %9904 }
 0x521   : > { %v21792_v16 = vmul.f32 %v21556_v10, %v10171_v32  ;;  %v11777_v18 = vmul.f32 %v21637_v43, %v21262_v4  ;;  %v21808_v47 = vmul.f32 %v21596_v3, %v10173_v62  ;;  %v10166_v51 = vmul.f32 %v16308_v21, %v10102_v5  ;;  %v21834_v62 = vpop.xlane.xlu1 %9919 }
 0x522   : > { %v12491_v36 = vcombine.low %v21676_v53, %v21789_v56  ;;  %v12492_v14 = vcombine.high %v21676_v53, %v21789_v56  ;;  %v12267_v35 = vcombine.low %v21692_v28, %v11778_v38  ;;  %v12268_v15 = vcombine.high %v21692_v28, %v11778_v38 }
 0x523   : > { %v12355_v10 = vcombine.low %v21684_v44, %v21792_v16  ;;  %v12131_v4 = vcombine.low %v21705_v60, %v11777_v18  ;;  %14031 = vrot.lane.b32.xlu1 %v13301_v11, %s16367_s20  ;;  %v23555_v21 = vcombine.low %v21648_v46, %v21651_v42  ;;  %v12132_v5 = vcombine.high %v21705_v60, %v11777_v18 }
 0x524   : > { %v12275_v28 = vrot.slane %v12267_v35, %v23481_v27  ;;  %v12282_v23 = vrot.slane %v12268_v15, %v23481_v27  ;;  %v23556_v11 = vcombine.high %v21648_v46, %v21651_v42  ;;  %v23557_v35 = vcombine.low %v21661_v54, %v21664_v9 }
 0x525   : > { %v21830_v58 = vrot.slane %v23555_v21, %v23481_v27  ;;  %v12139_v56 = vrot.slane %v12131_v4, %v23481_v27  ;;  %v21851_v18 = vmul.f32 %v21384_v63, %v10166_v51  ;;  %v23558_v4 = vcombine.high %v21661_v54, %v21664_v9  ;;  %v23559_v63 = vld [vmem:[#allocation11_spill] sm:$0xff]  ;;  %v21886_v53 = vpop.xlane.xlu1 %9916 }
 0x526   : > { %v21840_v38 = vrot.slane %v23556_v11, %v23481_v27  ;;  %v21846_v15 = vrot.slane %v23557_v35, %v23481_v27  ;;  %v12315_v21 = vcombine.low %v21465_v55, %v12275_v28  ;;  %v12316_v60 = vcombine.high %v21465_v55, %v12275_v28 }
 0x527   : > { %v21857_v46 = vrot.slane %v23558_v4, %v23481_v27  ;;  %14063 = vrot.lane.b32.xlu1 %v13302_v24, %s16369_s22  ;;  %v12331_v42 = vcombine.low %v21471_v8, %v12282_v23  ;;  %v12332_v11 = vcombine.high %v21471_v8, %v12282_v23  ;;  %v12179_v51 = vcombine.low %v23559_v63, %v12139_v56 }
 0x528   : > { %v12323_v35 = vrot.slane %v12315_v21, %v16617_v13  ;;  %v12330_v55 = vrot.slane %v12316_v60, %v16617_v13  ;;  %v23560_v54 = vcombine.low %v21695_v45, %v21711_v29  ;;  %v12146_v8 = vrot.slane %v12132_v5, %v23481_v27  ;;  %v21881_v60 = vpop.xlane.xlu0 %9913 }
 0x529   : > { %v12339_v24 = vrot.slane %v12331_v42, %v16617_v13  ;;  %v12346_v28 = vrot.slane %v12332_v11, %v16617_v13  ;;  %v23561_v23 = vcombine.high %v21695_v45, %v21711_v29  ;;  %v12180_v32 = vcombine.high %v23559_v63, %v12139_v56 }
 0x52a   : > { %v21870_v9 = vrot.slane %v23560_v54, %v23481_v27  ;;  %v14906_v4 = vcombine.low %v12323_v35, %v12330_v55  ;;  %v14908_v34 = vcombine.high %v12323_v35, %v12330_v55  ;;  %16317 = vrcp.f32 %v21785_v12  ;;  %v23562_v35 = vld [vmem:[#allocation38_spill] sm:$0xff] }
 0x52b   : > { %v21879_v21 = vrot.slane %v23561_v23, %v23481_v27  ;;  %v14910_v54 = vcombine.low %v12339_v24, %v12346_v28  ;;  %v14912_v42 = vcombine.high %v12339_v24, %v12346_v28  ;;  %v12187_v11 = vrot.slane %v12179_v51, %v16617_v13 }
 0x52c   : > { %v12946_v45 = vrot.slane %v14886_v19, %v23481_v27  ;;  %v12962_v29 = vrot.slane %v14888_v25, %v23481_v27  ;;  %16319 = vrcp.f32 %v21817_v20  ;;  %v12194_v5 = vrot.slane %v12180_v32, %v16617_v13 }
 0x52d   : > { %v21899_v56 = vrot.slane %v12491_v36, %v23481_v27  ;;  %16321 = vrcp.f32 %v21881_v60  ;;  %v12195_v55 = vcombine.low %v23562_v35, %v12146_v8  ;;  %v12196_v63 = vcombine.high %v23562_v35, %v12146_v8 }
 0x52e   : > { %v14898_v51 = vcombine.low %v12187_v11, %v12194_v5  ;;  %v14900_v19 = vcombine.high %v12187_v11, %v12194_v5  ;;  %v13115_v24 = vcombine.low %v21830_v58, %v21840_v38  ;;  %v13147_v26 = vcombine.low %v21846_v15, %v21857_v46 }
 0x52f   : > { %v21909_v2 = vrot.slane %v12492_v14, %v23481_v27  ;;  %v12203_v25 = vrot.slane %v12195_v55, %v16617_v13  ;;  %v12210_v36 = vrot.slane %v12196_v63, %v16617_v13  ;;  %v12979_v32 = vcombine.low %v21870_v9, %v21879_v21  ;;  %v21927_v55 = vpop.xlane.xlu1 %9877  ;;  %v21929_v63 = vpop.eup %16315 }
 0x530   : > { %v21916_v28 = vrot.slane %v14906_v4, %v23481_v27  ;;  %v21919_v8 = vrot.slane %v14908_v34, %v23481_v27  ;;  %16323 = vrcp.f32 %v21834_v62  ;;  %v13123_v23 = vrot.slane %v13115_v24, %v16617_v13 }
 0x531   : > { %v21924_v14 = vrot.slane %v14910_v54, %v23481_v27  ;;  %v14902_v11 = vcombine.low %v12203_v25, %v12210_v36  ;;  %v14904_v5 = vcombine.high %v12203_v25, %v12210_v36  ;;  %v13155_v35 = vrot.slane %v13147_v26, %v16617_v13 }
 0x532   : > { %v21932_v4 = vrot.slane %v14898_v51, %v23481_v27  ;;  %v21935_v34 = vrot.slane %v14900_v19, %v23481_v27  ;;  %v21938_v43 = vrot.slane %v12979_v32, %v16617_v13  ;;  %v13011_v24 = vcombine.low %v12946_v45, %v12962_v29  ;;  %v21950_v19 = vpop.xlane.xlu0 %9910 }
 0x533   : > { %v21941_v54 = vrot.slane %v14912_v42, %v23481_v27  ;;  %v13167_v25 = vcombine.low %v13123_v23, %v13155_v35  ;;  %16325 = vrcp.f32 %v21886_v53  ;;  %v13168_v26 = vcombine.high %v13123_v23, %v13155_v35  ;;  %v22004_v37 = vpop.xlane.xlu1 %9898 }
 0x534   : > { %v13218_v36 = vrot.slane %v14902_v11, %v23481_v27  ;;  %v13234_v41 = vrot.slane %v14904_v5, %v23481_v27  ;;  %v21947_v51 = vrot.slane %v13011_v24, %v16617_v13  ;;  %16327 = vrcp.f32 %v21927_v55  ;;  %v21954_v3 = vpop.eup %16317 }
 0x535   : > { %14093 = vrot.lane.b32.xlu0 %v13167_v25, %s16370_s23  ;;  %v12980_v42 = vcombine.high %v21870_v9, %v21879_v21  ;;  %v13012_v23 = vcombine.high %v12946_v45, %v12962_v29  ;;  %v13116_v11 = vcombine.high %v21830_v58, %v21840_v38  ;;  %v13148_v5 = vcombine.high %v21846_v15, %v21857_v46 }
 0x536   : > { %v21952_v32 = vpop.f32.mrb[62].mxu1  ;;  %v21965_v24 = vpop.eup %16319  ;;  %v21971_v59 = vrot.slane %v12355_v10, %v23481_v27  ;;  %v13032_v9 = vcombine.high %v21938_v43, %v21947_v51  ;;  %v13251_v58 = vcombine.low %v21932_v4, %v21935_v34  ;;  %v13283_v25 = vcombine.low %v13218_v36, %v13234_v41 }
 0x537   : > { %v21963_v35 = vpop.f32.mrb[63].mxu1  ;;  %v21979_v38 = vpop.eup %16321  ;;  %v12994_v15 = vrot.slane %v12980_v42, %v16617_v13  ;;  %v13026_v46 = vrot.slane %v13012_v23, %v16617_v13  ;;  %v13130_v45 = vrot.slane %v13116_v11, %v16617_v13  ;;  %v13162_v10 = vrot.slane %v13148_v5, %v16617_v13 }
 0x538   : > { %23563 = vst [vmem:[#allocation86_spill] sm:$0xff] %v21971_v59  ;;  %23564 = vst [vmem:[#allocation42_spill] sm:$0xff] %v21979_v38  ;;  %14123 = vrot.lane.b32.xlu1 %v13032_v9, %s16371_s24  ;;  %v21987_v29 = vrot.slane %v13251_v58, %v16617_v13  ;;  %v13387_v21 = vcombine.low %v21916_v28, %v21919_v8  ;;  %v13419_v7 = vcombine.low %v21924_v14, %v21941_v54 }
 0x539   : > { %14125 = vrot.lane.b32.xlu0 %v13168_v26, %s16371_s24  ;;  %v13033_v23 = vcombine.low %v12994_v15, %v13026_v46  ;;  %v13169_v11 = vcombine.low %v13130_v45, %v13162_v10  ;;  %v13034_v57 = vcombine.high %v12994_v15, %v13026_v46  ;;  %v13170_v5 = vcombine.high %v13130_v45, %v13162_v10  ;;  %v22015_v46 = vpop.xlane.xlu0 %9931 }
 0x53a   : > { %v21996_v9 = vpop.eup %16323  ;;  %v23565_v58 = vcombine.high %v21684_v44, %v21792_v16  ;;  %v22007_v59 = vrot.slane %v13283_v25, %v16617_v13  ;;  %v22010_v26 = vrot.slane %v13387_v21, %v16617_v13  ;;  %v22013_v15 = vrot.slane %v13419_v7, %v16617_v13 }
 0x53b   : > { %v22019_v45 = vmul.f32 %v21929_v63, %v21718_v30  ;;  %v13252_v44 = vcombine.high %v21932_v4, %v21935_v34  ;;  %v13284_v16 = vcombine.high %v13218_v36, %v13234_v41  ;;  %v13388_v10 = vcombine.high %v21916_v28, %v21919_v8 }
 0x53c   : > { %v22002_v48 = vrot.slane %v23565_v58, %v23481_v27  ;;  %v23566_v21 = vcombine.low %v21708_v31, %v21808_v47  ;;  %14155 = vrot.lane.b32.xlu1 %v13033_v23, %s16372_s25  ;;  %v13303_v30 = vcombine.low %v21987_v29, %v22007_v59  ;;  %v13304_v41 = vcombine.high %v21987_v29, %v22007_v59 }
 0x53d   : > { %v15616_v42 = vpop.f32.mrb[64].mxu1  ;;  %v22038_v4 = vpop.eup %16325  ;;  %14157 = vrot.lane.b32.xlu0 %v13169_v11, %s16372_s25  ;;  %16329 = vrcp.f32 %v22004_v37  ;;  %v22045_v8 = vrot.slane %v13252_v44, %v16617_v13  ;;  %v22048_v34 = vrot.slane %v13284_v16, %v16617_v13  ;;  %v22052_v23 = vmul.f32 %v21954_v3, %v21785_v12 }
 0x53e   : > { %v21994_v0 = vpop.f32.mrb[65].mxu1  ;;  %v22029_v25 = vrot.slane %v23566_v21, %v23481_v27  ;;  %v16328_v36 = vpop.eup %16327  ;;  %v22056_v59 = vmul.f32 %v21965_v24, %v21817_v20  ;;  %v22059_v29 = vrot.slane %v13388_v10, %v16617_v13  ;;  %v13420_v11 = vcombine.high %v21924_v14, %v21941_v54  ;;  %v23568_v20 = vld [vmem:[#allocation10_spill] sm:$0xff] }
 0x53f   : > { %v10046_v58 = vmul.f32 %v16328_v36, %v21927_v55  ;;  %16331 = vrcp.f32 %v21950_v19  ;;  %v22067_v16 = vpop.xlane.xlu1 %9922  ;;  %v23567_v10 = vcombine.high %v21708_v31, %v21808_v47  ;;  %v22080_v14 = vmul.f32 %v21979_v38, %v21881_v60  ;;  %v22086_v54 = vpop.xlane.xlu0 %9928  ;;  %v23570_v47 = vld [vmem:[#allocation12_spill] sm:$0xff] }
 0x540   : > { %14187 = vrot.lane.b32.xlu1 %v13034_v57, %s16373_s27  ;;  %v22084_v55 = vrot.slane %v13420_v11, %v16617_v13  ;;  %v22090_v12 = vmul.f32 %v21996_v9, %v21834_v62  ;;  %v23569_v31 = vsub.f32 2.0, %v23568_v20  ;;  %v23571_v60 = vsub.f32 2.0, %v21754_v33 }
 0x541   : > { %v22076_v21 = vrot.slane %v23567_v10, %v23481_v27  ;;  %v10110_v28 = vsub.f32 2.0, %v10046_v58  ;;  %14189 = vrot.lane.b32.xlu0 %v13170_v5, %s16373_s27  ;;  %v22104_v7 = vmul.f32 %v22038_v4, %v21886_v53  ;;  %v23574_v53 = vld [vmem:[#allocation36_spill] sm:$0xff]  ;;  %16333 = vrcp.f32 %v22015_v46 }
 0x542   : > { %v10168_v10 = vmul.f32 %v23570_v47, %v23569_v31  ;;  %v10176_v57 = vmul.f32 %v21697_v61, %v23571_v60  ;;  %v23572_v60 = vld [vmem:[#allocation40_spill] sm:$0xff]  ;;  %v23575_v58 = vsub.f32 2.0, %v21777_v39  ;;  %16335 = vrcp.f32 %v22067_v16 }
 0x543   : > { %v10174_v5 = vmul.f32 %v16328_v36, %v10110_v28  ;;  %v23573_v11 = vsub.f32 2.0, %v23572_v60  ;;  %v22131_v28 = vpop.xlane.xlu1 %9901  ;;  %16337 = vrcp.f32 %v22086_v54 }
 0x544   : > { %v11784_v61 = vmul.f32 %v21713_v17, %v10168_v10  ;;  %v11792_v31 = vmul.f32 %v15616_v42, %v10176_v57  ;;  %14095 = vrot.lane.b32.xlu1 %v13303_v30, %s16370_s23  ;;  %v10175_v62 = vmul.f32 %v21733_v49, %v23575_v58  ;;  %v23576_v42 = vcombine.low %v21938_v43, %v21947_v51  ;;  %v22138_v57 = vpop.xlane.xlu0 %9937 }
 0x545   : > { %v10167_v38 = vmul.f32 %v23574_v53, %v23573_v11  ;;  %v22125_v17 = vmul.f32 %v21589_v50, %v10174_v5  ;;  %16339 = vrcp.f32 %v22131_v28 }
 0x546   : > { %v22099_v44 = vpop.f32.mrb[66].mxu1  ;;  %14091 = vrot.lane.b32.xlu0 %v23576_v42, %s16370_s23  ;;  %v12507_v36 = vcombine.low %v11784_v61, %v11792_v31  ;;  %v12508_v30 = vcombine.high %v11784_v61, %v11792_v31  ;;  %v11791_v50 = vmul.f32 %v21994_v0, %v10175_v62  ;;  %v23579_v62 = vld [vmem:[#allocation41_spill] sm:$0xff]  ;;  %16341 = vrcp.f32 %v22138_v57 }
 0x547   : > { %v22110_v20 = vpop.f32.mrb[67].mxu1  ;;  %v11783_v49 = vmul.f32 %v21720_v40, %v10167_v38  ;;  %v22143_v43 = vpop.eup %16329  ;;  %v12763_v51 = vcombine.low %v21851_v18, %v22125_v17  ;;  %v23577_v38 = vld [vmem:[#allocation39_spill] sm:$0xff] }
 0x548   : > { %v22133_v10 = vpop.f32.mrb[60].mxu0  ;;  %v12515_v61 = vrot.slane %v12507_v36, %v23481_v27  ;;  %v12522_v40 = vrot.slane %v12508_v30, %v23481_v27  ;;  %14127 = vrot.lane.b32.xlu1 %v13304_v41, %s16371_s24  ;;  %v23578_v0 = vsub.f32 2.0, %v23577_v38  ;;  %v23581_v36 = vcombine.low %v22010_v26, %v22013_v15 }
 0x549   : > { %v22141_v11 = vpop.f32.mrb[61].mxu0  ;;  %v12371_v31 = vcombine.low %v11783_v49, %v11791_v50  ;;  %v12372_v60 = vcombine.high %v11783_v49, %v11791_v50  ;;  %v22158_v42 = vpop.eup %16331  ;;  %v22174_v50 = vmul.f32 %v22143_v43, %v22004_v37 }
 0x54a   : > { %v10170_v5 = vmul.f32 %v23579_v62, %v23578_v0  ;;  %23580 = vst [vmem:[#allocation85_spill] sm:$0xff] %v22158_v42  ;;  %14097 = vrot.lane.b32.xlu0 %v23581_v36, %s16370_s23  ;;  %v12555_v41 = vcombine.low %v21899_v56, %v12515_v61  ;;  %v12556_v30 = vcombine.high %v21899_v56, %v12515_v61  ;;  %v23583_v36 = vsub.f32 2.0, %v21688_v6  ;;  %v22184_v56 = vpop.xlane.xlu1 %9925 }
 0x54b   : > { %v12571_v38 = vcombine.low %v21909_v2, %v12522_v40  ;;  %v12572_v39 = vcombine.high %v21909_v2, %v12522_v40  ;;  %v23586_v2 = vcombine.low %v22045_v8, %v22048_v34  ;;  %v22203_v40 = vpop.xlane.xlu0 %9934  ;;  %16343 = vrcp.f32 %v22184_v56 }
 0x54c   : > { %v11786_v62 = vmul.f32 %v21952_v32, %v10170_v5  ;;  %v10169_v47 = vmul.f32 %v21653_v1, %v23583_v36  ;;  %v22187_v61 = vrot.slane %v12555_v41, %v16617_v13  ;;  %v22190_v37 = vrot.slane %v12556_v30, %v16617_v13 }
 0x54d   : > { %v23585_v32 = vsub.f32 2.0, %v21781_v52  ;;  %v22197_v1 = vmul.f32 %v22158_v42, %v21950_v19  ;;  %14159 = vrot.lane.b32.xlu1 %v23586_v2, %s16372_s25  ;;  %v22206_v5 = vrot.slane %v12571_v38, %v16617_v13  ;;  %v22209_v41 = vrot.slane %v12572_v39, %v16617_v13  ;;  %v23590_v2 = vld [vmem:[#allocation86_spill] sm:$0xff] }
 0x54e   : > { %v22156_v53 = vpop.f32.mrb[68].mxu1  ;;  %v22168_v0 = vpop.f32.mrb[62].mxu0  ;;  %v12379_v52 = vrot.slane %v12371_v31, %v23481_v27  ;;  %v22217_v19 = vmul.f32 %v21963_v35, %v10169_v47  ;;  %v14921_v30 = vcombine.low %v22187_v61, %v22190_v37  ;;  %v14923_v38 = vcombine.high %v22187_v61, %v22190_v37  ;;  %v23594_v35 = vld [vmem:[#allocation88_spill] sm:$0xff] }
 0x54f   : > { %23582 = vst [vmem:[#allocation43_spill] sm:$0xff] %v22168_v0  ;;  %v22170_v49 = vpop.f32.mrb[69].mxu1  ;;  %v22181_v33 = vpop.f32.mrb[63].mxu0  ;;  %v10178_v6 = vmul.f32 %v21743_v22, %v23585_v32  ;;  %v23587_v22 = vcombine.high %v22010_v26, %v22013_v15  ;;  %v23588_v36 = vsub.f32 2.0, %v22019_v45  ;;  %16345 = vrcp.f32 %v22203_v40 }
 0x550   : > { %23584 = vst [vmem:[#allocation20_spill] sm:$0xff] %v22181_v33  ;;  %v22226_v32 = vpop.eup %16333  ;;  %v12386_v45 = vrot.slane %v12372_v60, %v23481_v27  ;;  %v23589_v37 = vcombine.high %v22045_v8, %v22048_v34  ;;  %v23595_v26 = vsub.f32 2.0, %v23594_v35  ;;  %v23596_v60 = vld [vmem:[#allocation34_spill] sm:$0xff]  ;;  %v12420_v8 = vcombine.high %v23590_v2, %v12379_v52 }
 0x551   : > { %14129 = vrot.lane.b32.xlu0 %v23587_v22, %s16371_s24  ;;  %v10177_v39 = vmul.f32 %v21929_v63, %v23588_v36  ;;  %v11794_v15 = vmul.f32 %v22099_v44, %v10178_v6  ;;  %v22238_v31 = vpop.eup %16335  ;;  %v12419_v22 = vcombine.low %v23590_v2, %v12379_v52  ;;  %v23591_v44 = vld [vmem:[#allocation87_spill] sm:$0xff] }
 0x552   : > { %14191 = vrot.lane.b32.xlu1 %v23589_v37, %s16373_s27  ;;  %v23592_v6 = vsub.f32 2.0, %v23591_v44  ;;  %v23593_v36 = vld [vmem:[#allocation35_spill] sm:$0xff]  ;;  %v10179_v58 = vmul.f32 %v23596_v60, %v23595_v26  ;;  %v12435_v34 = vcombine.low %v22002_v48, %v12386_v45  ;;  %v12436_v37 = vcombine.high %v22002_v48, %v12386_v45  ;;  %v22263_v44 = vpop.eup %16337 }
 0x553   : > { %v11793_v63 = vmul.f32 %v22110_v20, %v10177_v39  ;;  %v22254_v20 = vmul.f32 %v22226_v32, %v22015_v46  ;;  %v23597_v39 = vcombine.low %v22059_v29, %v22084_v55  ;;  %v12427_v35 = vrot.slane %v12419_v22, %v16617_v13 }
 0x554   : > { %v10180_v47 = vmul.f32 %v23593_v36, %v23592_v6  ;;  %v12771_v26 = vrot.slane %v12763_v51, %v23481_v27  ;;  %v12779_v6 = vcombine.low %v11786_v62, %v11794_v15  ;;  %v12780_v46 = vcombine.high %v11786_v62, %v11794_v15  ;;  %v22267_v36 = vpop.eup %16339 }
 0x555   : > { %14161 = vrot.lane.b32.xlu0 %v23597_v39, %s16372_s25  ;;  %v12434_v60 = vrot.slane %v12420_v8, %v16617_v13  ;;  %v12443_v39 = vrot.slane %v12435_v34, %v16617_v13  ;;  %v12450_v52 = vrot.slane %v12436_v37, %v16617_v13  ;;  %v12643_v2 = vcombine.low %v22217_v19, %v11793_v63  ;;  %v22284_v8 = vpop.eup %16341 }
 0x556   : > { %v23598_v48 = vcombine.high %v21851_v18, %v22125_v17  ;;  %v12787_v51 = vrot.slane %v12779_v6, %v23481_v27  ;;  %v12794_v62 = vrot.slane %v12780_v46, %v23481_v27  ;;  %v12644_v15 = vcombine.high %v22217_v19, %v11793_v63 }
 0x557   : > { %v23599_v34 = vcombine.high %v22059_v29, %v22084_v55  ;;  %v14913_v37 = vcombine.low %v12427_v35, %v12434_v60  ;;  %v14915_v33 = vcombine.high %v12427_v35, %v12434_v60  ;;  %v14917_v0 = vcombine.low %v12443_v39, %v12450_v52  ;;  %v22303_v35 = vpop.eup %16343 }
 0x558   : > { %v12778_v45 = vrot.slane %v23598_v48, %v23481_v27  ;;  %v14919_v18 = vcombine.high %v12443_v39, %v12450_v52  ;;  %v12827_v17 = vcombine.low %v12771_v26, %v12787_v51  ;;  %v12828_v48 = vcombine.high %v12771_v26, %v12787_v51 }
 0x559   : > { %v22273_v61 = vpop.f32.mrb[64].mxu0  ;;  %14193 = vrot.lane.b32.xlu0 %v23599_v34, %s16373_s27  ;;  %v22292_v19 = vmul.f32 %v22238_v31, %v22067_v16  ;;  %v22296_v63 = vmul.f32 %v22263_v44, %v22086_v54  ;;  %v22300_v29 = vmul.f32 %v22267_v36, %v22131_v28  ;;  %v13587_v55 = vrot.slane %v14921_v30, %v23481_v27  ;;  %v22309_v39 = vpop.eup %16345 }
 0x55a   : > { %v22282_v22 = vpop.f32.mrb[65].mxu0  ;;  %v12843_v6 = vcombine.low %v12778_v45, %v12794_v62  ;;  %v12844_v42 = vcombine.high %v12778_v45, %v12794_v62  ;;  %v12835_v26 = vrot.slane %v12827_v17, %v16617_v13  ;;  %v12842_v46 = vrot.slane %v12828_v48, %v16617_v13 }
 0x55b   : > { %v13603_v54 = vrot.slane %v14923_v38, %v23481_v27  ;;  %v12651_v52 = vrot.slane %v12643_v2, %v23481_v27  ;;  %v12658_v28 = vrot.slane %v12644_v15, %v23481_v27  ;;  %v22315_v30 = vmul.f32 %v22141_v11, %v10179_v58 }
 0x55c   : > { %v12851_v60 = vrot.slane %v12843_v6, %v16617_v13  ;;  %v12858_v16 = vrot.slane %v12844_v42, %v16617_v13  ;;  %v14937_v45 = vcombine.low %v12835_v26, %v12842_v46  ;;  %v14939_v51 = vcombine.high %v12835_v26, %v12842_v46 }
 0x55d   : > { %v12691_v17 = vcombine.low %v22029_v25, %v12651_v52  ;;  %v12692_v48 = vcombine.high %v22029_v25, %v12651_v52  ;;  %v12707_v42 = vcombine.low %v22076_v21, %v12658_v28  ;;  %v12708_v6 = vcombine.high %v22076_v21, %v12658_v28 }
 0x55e   : > { %v14941_v62 = vcombine.low %v12851_v60, %v12858_v16  ;;  %v14943_v34 = vcombine.high %v12851_v60, %v12858_v16  ;;  %v23600_v38 = vcombine.low %v22206_v5, %v22209_v41  ;;  %v23601_v11 = vcombine.high %v22206_v5, %v22209_v41 }
 0x55f   : > { %v13451_v15 = vrot.slane %v14913_v37, %v23481_v27  ;;  %v22331_v26 = vmul.f32 %v22133_v10, %v10180_v47  ;;  %v12699_v25 = vrot.slane %v12691_v17, %v16617_v13  ;;  %v12706_v46 = vrot.slane %v12692_v48, %v16617_v13 }
 0x560   : > { %v13619_v2 = vrot.slane %v23600_v38, %v23481_v27  ;;  %v13635_v58 = vrot.slane %v23601_v11, %v23481_v27  ;;  %v12715_v21 = vrot.slane %v12707_v42, %v16617_v13  ;;  %v12722_v60 = vrot.slane %v12708_v6, %v16617_v13 }
 0x561   : > { %v13467_v16 = vrot.slane %v14915_v33, %v23481_v27  ;;  %v13483_v52 = vrot.slane %v14917_v0, %v23481_v27  ;;  %v13499_v5 = vrot.slane %v14919_v18, %v23481_v27  ;;  %v22341_v41 = vrot.slane %v14937_v45, %v23481_v27 }
 0x562   : > { %v14929_v37 = vcombine.low %v12699_v25, %v12706_v46  ;;  %v14931_v10 = vcombine.high %v12699_v25, %v12706_v46  ;;  %v14933_v47 = vcombine.low %v12715_v21, %v12722_v60  ;;  %v14935_v28 = vcombine.high %v12715_v21, %v12722_v60 }
 0x563   : > { %v22344_v17 = vrot.slane %v14939_v51, %v23481_v27  ;;  %v22347_v48 = vrot.slane %v14941_v62, %v23481_v27  ;;  %v22350_v42 = vrot.slane %v14943_v34, %v23481_v27  ;;  %v13643_v33 = vcombine.low %v13587_v55, %v13603_v54 }
 0x564   : > { %v22353_v0 = vrot.slane %v14929_v37, %v23481_v27  ;;  %v22356_v18 = vrot.slane %v14931_v10, %v23481_v27  ;;  %v22359_v45 = vrot.slane %v14933_v47, %v23481_v27  ;;  %v22362_v6 = vrot.slane %v14935_v28, %v23481_v27 }
 0x565   : > { %v22365_v51 = vrot.slane %v13643_v33, %v16617_v13  ;;  %v13675_v62 = vcombine.low %v13619_v2, %v13635_v58  ;;  %v13507_v38 = vcombine.low %v13451_v15, %v13467_v16  ;;  %v13539_v34 = vcombine.low %v13483_v52, %v13499_v5 }
 0x566   : > { %v13644_v11 = vcombine.high %v13587_v55, %v13603_v54  ;;  %v13676_v25 = vcombine.high %v13619_v2, %v13635_v58  ;;  %v13508_v46 = vcombine.high %v13451_v15, %v13467_v16  ;;  %v13540_v21 = vcombine.high %v13483_v52, %v13499_v5 }
 0x567   : > { %v22368_v60 = vrot.slane %v13675_v62, %v16617_v13  ;;  %v22371_v37 = vrot.slane %v13507_v38, %v16617_v13  ;;  %v22374_v10 = vrot.slane %v13539_v34, %v16617_v13  ;;  %v23602_v47 = vsub.f32 2.0, %v22090_v12 }
 0x568   : > { %v13658_v33 = vrot.slane %v13644_v11, %v16617_v13  ;;  %v13690_v55 = vrot.slane %v13676_v25, %v16617_v13  ;;  %v13522_v54 = vrot.slane %v13508_v46, %v16617_v13  ;;  %v13554_v2 = vrot.slane %v13540_v21, %v16617_v13 }
 0x569   : > { %v10188_v28 = vmul.f32 %v21996_v9, %v23602_v47  ;;  %v13708_v58 = vcombine.high %v22365_v51, %v22368_v60  ;;  %v13572_v15 = vcombine.high %v22371_v37, %v22374_v10  ;;  %v23603_v12 = vsub.f32 2.0, %v22104_v7 }
 0x56a   : > { %v13709_v52 = vcombine.low %v13658_v33, %v13690_v55  ;;  %v13573_v5 = vcombine.low %v13522_v54, %v13554_v2  ;;  %v13710_v62 = vcombine.high %v13658_v33, %v13690_v55  ;;  %v13574_v38 = vcombine.high %v13522_v54, %v13554_v2 }
 0x56b   : > { %v11804_v16 = vmul.f32 %v22273_v61, %v10188_v28  ;;  %v10187_v9 = vmul.f32 %v22038_v4, %v23603_v12  ;;  %v10128_v34 = vsub.f32 2.0, %v22254_v20  ;;  %14005 = vrot.lane.b32.xlu0 %v13708_v58, %s16368_s21  ;;  %14003 = vrot.lane.b32.xlu1 %v13572_v15, %s16368_s21  ;;  %v13915_v7 = vcombine.low %v22341_v41, %v22344_v17 }
 0x56c   : > { %v13947_v4 = vcombine.low %v22347_v48, %v22350_v42  ;;  %v13779_v46 = vcombine.low %v22353_v0, %v22356_v18  ;;  %v13811_v20 = vcombine.low %v22359_v45, %v22362_v6  ;;  %v10118_v21 = vsub.f32 2.0, %v22300_v29 }
 0x56d   : > { %v12523_v11 = vcombine.low %v22331_v26, %v11804_v16  ;;  %v12524_v25 = vcombine.high %v22331_v26, %v11804_v16  ;;  %v11803_v61 = vmul.f32 %v22282_v22, %v10187_v9  ;;  %v10066_v47 = vmul.f32 %v22284_v8, %v22138_v57 }
 0x56e   : > { %v22411_v28 = vrot.slane %v13915_v7, %v16617_v13  ;;  %v22414_v33 = vrot.slane %v13947_v4, %v16617_v13  ;;  %v22417_v55 = vrot.slane %v13779_v46, %v16617_v13  ;;  %v22420_v54 = vrot.slane %v13811_v20, %v16617_v13  ;;  %v14274_v7 = vld [vmem:[%s22812_s3 + $0x10] sm:$0xff]  ;;  %v14275_v4 = vld [vmem:[%s22812_s3 + $0x18] sm:$0xff] }
 0x56f   : > { %v12387_v26 = vcombine.low %v22315_v30, %v11803_v61  ;;  %v12388_v22 = vcombine.high %v22315_v30, %v11803_v61  ;;  %v10127_v29 = vsub.f32 2.0, %v22296_v63  ;;  %v22425_v57 = vmul.f32 %v22303_v35, %v22184_v56  ;;  %14037 = vrot.lane.b32.xlu0 %v13709_v52, %s16367_s20  ;;  %14035 = vrot.lane.b32.xlu1 %v13573_v5, %s16367_s20 }
 0x570   : > { %v22429_v30 = vmul.f32 %v22309_v39, %v22203_v40  ;;  %v13916_v2 = vcombine.high %v22341_v41, %v22344_v17  ;;  %v13980_v58 = vcombine.high %v22411_v28, %v22414_v33  ;;  %v13844_v63 = vcombine.high %v22417_v55, %v22420_v54  ;;  %v15647_v15 = vpop.f32.mrb[70].mxu1 }
 0x571   : > { %v13948_v56 = vcombine.high %v22347_v48, %v22350_v42  ;;  %v13780_v40 = vcombine.high %v22353_v0, %v22356_v18  ;;  %v23604_v16 = vsub.f32 2.0, %v22052_v23  ;;  %v23605_v9 = vsub.f32 2.0, %v22056_v59  ;;  %v11544_v5 = vpop.f32.mrb[71].mxu1 }
 0x572   : > { %v22450_v17 = vrot.slane %v13916_v2, %v16617_v13  ;;  %v13812_v52 = vcombine.high %v22359_v45, %v22362_v6  ;;  %v22455_v48 = vmul.f32 %v22267_v36, %v10118_v21  ;;  %v23606_v42 = vsub.f32 2.0, %v22174_v50  ;;  %v23608_v21 = vld [vmem:[#allocation42_spill] sm:$0xff] }
 0x573   : > { %v10184_v12 = vmul.f32 %v21954_v3, %v23604_v16  ;;  %v10183_v41 = vmul.f32 %v21965_v24, %v23605_v9  ;;  %v22463_v3 = vrot.slane %v13948_v56, %v16617_v13  ;;  %v22466_v24 = vrot.slane %v13780_v40, %v16617_v13  ;;  %14069 = vrot.lane.b32.xlu0 %v13710_v62, %s16369_s22  ;;  %v14273_v62 = vld [vmem:[%s22812_s3 + $0x8] sm:$0xff]  ;;  %v23610_v16 = vld [vmem:[#allocation85_spill] sm:$0xff] }
 0x574   : > { %v22460_v23 = vmul.f32 %v22143_v43, %v23606_v42  ;;  %v10130_v59 = vsub.f32 2.0, %v10066_v47  ;;  %14067 = vrot.lane.b32.xlu1 %v13574_v38, %s16369_s22  ;;  %v22473_v50 = vrot.slane %v13812_v52, %v16617_v13  ;;  %v12531_v43 = vrot.slane %v12523_v11, %v23481_v27 }
 0x575   : > { %v11800_v0 = vmul.f32 %v22156_v53, %v10184_v12  ;;  %v11799_v18 = vmul.f32 %v22170_v49, %v10183_v41  ;;  %v13981_v36 = vcombine.low %v22450_v17, %v22463_v3  ;;  %v13982_v45 = vcombine.high %v22450_v17, %v22463_v3  ;;  %v15672_v53 = vpop.f32.mrb[72].mxu1  ;;  %v14272_v49 = vld [vmem:[%s22812_s3] sm:$0xff] }
 0x576   : > { %v10192_v6 = vmul.f32 %v22226_v32, %v10128_v34  ;;  %v22488_v38 = vrot.slane %v12524_v25, %v23481_v27  ;;  %v13845_v11 = vcombine.low %v22466_v24, %v22473_v50  ;;  %v13846_v61 = vcombine.high %v22466_v24, %v22473_v50  ;;  %v11728_v34 = vpop.f32.mrb[73].mxu1 }
 0x577   : > { %v10191_v32 = vmul.f32 %v22263_v44, %v10127_v29  ;;  %v12395_v25 = vrot.slane %v12387_v26, %v23481_v27  ;;  %v22503_v46 = vrot.slane %v12388_v22, %v23481_v27  ;;  %v23607_v20 = vsub.f32 2.0, %v22080_v14  ;;  %14009 = vrot.lane.b32.xlu0 %v13980_v58, %s16368_s21  ;;  %v14276_v26 = vld [vmem:[%s22812_s3 + $0x20] sm:$0xff]  ;;  %v14277_v14 = vld [vmem:[%s22812_s3 + $0x28] sm:$0xff] }
 0x578   : > { %v11808_v2 = vmul.f32 %v15672_v53, %v10192_v6  ;;  %v10129_v44 = vsub.f32 2.0, %v22429_v30  ;;  %14007 = vrot.lane.b32.xlu1 %v13844_v63, %s16368_s21  ;;  %v10194_v56 = vmul.f32 %v22284_v8, %v10130_v59  ;;  %v16040_v40 = vpack.c.bf16 %v14273_v62, %v14272_v49  ;;  %v15675_v9 = vpop.f32.mrb[74].mxu1 }
 0x579   : > { %v10186_v47 = vmul.f32 %v23608_v21, %v23607_v20  ;;  %v11807_v29 = vmul.f32 %v11728_v34, %v10191_v32  ;;  %v23609_v22 = vsub.f32 2.0, %v22197_v1  ;;  %v16044_v63 = vpack.c.bf16 %v14275_v4, %v14274_v7  ;;  %v11738_v24 = vpop.f32.mrb[75].mxu1 }
 0x57a   : > { %v12539_v12 = vcombine.low %v11800_v0, %v11808_v2  ;;  %v12540_v58 = vcombine.high %v11800_v0, %v11808_v2  ;;  %v22523_v42 = vmul.f32 %v15675_v9, %v10194_v56  ;;  %16041 = vmatprep.subr.bf16.mxu0 %v16040_v40  ;;  %v16048_v6 = vpack.c.bf16 %v14277_v14, %v14276_v26 }
 0x57b   : > { %v10185_v30 = vmul.f32 %v23610_v16, %v23609_v22  ;;  %v22521_v41 = vmul.f32 %v15647_v15, %v10186_v47  ;;  %v12403_v8 = vcombine.low %v11799_v18, %v11807_v29  ;;  %v12404_v52 = vcombine.high %v11799_v18, %v11807_v29  ;;  %16043 = vmatpush3.bf16.msra.mxu0 %v16040_v40 }
 0x57c   : > { %v12547_v50 = vrot.slane %v12539_v12, %v23481_v27  ;;  %v12554_v1 = vrot.slane %v12540_v58, %v23481_v27  ;;  %v10125_v0 = vsub.f32 2.0, %v22292_v19  ;;  %14041 = vrot.lane.b32.xlu0 %v13981_v36, %s16367_s20  ;;  %14039 = vrot.lane.b32.xlu1 %v13845_v11, %s16367_s20  ;;  %v14278_v19 = vld [vmem:[%s22812_s3 + $0x30] sm:$0xff]  ;;  %v14279_v36 = vld [vmem:[%s22812_s3 + $0x38] sm:$0xff]  ;;  %v10193_v47 = vmul.f32 %v22309_v39, %v10129_v44 }
 0x57d   : > { %v22525_v59 = vmul.f32 %v11544_v5, %v10185_v30  ;;  %v12411_v15 = vrot.slane %v12403_v8, %v23481_v27  ;;  %v12418_v18 = vrot.slane %v12404_v52, %v23481_v27  ;;  %v12811_v5 = vcombine.low %v22521_v41, %v22523_v42  ;;  %16045 = vmatprep.subr.bf16.mxu0 %v16044_v63 }
 0x57e   : > { %v12587_v53 = vcombine.low %v12531_v43, %v12547_v50  ;;  %v12588_v49 = vcombine.high %v12531_v43, %v12547_v50  ;;  %v12603_v62 = vcombine.low %v22488_v38, %v12554_v1  ;;  %v12604_v32 = vcombine.high %v22488_v38, %v12554_v1  ;;  %v15661_v43 = vpop.f32.mrb[66].mxu0  ;;  %v23611_v50 = vld [vmem:[#allocation43_spill] sm:$0xff] }
 0x57f   : > { %v12451_v11 = vcombine.low %v12395_v25, %v12411_v15  ;;  %v12452_v34 = vcombine.high %v12395_v25, %v12411_v15  ;;  %v12467_v7 = vcombine.low %v22503_v46, %v12418_v18  ;;  %v12468_v4 = vcombine.high %v22503_v46, %v12418_v18  ;;  %v11641_v2 = vpop.f32.mrb[67].mxu0  ;;  %16047 = vmatpush3.bf16.msra.mxu0 %v16044_v63 }
 0x580   : > { %v12595_v20 = vrot.slane %v12587_v53, %v16617_v13  ;;  %v12602_v38 = vrot.slane %v12588_v49, %v16617_v13  ;;  %v12611_v21 = vrot.slane %v12603_v62, %v16617_v13  ;;  %v10126_v29 = vsub.f32 2.0, %v22425_v57  ;;  %14073 = vrot.lane.b32.xlu0 %v13982_v45, %s16369_s22  ;;  %14071 = vrot.lane.b32.xlu1 %v13846_v61, %s16369_s22  ;;  %v23612_v53 = vld [vmem:[#allocation20_spill] sm:$0xff] }
 0x581   : > { %v12618_v25 = vrot.slane %v12604_v32, %v16617_v13  ;;  %v12459_v46 = vrot.slane %v12451_v11, %v16617_v13  ;;  %v16052_v56 = vpack.c.bf16 %v14279_v36, %v14278_v19  ;;  %v12466_v39 = vrot.slane %v12452_v34, %v16617_v13  ;;  %16049 = vmatprep.subr.bf16.mxu0 %v16048_v6 }
 0x582   : > { %v14922_v40 = vcombine.low %v12595_v20, %v12602_v38  ;;  %v14924_v26 = vcombine.high %v12595_v20, %v12602_v38  ;;  %v12475_v44 = vrot.slane %v12467_v7, %v16617_v13  ;;  %v12482_v22 = vrot.slane %v12468_v4, %v16617_v13 }
 0x583   : > { %v14926_v57 = vcombine.low %v12611_v21, %v12618_v25  ;;  %v14928_v14 = vcombine.high %v12611_v21, %v12618_v25  ;;  %v11809_v17 = vmul.f32 %v11738_v24, %v10193_v47  ;;  %v14914_v61 = vcombine.low %v12459_v46, %v12466_v39  ;;  %16051 = vmatpush3.bf16.msra.mxu0 %v16048_v6  ;;  %v22584_v6 = vpop.permute.xlu1 %14029 }
 0x584   : > { %v22562_v3 = vrot.slane %v14922_v40, %v23481_v27  ;;  %v22565_v45 = vrot.slane %v14924_v26, %v23481_v27  ;;  %v14916_v16 = vcombine.high %v12459_v46, %v12466_v39  ;;  %v14918_v58 = vcombine.low %v12475_v44, %v12482_v22  ;;  %16053 = vmatprep.subr.bf16.mxu0 %v16052_v56 }
 0x585   : > { %v22568_v30 = vrot.slane %v14926_v57, %v23481_v27  ;;  %v22571_v12 = vrot.slane %v14928_v14, %v23481_v27  ;;  %v14920_v9 = vcombine.high %v12475_v44, %v12482_v22  ;;  %v22574_v63 = vrot.slane %v14914_v61, %v23481_v27 }
 0x586   : > { %v22577_v8 = vrot.slane %v14916_v16, %v23481_v27  ;;  %v12812_v52 = vcombine.high %v22521_v41, %v22523_v42  ;;  %v10190_v24 = vmul.f32 %v22303_v35, %v10126_v29  ;;  %v11798_v1 = vmul.f32 %v23611_v50, %v22455_v48 }
 0x587   : > { %v12675_v15 = vcombine.low %v22525_v59, %v11809_v17  ;;  %v10189_v18 = vmul.f32 %v22238_v31, %v10125_v0  ;;  %v11797_v49 = vmul.f32 %v23612_v53, %v22460_v23  ;;  %v22591_v62 = vrot.slane %v14918_v58, %v23481_v27  ;;  %16055 = vmatpush3.bf16.msra.mxu0 %v16052_v56 }
 0x588   : > { %v12676_v32 = vcombine.high %v22525_v59, %v11809_v17  ;;  %v11806_v41 = vmul.f32 %v15661_v43, %v10190_v24  ;;  %v22595_v35 = vrot.slane %v14920_v9, %v23481_v27  ;;  %v13659_v42 = vcombine.low %v22562_v3, %v22565_v45  ;;  %v22628_v9 = vpop.permute.xlu0 %13997 }
 0x589   : > { %v11805_v48 = vmul.f32 %v11641_v2, %v10189_v18  ;;  %v13691_v31 = vcombine.low %v22568_v30, %v22571_v12  ;;  %v12819_v0 = vrot.slane %v12811_v5, %v23481_v27  ;;  %v13523_v36 = vcombine.low %v22574_v63, %v22577_v8  ;;  %v22612_v5 = vpop.permute.xlu1 %14061 }
 0x58a   : > { %v12795_v23 = vcombine.low %v11798_v1, %v11806_v41  ;;  %v12796_v19 = vcombine.high %v11798_v1, %v11806_v41  ;;  %v12826_v59 = vrot.slane %v12812_v52, %v23481_v27  ;;  %v12683_v11 = vrot.slane %v12675_v15, %v23481_v27 }
 0x58b   : > { %v12659_v34 = vcombine.low %v11797_v49, %v11805_v48  ;;  %v12660_v7 = vcombine.high %v11797_v49, %v11805_v48  ;;  %v12690_v4 = vrot.slane %v12676_v32, %v23481_v27  ;;  %v22610_v38 = vrot.slane %v13659_v42, %v16617_v13 }
 0x58c   : > { %v12803_v43 = vrot.slane %v12795_v23, %v23481_v27  ;;  %v12810_v20 = vrot.slane %v12796_v19, %v23481_v27  ;;  %v13555_v2 = vcombine.low %v22591_v62, %v22595_v35  ;;  %v13660_v29 = vcombine.high %v22562_v3, %v22565_v45 }
 0x58d   : > { %v12667_v21 = vrot.slane %v12659_v34, %v23481_v27  ;;  %v12674_v47 = vrot.slane %v12660_v7, %v23481_v27  ;;  %v13699_v1 = vrot.slane %v13691_v31, %v16617_v13  ;;  %v22631_v15 = vpop.permute.xlu1 %13995 }
 0x58e   : > { %v12859_v25 = vcombine.low %v12803_v43, %v12819_v0  ;;  %v12860_v46 = vcombine.high %v12803_v43, %v12819_v0  ;;  %v12875_v56 = vcombine.low %v12810_v20, %v12826_v59  ;;  %v12876_v40 = vcombine.high %v12810_v20, %v12826_v59 }
 0x58f   : > { %v12723_v26 = vcombine.low %v12667_v21, %v12683_v11  ;;  %v12724_v39 = vcombine.high %v12667_v21, %v12683_v11  ;;  %v12739_v44 = vcombine.low %v12674_v47, %v12690_v4  ;;  %v12740_v57 = vcombine.high %v12674_v47, %v12690_v4  ;;  %v22648_v21 = vpop.permute.xlu0 %14059 }
 0x590   : > { %v12867_v14 = vrot.slane %v12859_v25, %v16617_v13  ;;  %v12874_v22 = vrot.slane %v12860_v46, %v16617_v13  ;;  %v12883_v17 = vrot.slane %v12875_v56, %v16617_v13  ;;  %v12890_v61 = vrot.slane %v12876_v40, %v16617_v13 }
 0x591   : > { %v12731_v16 = vrot.slane %v12723_v26, %v16617_v13  ;;  %v12738_v3 = vrot.slane %v12724_v39, %v16617_v13  ;;  %v12747_v45 = vrot.slane %v12739_v44, %v16617_v13  ;;  %v12754_v58 = vrot.slane %v12740_v57, %v16617_v13 }
 0x592   : > { %v14938_v52 = vcombine.low %v12867_v14, %v12874_v22  ;;  %v14940_v24 = vcombine.high %v12867_v14, %v12874_v22  ;;  %v14942_v50 = vcombine.low %v12883_v17, %v12890_v61  ;;  %v14944_v18 = vcombine.high %v12883_v17, %v12890_v61 }
 0x593   : > { %v14930_v53 = vcombine.low %v12731_v16, %v12738_v3  ;;  %v14932_v49 = vcombine.high %v12731_v16, %v12738_v3  ;;  %v14934_v32 = vcombine.low %v12747_v45, %v12754_v58  ;;  %v14936_v42 = vcombine.high %v12747_v45, %v12754_v58 }
 0x594   : > { %v13866_v41 = vrot.slane %v14938_v52, %v23481_v27  ;;  %v13882_v48 = vrot.slane %v14940_v24, %v23481_v27  ;;  %v13531_v0 = vrot.slane %v13523_v36, %v16617_v13  ;;  %v13898_v23 = vrot.slane %v14942_v50, %v23481_v27 }
 0x595   : > { %v13730_v19 = vrot.slane %v14930_v53, %v23481_v27  ;;  %v13746_v59 = vrot.slane %v14932_v49, %v23481_v27  ;;  %v13762_v31 = vrot.slane %v14934_v32, %v23481_v27  ;;  %v13914_v11 = vrot.slane %v14944_v18, %v23481_v27 }
 0x596   : > { %v13778_v34 = vrot.slane %v14936_v42, %v23481_v27  ;;  %v13711_v7 = vcombine.low %v22610_v38, %v13699_v1  ;;  %v13563_v4 = vrot.slane %v13555_v2, %v16617_v13  ;;  %v13712_v43 = vcombine.high %v22610_v38, %v13699_v1  ;;  %v22655_v2 = vpop.permute.xlu1 %14027 }
 0x597   : > { %v13674_v36 = vrot.slane %v13660_v29, %v16617_v13  ;;  %v13692_v20 = vcombine.high %v22568_v30, %v22571_v12  ;;  %v13524_v27 = vcombine.high %v22574_v63, %v22577_v8  ;;  %v13556_v46 = vcombine.high %v22591_v62, %v22595_v35  ;;  %v22662_v8 = vpop.permute.xlu0 %14001 }
 0x598   : > { %14101 = vrot.lane.b32.xlu0 %v13711_v7, %s16370_s23  ;;  %v13575_v47 = vcombine.low %v13531_v0, %v13563_v4  ;;  %v13576_v25 = vcombine.high %v13531_v0, %v13563_v4  ;;  %v13795_v29 = vcombine.low %v13730_v19, %v13746_v59  ;;  %v13827_v56 = vcombine.low %v13762_v31, %v13778_v34 }
 0x599   : > { %v13706_v38 = vrot.slane %v13692_v20, %v16617_v13  ;;  %v13538_v30 = vrot.slane %v13524_v27, %v16617_v13  ;;  %v13570_v12 = vrot.slane %v13556_v46, %v16617_v13  ;;  %v13931_v40 = vcombine.low %v13866_v41, %v13882_v48  ;;  %v23615_v46 = vld [vmem:[#allocation53_spill] sm:$0xff] }
 0x59a   : > { %14099 = vrot.lane.b32.xlu1 %v13575_v47, %s16370_s23  ;;  %v13963_v26 = vcombine.low %v13898_v23, %v13914_v11  ;;  %v13803_v63 = vrot.slane %v13795_v29, %v16617_v13  ;;  %v13835_v57 = vrot.slane %v13827_v56, %v16617_v13  ;;  %v13796_v17 = vcombine.high %v13730_v19, %v13746_v59  ;;  %v22671_v24 = vpop.permute.xlu1 %13999  ;;  %v23613_v47 = vld [vmem:[#allocation80_spill] sm:$0xff] }
 0x59b   : > { %v13713_v39 = vcombine.low %v13674_v36, %v13706_v38  ;;  %v13714_v44 = vcombine.high %v13674_v36, %v13706_v38  ;;  %v13577_v62 = vcombine.low %v13538_v30, %v13570_v12  ;;  %v13578_v35 = vcombine.high %v13538_v30, %v13570_v12  ;;  %v22684_v19 = vpop.permute.xlu0 %14033  ;;  %v23616_v38 = vld [vmem:[#allocation59_spill] sm:$0xff] }
 0x59c   : > { %14133 = vrot.lane.b32.xlu0 %v13712_v43, %s16371_s24  ;;  %v13939_v14 = vrot.slane %v13931_v40, %v16617_v13  ;;  %v13971_v22 = vrot.slane %v13963_v26, %v16617_v13  ;;  %v13828_v61 = vcombine.high %v13762_v31, %v13778_v34  ;;  %v13932_v16 = vcombine.high %v13866_v41, %v13882_v48 }
 0x59d   : > { %v13848_v3 = vcombine.high %v13803_v63, %v13835_v57  ;;  %v13964_v45 = vcombine.high %v13898_v23, %v13914_v11  ;;  %v13847_v58 = vcombine.low %v13803_v63, %v13835_v57  ;;  %v13707_v52 = vcombine.low %v22365_v51, %v22368_v60 }
 0x59e   : > { %14131 = vrot.lane.b32.xlu1 %v13576_v25, %s16371_s24  ;;  %v13983_v50 = vcombine.low %v13939_v14, %v13971_v22  ;;  %v13810_v1 = vrot.slane %v13796_v17, %v16617_v13  ;;  %v13842_v18 = vrot.slane %v13828_v61, %v16617_v13  ;;  %v13984_v53 = vcombine.high %v13939_v14, %v13971_v22  ;;  %v23614_v25 = vld [vmem:[#allocation83_spill] sm:$0xff]  ;;  %v23618_v17 = vld [vmem:[#allocation5_spill] sm:$0xff] }
 0x59f   : > { %v13946_v49 = vrot.slane %v13932_v16, %v16617_v13  ;;  %v13978_v32 = vrot.slane %v13964_v45, %v16617_v13  ;;  %v13571_v41 = vcombine.low %v22371_v37, %v22374_v10  ;;  %v13979_v0 = vcombine.low %v22411_v28, %v22414_v33  ;;  %v14032_v13 = vpop.permute.xlu1 %14031  ;;  %v14066_v11 = vpop.permute.xlu0 %14065  ;;  %v23617_v22 = vld [vmem:[#allocation15_spill] sm:$0xff] }
 0x5a0   : > { %14165 = vrot.lane.b32.xlu0 %v13713_v39, %s16372_s25  ;;  %v13849_v48 = vcombine.low %v13810_v1, %v13842_v18  ;;  %v13850_v42 = vcombine.high %v13810_v1, %v13842_v18  ;;  %v13843_v23 = vcombine.low %v22417_v55, %v22420_v54  ;;  %v13027_v27 = vcombine.low %v23614_v25, %v23613_v47 }
 0x5a1   : > { %v13985_v59 = vcombine.low %v13946_v49, %v13978_v32  ;;  %v13986_v31 = vcombine.high %v13946_v49, %v13978_v32  ;;  %v13163_v29 = vcombine.low %v23616_v38, %v23615_v46  ;;  %v23620_v49 = vld [vmem:[#allocation55_spill] sm:$0xff] }
 0x5a2   : > { %14163 = vrot.lane.b32.xlu1 %v13577_v62, %s16372_s25  ;;  %v14211_v30 = vsel %vm7474_vm1, %v13027_v27, %v22631_v15 }
 0x5a3   : > { %v14064_v34 = vpop.permute.xlu1 %14063  ;;  %v14212_v40 = vsel %vm7474_vm1, %v13163_v29, %v22628_v9  ;;  %v14220_v26 = vsel %vm14219_vm8, %v14211_v30, %v22655_v2 }
 0x5a4   : > { %14197 = vrot.lane.b32.xlu0 %v13714_v44, %s16373_s27  ;;  %v14221_v44 = vsel %vm14219_vm8, %v14212_v40, %v22584_v6  ;;  %v14229_v63 = vsel %vm14228_vm9, %v14220_v26, %v22648_v21  ;;  %v13299_v21 = vcombine.low %v23618_v17, %v23617_v22 }
 0x5a5   : > { %v14230_v15 = vsel %vm14228_vm9, %v14221_v44, %v22612_v5 }
 0x5a6   : > { %14195 = vrot.lane.b32.xlu1 %v13578_v35, %s16373_s27  ;;  %v14213_v45 = vsel %vm7474_vm1, %v13299_v21, %v22671_v24 }
 0x5a7   : > { %v14094_v7 = vpop.permute.xlu0 %14093 }
 0x5a8   : > { %14135 = vrot.lane.b32.xlu0 %v13848_v3, %s16371_s24  ;;  %v14238_v2 = vsel %vm9362_vm5, %v14230_v15, %v14094_v7 }
 0x5aa   : > { %14105 = vrot.lane.b32.xlu1 %v13983_v50, %s16370_s23  ;;  %v14124_v4 = vpop.permute.xlu1 %14123 }
 0x5ab   : > { %v14126_v43 = vpop.permute.xlu0 %14125 }
 0x5ac   : > { %14167 = vrot.lane.b32.xlu0 %v13849_v48, %s16372_s25  ;;  %v14247_v57 = vsel %vm14245_vm10, %v14238_v2, %v14126_v43 }
 0x5ae   : > { %14137 = vrot.lane.b32.xlu1 %v13984_v53, %s16371_s24  ;;  %v14156_v36 = vpop.permute.xlu1 %14155  ;;  %v23619_v53 = vld [vmem:[#allocation52_spill] sm:$0xff] }
 0x5af   : > { %v14158_v20 = vpop.permute.xlu0 %14157  ;;  %v13435_v32 = vcombine.low %v23620_v49, %v23619_v53 }
 0x5b0   : > { %14199 = vrot.lane.b32.xlu0 %v13850_v42, %s16373_s27  ;;  %v14256_v61 = vsel %vm14254_vm11, %v14247_v57, %v14158_v20 }
 0x5b2   : > { %14169 = vrot.lane.b32.xlu1 %v13985_v59, %s16372_s25  ;;  %v14188_v56 = vpop.permute.xlu1 %14187  ;;  %v14214_v59 = vsel %vm7474_vm1, %v13435_v32, %v22662_v8  ;;  %s226_s25 = scalar_lea.vmem %s22814_s5, %s14486_s30 }
 0x5b3   : > { %v14190_v12 = vpop.permute.xlu0 %14189 }
 0x5b4   : > { %v14265_v3 = vsel %vm14263_vm12, %v14256_v61, %v14190_v12 }
 0x5b6   : > { %14103 = vrot.lane.b32.xlu1 %v13847_v58, %s16370_s23  ;;  %v14096_v39 = vpop.permute.xlu1 %14095  ;;  %v14222_v58 = vsel %vm14219_vm8, %v14213_v45, %v14032_v13  ;;  %v14223_v13 = vsel %vm14219_vm8, %v14214_v59, %v22684_v19 }
 0x5b7   : > { %v14231_v1 = vsel %vm14228_vm9, %v14222_v58, %v14064_v34 }
 0x5b8   : > { %v14092_v62 = vpop.permute.xlu0 %14091  ;;  %v14239_v48 = vsel %vm9362_vm5, %v14231_v1, %v14096_v39 }
 0x5b9   : > { %v14237_v9 = vsel %vm9362_vm5, %v14229_v63, %v14092_v62 }
 0x5ba   : > { %14201 = vrot.lane.b32.xlu1 %v13986_v31, %s16373_s27  ;;  %v14246_v35 = vsel %vm14245_vm10, %v14237_v9, %v14124_v4  ;;  %v14128_v14 = vpop.permute.xlu1 %14127  ;;  %v14232_v4 = vsel %vm14228_vm9, %v14223_v13, %v14066_v11 }
 0x5bb   : > { %v14255_v6 = vsel %vm14254_vm11, %v14246_v35, %v14156_v36  ;;  %v14248_v42 = vsel %vm14245_vm10, %v14239_v48, %v14128_v14 }
 0x5bc   : > { %v14098_v16 = vpop.permute.xlu0 %14097  ;;  %v14264_v5 = vsel %vm14263_vm12, %v14255_v6, %v14188_v56 }
 0x5bd   : > { %15692 = vmatprep.mubr.msk.f32.mxu0 %vm264_vm0, %v14264_v5  ;;  %v14240_v43 = vsel %vm9362_vm5, %v14232_v4, %v14098_v16 }
 0x5be   : > { %15693 = vmatmul.mubr.msk.f32.vlgmr.msra.gmra.mrb[68].mxu0 %vm264_vm0, %v14265_v3 }
 0x5bf   : > { %v14160_v50 = vpop.permute.xlu1 %14159 }
 0x5c0   : > { %v14257_v24 = vsel %vm14254_vm11, %v14248_v42, %v14160_v50 }
 0x5c3   : > { %v14130_v18 = vpop.permute.xlu0 %14129 }
 0x5c4   : > { %v14192_v31 = vpop.permute.xlu1 %14191  ;;  %v14249_v36 = vsel %vm14245_vm10, %v14240_v43, %v14130_v18 }
 0x5c5   : > { %v14266_v34 = vsel %vm14263_vm12, %v14257_v24, %v14192_v31 }
 0x5c6   : > { %15695 = vmatprep.mubr.msk.f32.mxu0 %vm264_vm0, %v14266_v34 }
 0x5c7   : > { %v14162_v7 = vpop.permute.xlu0 %14161 }
 0x5c8   : > { %v14258_v20 = vsel %vm14254_vm11, %v14249_v36, %v14162_v7  ;;  %v14945_v7 = vld [vmem:[%s22813_s4] ss:$0 sm:$0xff] }
 0x5cb   : > { %v14194_v8 = vpop.permute.xlu0 %14193 }
 0x5cc   : > { %v14267_v47 = vsel %vm14263_vm12, %v14258_v20, %v14194_v8 }
 0x5cd   : > { %15696 = vmatmul.mubr.msk.f32.gmra.mrb[70].mxu0 %vm264_vm0, %v14267_v47 }
 0x5dd   : > { %v14006_v25 = vpop.permute.xlu0 %14005  ;;  %v14004_v19 = vpop.permute.xlu1 %14003 }
 0x5de   : > { %v14215_v9 = vsel %vm7474_vm1, %v13571_v41, %v14004_v19  ;;  %v14216_v2 = vsel %vm7474_vm1, %v13707_v52, %v14006_v25 }
 0x5e1   : > { %v14038_v27 = vpop.permute.xlu0 %14037  ;;  %v14036_v46 = vpop.permute.xlu1 %14035 }
 0x5e2   : > { %v14224_v35 = vsel %vm14219_vm8, %v14215_v9, %v14036_v46  ;;  %v14225_v6 = vsel %vm14219_vm8, %v14216_v2, %v14038_v27 }
 0x5e5   : > { %v14070_v38 = vpop.permute.xlu0 %14069 }
 0x5e6   : > { %v14068_v29 = vpop.permute.xlu1 %14067  ;;  %v14234_v22 = vsel %vm14228_vm9, %v14225_v6, %v14070_v38 }
 0x5e7   : > { %v14233_v14 = vsel %vm14228_vm9, %v14224_v35, %v14068_v29 }
 0x5e9   : > { %v14010_v11 = vpop.permute.xlu0 %14009 }
 0x5ea   : > { %v14008_v56 = vpop.permute.xlu1 %14007  ;;  %v14218_v18 = vsel %vm7474_vm1, %v13979_v0, %v14010_v11 }
 0x5eb   : > { %v14217_v1 = vsel %vm7474_vm1, %v13843_v23, %v14008_v56 }
 0x5ee   : > { %v14042_v30 = vpop.permute.xlu0 %14041  ;;  %v14040_v12 = vpop.permute.xlu1 %14039 }
 0x5ef   : > { %v14226_v53 = vsel %vm14219_vm8, %v14217_v1, %v14040_v12  ;;  %v14227_v49 = vsel %vm14219_vm8, %v14218_v18, %v14042_v30 }
 0x5f2   : > { %v14074_v40 = vpop.permute.xlu0 %14073  ;;  %v14072_v26 = vpop.permute.xlu1 %14071 }
 0x5f3   : > { %v14235_v32 = vsel %vm14228_vm9, %v14226_v53, %v14072_v26  ;;  %v14236_v42 = vsel %vm14228_vm9, %v14227_v49, %v14074_v40 }
 0x60a   : > { %v14102_v39 = vpop.permute.xlu0 %14101 }
 0x60b   : > { %v14242_v37 = vsel %vm9362_vm5, %v14234_v22, %v14102_v39 }
 0x60c   : > { %v14100_v44 = vpop.permute.xlu1 %14099 }
 0x60d   : > { %v14241_v17 = vsel %vm9362_vm5, %v14233_v14, %v14100_v44 }
 0x60e   : > { %v14134_v63 = vpop.permute.xlu0 %14133 }
 0x60f   : > { %v14251_v51 = vsel %vm14245_vm10, %v14242_v37, %v14134_v63 }
 0x610   : > { %v14132_v62 = vpop.permute.xlu1 %14131 }
 0x611   : > { %v14250_v10 = vsel %vm14245_vm10, %v14241_v17, %v14132_v62 }
 0x612   : > { %v14166_v15 = vpop.permute.xlu0 %14165 }
 0x613   : > { %v14260_v21 = vsel %vm14254_vm11, %v14251_v51, %v14166_v15 }
 0x614   : > { %v14164_v57 = vpop.permute.xlu1 %14163 }
 0x615   : > { %v14259_v60 = vsel %vm14254_vm11, %v14250_v10, %v14164_v57 }
 0x616   : > { %v14198_v41 = vpop.permute.xlu0 %14197 }
 0x617   : > { %v14269_v16 = vsel %vm14263_vm12, %v14260_v21, %v14198_v41 }
 0x618   : > { %v14196_v52 = vpop.permute.xlu1 %14195 }
 0x619   : > { %v14268_v61 = vsel %vm14263_vm12, %v14259_v60, %v14196_v52 }
 0x61a   : > { %15698 = vmatprep.mubr.msk.f32.mxu0 %vm264_vm0, %v14268_v61  ;;  %v14136_v3 = vpop.permute.xlu0 %14135 }
 0x61b   : > { %15699 = vmatmul.mubr.msk.f32.gmra.mrb[72].mxu0 %vm264_vm0, %v14269_v16 }
 0x61c   : > { %v14106_v5 = vpop.permute.xlu1 %14105 }
 0x61d   : > { %v14244_v55 = vsel %vm9362_vm5, %v14236_v42, %v14106_v5 }
 0x61e   : > { %v14168_v50 = vpop.permute.xlu0 %14167 }
 0x620   : > { %v14138_v45 = vpop.permute.xlu1 %14137 }
 0x621   : > { %v14253_v28 = vsel %vm14245_vm10, %v14244_v55, %v14138_v45 }
 0x622   : > { %v14200_v33 = vpop.permute.xlu0 %14199 }
 0x624   : > { %v14170_v58 = vpop.permute.xlu1 %14169 }
 0x625   : > { %v14262_v23 = vsel %vm14254_vm11, %v14253_v28, %v14170_v58 }
 0x628   : > { %v14104_v48 = vpop.permute.xlu1 %14103 }
 0x629   : > { %v14243_v59 = vsel %vm9362_vm5, %v14235_v32, %v14104_v48 }
 0x62a   : > { %v14252_v54 = vsel %vm14245_vm10, %v14243_v59, %v14136_v3 }
 0x62b   : > { %v14261_v0 = vsel %vm14254_vm11, %v14252_v54, %v14168_v50 }
 0x62c   : > { %v14202_v24 = vpop.permute.xlu1 %14201  ;;  %v14270_v31 = vsel %vm14263_vm12, %v14261_v0, %v14200_v33 }
 0x62d   : > { %v14271_v13 = vsel %vm14263_vm12, %v14262_v23, %v14202_v24  ;;  %15701 = vmatprep.mubr.msk.f32.mxu0 %vm264_vm0, %v14270_v31 }
 0x62e   : > { %15702 = vmatmul.mubr.msk.f32.gmra.mrb[74].mxu0 %vm264_vm0, %v14271_v13 }
 0x691   : > { %v15694_v34 = vpop.f32.mrb[68].mxu0 }
 0x692   : > { %v14383_v4 = vadd.f32 %v15694_v34, %v14945_v7  ;;  %v14377_v43 = vpop.f32.mrb[69].mxu0 }
 0x693   : > { %v14378_v36 = vadd.f32 %v14945_v7, %v14377_v43 }
 0x694   : > { %14417 = vst.msk [vmem:[%s226_s25 + $0x8] sm:$0xff] %vm264_vm0, %v14383_v4 }
 0x695   : > { %14416 = vst.msk [vmem:[%s226_s25] sm:$0xff] %vm264_vm0, %v14378_v36 }
 0x6a0   : > { %v15697_v20 = vpop.f32.mrb[70].mxu0 }
 0x6a1   : > { %v14393_v8 = vadd.f32 %v15697_v20, %v14945_v7  ;;  %v14387_v47 = vpop.f32.mrb[71].mxu0 }
 0x6a2   : > { %v14388_v25 = vadd.f32 %v14945_v7, %v14387_v47 }
 0x6a3   : > { %14419 = vst.msk [vmem:[%s226_s25 + $0x18] sm:$0xff] %vm264_vm0, %v14393_v8 }
 0x6a4   : > { %14418 = vst.msk [vmem:[%s226_s25 + $0x10] sm:$0xff] %vm264_vm0, %v14388_v25 }
 0x6ee   : > { %v15700_v19 = vpop.f32.mrb[72].mxu0 }
 0x6ef   : > { %v14403_v27 = vadd.f32 %v15700_v19, %v14945_v7  ;;  %v14397_v46 = vpop.f32.mrb[73].mxu0 }
 0x6f0   : > { %v14398_v38 = vadd.f32 %v14945_v7, %v14397_v46 }
 0x6f1   : > { %14421 = vst.msk [vmem:[%s226_s25 + $0x28] sm:$0xff] %vm264_vm0, %v14403_v27 }
 0x6f2   : > { %14420 = vst.msk [vmem:[%s226_s25 + $0x20] sm:$0xff] %vm264_vm0, %v14398_v38 }
 0x701   : > { %v15703_v29 = vpop.f32.mrb[74].mxu0 }
 0x702   : > { %v14413_v11 = vadd.f32 %v15703_v29, %v14945_v7  ;;  %v14407_v56 = vpop.f32.mrb[75].mxu0 }
 0x703   : > { %v14408_v30 = vadd.f32 %v14945_v7, %v14407_v56 }
 0x704   : > { %14423 = vst.msk [vmem:[%s226_s25 + $0x38] sm:$0xff] %vm264_vm0, %v14413_v11 }
 0x705   : > { %14422 = vst.msk [vmem:[%s226_s25 + $0x30] sm:$0xff] %vm264_vm0, %v14408_v30 }
 0x706 PF: > { %s15_s18 = sadd.s32 1, %s16353_s18  }
 0x707   : > { %p12_p4 = scmp.ge.s32.totalorder %s15_s18, 4  }
 0x709   :  { %14 = sbr.rel (!%p12_p4) target bundleno = 1 (0x1), region = 70 }

</bundles_post_ra>
